<compile_context>
chip_gen: v6e
topology: v6e:2x2x1
jax: 0.10.0
libtpu: 0.0.40
codegen_flags: <defaults>
</compile_context>

<pallas_src>
import functools

import jax
import jax.numpy as jnp
from jax import lax
from jax.experimental import pallas as pl
from jax.experimental.pallas import tpu as pltpu


def _ffn_kernel(x_ref, wraw_ref, w_in_ref, b_in_ref, w3_ref, b3_ref,
                w5_ref, b5_ref, w_out_ref, b_out_ref, out_ref, pad_ref,
                *, H, W, hidden):
    PAD = 2
    HP, WP = H + 2 * PAD, W + 2 * PAD
    ch2 = 2 * hidden

    # ---- project_in: 1x1 conv == matmul (bf16 MXU operands, f32 accumulate) ----
    x2d = x_ref[0]                                            # (H*W, dim) f32
    y = jnp.dot(x2d.astype(jnp.bfloat16), w_in_ref[...],
                preferred_element_type=jnp.float32) + b_in_ref[...]
    # y channel order is [even-of-group | odd-of-group] (wrapper permuted w_in).

    # ---- padded scratch: zero ONLY the 2-wide border, overwrite the interior ---
    pad_ref[0:PAD, :, :] = jnp.zeros((PAD, WP, ch2), jnp.float32)
    pad_ref[PAD + H:HP, :, :] = jnp.zeros((PAD, WP, ch2), jnp.float32)
    pad_ref[:, 0:PAD, :] = jnp.zeros((HP, PAD, ch2), jnp.float32)
    pad_ref[:, PAD + W:WP, :] = jnp.zeros((HP, PAD, ch2), jnp.float32)
    pad_ref[PAD:PAD + H, PAD:PAD + W, :] = y.reshape(H, W, ch2)

    # ---- fused grouped dwconv3 + dwconv5 over one lane-dense scratch -----------
    w3 = w3_ref[...]                                          # (9,  2*hidden), hoisted
    w5 = w5_ref[...]                                          # (25, 2*hidden), hoisted
    acc3 = jnp.zeros((H, W, ch2), jnp.float32)
    acc5 = jnp.zeros((H, W, ch2), jnp.float32)
    for kx in range(5):
        # One sublane-offset W slice per kx (5 total); every ky offset below is a
        # free leading-dim select of the loaded value.
        slab = pad_ref[:, kx:kx + W, :]                       # (H+4, W, 2*hidden)
        for ky in range(5):
            win = slab[ky:ky + H]                             # (H, W, 2*hidden)
            t5 = ky * 5 + kx
            acc5 = acc5 + win * w5[t5:t5 + 1]
            if 1 <= ky <= 3 and 1 <= kx <= 3:                 # inner 3x3 == dwconv3 taps
                t3 = (ky - 1) * 3 + (kx - 1)
                acc3 = acc3 + win * w3[t3:t3 + 1]

    # even-group half + odd-group half, plus bias
    x1 = acc3[:, :, :hidden] + acc3[:, :, hidden:] + b3_ref[...]
    x2 = acc5[:, :, :hidden] + acc5[:, :, hidden:] + b5_ref[...]

    # ---- combine: sigmoid(w)*x1 + (1 - sigmoid(w)*x2)  (exact torch math) ------
    wgt = jax.nn.sigmoid(wraw_ref[0])
    comb = wgt * x1 + (1.0 - wgt * x2)                        # (H, W, hidden) f32

    # ---- project_out: 1x1 conv == matmul (bf16 MXU operands, f32 accumulate) ---
    out = jnp.dot(comb.reshape(H * W, hidden).astype(jnp.bfloat16),
                  w_out_ref[...], preferred_element_type=jnp.float32)
    out_ref[0] = out + b_out_ref[...]


def feedforward_pallas(x_nchw, params, *, dim, hidden):
    """x_nchw: (B, dim, H, W) float32. Returns (B, dim, H, W) float32."""
    (w_raw, w_in_k, b_in_k, w3_k, b3_k, w5_k, b5_k, w_out_k, b_out_k) = params

    B, C, H, W = x_nchw.shape
    assert C == dim
    # NCHW -> (B, H*W, C): channels-last rows, matmul-ready for the 1x1 convs.
    x_rows = jnp.transpose(x_nchw, (0, 2, 3, 1)).reshape(B, H * W, dim)

    const = lambda *shape: pl.BlockSpec(shape, lambda b: tuple(0 for _ in shape))
    kernel = functools.partial(_ffn_kernel, H=H, W=W, hidden=hidden)

    out_rows = pl.pallas_call(
        kernel,
        out_shape=jax.ShapeDtypeStruct((B, H * W, dim), jnp.float32),
        grid_spec=pltpu.PrefetchScalarGridSpec(
            num_scalar_prefetch=0,
            grid=(B,),
            in_specs=[
                pl.BlockSpec((1, H * W, dim), lambda b: (b, 0, 0)),        # x
                pl.BlockSpec(memory_space=pltpu.MemorySpace.SMEM),         # raw gate scalar
                const(dim, 2 * hidden),                                    # w_in  (bf16)
                const(1, 2 * hidden),                                      # b_in
                const(9, 2 * hidden),                                      # w3 [even|odd]
                const(1, hidden),                                          # b3
                const(25, 2 * hidden),                                     # w5 [even|odd]
                const(1, hidden),                                          # b5
                const(hidden, dim),                                        # w_out (bf16)
                const(1, dim),                                             # b_out
            ],
            out_specs=pl.BlockSpec((1, H * W, dim), lambda b: (b, 0, 0)),
            scratch_shapes=[
                pltpu.VMEM((H + 4, W + 4, 2 * hidden), jnp.float32),       # merged padded scratch
            ],
        ),
        # Batch elements are independent: "parallel" lets v7x shard the batch axis
        # across its 2 TensorCores; harmless on v5e/v6e. For production (large H*W,
        # large hidden) add a spatial tile axis with a 2-row halo and set
        # vmem_limit_bytes for the 64 MiB v7x budget.
        compiler_params=pltpu.CompilerParams(dimension_semantics=("parallel",)),
    )(x_rows, w_raw, w_in_k, b_in_k, w3_k, b3_k, w5_k, b5_k, w_out_k, b_out_k)

    return jnp.transpose(out_rows.reshape(B, H, W, dim), (0, 3, 1, 2))


def make_params(key, dim, hidden):
    """PyTorch-layout parameters (deterministic) + kernel-layout views."""
    ks = jax.random.split(key, 8)
    scale = 0.1
    # PyTorch layouts
    w_in_pt = jax.random.normal(ks[0], (2 * hidden, dim, 1, 1), jnp.float32) * scale
    b_in_pt = jax.random.normal(ks[1], (2 * hidden,), jnp.float32) * scale
    w3_pt = jax.random.normal(ks[2], (hidden, 2, 3, 3), jnp.float32) * scale
    b3_pt = jax.random.normal(ks[3], (hidden,), jnp.float32) * scale
    w5_pt = jax.random.normal(ks[4], (hidden, 2, 5, 5), jnp.float32) * scale
    b5_pt = jax.random.normal(ks[5], (hidden,), jnp.float32) * scale
    w_out_pt = jax.random.normal(ks[6], (dim, hidden, 1, 1), jnp.float32) * scale
    b_out_pt = jax.random.normal(ks[7], (dim,), jnp.float32) * scale
    w_raw = jnp.array([0.8], jnp.float32)          # m = 0.8 as in __init__

    pt = (w_raw, w_in_pt, b_in_pt, w3_pt, b3_pt, w5_pt, b5_pt, w_out_pt, b_out_pt)

    # Kernel layouts: permute project_in output channels to [even-of-group | odd-of-group],
    # merge even/odd depthwise tap weights into (taps, 2*hidden) tables, and keep the
    # two MXU weight matrices in bf16 (f32 accumulation happens in-kernel).
    perm = jnp.concatenate([jnp.arange(0, 2 * hidden, 2),
                            jnp.arange(1, 2 * hidden, 2)])
    w_in_k = jnp.transpose(w_in_pt[perm, :, 0, 0], (1, 0)).astype(jnp.bfloat16)   # (dim, 2*hidden)
    b_in_k = b_in_pt[perm][None, :]                                               # (1, 2*hidden)
    w3e = jnp.transpose(w3_pt[:, 0], (1, 2, 0)).reshape(9, hidden)
    w3o = jnp.transpose(w3_pt[:, 1], (1, 2, 0)).reshape(9, hidden)
    w3_k = jnp.concatenate([w3e, w3o], axis=1)                                    # (9, 2*hidden)
    b3_k = b3_pt[None, :]                                                         # (1, hidden)
    w5e = jnp.transpose(w5_pt[:, 0], (1, 2, 0)).reshape(25, hidden)
    w5o = jnp.transpose(w5_pt[:, 1], (1, 2, 0)).reshape(25, hidden)
    w5_k = jnp.concatenate([w5e, w5o], axis=1)                                    # (25, 2*hidden)
    b5_k = b5_pt[None, :]                                                         # (1, hidden)
    w_out_k = jnp.transpose(w_out_pt[:, :, 0, 0], (1, 0)).astype(jnp.bfloat16)    # (hidden, dim)
    b_out_k = b_out_pt[None, :]                                                   # (1, dim)

    kparams = (w_raw, w_in_k, b_in_k, w3_k, b3_k, w5_k, b5_k, w_out_k, b_out_k)
    return pt, kparams


def ref_forward(x_nchw, pt_params, *, hidden):
    """Pure-JAX (XLA conv, f32) reference matching the PyTorch module exactly."""
    (w_raw, w_in, b_in, w3, b3, w5, b5, w_out, b_out) = pt_params
    dn = ("NCHW", "OIHW", "NCHW")
    y = lax.conv_general_dilated(x_nchw, w_in, (1, 1), "VALID",
                                 dimension_numbers=dn) + b_in[None, :, None, None]
    x1 = lax.conv_general_dilated(y, w3, (1, 1), [(1, 1), (1, 1)],
                                  feature_group_count=hidden,
                                  dimension_numbers=dn) + b3[None, :, None, None]
    x2 = lax.conv_general_dilated(y, w5, (1, 1), [(2, 2), (2, 2)],
                                  feature_group_count=hidden,
                                  dimension_numbers=dn) + b5[None, :, None, None]
    wgt = jax.nn.sigmoid(w_raw[0])
    z = wgt * x1 + (1.0 - wgt * x2)
    out = lax.conv_general_dilated(z, w_out, (1, 1), "VALID",
                                   dimension_numbers=dn) + b_out[None, :, None, None]
    return out


if __name__ == "__main__":
    B, dim, H, W = 2, 4, 16, 16
    ffn_expansion_factor = 2
    hidden = int(dim * ffn_expansion_factor)       # 8

    key = jax.random.PRNGKey(0)
    k_x, k_p = jax.random.split(key)
    x = jax.random.normal(k_x, (B, dim, H, W), jnp.float32)

    pt_params, k_params = make_params(k_p, dim, hidden)

    out = feedforward_pallas(x, k_params, dim=dim, hidden=hidden)
    out = jax.block_until_ready(out)

    ref = jax.block_until_ready(ref_forward(x, pt_params, hidden=hidden))
    assert out.shape == (B, dim, H, W)
    # bf16 MXU operands (f32 accumulation) -> slightly looser tolerance than pure f32.
    max_err = jnp.max(jnp.abs(out - ref))
    assert jnp.allclose(out, ref, rtol=2e-2, atol=2e-2), f"max abs err {max_err}"

    print("KERNEL_OK")
</pallas_src>

<mosaic_0001>
module attributes {stable_mosaic.version = 11 : i64} {
  func.func @_ffn_kernel(%arg0: i32, %arg1: memref<1x256x4xf32, #tpu.memory_space<vmem>>, %arg2: memref<1xf32, #tpu.memory_space<smem>>, %arg3: memref<4x16xbf16, #tpu.memory_space<vmem>>, %arg4: memref<1x16xf32, #tpu.memory_space<vmem>>, %arg5: memref<9x16xf32, #tpu.memory_space<vmem>>, %arg6: memref<1x8xf32, #tpu.memory_space<vmem>>, %arg7: memref<25x16xf32, #tpu.memory_space<vmem>>, %arg8: memref<1x8xf32, #tpu.memory_space<vmem>>, %arg9: memref<8x4xbf16, #tpu.memory_space<vmem>>, %arg10: memref<1x4xf32, #tpu.memory_space<vmem>>, %arg11: memref<1x256x4xf32, #tpu.memory_space<vmem>>, %arg12: memref<20x20x16xf32, #tpu.memory_space<vmem>>) attributes {dimension_semantics = [#tpu.dimension_semantics<parallel>], iteration_bounds = array<i64: 2>, scalar_prefetch = 0 : i64, scratch_operands = 1 : i64, tpu.core_type = #tpu.core_type<tc>, window_params = [{transform_indices = @transform_0, window_bounds = array<i64: 1, 256, 4>}, {transform_indices = @transform_1, window_bounds = array<i64: 1>}, {pipeline_mode = #tpu.pipeline_mode<synchronous>, transform_indices = @transform_2, window_bounds = array<i64: 4, 16>}, {pipeline_mode = #tpu.pipeline_mode<synchronous>, transform_indices = @transform_3, window_bounds = array<i64: 1, 16>}, {pipeline_mode = #tpu.pipeline_mode<synchronous>, transform_indices = @transform_4, window_bounds = array<i64: 9, 16>}, {pipeline_mode = #tpu.pipeline_mode<synchronous>, transform_indices = @transform_5, window_bounds = array<i64: 1, 8>}, {pipeline_mode = #tpu.pipeline_mode<synchronous>, transform_indices = @transform_6, window_bounds = array<i64: 25, 16>}, {pipeline_mode = #tpu.pipeline_mode<synchronous>, transform_indices = @transform_7, window_bounds = array<i64: 1, 8>}, {pipeline_mode = #tpu.pipeline_mode<synchronous>, transform_indices = @transform_8, window_bounds = array<i64: 8, 4>}, {pipeline_mode = #tpu.pipeline_mode<synchronous>, transform_indices = @transform_9, window_bounds = array<i64: 1, 4>}, {transform_indices = @transform_10, window_bounds = array<i64: 1, 256, 4>}]} {
    %c0 = arith.constant 0 : index
    %c0_0 = arith.constant 0 : index
    %c0_1 = arith.constant 0 : index
    %0 = vector.load %arg1[%c0, %c0_0, %c0_1] : memref<1x256x4xf32, #tpu.memory_space<vmem>>, vector<1x256x4xf32>
    %1 = vector.shape_cast %0 : vector<1x256x4xf32> to vector<256x4xf32>
    %2 = arith.truncf %1 : vector<256x4xf32> to vector<256x4xbf16>
    %c0_2 = arith.constant 0 : index
    %c0_3 = arith.constant 0 : index
    %3 = vector.load %arg3[%c0_2, %c0_3] : memref<4x16xbf16, #tpu.memory_space<vmem>>, vector<4x16xbf16>
    %cst = arith.constant dense<0.000000e+00> : vector<256x16xf32>
    %4 = tpu.matmul %2, %3, %cst {dimension_numbers = #tpu.dot_dimension_numbers<[1], [0], [0], [1], [0, 0, 1, 1], [], []>} : vector<256x4xbf16>, vector<4x16xbf16>, vector<256x16xf32> -> vector<256x16xf32>
    %c0_4 = arith.constant 0 : index
    %c0_5 = arith.constant 0 : index
    %5 = vector.load %arg4[%c0_4, %c0_5] : memref<1x16xf32, #tpu.memory_space<vmem>>, vector<1x16xf32>
    %6 = vector.broadcast %5 : vector<1x16xf32> to vector<256x16xf32>
    %7 = arith.addf %4, %6 : vector<256x16xf32>
    %cst_6 = arith.constant 0.000000e+00 : f32
    %8 = vector.broadcast %cst_6 : f32 to vector<2x20x16xf32>
    %c0_7 = arith.constant 0 : index
    %c0_8 = arith.constant 0 : index
    %c0_9 = arith.constant 0 : index
    %9 = vector.load %arg12[%c0_7, %c0_8, %c0_9] : memref<20x20x16xf32, #tpu.memory_space<vmem>>, vector<2x20x16xf32>
    tpu.vector_store %arg12[%c0_7, %c0_8, %c0_9], %8 {strides = array<i32>} : memref<20x20x16xf32, #tpu.memory_space<vmem>>, vector<2x20x16xf32>,
    %cst_10 = arith.constant 0.000000e+00 : f32
    %10 = vector.broadcast %cst_10 : f32 to vector<2x20x16xf32>
    %c18 = arith.constant 18 : index
    %c0_11 = arith.constant 0 : index
    %c0_12 = arith.constant 0 : index
    %11 = vector.load %arg12[%c18, %c0_11, %c0_12] : memref<20x20x16xf32, #tpu.memory_space<vmem>>, vector<2x20x16xf32>
    tpu.vector_store %arg12[%c18, %c0_11, %c0_12], %10 {strides = array<i32>} : memref<20x20x16xf32, #tpu.memory_space<vmem>>, vector<2x20x16xf32>,
    %cst_13 = arith.constant 0.000000e+00 : f32
    %12 = vector.broadcast %cst_13 : f32 to vector<20x2x16xf32>
    %c0_14 = arith.constant 0 : index
    %c0_15 = arith.constant 0 : index
    %c0_16 = arith.constant 0 : index
    %13 = vector.load %arg12[%c0_14, %c0_15, %c0_16] : memref<20x20x16xf32, #tpu.memory_space<vmem>>, vector<20x2x16xf32>
    tpu.vector_store %arg12[%c0_14, %c0_15, %c0_16], %12 {strides = array<i32>} : memref<20x20x16xf32, #tpu.memory_space<vmem>>, vector<20x2x16xf32>,
    %cst_17 = arith.constant 0.000000e+00 : f32
    %14 = vector.broadcast %cst_17 : f32 to vector<20x2x16xf32>
    %c0_18 = arith.constant 0 : index
    %c18_19 = arith.constant 18 : index
    %c0_20 = arith.constant 0 : index
    %15 = vector.load %arg12[%c0_18, %c18_19, %c0_20] : memref<20x20x16xf32, #tpu.memory_space<vmem>>, vector<20x2x16xf32>
    tpu.vector_store %arg12[%c0_18, %c18_19, %c0_20], %14 {strides = array<i32>} : memref<20x20x16xf32, #tpu.memory_space<vmem>>, vector<20x2x16xf32>,
    %16 = vector.shape_cast %7 : vector<256x16xf32> to vector<16x16x16xf32>
    %c2 = arith.constant 2 : index
    %c2_21 = arith.constant 2 : index
    %c0_22 = arith.constant 0 : index
    %17 = vector.load %arg12[%c2, %c2_21, %c0_22] : memref<20x20x16xf32, #tpu.memory_space<vmem>>, vector<16x16x16xf32>
    tpu.vector_store %arg12[%c2, %c2_21, %c0_22], %16 {strides = array<i32>} : memref<20x20x16xf32, #tpu.memory_space<vmem>>, vector<16x16x16xf32>,
    %c0_23 = arith.constant 0 : index
    %c0_24 = arith.constant 0 : index
    %18 = vector.load %arg5[%c0_23, %c0_24] : memref<9x16xf32, #tpu.memory_space<vmem>>, vector<9x16xf32>
    %c0_25 = arith.constant 0 : index
    %c0_26 = arith.constant 0 : index
    %19 = vector.load %arg7[%c0_25, %c0_26] : memref<25x16xf32, #tpu.memory_space<vmem>>, vector<25x16xf32>
    %cst_27 = arith.constant 0.000000e+00 : f32
    %20 = vector.broadcast %cst_27 : f32 to vector<16x16x16xf32>
    %cst_28 = arith.constant 0.000000e+00 : f32
    %21 = vector.broadcast %cst_28 : f32 to vector<16x16x16xf32>
    %c0_29 = arith.constant 0 : index
    %c0_30 = arith.constant 0 : index
    %c0_31 = arith.constant 0 : index
    %22 = vector.load %arg12[%c0_29, %c0_30, %c0_31] : memref<20x20x16xf32, #tpu.memory_space<vmem>>, vector<20x16x16xf32>
    %23 = vector.extract_strided_slice %22 {offsets = [0, 0, 0], sizes = [16, 16, 16], strides = [1, 1, 1]} : vector<20x16x16xf32> to vector<16x16x16xf32>
    %24 = vector.extract_strided_slice %19 {offsets = [0, 0], sizes = [1, 16], strides = [1, 1]} : vector<25x16xf32> to vector<1x16xf32>
    %25 = vector.shape_cast %24 : vector<1x16xf32> to vector<1x1x16xf32>
    %26 = vector.broadcast %25 : vector<1x1x16xf32> to vector<16x16x16xf32>
    %27 = arith.mulf %23, %26 : vector<16x16x16xf32>
    %28 = arith.addf %21, %27 : vector<16x16x16xf32>
    %29 = vector.extract_strided_slice %22 {offsets = [1, 0, 0], sizes = [16, 16, 16], strides = [1, 1, 1]} : vector<20x16x16xf32> to vector<16x16x16xf32>
    %30 = vector.extract_strided_slice %19 {offsets = [5, 0], sizes = [1, 16], strides = [1, 1]} : vector<25x16xf32> to vector<1x16xf32>
    %31 = vector.shape_cast %30 : vector<1x16xf32> to vector<1x1x16xf32>
    %32 = vector.broadcast %31 : vector<1x1x16xf32> to vector<16x16x16xf32>
    %33 = arith.mulf %29, %32 : vector<16x16x16xf32>
    %34 = arith.addf %28, %33 : vector<16x16x16xf32>
    %35 = vector.extract_strided_slice %22 {offsets = [2, 0, 0], sizes = [16, 16, 16], strides = [1, 1, 1]} : vector<20x16x16xf32> to vector<16x16x16xf32>
    %36 = vector.extract_strided_slice %19 {offsets = [10, 0], sizes = [1, 16], strides = [1, 1]} : vector<25x16xf32> to vector<1x16xf32>
    %37 = vector.shape_cast %36 : vector<1x16xf32> to vector<1x1x16xf32>
    %38 = vector.broadcast %37 : vector<1x1x16xf32> to vector<16x16x16xf32>
    %39 = arith.mulf %35, %38 : vector<16x16x16xf32>
    %40 = arith.addf %34, %39 : vector<16x16x16xf32>
    %41 = vector.extract_strided_slice %22 {offsets = [3, 0, 0], sizes = [16, 16, 16], strides = [1, 1, 1]} : vector<20x16x16xf32> to vector<16x16x16xf32>
    %42 = vector.extract_strided_slice %19 {offsets = [15, 0], sizes = [1, 16], strides = [1, 1]} : vector<25x16xf32> to vector<1x16xf32>
    %43 = vector.shape_cast %42 : vector<1x16xf32> to vector<1x1x16xf32>
    %44 = vector.broadcast %43 : vector<1x1x16xf32> to vector<16x16x16xf32>
    %45 = arith.mulf %41, %44 : vector<16x16x16xf32>
    %46 = arith.addf %40, %45 : vector<16x16x16xf32>
    %47 = vector.extract_strided_slice %22 {offsets = [4, 0, 0], sizes = [16, 16, 16], strides = [1, 1, 1]} : vector<20x16x16xf32> to vector<16x16x16xf32>
    %48 = vector.extract_strided_slice %19 {offsets = [20, 0], sizes = [1, 16], strides = [1, 1]} : vector<25x16xf32> to vector<1x16xf32>
    %49 = vector.shape_cast %48 : vector<1x16xf32> to vector<1x1x16xf32>
    %50 = vector.broadcast %49 : vector<1x1x16xf32> to vector<16x16x16xf32>
    %51 = arith.mulf %47, %50 : vector<16x16x16xf32>
    %52 = arith.addf %46, %51 : vector<16x16x16xf32>
    %c0_32 = arith.constant 0 : index
    %c1 = arith.constant 1 : index
    %c0_33 = arith.constant 0 : index
    %53 = vector.load %arg12[%c0_32, %c1, %c0_33] : memref<20x20x16xf32, #tpu.memory_space<vmem>>, vector<20x16x16xf32>
    %54 = vector.extract_strided_slice %53 {offsets = [0, 0, 0], sizes = [16, 16, 16], strides = [1, 1, 1]} : vector<20x16x16xf32> to vector<16x16x16xf32>
    %55 = vector.extract_strided_slice %19 {offsets = [1, 0], sizes = [1, 16], strides = [1, 1]} : vector<25x16xf32> to vector<1x16xf32>
    %56 = vector.shape_cast %55 : vector<1x16xf32> to vector<1x1x16xf32>
    %57 = vector.broadcast %56 : vector<1x1x16xf32> to vector<16x16x16xf32>
    %58 = arith.mulf %54, %57 : vector<16x16x16xf32>
    %59 = arith.addf %52, %58 : vector<16x16x16xf32>
    %60 = vector.extract_strided_slice %53 {offsets = [1, 0, 0], sizes = [16, 16, 16], strides = [1, 1, 1]} : vector<20x16x16xf32> to vector<16x16x16xf32>
    %61 = vector.extract_strided_slice %19 {offsets = [6, 0], sizes = [1, 16], strides = [1, 1]} : vector<25x16xf32> to vector<1x16xf32>
    %62 = vector.shape_cast %61 : vector<1x16xf32> to vector<1x1x16xf32>
    %63 = vector.broadcast %62 : vector<1x1x16xf32> to vector<16x16x16xf32>
    %64 = arith.mulf %60, %63 : vector<16x16x16xf32>
    %65 = arith.addf %59, %64 : vector<16x16x16xf32>
    %66 = vector.extract_strided_slice %18 {offsets = [0, 0], sizes = [1, 16], strides = [1, 1]} : vector<9x16xf32> to vector<1x16xf32>
    %67 = vector.shape_cast %66 : vector<1x16xf32> to vector<1x1x16xf32>
    %68 = vector.broadcast %67 : vector<1x1x16xf32> to vector<16x16x16xf32>
    %69 = arith.mulf %60, %68 : vector<16x16x16xf32>
    %70 = arith.addf %20, %69 : vector<16x16x16xf32>
    %71 = vector.extract_strided_slice %53 {offsets = [2, 0, 0], sizes = [16, 16, 16], strides = [1, 1, 1]} : vector<20x16x16xf32> to vector<16x16x16xf32>
    %72 = vector.extract_strided_slice %19 {offsets = [11, 0], sizes = [1, 16], strides = [1, 1]} : vector<25x16xf32> to vector<1x16xf32>
    %73 = vector.shape_cast %72 : vector<1x16xf32> to vector<1x1x16xf32>
    %74 = vector.broadcast %73 : vector<1x1x16xf32> to vector<16x16x16xf32>
    %75 = arith.mulf %71, %74 : vector<16x16x16xf32>
    %76 = arith.addf %65, %75 : vector<16x16x16xf32>
    %77 = vector.extract_strided_slice %18 {offsets = [3, 0], sizes = [1, 16], strides = [1, 1]} : vector<9x16xf32> to vector<1x16xf32>
    %78 = vector.shape_cast %77 : vector<1x16xf32> to vector<1x1x16xf32>
    %79 = vector.broadcast %78 : vector<1x1x16xf32> to vector<16x16x16xf32>
    %80 = arith.mulf %71, %79 : vector<16x16x16xf32>
    %81 = arith.addf %70, %80 : vector<16x16x16xf32>
    %82 = vector.extract_strided_slice %53 {offsets = [3, 0, 0], sizes = [16, 16, 16], strides = [1, 1, 1]} : vector<20x16x16xf32> to vector<16x16x16xf32>
    %83 = vector.extract_strided_slice %19 {offsets = [16, 0], sizes = [1, 16], strides = [1, 1]} : vector<25x16xf32> to vector<1x16xf32>
    %84 = vector.shape_cast %83 : vector<1x16xf32> to vector<1x1x16xf32>
    %85 = vector.broadcast %84 : vector<1x1x16xf32> to vector<16x16x16xf32>
    %86 = arith.mulf %82, %85 : vector<16x16x16xf32>
    %87 = arith.addf %76, %86 : vector<16x16x16xf32>
    %88 = vector.extract_strided_slice %18 {offsets = [6, 0], sizes = [1, 16], strides = [1, 1]} : vector<9x16xf32> to vector<1x16xf32>
    %89 = vector.shape_cast %88 : vector<1x16xf32> to vector<1x1x16xf32>
    %90 = vector.broadcast %89 : vector<1x1x16xf32> to vector<16x16x16xf32>
    %91 = arith.mulf %82, %90 : vector<16x16x16xf32>
    %92 = arith.addf %81, %91 : vector<16x16x16xf32>
    %93 = vector.extract_strided_slice %53 {offsets = [4, 0, 0], sizes = [16, 16, 16], strides = [1, 1, 1]} : vector<20x16x16xf32> to vector<16x16x16xf32>
    %94 = vector.extract_strided_slice %19 {offsets = [21, 0], sizes = [1, 16], strides = [1, 1]} : vector<25x16xf32> to vector<1x16xf32>
    %95 = vector.shape_cast %94 : vector<1x16xf32> to vector<1x1x16xf32>
    %96 = vector.broadcast %95 : vector<1x1x16xf32> to vector<16x16x16xf32>
    %97 = arith.mulf %93, %96 : vector<16x16x16xf32>
    %98 = arith.addf %87, %97 : vector<16x16x16xf32>
    %c0_34 = arith.constant 0 : index
    %c2_35 = arith.constant 2 : index
    %c0_36 = arith.constant 0 : index
    %99 = vector.load %arg12[%c0_34, %c2_35, %c0_36] : memref<20x20x16xf32, #tpu.memory_space<vmem>>, vector<20x16x16xf32>
    %100 = vector.extract_strided_slice %99 {offsets = [0, 0, 0], sizes = [16, 16, 16], strides = [1, 1, 1]} : vector<20x16x16xf32> to vector<16x16x16xf32>
    %101 = vector.extract_strided_slice %19 {offsets = [2, 0], sizes = [1, 16], strides = [1, 1]} : vector<25x16xf32> to vector<1x16xf32>
    %102 = vector.shape_cast %101 : vector<1x16xf32> to vector<1x1x16xf32>
    %103 = vector.broadcast %102 : vector<1x1x16xf32> to vector<16x16x16xf32>
    %104 = arith.mulf %100, %103 : vector<16x16x16xf32>
    %105 = arith.addf %98, %104 : vector<16x16x16xf32>
    %106 = vector.extract_strided_slice %99 {offsets = [1, 0, 0], sizes = [16, 16, 16], strides = [1, 1, 1]} : vector<20x16x16xf32> to vector<16x16x16xf32>
    %107 = vector.extract_strided_slice %19 {offsets = [7, 0], sizes = [1, 16], strides = [1, 1]} : vector<25x16xf32> to vector<1x16xf32>
    %108 = vector.shape_cast %107 : vector<1x16xf32> to vector<1x1x16xf32>
    %109 = vector.broadcast %108 : vector<1x1x16xf32> to vector<16x16x16xf32>
    %110 = arith.mulf %106, %109 : vector<16x16x16xf32>
    %111 = arith.addf %105, %110 : vector<16x16x16xf32>
    %112 = vector.extract_strided_slice %18 {offsets = [1, 0], sizes = [1, 16], strides = [1, 1]} : vector<9x16xf32> to vector<1x16xf32>
    %113 = vector.shape_cast %112 : vector<1x16xf32> to vector<1x1x16xf32>
    %114 = vector.broadcast %113 : vector<1x1x16xf32> to vector<16x16x16xf32>
    %115 = arith.mulf %106, %114 : vector<16x16x16xf32>
    %116 = arith.addf %92, %115 : vector<16x16x16xf32>
    %117 = vector.extract_strided_slice %99 {offsets = [2, 0, 0], sizes = [16, 16, 16], strides = [1, 1, 1]} : vector<20x16x16xf32> to vector<16x16x16xf32>
    %118 = vector.extract_strided_slice %19 {offsets = [12, 0], sizes = [1, 16], strides = [1, 1]} : vector<25x16xf32> to vector<1x16xf32>
    %119 = vector.shape_cast %118 : vector<1x16xf32> to vector<1x1x16xf32>
    %120 = vector.broadcast %119 : vector<1x1x16xf32> to vector<16x16x16xf32>
    %121 = arith.mulf %117, %120 : vector<16x16x16xf32>
    %122 = arith.addf %111, %121 : vector<16x16x16xf32>
    %123 = vector.extract_strided_slice %18 {offsets = [4, 0], sizes = [1, 16], strides = [1, 1]} : vector<9x16xf32> to vector<1x16xf32>
    %124 = vector.shape_cast %123 : vector<1x16xf32> to vector<1x1x16xf32>
    %125 = vector.broadcast %124 : vector<1x1x16xf32> to vector<16x16x16xf32>
    %126 = arith.mulf %117, %125 : vector<16x16x16xf32>
    %127 = arith.addf %116, %126 : vector<16x16x16xf32>
    %128 = vector.extract_strided_slice %99 {offsets = [3, 0, 0], sizes = [16, 16, 16], strides = [1, 1, 1]} : vector<20x16x16xf32> to vector<16x16x16xf32>
    %129 = vector.extract_strided_slice %19 {offsets = [17, 0], sizes = [1, 16], strides = [1, 1]} : vector<25x16xf32> to vector<1x16xf32>
    %130 = vector.shape_cast %129 : vector<1x16xf32> to vector<1x1x16xf32>
    %131 = vector.broadcast %130 : vector<1x1x16xf32> to vector<16x16x16xf32>
    %132 = arith.mulf %128, %131 : vector<16x16x16xf32>
    %133 = arith.addf %122, %132 : vector<16x16x16xf32>
    %134 = vector.extract_strided_slice %18 {offsets = [7, 0], sizes = [1, 16], strides = [1, 1]} : vector<9x16xf32> to vector<1x16xf32>
    %135 = vector.shape_cast %134 : vector<1x16xf32> to vector<1x1x16xf32>
    %136 = vector.broadcast %135 : vector<1x1x16xf32> to vector<16x16x16xf32>
    %137 = arith.mulf %128, %136 : vector<16x16x16xf32>
    %138 = arith.addf %127, %137 : vector<16x16x16xf32>
    %139 = vector.extract_strided_slice %99 {offsets = [4, 0, 0], sizes = [16, 16, 16], strides = [1, 1, 1]} : vector<20x16x16xf32> to vector<16x16x16xf32>
    %140 = vector.extract_strided_slice %19 {offsets = [22, 0], sizes = [1, 16], strides = [1, 1]} : vector<25x16xf32> to vector<1x16xf32>
    %141 = vector.shape_cast %140 : vector<1x16xf32> to vector<1x1x16xf32>
    %142 = vector.broadcast %141 : vector<1x1x16xf32> to vector<16x16x16xf32>
    %143 = arith.mulf %139, %142 : vector<16x16x16xf32>
    %144 = arith.addf %133, %143 : vector<16x16x16xf32>
    %c0_37 = arith.constant 0 : index
    %c3 = arith.constant 3 : index
    %c0_38 = arith.constant 0 : index
    %145 = vector.load %arg12[%c0_37, %c3, %c0_38] : memref<20x20x16xf32, #tpu.memory_space<vmem>>, vector<20x16x16xf32>
    %146 = vector.extract_strided_slice %145 {offsets = [0, 0, 0], sizes = [16, 16, 16], strides = [1, 1, 1]} : vector<20x16x16xf32> to vector<16x16x16xf32>
    %147 = vector.extract_strided_slice %19 {offsets = [3, 0], sizes = [1, 16], strides = [1, 1]} : vector<25x16xf32> to vector<1x16xf32>
    %148 = vector.shape_cast %147 : vector<1x16xf32> to vector<1x1x16xf32>
    %149 = vector.broadcast %148 : vector<1x1x16xf32> to vector<16x16x16xf32>
    %150 = arith.mulf %146, %149 : vector<16x16x16xf32>
    %151 = arith.addf %144, %150 : vector<16x16x16xf32>
    %152 = vector.extract_strided_slice %145 {offsets = [1, 0, 0], sizes = [16, 16, 16], strides = [1, 1, 1]} : vector<20x16x16xf32> to vector<16x16x16xf32>
    %153 = vector.extract_strided_slice %19 {offsets = [8, 0], sizes = [1, 16], strides = [1, 1]} : vector<25x16xf32> to vector<1x16xf32>
    %154 = vector.shape_cast %153 : vector<1x16xf32> to vector<1x1x16xf32>
    %155 = vector.broadcast %154 : vector<1x1x16xf32> to vector<16x16x16xf32>
    %156 = arith.mulf %152, %155 : vector<16x16x16xf32>
    %157 = arith.addf %151, %156 : vector<16x16x16xf32>
    %158 = vector.extract_strided_slice %18 {offsets = [2, 0], sizes = [1, 16], strides = [1, 1]} : vector<9x16xf32> to vector<1x16xf32>
    %159 = vector.shape_cast %158 : vector<1x16xf32> to vector<1x1x16xf32>
    %160 = vector.broadcast %159 : vector<1x1x16xf32> to vector<16x16x16xf32>
    %161 = arith.mulf %152, %160 : vector<16x16x16xf32>
    %162 = arith.addf %138, %161 : vector<16x16x16xf32>
    %163 = vector.extract_strided_slice %145 {offsets = [2, 0, 0], sizes = [16, 16, 16], strides = [1, 1, 1]} : vector<20x16x16xf32> to vector<16x16x16xf32>
    %164 = vector.extract_strided_slice %19 {offsets = [13, 0], sizes = [1, 16], strides = [1, 1]} : vector<25x16xf32> to vector<1x16xf32>
    %165 = vector.shape_cast %164 : vector<1x16xf32> to vector<1x1x16xf32>
    %166 = vector.broadcast %165 : vector<1x1x16xf32> to vector<16x16x16xf32>
    %167 = arith.mulf %163, %166 : vector<16x16x16xf32>
    %168 = arith.addf %157, %167 : vector<16x16x16xf32>
    %169 = vector.extract_strided_slice %18 {offsets = [5, 0], sizes = [1, 16], strides = [1, 1]} : vector<9x16xf32> to vector<1x16xf32>
    %170 = vector.shape_cast %169 : vector<1x16xf32> to vector<1x1x16xf32>
    %171 = vector.broadcast %170 : vector<1x1x16xf32> to vector<16x16x16xf32>
    %172 = arith.mulf %163, %171 : vector<16x16x16xf32>
    %173 = arith.addf %162, %172 : vector<16x16x16xf32>
    %174 = vector.extract_strided_slice %145 {offsets = [3, 0, 0], sizes = [16, 16, 16], strides = [1, 1, 1]} : vector<20x16x16xf32> to vector<16x16x16xf32>
    %175 = vector.extract_strided_slice %19 {offsets = [18, 0], sizes = [1, 16], strides = [1, 1]} : vector<25x16xf32> to vector<1x16xf32>
    %176 = vector.shape_cast %175 : vector<1x16xf32> to vector<1x1x16xf32>
    %177 = vector.broadcast %176 : vector<1x1x16xf32> to vector<16x16x16xf32>
    %178 = arith.mulf %174, %177 : vector<16x16x16xf32>
    %179 = arith.addf %168, %178 : vector<16x16x16xf32>
    %180 = vector.extract_strided_slice %18 {offsets = [8, 0], sizes = [1, 16], strides = [1, 1]} : vector<9x16xf32> to vector<1x16xf32>
    %181 = vector.shape_cast %180 : vector<1x16xf32> to vector<1x1x16xf32>
    %182 = vector.broadcast %181 : vector<1x1x16xf32> to vector<16x16x16xf32>
    %183 = arith.mulf %174, %182 : vector<16x16x16xf32>
    %184 = arith.addf %173, %183 : vector<16x16x16xf32>
    %185 = vector.extract_strided_slice %145 {offsets = [4, 0, 0], sizes = [16, 16, 16], strides = [1, 1, 1]} : vector<20x16x16xf32> to vector<16x16x16xf32>
    %186 = vector.extract_strided_slice %19 {offsets = [23, 0], sizes = [1, 16], strides = [1, 1]} : vector<25x16xf32> to vector<1x16xf32>
    %187 = vector.shape_cast %186 : vector<1x16xf32> to vector<1x1x16xf32>
    %188 = vector.broadcast %187 : vector<1x1x16xf32> to vector<16x16x16xf32>
    %189 = arith.mulf %185, %188 : vector<16x16x16xf32>
    %190 = arith.addf %179, %189 : vector<16x16x16xf32>
    %c0_39 = arith.constant 0 : index
    %c4 = arith.constant 4 : index
    %c0_40 = arith.constant 0 : index
    %191 = vector.load %arg12[%c0_39, %c4, %c0_40] : memref<20x20x16xf32, #tpu.memory_space<vmem>>, vector<20x16x16xf32>
    %192 = vector.extract_strided_slice %191 {offsets = [0, 0, 0], sizes = [16, 16, 16], strides = [1, 1, 1]} : vector<20x16x16xf32> to vector<16x16x16xf32>
    %193 = vector.extract_strided_slice %19 {offsets = [4, 0], sizes = [1, 16], strides = [1, 1]} : vector<25x16xf32> to vector<1x16xf32>
    %194 = vector.shape_cast %193 : vector<1x16xf32> to vector<1x1x16xf32>
    %195 = vector.broadcast %194 : vector<1x1x16xf32> to vector<16x16x16xf32>
    %196 = arith.mulf %192, %195 : vector<16x16x16xf32>
    %197 = arith.addf %190, %196 : vector<16x16x16xf32>
    %198 = vector.extract_strided_slice %191 {offsets = [1, 0, 0], sizes = [16, 16, 16], strides = [1, 1, 1]} : vector<20x16x16xf32> to vector<16x16x16xf32>
    %199 = vector.extract_strided_slice %19 {offsets = [9, 0], sizes = [1, 16], strides = [1, 1]} : vector<25x16xf32> to vector<1x16xf32>
    %200 = vector.shape_cast %199 : vector<1x16xf32> to vector<1x1x16xf32>
    %201 = vector.broadcast %200 : vector<1x1x16xf32> to vector<16x16x16xf32>
    %202 = arith.mulf %198, %201 : vector<16x16x16xf32>
    %203 = arith.addf %197, %202 : vector<16x16x16xf32>
    %204 = vector.extract_strided_slice %191 {offsets = [2, 0, 0], sizes = [16, 16, 16], strides = [1, 1, 1]} : vector<20x16x16xf32> to vector<16x16x16xf32>
    %205 = vector.extract_strided_slice %19 {offsets = [14, 0], sizes = [1, 16], strides = [1, 1]} : vector<25x16xf32> to vector<1x16xf32>
    %206 = vector.shape_cast %205 : vector<1x16xf32> to vector<1x1x16xf32>
    %207 = vector.broadcast %206 : vector<1x1x16xf32> to vector<16x16x16xf32>
    %208 = arith.mulf %204, %207 : vector<16x16x16xf32>
    %209 = arith.addf %203, %208 : vector<16x16x16xf32>
    %210 = vector.extract_strided_slice %191 {offsets = [3, 0, 0], sizes = [16, 16, 16], strides = [1, 1, 1]} : vector<20x16x16xf32> to vector<16x16x16xf32>
    %211 = vector.extract_strided_slice %19 {offsets = [19, 0], sizes = [1, 16], strides = [1, 1]} : vector<25x16xf32> to vector<1x16xf32>
    %212 = vector.shape_cast %211 : vector<1x16xf32> to vector<1x1x16xf32>
    %213 = vector.broadcast %212 : vector<1x1x16xf32> to vector<16x16x16xf32>
    %214 = arith.mulf %210, %213 : vector<16x16x16xf32>
    %215 = arith.addf %209, %214 : vector<16x16x16xf32>
    %216 = vector.extract_strided_slice %191 {offsets = [4, 0, 0], sizes = [16, 16, 16], strides = [1, 1, 1]} : vector<20x16x16xf32> to vector<16x16x16xf32>
    %217 = vector.extract_strided_slice %19 {offsets = [24, 0], sizes = [1, 16], strides = [1, 1]} : vector<25x16xf32> to vector<1x16xf32>
    %218 = vector.shape_cast %217 : vector<1x16xf32> to vector<1x1x16xf32>
    %219 = vector.broadcast %218 : vector<1x1x16xf32> to vector<16x16x16xf32>
    %220 = arith.mulf %216, %219 : vector<16x16x16xf32>
    %221 = arith.addf %215, %220 : vector<16x16x16xf32>
    %222 = vector.extract_strided_slice %184 {offsets = [0, 0, 0], sizes = [16, 16, 8], strides = [1, 1, 1]} : vector<16x16x16xf32> to vector<16x16x8xf32>
    %223 = vector.extract_strided_slice %184 {offsets = [0, 0, 8], sizes = [16, 16, 8], strides = [1, 1, 1]} : vector<16x16x16xf32> to vector<16x16x8xf32>
    %224 = arith.addf %222, %223 : vector<16x16x8xf32>
    %c0_41 = arith.constant 0 : index
    %c0_42 = arith.constant 0 : index
    %225 = vector.load %arg6[%c0_41, %c0_42] : memref<1x8xf32, #tpu.memory_space<vmem>>, vector<1x8xf32>
    %226 = vector.shape_cast %225 : vector<1x8xf32> to vector<1x1x8xf32>
    %227 = vector.broadcast %226 : vector<1x1x8xf32> to vector<16x16x8xf32>
    %228 = arith.addf %224, %227 : vector<16x16x8xf32>
    %229 = vector.extract_strided_slice %221 {offsets = [0, 0, 0], sizes = [16, 16, 8], strides = [1, 1, 1]} : vector<16x16x16xf32> to vector<16x16x8xf32>
    %230 = vector.extract_strided_slice %221 {offsets = [0, 0, 8], sizes = [16, 16, 8], strides = [1, 1, 1]} : vector<16x16x16xf32> to vector<16x16x8xf32>
    %231 = arith.addf %229, %230 : vector<16x16x8xf32>
    %c0_43 = arith.constant 0 : index
    %c0_44 = arith.constant 0 : index
    %232 = vector.load %arg8[%c0_43, %c0_44] : memref<1x8xf32, #tpu.memory_space<vmem>>, vector<1x8xf32>
    %233 = vector.shape_cast %232 : vector<1x8xf32> to vector<1x1x8xf32>
    %234 = vector.broadcast %233 : vector<1x1x8xf32> to vector<16x16x8xf32>
    %235 = arith.addf %231, %234 : vector<16x16x8xf32>
    %c0_45 = arith.constant 0 : index
    %236 = memref.load %arg2[%c0_45] : memref<1xf32, #tpu.memory_space<smem>>
    %237 = arith.negf %236 : f32
    %238 = math.exp %237 : f32
    %cst_46 = arith.constant 1.000000e+00 : f32
    %239 = arith.addf %cst_46, %238 : f32
    %240 = arith.divf %cst_46, %239 : f32
    %241 = vector.broadcast %240 : f32 to vector<16x16x8xf32>
    %242 = arith.mulf %241, %228 : vector<16x16x8xf32>
    %243 = vector.broadcast %240 : f32 to vector<16x16x8xf32>
    %244 = arith.mulf %243, %235 : vector<16x16x8xf32>
    %cst_47 = arith.constant 1.000000e+00 : f32
    %245 = vector.broadcast %cst_47 : f32 to vector<16x16x8xf32>
    %246 = arith.subf %245, %244 : vector<16x16x8xf32>
    %247 = arith.addf %242, %246 : vector<16x16x8xf32>
    %248 = vector.shape_cast %247 : vector<16x16x8xf32> to vector<256x8xf32>
    %249 = arith.truncf %248 : vector<256x8xf32> to vector<256x8xbf16>
    %c0_48 = arith.constant 0 : index
    %c0_49 = arith.constant 0 : index
    %250 = vector.load %arg9[%c0_48, %c0_49] : memref<8x4xbf16, #tpu.memory_space<vmem>>, vector<8x4xbf16>
    %cst_50 = arith.constant dense<0.000000e+00> : vector<256x4xf32>
    %251 = tpu.matmul %249, %250, %cst_50 {dimension_numbers = #tpu.dot_dimension_numbers<[1], [0], [0], [1], [0, 0, 1, 1], [], []>} : vector<256x8xbf16>, vector<8x4xbf16>, vector<256x4xf32> -> vector<256x4xf32>
    %c0_51 = arith.constant 0 : index
    %c0_52 = arith.constant 0 : index
    %252 = vector.load %arg10[%c0_51, %c0_52] : memref<1x4xf32, #tpu.memory_space<vmem>>, vector<1x4xf32>
    %253 = vector.broadcast %252 : vector<1x4xf32> to vector<256x4xf32>
    %254 = arith.addf %251, %253 : vector<256x4xf32>
    %c0_53 = arith.constant 0 : index
    %c0_54 = arith.constant 0 : index
    %c0_55 = arith.constant 0 : index
    %255 = vector.load %arg11[%c0_53, %c0_54, %c0_55] : memref<1x256x4xf32, #tpu.memory_space<vmem>>, vector<1x256x4xf32>
    %256 = vector.shape_cast %255 : vector<1x256x4xf32> to vector<256x4xf32>
    %257 = vector.shape_cast %254 : vector<256x4xf32> to vector<1x256x4xf32>
    tpu.vector_store %arg11[%c0_53, %c0_54, %c0_55], %257 {strides = array<i32>} : memref<1x256x4xf32, #tpu.memory_space<vmem>>, vector<1x256x4xf32>,
    return
  }
  func.func @transform_0(%arg0: i32) -> (i32, i32, i32) {
    %c0_i32 = arith.constant 0 : i32
    %c0_i32_0 = arith.constant 0 : i32
    %c0_i32_1 = arith.constant 0 : i32
    return %arg0, %c0_i32, %c0_i32_0 : i32, i32, i32
  }
  func.func @transform_1(%arg0: i32) -> i32 {
    %c0_i32 = arith.constant 0 : i32
    %c0_i32_0 = arith.constant 0 : i32
    return %c0_i32 : i32
  }
  func.func @transform_2(%arg0: i32) -> (i32, i32) {
    %c0_i32 = arith.constant 0 : i32
    %c0_i32_0 = arith.constant 0 : i32
    %c0_i32_1 = arith.constant 0 : i32
    return %c0_i32, %c0_i32_0 : i32, i32
  }
  func.func @transform_3(%arg0: i32) -> (i32, i32) {
    %c0_i32 = arith.constant 0 : i32
    %c0_i32_0 = arith.constant 0 : i32
    %c0_i32_1 = arith.constant 0 : i32
    return %c0_i32, %c0_i32_0 : i32, i32
  }
  func.func @transform_4(%arg0: i32) -> (i32, i32) {
    %c0_i32 = arith.constant 0 : i32
    %c0_i32_0 = arith.constant 0 : i32
    %c0_i32_1 = arith.constant 0 : i32
    return %c0_i32, %c0_i32_0 : i32, i32
  }
  func.func @transform_5(%arg0: i32) -> (i32, i32) {
    %c0_i32 = arith.constant 0 : i32
    %c0_i32_0 = arith.constant 0 : i32
    %c0_i32_1 = arith.constant 0 : i32
    return %c0_i32, %c0_i32_0 : i32, i32
  }
  func.func @transform_6(%arg0: i32) -> (i32, i32) {
    %c0_i32 = arith.constant 0 : i32
    %c0_i32_0 = arith.constant 0 : i32
    %c0_i32_1 = arith.constant 0 : i32
    return %c0_i32, %c0_i32_0 : i32, i32
  }
  func.func @transform_7(%arg0: i32) -> (i32, i32) {
    %c0_i32 = arith.constant 0 : i32
    %c0_i32_0 = arith.constant 0 : i32
    %c0_i32_1 = arith.constant 0 : i32
    return %c0_i32, %c0_i32_0 : i32, i32
  }
  func.func @transform_8(%arg0: i32) -> (i32, i32) {
    %c0_i32 = arith.constant 0 : i32
    %c0_i32_0 = arith.constant 0 : i32
    %c0_i32_1 = arith.constant 0 : i32
    return %c0_i32, %c0_i32_0 : i32, i32
  }
  func.func @transform_9(%arg0: i32) -> (i32, i32) {
    %c0_i32 = arith.constant 0 : i32
    %c0_i32_0 = arith.constant 0 : i32
    %c0_i32_1 = arith.constant 0 : i32
    return %c0_i32, %c0_i32_0 : i32, i32
  }
  func.func @transform_10(%arg0: i32) -> (i32, i32, i32) {
    %c0_i32 = arith.constant 0 : i32
    %c0_i32_0 = arith.constant 0 : i32
    %c0_i32_1 = arith.constant 0 : i32
    return %arg0, %c0_i32, %c0_i32_0 : i32, i32, i32
  }
}

</mosaic_0001>

<bundles_post_ra>
// kernel: tpu_custom_call.1
= control target key start
LH: loop header
LB: loop body
LE: loop exit
PB: predicated region body
PF: predicated region fallthrough
CT: control target
= control target key end

     0   :  { %s4462_s15 = smov 0   ;;  %s8779_s0 = inlined_call_operand.vmem [shape: f32[2,256,4], index: 0, kind: input, shape index: {}]   ;;  %s8780_s1 = inlined_call_operand.<no memory space> [shape: f32[1], index: 1, kind: input, shape index: {}]   ;;  %s8781_s2 = inlined_call_operand.vmem [shape: bf16[4,16], index: 2, kind: input, shape index: {}]   ;;  %s8782_s3 = inlined_call_operand.vmem [shape: f32[1,16], index: 3, kind: input, shape index: {}]   ;;  %s8783_s4 = inlined_call_operand.vmem [shape: f32[9,16], index: 4, kind: input, shape index: {}]   ;;  %s8784_s5 = inlined_call_operand.vmem [shape: f32[1,8], index: 5, kind: input, shape index: {}]   ;;  %s8785_s6 = inlined_call_operand.vmem [shape: f32[25,16], index: 6, kind: input, shape index: {}]   ;;  %s8786_s7 = inlined_call_operand.vmem [shape: f32[1,8], index: 7, kind: input, shape index: {}]   ;;  %s8787_s8 = inlined_call_operand.vmem [shape: bf16[8,4], index: 8, kind: input, shape index: {}]   ;;  %s8788_s9 = inlined_call_operand.vmem [shape: f32[1,4], index: 9, kind: input, shape index: {}]   ;;  %s8789_s10 = inlined_call_operand.vmem [shape: f32[2,256,4], index: 10, kind: output, shape index: {}]  }
   0x1   :  { %15 = sst [smem:[#allocation3]] %s8780_s1 }
   0x2 LB: > { %s4101_s16 = sadd.s32 4294967295, %s4400_s15   ;;  %p4105_p0 = scmp.ge.s32.totalorder %s4400_s15, 1  ;;  %s4400_s15 = sphi %s4462_s15, %s21_s15  }
   0x3   : > { %p313_p1 = scmp.lt.s32.totalorder %s4400_s15, 3 }
   0x5   : > { %p314_p2 = pnand %p4105_p0, %p313_p1 }
   0x7   : > { %317 = sbr.rel (%p314_p2) target bundleno = 1119 (0x45f), region = 60 }
   0xc   : > { %v410_v0 = vld [vmem:[%s8781_s2] sm:$0x3]  ;;  %vm467_vm0 = vcmask 1041408   ;;  %p351_p3 = scmp.lt.s32.totalorder %s4101_s16, 1  ;;  %vm418_vm1 = vcmask 31744   ;;  %vm632_vm2 = vcmask 130048   ;;  %v767_v54 = vlaneseq }
   0xd   : > { %4254 = vmatprep.subr.msk.bf16.mxu0 %vm467_vm0, %v410_v0  ;;  %v469_v1 = vsel %vm467_vm0, %v410_v0, 0  ;;  %vm647_vm3 = vcmask 123904   ;;  %v4402_v50 = vmov 0.0   ;;  %s3637_s22 = sld [smem:[#allocation3]]  ;;  %vm635_vm4 = vcmask 125952   ;;  %v723_v58 = vld [vmem:[%s8785_s6] sm:$0xff] }
   0xe   : > { %4187 = vmatpush3.bf16.msra.mxu0 %v469_v1  ;;  %s10033_s16 = smov (!%p351_p3, %s4101_s16), 1  ;;  %651 = vst.msk [vmem:[#allocation2 + $0x48] sm:$0x3] %vm647_vm3, %v4402_v50  ;;  %650 = vst.msk [vmem:[#allocation2 + $0x30] sm:$0x3] %vm647_vm3, %v4402_v50  ;;  %v768_v55 = vshrl.u32 %v767_v54, 7 }
   0xf   : > { %s4150_s1 = sshll.u32 %s10033_s16, 8  ;;  %633 = vst.msk [vmem:[#allocation2] sm:$0xff] %vm632_vm2, %v4402_v50  ;;  %634 = vst.msk [vmem:[#allocation2 + $0x8] sm:$0xff] %vm632_vm2, %v4402_v50  ;;  %v4589_v60 = vld [vmem:[%s8782_s3] ss:$0 sm:$0xff]  ;;  %v724_v63 = vld [vmem:[%s8785_s6 + $0x8] sm:$0xff] }
  0x10   : > { %s4481_s21 = scalar_lea.vmem %s8779_s0, %s4150_s1  ;;  %637 = vst.msk [vmem:[#allocation2 + $0x18] sm:$0xff] %vm632_vm2, %v4402_v50  ;;  %638 = vst.msk [vmem:[#allocation2 + $0x20] sm:$0xff] %vm632_vm2, %v4402_v50  ;;  %v769_v56 = vsub.s32 0, %v768_v55  ;;  %v4579_v57 = vsub.s32 5, %v768_v55  ;;  %v4584_v59 = vsub.s32 2, %v768_v55  ;;  %v4599_v0 = vsub.s32 7, %v768_v55  ;;  %s8678_s14 = scalar_lea.vmem %s8789_s10, %s4150_s1 }
  0x11   : > { %v362_v2 = vld [vmem:[%s4481_s21] sm:$0xff]  ;;  %v363_v3 = vld [vmem:[%s4481_s21 + $0x8] sm:$0xff]  ;;  %v364_v4 = vld [vmem:[%s4481_s21 + $0x10] sm:$0xff]  ;;  %641 = vst.msk [vmem:[#allocation2 + $0x1b0] sm:$0xff] %vm632_vm2, %v4402_v50  ;;  %v4601_v1 = vsub.s32 1, %v768_v55  ;;  %s4403_s18 = smov 120  }
  0x12   : > { %v394_v5 = vpack.c.bf16 %v363_v3, %v362_v2  ;;  %v365_v6 = vld [vmem:[%s4481_s21 + $0x18] sm:$0xff]  ;;  %v366_v7 = vld [vmem:[%s4481_s21 + $0x20] sm:$0xff]  ;;  %v367_v8 = vld [vmem:[%s4481_s21 + $0x28] sm:$0xff]  ;;  %642 = vst.msk [vmem:[#allocation2 + $0x1b8] sm:$0xff] %vm632_vm2, %v4402_v50  ;;  %v4591_v61 = vrot.slane %v723_v58, %v769_v56  ;;  %v4594_v62 = vrot.slane %v723_v58, %v4579_v57  ;;  %vm3849_vm5 = vcmask 1043456  }
  0x13   : > { %v395_v9 = vpack.c.bf16 %v365_v6, %v364_v4  ;;  %v396_v10 = vpack.c.bf16 %v367_v8, %v366_v7  ;;  %v368_v11 = vld [vmem:[%s4481_s21 + $0x30] sm:$0xff]  ;;  %v369_v12 = vld [vmem:[%s4481_s21 + $0x38] sm:$0xff]  ;;  %v370_v13 = vld [vmem:[%s4481_s21 + $0x40] sm:$0xff]  ;;  %644 = vst.msk [vmem:[#allocation2 + $0x1c8] sm:$0xff] %vm632_vm2, %v4402_v50  ;;  %s3638_s23 = sxor.u32 2147483648, %s3637_s22  ;;  %v4603_v4 = vsub.s32 6, %v768_v55 }
  0x14   : > { %4188 = vmatprep.mubr.msk.bf16.mxu0 %vm418_vm1, %v394_v5  ;;  %v371_v14 = vld [vmem:[%s4481_s21 + $0x48] sm:$0xff]  ;;  %v397_v15 = vpack.c.bf16 %v369_v12, %v368_v11  ;;  %v372_v17 = vld [vmem:[%s4481_s21 + $0x50] sm:$0xff]  ;;  %v373_v18 = vld [vmem:[%s4481_s21 + $0x58] sm:$0xff]  ;;  %645 = vst.msk [vmem:[#allocation2 + $0x1d0] sm:$0xff] %vm632_vm2, %v4402_v50  ;;  %v3639_v51 = vstv %s3638_s23  ;;  %v4605_v5 = vsub.s32 3, %v768_v55  ;;  %v4617_v11 = vsub.s32 4, %v768_v55 }
  0x15   : > { %4189 = vmatmul.mubr.msk.bf16.vlgmr.msra.gmra.mxu0 %vm418_vm1, %v395_v9  ;;  %v398_v16 = vpack.c.bf16 %v371_v14, %v370_v13  ;;  %v374_v19 = vld [vmem:[%s4481_s21 + $0x60] sm:$0xff]  ;;  %v375_v20 = vld [vmem:[%s4481_s21 + $0x68] sm:$0xff]  ;;  %v399_v21 = vpack.c.bf16 %v373_v18, %v372_v17  ;;  %v376_v23 = vld [vmem:[%s4481_s21 + $0x70] sm:$0xff]  ;;  %652 = vst.msk [vmem:[#allocation2 + $0x60] sm:$0x3] %vm647_vm3, %v4402_v50  ;;  %v4620_v13 = vrot.slane %v724_v63, %v4599_v0  ;;  %vm3800_vm6 = vcmask 64512  }
  0x16   : > { %4192 = vmatprep.mubr.msk.bf16.mxu0 %vm418_vm1, %v396_v10  ;;  %v400_v22 = vpack.c.bf16 %v375_v20, %v374_v19  ;;  %v377_v24 = vld [vmem:[%s4481_s21 + $0x78] sm:$0xff]  ;;  %v378_v25 = vld [vmem:[%s4481_s21 + $0x80] sm:$0xff]  ;;  %v379_v26 = vld [vmem:[%s4481_s21 + $0x88] sm:$0xff]  ;;  %653 = vst.msk [vmem:[#allocation2 + $0x78] sm:$0x3] %vm647_vm3, %v4402_v50  ;;  %v4615_v10 = vrot.slane %v724_v63, %v4584_v59  ;;  %v4630_v19 = vrot.slane %v723_v58, %v4603_v4 }
  0x17   : > { %v401_v27 = vpack.c.bf16 %v377_v24, %v376_v23  ;;  %v402_v28 = vpack.c.bf16 %v379_v26, %v378_v25  ;;  %v380_v29 = vld [vmem:[%s4481_s21 + $0x90] sm:$0xff]  ;;  %v381_v30 = vld [vmem:[%s4481_s21 + $0x98] sm:$0xff]  ;;  %v382_v31 = vld [vmem:[%s4481_s21 + $0xa0] sm:$0xff]  ;;  %654 = vst.msk [vmem:[#allocation2 + $0x90] sm:$0x3] %vm647_vm3, %v4402_v50  ;;  %v4646_v26 = vrot.slane %v723_v58, %v4584_v59 }
  0x18   : > { %v383_v32 = vld [vmem:[%s4481_s21 + $0xa8] sm:$0xff]  ;;  %v403_v33 = vpack.c.bf16 %v381_v30, %v380_v29  ;;  %v384_v35 = vld [vmem:[%s4481_s21 + $0xb0] sm:$0xff]  ;;  %v385_v36 = vld [vmem:[%s4481_s21 + $0xb8] sm:$0xff]  ;;  %655 = vst.msk [vmem:[#allocation2 + $0xa8] sm:$0x3] %vm647_vm3, %v4402_v50  ;;  %v4654_v29 = vrot.slane %v723_v58, %v4599_v0 }
  0x19   : > { %v404_v34 = vpack.c.bf16 %v383_v32, %v382_v31  ;;  %v386_v37 = vld [vmem:[%s4481_s21 + $0xc0] sm:$0xff]  ;;  %v387_v38 = vld [vmem:[%s4481_s21 + $0xc8] sm:$0xff]  ;;  %v405_v39 = vpack.c.bf16 %v385_v36, %v384_v35  ;;  %v388_v41 = vld [vmem:[%s4481_s21 + $0xd0] sm:$0xff]  ;;  %656 = vst.msk [vmem:[#allocation2 + $0xc0] sm:$0x3] %vm647_vm3, %v4402_v50  ;;  %v4665_v35 = vrot.slane %v724_v63, %v4617_v11 }
  0x1a   : > { %v406_v40 = vpack.c.bf16 %v387_v38, %v386_v37  ;;  %v389_v42 = vld [vmem:[%s4481_s21 + $0xd8] sm:$0xff]  ;;  %v390_v43 = vld [vmem:[%s4481_s21 + $0xe0] sm:$0xff]  ;;  %v391_v44 = vld [vmem:[%s4481_s21 + $0xe8] sm:$0xff]  ;;  %657 = vst.msk [vmem:[#allocation2 + $0xd8] sm:$0x3] %vm647_vm3, %v4402_v50 }
  0x1b   : > { %v407_v45 = vpack.c.bf16 %v389_v42, %v388_v41  ;;  %v408_v46 = vpack.c.bf16 %v391_v44, %v390_v43  ;;  %v392_v47 = vld [vmem:[%s4481_s21 + $0xf0] sm:$0xff]  ;;  %v393_v48 = vld [vmem:[%s4481_s21 + $0xf8] sm:$0xff]  ;;  %658 = vst.msk [vmem:[#allocation2 + $0xf0] sm:$0x3] %vm647_vm3, %v4402_v50  ;;  %659 = vst.msk [vmem:[#allocation2 + $0x108] sm:$0x3] %vm647_vm3, %v4402_v50 }
  0x1c   : > { %v409_v49 = vpack.c.bf16 %v393_v48, %v392_v47  ;;  %660 = vst.msk [vmem:[#allocation2 + $0x120] sm:$0x3] %vm647_vm3, %v4402_v50  ;;  %661 = vst.msk [vmem:[#allocation2 + $0x138] sm:$0x3] %vm647_vm3, %v4402_v50  ;;  %v3640_v52 = vmul.f32 1.442695, %v3639_v51  ;;  %v4685_v47 = vrot.slane %v723_v58, %v4605_v5  ;;  %v4687_v48 = vrot.slane %v724_v63, %v769_v56 }
  0x1d   : > { %4193 = vmatmul.mubr.msk.bf16.gmra.mxu0 %vm418_vm1, %v397_v15  ;;  %662 = vst.msk [vmem:[#allocation2 + $0x150] sm:$0x3] %vm647_vm3, %v4402_v50  ;;  %663 = vst.msk [vmem:[#allocation2 + $0x168] sm:$0x3] %vm647_vm3, %v4402_v50  ;;  %v721_v7 = vld [vmem:[%s8783_s4] sm:$0xff]  ;;  %v725_v9 = vld [vmem:[%s8785_s6 + $0x10] sm:$0xff] }
  0x1e   : > { %4196 = vmatprep.mubr.msk.bf16.mxu0 %vm418_vm1, %v398_v16  ;;  %664 = vst.msk [vmem:[#allocation2 + $0x180] sm:$0x3] %vm647_vm3, %v4402_v50  ;;  %665 = vst.msk [vmem:[#allocation2 + $0x198] sm:$0x3] %vm647_vm3, %v4402_v50  ;;  %4270 = vpow2.f32 %v3640_v52  ;;  %v4625_v16 = vrot.slane %v723_v58, %v4601_v1  ;;  %v4632_v20 = vrot.slane %v721_v7, %v769_v56  ;;  %v728_v42 = vld [vmem:[#allocation2 + $0x8] sm:$0xff]  ;;  %v730_v43 = vld [vmem:[#allocation2 + $0x20] sm:$0xff] }
  0x1f   : > { %670 = vst.msk [vmem:[#allocation2 + $0x42] sm:$0x3] %vm647_vm3, %v4402_v50  ;;  %671 = vst.msk [vmem:[#allocation2 + $0x5a] sm:$0x3] %vm647_vm3, %v4402_v50  ;;  %v4638_v23 = vrot.slane %v721_v7, %v4605_v5  ;;  %v4640_v24 = vrot.slane %v725_v9, %v769_v56  ;;  %v4643_v25 = vrot.slane %v721_v7, %v4603_v4  ;;  %v1691_v51 = vld [vmem:[#allocation2 + $0x2] sm:$0xff] }
  0x20   : > { %672 = vst.msk [vmem:[#allocation2 + $0x72] sm:$0x3] %vm647_vm3, %v4402_v50  ;;  %673 = vst.msk [vmem:[#allocation2 + $0x8a] sm:$0x3] %vm647_vm3, %v4402_v50  ;;  %v4657_v30 = vrot.slane %v721_v7, %v4601_v1  ;;  %v4668_v36 = vrot.slane %v721_v7, %v4617_v11  ;;  %v4673_v38 = vrot.slane %v725_v9, %v4617_v11 }
  0x21   : > { %674 = vst.msk [vmem:[#allocation2 + $0xa2] sm:$0x3] %vm647_vm3, %v4402_v50  ;;  %675 = vst.msk [vmem:[#allocation2 + $0xba] sm:$0x3] %vm647_vm3, %v4402_v50  ;;  %v4679_v41 = vrot.slane %v721_v7, %v4599_v0  ;;  %v4701_v54 = vrot.slane %v721_v7, %v4579_v57  ;;  %v4707_v58 = vrot.slane %v725_v9, %v4603_v4 }
  0x22   : > { %676 = vst.msk [vmem:[#allocation2 + $0xd2] sm:$0x3] %vm647_vm3, %v4402_v50  ;;  %677 = vst.msk [vmem:[#allocation2 + $0xea] sm:$0x3] %vm647_vm3, %v4402_v50 }
  0x23   : > { %678 = vst.msk [vmem:[#allocation2 + $0x102] sm:$0x3] %vm647_vm3, %v4402_v50  ;;  %679 = vst.msk [vmem:[#allocation2 + $0x11a] sm:$0x3] %vm647_vm3, %v4402_v50 }
  0x24   : > { %680 = vst.msk [vmem:[#allocation2 + $0x132] sm:$0x3] %vm647_vm3, %v4402_v50  ;;  %681 = vst.msk [vmem:[#allocation2 + $0x14a] sm:$0x3] %vm647_vm3, %v4402_v50 }
  0x25   : > { %4197 = vmatmul.mubr.msk.bf16.gmra.mxu0 %vm418_vm1, %v399_v21  ;;  %682 = vst.msk [vmem:[#allocation2 + $0x162] sm:$0x3] %vm647_vm3, %v4402_v50  ;;  %683 = vst.msk [vmem:[#allocation2 + $0x17a] sm:$0x3] %vm647_vm3, %v4402_v50  ;;  %v4635_v21 = vrot.slane %v724_v63, %v4605_v5 }
  0x26   : > { %4200 = vmatprep.mubr.msk.bf16.mxu0 %vm418_vm1, %v400_v22  ;;  %684 = vst.msk [vmem:[#allocation2 + $0x192] sm:$0x3] %vm647_vm3, %v4402_v50  ;;  %685 = vst.msk [vmem:[#allocation2 + $0x1aa] sm:$0x3] %vm647_vm3, %v4402_v50 }
  0x27   : > { %648 = vst.msk [vmem:[#allocation2] sm:$0x3] %vm647_vm3, %v4402_v50  ;;  %649 = vst.msk [vmem:[#allocation2 + $0x18] sm:$0x3] %vm647_vm3, %v4402_v50 }
  0x28   : > { %666 = vst.msk [vmem:[#allocation2 + $0x1b0] sm:$0x3] %vm647_vm3, %v4402_v50  ;;  %667 = vst.msk [vmem:[#allocation2 + $0x1c8] sm:$0x3] %vm647_vm3, %v4402_v50 }
  0x29   : > { %636 = vst.msk [vmem:[#allocation2 + $0x10] sm:$0xf] %vm635_vm4, %v4402_v50  ;;  %639 = vst.msk [vmem:[#allocation2 + $0x28] sm:$0xf] %vm635_vm4, %v4402_v50 }
  0x2a   : > { %643 = vst.msk [vmem:[#allocation2 + $0x1c0] sm:$0xf] %vm635_vm4, %v4402_v50  ;;  %646 = vst.msk [vmem:[#allocation2 + $0x1d8] sm:$0xf] %vm635_vm4, %v4402_v50 }
  0x2b   : > { %668 = vst.msk [vmem:[#allocation2 + $0x12] sm:$0x3] %vm647_vm3, %v4402_v50  ;;  %669 = vst.msk [vmem:[#allocation2 + $0x2a] sm:$0x3] %vm647_vm3, %v4402_v50  ;;  %v4271_v53 = vpop.eup %4270 }
  0x2c   : > { %686 = vst.msk [vmem:[#allocation2 + $0x1c2] sm:$0x3] %vm647_vm3, %v4402_v50  ;;  %687 = vst.msk [vmem:[#allocation2 + $0x1da] sm:$0x3] %vm647_vm3, %v4402_v50 }
  0x2d   : > { %4201 = vmatmul.mubr.msk.bf16.gmra.mxu0 %vm418_vm1, %v401_v27  ;;  %4256 = vpush %v4271_v53  ;;  %9181 = vst [vmem:[#allocation4_spill] sm:$0xff] %v4584_v59  ;;  %v4698_v53 = vrot.slane %v724_v63, %v4579_v57 }
  0x2e   : > { %4204 = vmatprep.mubr.msk.bf16.mxu0 %vm418_vm1, %v402_v28  ;;  %9182 = vst [vmem:[#allocation5_spill] sm:$0xff] %v4594_v62  ;;  %9183 = vst [vmem:[#allocation6_spill] sm:$0xff] %v4599_v0  ;;  %v727_v2 = vld [vmem:[#allocation2] sm:$0xff]  ;;  %v729_v3 = vld [vmem:[#allocation2 + $0x18] sm:$0xff] }
  0x2f   : > { %9184 = vst [vmem:[#allocation7_spill] sm:$0xff] %v4601_v1  ;;  %9185 = vst [vmem:[#allocation8_spill] sm:$0xff] %v4603_v4  ;;  %v771_v14 = vmul.f32 %v4591_v61, %v727_v2  ;;  %v839_v15 = vmul.f32 %v4594_v62, %v729_v3  ;;  %v1109_v18 = vld [vmem:[#allocation2 + $0x19] sm:$0xff]  ;;  %v4651_v28 = vmul.f32 %v4591_v61, %v729_v3  ;;  %v2275_v2 = vld [vmem:[#allocation2 + $0x3] sm:$0xff] }
  0x30   : > { %9186 = vst [vmem:[#allocation9_spill] sm:$0xff] %v4605_v5  ;;  %9187 = vst [vmem:[#allocation10_spill] sm:$0xff] %v4617_v11  ;;  %v772_v3 = vmul.f32 %v4591_v61, %v728_v42 }
  0x31   : > { %9188 = vst [vmem:[#allocation11_spill] sm:$0xff] %v4620_v13  ;;  %9189 = vst [vmem:[#allocation12_spill] sm:$0xff] %v4625_v16  ;;  %v4659_v32 = vadd.f32 %v839_v15, %v771_v14 }
  0x32   : > { %9190 = vst [vmem:[#allocation13_spill] sm:$0xff] %v4630_v19  ;;  %9191 = vst [vmem:[#allocation14_spill] sm:$0xff] %v4632_v20  ;;  %v2276_v5 = vld [vmem:[#allocation2 + $0xb] sm:$0xff] }
  0x33   : > { %9192 = vst [vmem:[#allocation15_spill] sm:$0xff] %v4635_v21  ;;  %9193 = vst [vmem:[#allocation16_spill] sm:$0xff] %v4638_v23 }
  0x34   : > { %9194 = vst [vmem:[#allocation17_spill] sm:$0xff] %v4640_v24  ;;  %9195 = vst [vmem:[#allocation18_spill] sm:$0xff] %v4643_v25 }
  0x35   : > { %4205 = vmatmul.mubr.msk.bf16.gmra.mxu0 %vm418_vm1, %v403_v33  ;;  %9196 = vst [vmem:[#allocation19_spill] sm:$0xff] %v4646_v26  ;;  %9197 = vst [vmem:[#allocation20_spill] sm:$0xff] %v4654_v29  ;;  %v4662_v33 = vmul.f32 %v4632_v20, %v1109_v18 }
  0x36   : > { %4208 = vmatprep.mubr.msk.bf16.mxu0 %vm418_vm1, %v404_v34  ;;  %9198 = vst [vmem:[#allocation21_spill] sm:$0xff] %v4657_v30  ;;  %v1693_v34 = vld [vmem:[#allocation2 + $0x1a] sm:$0xff]  ;;  %9199 = vst [vmem:[#allocation22_spill] sm:$0xff] %v4665_v35 }
  0x37   : > { %9200 = vst [vmem:[#allocation23_spill] sm:$0xff] %v4668_v36  ;;  %9201 = vst [vmem:[#allocation24_spill] sm:$0xff] %v4673_v38  ;;  %v4695_v52 = vmul.f32 %v4657_v30, %v1693_v34 }
  0x38   : > { %9203 = vst [vmem:[#allocation26_spill] sm:$0xff] %v4679_v41  ;;  %9205 = vst [vmem:[#allocation28_spill] sm:$0xff] %v4685_v47 }
  0x39   : > { %9206 = vst [vmem:[#allocation29_spill] sm:$0xff] %v4687_v48  ;;  %9208 = vst [vmem:[#allocation31_spill] sm:$0xff] %v4698_v53 }
  0x3a   : > { %9209 = vst [vmem:[#allocation32_spill] sm:$0xff] %v4701_v54  ;;  %9210 = vst [vmem:[#allocation33_spill] sm:$0xff] %v4707_v58 }
  0x3d   : > { %4209 = vmatmul.mubr.msk.bf16.gmra.mxu0 %vm418_vm1, %v405_v39  ;;  %v1107_v39 = vld [vmem:[#allocation2 + $0x1] sm:$0xff] }
  0x3e   : > { %4212 = vmatprep.mubr.msk.bf16.mxu0 %vm418_vm1, %v406_v40  ;;  %v4676_v40 = vrot.slane %v725_v9, %v4601_v1  ;;  %v4704_v56 = vmul.f32 %v4625_v16, %v1107_v39  ;;  %v4741_v39 = vmul.f32 %v4685_v47, %v2275_v2 }
  0x40   : > { %9202 = vst [vmem:[#allocation25_spill] sm:$0xff] %v4676_v40  ;;  %9215 = vst [vmem:[#allocation38_spill] sm:$0xff] %v4741_v39 }
  0x45   : > { %4213 = vmatmul.mubr.msk.bf16.gmra.mxu0 %vm418_vm1, %v407_v45  ;;  %v4682_v45 = vrot.slane %v725_v9, %v4579_v57  ;;  %v4717_v57 = vmul.f32 %v4630_v19, %v1109_v18  ;;  %v1108_v9 = vld [vmem:[#allocation2 + $0x9] sm:$0xff] }
  0x46   : > { %4216 = vmatprep.mubr.msk.bf16.mxu0 %vm418_vm1, %v408_v46  ;;  %v2277_v46 = vld [vmem:[#allocation2 + $0x1b] sm:$0xff] }
  0x47   : > { %9204 = vst [vmem:[#allocation27_spill] sm:$0xff] %v4682_v45  ;;  %v4744_v42 = vmul.f32 %v4687_v48, %v2277_v46 }
  0x49   : > { %9216 = vst [vmem:[#allocation39_spill] sm:$0xff] %v4744_v42 }
  0x4d   : > { %4217 = vmatmul.mubr.msk.bf16.gmra.mxu0 %vm418_vm1, %v409_v49  ;;  %v4690_v49 = vrot.slane %v721_v7, %v4584_v59 }
  0x4f   : > { %9207 = vst [vmem:[#allocation30_spill] sm:$0xff] %v4690_v49  ;;  %v4720_v7 = vmul.f32 %v4690_v49, %v2277_v46 }
  0x5e   : > { %s6235_s11 = spop %4256 }
  0x5f   : > { %s3643_s12 = sadd.f32 1.0, %s6235_s11 }
  0xd5   : > { %v4190_v6 = vpop.f32.mrf.mxu0 }
  0xd6   : > { %v514_v8 = vadd.f32 %v4190_v6, %v4589_v60  ;;  %v840_v6 = vmul.f32 %v4594_v62, %v730_v43 }
  0xd7   : > { %v505_v12 = vpop.f32.mrf.mxu0 }
  0xd8   : > { %691 = vst.msk [vmem:[#allocation2 + $0x4a] sm:$0xff] %vm632_vm2, %v514_v8  ;;  %v506_v17 = vadd.f32 %v4589_v60, %v505_v12  ;;  %v4714_v8 = vmul.f32 %v4625_v16, %v1109_v18  ;;  %v1110_v12 = vld [vmem:[#allocation2 + $0x21] sm:$0xff]  ;;  %v4734_v18 = vmul.f32 %v4685_v47, %v2277_v46 }
  0xd9   : > { %v4191_v22 = vpop.f32.mrf.mxu0  ;;  %v4762_v1 = vmul.f32 %v4625_v16, %v1110_v12 }
  0xda   : > { %689 = vst.msk [vmem:[#allocation2 + $0x32] sm:$0xff] %vm632_vm2, %v506_v17  ;;  %v517_v27 = vadd.f32 %v4191_v22, %v4589_v60  ;;  %v4725_v17 = vmul.f32 %v4646_v26, %v1691_v51  ;;  %v4728_v22 = vmul.f32 %v4646_v26, %v1693_v34  ;;  %9214 = vst [vmem:[#allocation37_spill] sm:$0xff] %v4734_v18 }
  0xdb   : > { %v508_v31 = vpop.f32.mrf.mxu0  ;;  %v4747_v51 = vmul.f32 %v4591_v61, %v730_v43  ;;  %9222 = vst [vmem:[#allocation45_spill] sm:$0xff] %v4762_v1  ;;  %v4765_v43 = vmul.f32 %v4630_v19, %v1110_v12 }
  0xdc   : > { %692 = vst.msk [vmem:[#allocation2 + $0x52] sm:$0xff] %vm632_vm2, %v517_v27  ;;  %v509_v37 = vadd.f32 %v4589_v60, %v508_v31  ;;  %9211 = vst [vmem:[#allocation34_spill] sm:$0xff] %v4725_v17  ;;  %v4731_v27 = vmul.f32 %v4654_v29, %v1693_v34 }
  0xdd   : > { %v4194_v44 = vpop.f32.mrf.mxu0  ;;  %9212 = vst [vmem:[#allocation35_spill] sm:$0xff] %v4728_v22  ;;  %9217 = vst [vmem:[#allocation40_spill] sm:$0xff] %v4747_v51 }
  0xde   : > { %690 = vst.msk [vmem:[#allocation2 + $0x3a] sm:$0xff] %vm632_vm2, %v509_v37  ;;  %v530_v50 = vadd.f32 %v4194_v44, %v4589_v60  ;;  %9213 = vst [vmem:[#allocation36_spill] sm:$0xff] %v4731_v27  ;;  %v1692_v44 = vld [vmem:[#allocation2 + $0xa] sm:$0xff] }
  0xdf   : > { %v521_v55 = vpop.f32.mrf.mxu0  ;;  %v733_v2 = vld [vmem:[#allocation2 + $0x48] sm:$0xff]  ;;  %9223 = vst [vmem:[#allocation46_spill] sm:$0xff] %v4765_v43 }
  0xe0   : > { %695 = vst.msk [vmem:[#allocation2 + $0x7a] sm:$0xff] %vm632_vm2, %v530_v50  ;;  %v522_v63 = vadd.f32 %v4589_v60, %v521_v55  ;;  %v1694_v50 = vld [vmem:[#allocation2 + $0x22] sm:$0xff]  ;;  %v4749_v55 = vadd.f32 %v840_v6, %v772_v3  ;;  %v4814_v1 = vld [vmem:[#allocation2 + $0x4a] sm:$0xff] }
  0xe1   : > { %v4195_v14 = vpop.f32.mrf.mxu0  ;;  %v4722_v15 = vld [vmem:[#allocation2 + $0x31] sm:$0xff]  ;;  %v4759_v4 = vld [vmem:[#allocation2 + $0x49] sm:$0xff]  ;;  %v4768_v3 = vmul.f32 %v4646_v26, %v1694_v50  ;;  %v4780_v59 = vmul.f32 %v4657_v30, %v1694_v50  ;;  %9233 = vst [vmem:[#allocation56_spill] sm:$0xff] %v4814_v1 }
  0xe2   : > { %693 = vst.msk [vmem:[#allocation2 + $0x62] sm:$0xff] %vm632_vm2, %v522_v63  ;;  %v533_v31 = vadd.f32 %v4195_v14, %v4589_v60  ;;  %v1423_v37 = vmul.f32 %v4638_v23, %v4722_v15  ;;  %9218 = vst [vmem:[#allocation41_spill] sm:$0xff] %v4749_v55  ;;  %v4752_v63 = vmul.f32 %v4625_v16, %v1108_v9  ;;  %v2278_v6 = vld [vmem:[#allocation2 + $0x23] sm:$0xff]  ;;  %v4770_v9 = vld [vmem:[#allocation2 + $0x30] sm:$0xff] }
  0xe3   : > { %v524_v34 = vpop.f32.mrf.mxu0  ;;  %v4755_v14 = vmul.f32 %v4632_v20, %v1110_v12  ;;  %9221 = vst [vmem:[#allocation44_spill] sm:$0xff] %v4759_v4  ;;  %9224 = vst [vmem:[#allocation47_spill] sm:$0xff] %v4768_v3  ;;  %v4785_v3 = vmul.f32 %v4685_v47, %v2276_v5  ;;  %v4788_v43 = vmul.f32 %v4685_v47, %v2278_v6  ;;  %v4830_v30 = vld [vmem:[#allocation2 + $0x50] sm:$0xff] }
  0xe4   : > { %9219 = vst [vmem:[#allocation42_spill] sm:$0xff] %v4752_v63  ;;  %696 = vst.msk [vmem:[#allocation2 + $0x82] sm:$0xff] %vm632_vm2, %v533_v31  ;;  %v525_v46 = vadd.f32 %v4589_v60, %v524_v34  ;;  %v1455_v0 = vadd.f32 %v1423_v37, %v4662_v33  ;;  %v4774_v31 = vmul.f32 %v4646_v26, %v1692_v44 }
  0xe5   : > { %9220 = vst [vmem:[#allocation43_spill] sm:$0xff] %v4755_v14  ;;  %v4198_v11 = vpop.f32.mrf.mxu0  ;;  %v4777_v34 = vmul.f32 %v4654_v29, %v1694_v50  ;;  %9227 = vst [vmem:[#allocation50_spill] sm:$0xff] %v4780_v59  ;;  %v4791_v33 = vmul.f32 %v4687_v48, %v2278_v6  ;;  %v777_v37 = vmul.f32 %v4591_v61, %v733_v2  ;;  %v4832_v20 = vld [vmem:[#allocation2 + $0x38] sm:$0xff] }
  0xe6   : > { %9225 = vst [vmem:[#allocation48_spill] sm:$0xff] %v4774_v31  ;;  %694 = vst.msk [vmem:[#allocation2 + $0x6a] sm:$0xff] %vm632_vm2, %v525_v46  ;;  %v546_v12 = vadd.f32 %v4198_v11, %v4589_v60  ;;  %v843_v44 = vmul.f32 %v4594_v62, %v733_v2  ;;  %v1559_v46 = vmul.f32 %v4643_v25, %v4759_v4  ;;  %v4812_v31 = vld [vmem:[#allocation2 + $0x32] sm:$0xff] }
  0xe7   : > { %9226 = vst [vmem:[#allocation49_spill] sm:$0xff] %v4777_v34  ;;  %9228 = vst [vmem:[#allocation51_spill] sm:$0xff] %v4785_v3  ;;  %v537_v34 = vpop.f32.mrf.mxu0  ;;  %v4795_v50 = vld [vmem:[#allocation2 + $0x78] sm:$0xff]  ;;  %v4800_v11 = vmul.f32 %v4690_v49, %v2278_v6  ;;  %v775_v5 = vmul.f32 %v4591_v61, %v4770_v9  ;;  %v4810_v3 = vmul.f32 %v4620_v13, %v733_v2 }
  0xe8   : > { %9229 = vst [vmem:[#allocation52_spill] sm:$0xff] %v4788_v43  ;;  %9230 = vst [vmem:[#allocation53_spill] sm:$0xff] %v4791_v33  ;;  %v538_v33 = vadd.f32 %v4589_v60, %v537_v34  ;;  %v4807_v43 = vmul.f32 %v4615_v10, %v733_v2  ;;  %v4820_v49 = vmul.f32 %v4625_v16, %v4759_v4  ;;  %v4864_v25 = vld [vmem:[#allocation2 + $0x33] sm:$0xff] }
  0xe9   : > { %9231 = vst [vmem:[#allocation54_spill] sm:$0xff] %v4800_v11  ;;  %699 = vst.msk [vmem:[#allocation2 + $0xaa] sm:$0xff] %vm632_vm2, %v546_v12  ;;  %v4816_v63 = vld [vmem:[#allocation2 + $0x60] sm:$0xff]  ;;  %v4199_v6 = vpop.f32.mrf.mxu0  ;;  %v4824_v34 = vmul.f32 %v4630_v19, %v4759_v4  ;;  %v4828_v12 = vmul.f32 %v4635_v21, %v4759_v4  ;;  %v1591_v2 = vadd.f32 %v1559_v46, %v1455_v0 }
  0xea   : > { %9232 = vst [vmem:[#allocation55_spill] sm:$0xff] %v4812_v31  ;;  %9234 = vst [vmem:[#allocation57_spill] sm:$0xff] %v4820_v49  ;;  %v779_v55 = vmul.f32 %v4591_v61, %v4816_v63  ;;  %v845_v51 = vmul.f32 %v4594_v62, %v4816_v63  ;;  %v549_v49 = vadd.f32 %v4199_v6, %v4589_v60  ;;  %v4901_v23 = vld [vmem:[#allocation2 + $0x79] sm:$0xff] }
  0xeb   : > { %9235 = vst [vmem:[#allocation58_spill] sm:$0xff] %v4830_v30  ;;  %9236 = vst [vmem:[#allocation59_spill] sm:$0xff] %v4832_v20  ;;  %v847_v11 = vmul.f32 %v4594_v62, %v4795_v50  ;;  %v540_v42 = vpop.f32.mrf.mxu0  ;;  %v4844_v0 = vmul.f32 %v4640_v24, %v4759_v4  ;;  %v4848_v46 = vmul.f32 %v4646_v26, %v4812_v31 }
  0xec   : > { %697 = vst.msk [vmem:[#allocation2 + $0x92] sm:$0xff] %vm632_vm2, %v538_v33  ;;  %v4852_v18 = vmul.f32 %v4654_v29, %v4812_v31  ;;  %v4856_v33 = vmul.f32 %v4654_v29, %v4814_v1  ;;  %v4858_v6 = vadd.f32 %v843_v44, %v775_v5  ;;  %v4860_v59 = vadd.f32 %v845_v51, %v777_v37 }
  0xed   : > { %9237 = vst [vmem:[#allocation60_spill] sm:$0xff] %v4848_v46  ;;  %700 = vst.msk [vmem:[#allocation2 + $0xb2] sm:$0xff] %vm632_vm2, %v549_v49  ;;  %v541_v4 = vadd.f32 %v4589_v60, %v540_v42  ;;  %v879_v39 = vadd.f32 %v847_v11, %v779_v55  ;;  %v778_v26 = vmul.f32 %v4591_v61, %v4830_v30  ;;  %v4872_v44 = vld [vmem:[#allocation2 + $0x68] sm:$0xff]  ;;  %v4202_v51 = vpop.f32.mrf.mxu0 }
  0xee   : > { %9238 = vst [vmem:[#allocation61_spill] sm:$0xff] %v4852_v18  ;;  %9239 = vst [vmem:[#allocation62_spill] sm:$0xff] %v4856_v33  ;;  %v844_v14 = vmul.f32 %v4594_v62, %v4830_v30  ;;  %v776_v29 = vmul.f32 %v4591_v61, %v4832_v20  ;;  %v1903_v37 = vadd.f32 %v4695_v52, %v1591_v2 }
  0xef   : > { %9240 = vst [vmem:[#allocation63_spill] sm:$0xff] %v4864_v25  ;;  %9241 = vst [vmem:[#allocation64_spill] sm:$0xff] %v4872_v44  ;;  %v846_v49 = vmul.f32 %v4594_v62, %v4872_v44  ;;  %v562_v42 = vadd.f32 %v4202_v51, %v4589_v60  ;;  %v4881_v55 = vmul.f32 %v4665_v35, %v4812_v31  ;;  %v553_v20 = vpop.f32.mrf.mxu0 }
  0xf0   : > { %698 = vst.msk [vmem:[#allocation2 + $0x9a] sm:$0xff] %vm632_vm2, %v541_v4  ;;  %v2007_v11 = vmul.f32 %v4668_v36, %v4812_v31  ;;  %v4885_v5 = vld [vmem:[#allocation2 + $0xa8] sm:$0xff]  ;;  %v4889_v52 = vmul.f32 %v4665_v35, %v4814_v1  ;;  %v4893_v2 = vmul.f32 %v4676_v40, %v4814_v1  ;;  %v2143_v4 = vmul.f32 %v4679_v41, %v4814_v1 }
  0xf1   : > { %9242 = vst [vmem:[#allocation65_spill] sm:$0xff] %v4881_v55  ;;  %v4899_v51 = vmul.f32 %v4685_v47, %v4864_v25  ;;  %9246 = vst [vmem:[#allocation69_spill] sm:$0xff] %v4901_v23  ;;  %v4903_v31 = vadd.f32 %v846_v49, %v778_v26  ;;  %v4914_v1 = vadd.f32 %v844_v14, %v776_v29  ;;  %v4923_v49 = vld [vmem:[#allocation2 + $0x61] sm:$0xff] }
  0xf2   : > { %9243 = vst [vmem:[#allocation66_spill] sm:$0xff] %v4889_v52  ;;  %9244 = vst [vmem:[#allocation67_spill] sm:$0xff] %v4893_v2  ;;  %v2039_v36 = vadd.f32 %v2007_v11, %v1903_v37  ;;  %v4908_v52 = vmul.f32 %v4687_v48, %v4864_v25  ;;  %v4912_v2 = vmul.f32 %v4698_v53, %v4864_v25  ;;  %v4949_v55 = vld [vmem:[#allocation2 + $0x62] sm:$0xff] }
  0xf3   : > { %9245 = vst [vmem:[#allocation68_spill] sm:$0xff] %v4899_v51  ;;  %9247 = vst [vmem:[#allocation70_spill] sm:$0xff] %v4903_v31  ;;  %v4916_v41 = vld [vmem:[#allocation2 + $0x90] sm:$0xff]  ;;  %v554_v47 = vadd.f32 %v4589_v60, %v553_v20  ;;  %v4203_v51 = vpop.f32.mrf.mxu0  ;;  %v781_v26 = vmul.f32 %v4591_v61, %v4795_v50  ;;  %v913_v37 = vmul.f32 %v4615_v10, %v4795_v50 }
  0xf4   : > { %703 = vst.msk [vmem:[#allocation2 + $0xda] sm:$0xff] %vm632_vm2, %v562_v42  ;;  %9248 = vst [vmem:[#allocation71_spill] sm:$0xff] %v4908_v52  ;;  %v851_v42 = vmul.f32 %v4594_v62, %v4885_v5  ;;  %v783_v29 = vmul.f32 %v4591_v61, %v4916_v41  ;;  %v849_v14 = vmul.f32 %v4594_v62, %v4916_v41  ;;  %v4937_v53 = vld [vmem:[#allocation2 + $0xb0] sm:$0xff] }
  0xf5   : > { %9249 = vst [vmem:[#allocation72_spill] sm:$0xff] %v4912_v2  ;;  %9250 = vst [vmem:[#allocation73_spill] sm:$0xff] %v4914_v1  ;;  %v4933_v20 = vmul.f32 %v4620_v13, %v4795_v50  ;;  %v915_v11 = vmul.f32 %v4615_v10, %v4916_v41  ;;  %v565_v48 = vadd.f32 %v4203_v51, %v4589_v60  ;;  %v556_v1 = vpop.f32.mrf.mxu0 }
  0xf6   : > { %9251 = vst [vmem:[#allocation74_spill] sm:$0xff] %v4923_v49  ;;  %701 = vst.msk [vmem:[#allocation2 + $0xc2] sm:$0xff] %vm632_vm2, %v554_v47  ;;  %v4943_v2 = vmul.f32 %v4673_v38, %v4795_v50  ;;  %v4947_v52 = vmul.f32 %v4640_v24, %v4901_v23  ;;  %v883_v18 = vadd.f32 %v851_v42, %v783_v29 }
  0xf7   : > { %9252 = vst [vmem:[#allocation75_spill] sm:$0xff] %v4949_v55  ;;  %v911_v31 = vmul.f32 %v4615_v10, %v4816_v63  ;;  %v4955_v47 = vmul.f32 %v4620_v13, %v4816_v63  ;;  %v2175_v51 = vadd.f32 %v2143_v4, %v2039_v36  ;;  %v4957_v33 = vld [vmem:[#allocation2 + $0x98] sm:$0xff]  ;;  %704 = vst.msk [vmem:[#allocation2 + $0xe2] sm:$0xff] %vm632_vm2, %v565_v48 }
  0xf8   : > { %v557_v50 = vadd.f32 %v4589_v60, %v556_v1  ;;  %v4961_v30 = vadd.f32 %v849_v14, %v781_v26  ;;  %v4965_v27 = vmul.f32 %v4673_v38, %v4816_v63  ;;  %v4969_v42 = vmul.f32 %v4635_v21, %v4923_v49  ;;  %v4983_v63 = vld [vmem:[#allocation2 + $0x7a] sm:$0xff] }
  0xf9   : > { %v852_v29 = vmul.f32 %v4594_v62, %v4937_v53  ;;  %v784_v36 = vmul.f32 %v4591_v61, %v4957_v33  ;;  %v4977_v48 = vmul.f32 %v4640_v24, %v4923_v49  ;;  %v4981_v1 = vmul.f32 %v4682_v45, %v4923_v49  ;;  %9255 = vst [vmem:[#allocation78_spill] sm:$0xff] %v4983_v63 }
  0xfa   : > { %702 = vst.msk [vmem:[#allocation2 + $0xca] sm:$0xff] %vm632_vm2, %v557_v50  ;;  %v4986_v4 = vadd.f32 %v915_v11, %v879_v39  ;;  %v4990_v26 = vmul.f32 %v4682_v45, %v4901_v23  ;;  %v4994_v14 = vmul.f32 %v4665_v35, %v4949_v55  ;;  %v4998_v24 = vmul.f32 %v4676_v40, %v4949_v55 }
  0xfb   : > { %9253 = vst [vmem:[#allocation76_spill] sm:$0xff] %v4977_v48  ;;  %9254 = vst [vmem:[#allocation77_spill] sm:$0xff] %v4981_v1  ;;  %v5002_v49 = vmul.f32 %v4591_v61, %v4872_v44  ;;  %v884_v22 = vadd.f32 %v852_v29, %v784_v36  ;;  %v5004_v50 = vld [vmem:[#allocation2 + $0xd8] sm:$0xff]  ;;  %v5007_v39 = vadd.f32 %v913_v37, %v4860_v59  ;;  %v4206_v44 = vpop.f32.mrf.mxu0 }
  0xfc   : > { %9256 = vst [vmem:[#allocation79_spill] sm:$0xff] %v4986_v4  ;;  %9257 = vst [vmem:[#allocation80_spill] sm:$0xff] %v4990_v26  ;;  %v2487_v11 = vadd.f32 %v4720_v7, %v2175_v51  ;;  %v785_v4 = vmul.f32 %v4591_v61, %v4885_v5  ;;  %v5014_v23 = vmul.f32 %v4676_v40, %v4983_v63 }
  0xfd   : > { %9258 = vst [vmem:[#allocation81_spill] sm:$0xff] %v4994_v14  ;;  %9259 = vst [vmem:[#allocation82_spill] sm:$0xff] %v4998_v24  ;;  %v5018_v35 = vmul.f32 %v4707_v58, %v4949_v55  ;;  %v5022_v29 = vmul.f32 %v4707_v58, %v4983_v63  ;;  %v5026_v59 = vmul.f32 %v4615_v10, %v4885_v5  ;;  %v5028_v7 = vld [vmem:[#allocation2 + $0xc0] sm:$0xff] }
  0xfe   : > { %9260 = vst [vmem:[#allocation83_spill] sm:$0xff] %v5014_v23  ;;  %v2591_v37 = vmul.f32 %v4701_v54, %v4864_v25  ;;  %v841_v51 = vmul.f32 %v4594_v62, %v4770_v9  ;;  %v907_v36 = vmul.f32 %v4615_v10, %v4770_v9  ;;  %v855_v40 = vmul.f32 %v4594_v62, %v5004_v50  ;;  %v5047_v25 = vld [vmem:[%s8783_s4 + $0x8] ss:$0 sm:$0xff]  ;;  %v5049_v54 = vld [vmem:[#allocation2 + $0x4b] sm:$0xff] }
  0xff   : > { %9261 = vst [vmem:[#allocation84_spill] sm:$0xff] %v5018_v35  ;;  %9262 = vst [vmem:[#allocation85_spill] sm:$0xff] %v5022_v29  ;;  %v787_v63 = vmul.f32 %v4591_v61, %v5028_v7  ;;  %v853_v55 = vmul.f32 %v4594_v62, %v5028_v7  ;;  %v919_v29 = vmul.f32 %v4615_v10, %v5028_v7  ;;  %v5055_v35 = vld [vmem:[#allocation2 + $0xe0] sm:$0xff] }
 0x100   : > { %9263 = vst [vmem:[#allocation86_spill] sm:$0xff] %v5047_v25  ;;  %9264 = vst [vmem:[#allocation87_spill] sm:$0xff] %v5049_v54  ;;  %v5053_v9 = vmul.f32 %v4620_v13, %v4885_v5  ;;  %v2623_v24 = vadd.f32 %v2591_v37, %v2487_v11  ;;  %v873_v23 = vadd.f32 %v841_v51, %v4651_v28 }
 0x101   : > { %v939_v14 = vadd.f32 %v907_v36, %v4659_v32  ;;  %v885_v46 = vadd.f32 %v853_v55, %v785_v4  ;;  %v5059_v17 = vadd.f32 %v855_v40, %v787_v63  ;;  %v5061_v26 = vadd.f32 %v919_v29, %v883_v18  ;;  %v5070_v11 = vld [vmem:[#allocation2 + $0xc8] sm:$0xff]  ;;  %v569_v29 = vpop.f32.mrf.mxu0 }
 0x102   : > { %9265 = vst [vmem:[#allocation88_spill] sm:$0xff] %v5053_v9  ;;  %v943_v1 = vadd.f32 %v911_v31, %v4858_v6  ;;  %v5066_v48 = vmul.f32 %v4673_v38, %v4885_v5  ;;  %v786_v9 = vmul.f32 %v4591_v61, %v4937_v53  ;;  %v1047_v28 = vmul.f32 %v4673_v38, %v4916_v41 }
 0x103   : > { %v2727_v32 = vmul.f32 %v5047_v25, %v5049_v54  ;;  %v856_v40 = vmul.f32 %v4594_v62, %v5055_v35  ;;  %v788_v18 = vmul.f32 %v4591_v61, %v5070_v11  ;;  %v854_v31 = vmul.f32 %v4594_v62, %v5070_v11  ;;  %v5097_v54 = vld [vmem:[#allocation2 + $0x80] sm:$0xff] }
 0x104   : > { %9266 = vst [vmem:[#allocation89_spill] sm:$0xff] %v5066_v48  ;;  %v920_v6 = vmul.f32 %v4615_v10, %v5070_v11  ;;  %v921_v55 = vmul.f32 %v4615_v10, %v5004_v50  ;;  %v941_v63 = vadd.f32 %v4807_v43, %v873_v23  ;;  %v1007_v4 = vadd.f32 %v4810_v3, %v939_v14 }
 0x105   : > { %v5086_v5 = vadd.f32 %v2727_v32, %v2623_v24  ;;  %v5090_v37 = vadd.f32 %v854_v31, %v786_v9  ;;  %v5092_v51 = vadd.f32 %v856_v40, %v788_v18  ;;  %v1011_v48 = vadd.f32 %v4933_v20, %v943_v1  ;;  %v5113_v9 = vld [vmem:[#allocation2 + $0x91] sm:$0xff] }
 0x106   : > { %v5094_v36 = vadd.f32 %v920_v6, %v884_v22  ;;  %v850_v25 = vmul.f32 %v4594_v62, %v4957_v33  ;;  %v1009_v23 = vadd.f32 %v4955_v47, %v941_v63  ;;  %v1075_v24 = vadd.f32 %v4965_v27, %v1007_v4  ;;  %v5115_v32 = vld [vmem:[#allocation2 + $0x92] sm:$0xff] }
 0x107   : > { %9267 = vst [vmem:[#allocation90_spill] sm:$0xff] %v5086_v5  ;;  %9268 = vst [vmem:[#allocation91_spill] sm:$0xff] %v5092_v51  ;;  %3271 = vrot.lane.b32.xlu0 %v5086_v5, %s4403_s18  ;;  %v1155_v43 = vmul.f32 %v4625_v16, %v4722_v15  ;;  %v1079_v22 = vadd.f32 %v1047_v28, %v1011_v48  ;;  %v578_v3 = vadd.f32 %v4206_v44, %v4589_v60  ;;  %v9320_v51 = vld [vmem:[#allocation72_spill] sm:$0xff] }
 0x108   : > { %v570_v20 = vadd.f32 %v4589_v60, %v569_v29  ;;  %v5109_v1 = vadd.f32 %v921_v55, %v885_v46  ;;  %v981_v14 = vmul.f32 %v4620_v13, %v4916_v41  ;;  %9269 = vst [vmem:[#allocation92_spill] sm:$0xff] %v5115_v32  ;;  %v1077_v47 = vadd.f32 %v4943_v2, %v1009_v23 }
 0x109   : > { %v1183_v27 = vadd.f32 %v4704_v56, %v1075_v24  ;;  %v782_v48 = vmul.f32 %v4591_v61, %v5097_v54  ;;  %v916_v44 = vmul.f32 %v4615_v10, %v4957_v33  ;;  %v1187_v28 = vadd.f32 %v1155_v43, %v1079_v22  ;;  %707 = vst.msk [vmem:[#allocation2 + $0x10a] sm:$0xff] %vm632_vm2, %v578_v3 }
 0x10a   : > { %v1221_v46 = vmul.f32 %v4630_v19, %v4722_v15  ;;  %705 = vst.msk [vmem:[#allocation2 + $0xf2] sm:$0xff] %vm632_vm2, %v570_v20  ;;  %v848_v41 = vmul.f32 %v4594_v62, %v5097_v54  ;;  %v1185_v2 = vadd.f32 %v4714_v8, %v1077_v47  ;;  %v1355_v40 = vmul.f32 %v4635_v21, %v4722_v15 }
 0x10b   : > { %v1251_v56 = vadd.f32 %v4717_v57, %v1183_v27  ;;  %v882_v18 = vadd.f32 %v850_v25, %v782_v48  ;;  %v1631_v31 = vmul.f32 %v4682_v45, %v5113_v9  ;;  %v5137_v6 = vmul.f32 %v4707_v58, %v5115_v32 }
 0x10c   : > { %v1255_v55 = vadd.f32 %v4824_v34, %v1187_v28  ;;  %v880_v63 = vadd.f32 %v848_v41, %v5002_v49  ;;  %v918_v8 = vmul.f32 %v4615_v10, %v4937_v53  ;;  %v5145_v57 = vmul.f32 %v4620_v13, %v4937_v53  ;;  %v9283_v28 = vld [vmem:[#allocation80_spill] sm:$0xff]  ;;  %v9284_v41 = vld [vmem:[#allocation34_spill] sm:$0xff] }
 0x10d   : > { %v1253_v4 = vadd.f32 %v1221_v46, %v1185_v2  ;;  %v1387_v25 = vadd.f32 %v1355_v40, %v1251_v56  ;;  %v5149_v29 = vmul.f32 %v4673_v38, %v4937_v53  ;;  %v982_v23 = vmul.f32 %v4620_v13, %v4957_v33  ;;  %v9286_v40 = vld [vmem:[#allocation60_spill] sm:$0xff] }
 0x10e   : > { %9270 = vst [vmem:[#allocation93_spill] sm:$0xff] %v5145_v57  ;;  %v1391_v34 = vadd.f32 %v4969_v42, %v1255_v55  ;;  %v5154_v24 = vadd.f32 %v916_v44, %v880_v63  ;;  %v5158_v49 = vadd.f32 %v5026_v59, %v4961_v30  ;;  %v5161_v43 = vadd.f32 %v981_v14, %v5007_v39  ;;  %v9279_v14 = vld [vmem:[#allocation77_spill] sm:$0xff]  ;;  %v9287_v63 = vld [vmem:[#allocation35_spill] sm:$0xff] }
 0x10f   : > { %9271 = vst [vmem:[#allocation94_spill] sm:$0xff] %v5149_v29  ;;  %v1389_v22 = vadd.f32 %v4828_v12, %v1253_v4  ;;  %v1523_v3 = vadd.f32 %v4844_v0, %v1387_v25  ;;  %v5167_v53 = vmul.f32 %v4591_v61, %v5004_v50  ;;  %v987_v42 = vmul.f32 %v4620_v13, %v5004_v50  ;;  %v9278_v0 = vld [vmem:[#allocation76_spill] sm:$0xff] }
 0x110   : > { %9272 = vst [vmem:[#allocation95_spill] sm:$0xff] %v5154_v24  ;;  %9273 = vst [vmem:[#allocation96_spill] sm:$0xff] %v5158_v49  ;;  %v5173_v20 = vmul.f32 %v4673_v38, %v5004_v50  ;;  %v1527_v30 = vadd.f32 %v4947_v52, %v1391_v34  ;;  %v5178_v39 = vmul.f32 %v4620_v13, %v5028_v7  ;;  %v9288_v25 = vld [vmem:[#allocation36_spill] sm:$0xff]  ;;  %v749_v5 = vld [vmem:[#allocation2 + $0x108] sm:$0xff] }
 0x111   : > { %9274 = vst [vmem:[#allocation97_spill] sm:$0xff] %v5161_v43  ;;  %v5182_v12 = vmul.f32 %v4673_v38, %v5028_v7  ;;  %v1525_v59 = vadd.f32 %v9278_v0, %v1389_v22  ;;  %v1659_v47 = vadd.f32 %v9279_v14, %v1523_v3  ;;  %v5188_v27 = vmul.f32 %v4591_v61, %v5055_v35  ;;  %v9289_v22 = vld [vmem:[#allocation58_spill] sm:$0xff]  ;;  %v5228_v0 = vld [vmem:[#allocation2 + $0x39] sm:$0xff] }
 0x112   : > { %9275 = vst [vmem:[#allocation98_spill] sm:$0xff] %v5173_v20  ;;  %9276 = vst [vmem:[#allocation99_spill] sm:$0xff] %v5178_v39  ;;  %v5192_v50 = vmul.f32 %v4615_v10, %v5055_v35  ;;  %v5196_v52 = vmul.f32 %v4620_v13, %v5055_v35  ;;  %v1663_v48 = vadd.f32 %v1631_v31, %v1527_v30  ;;  %v9290_v30 = vld [vmem:[#allocation64_spill] sm:$0xff]  ;;  %v5303_v24 = vld [vmem:[#allocation2 + $0x52] sm:$0xff] }
 0x113   : > { %9277 = vst [vmem:[#allocation100_spill] sm:$0xff] %v5182_v12  ;;  %9280 = vst [vmem:[#allocation76_spill] sm:$0xff] %v5188_v27  ;;  %v5200_v7 = vmul.f32 %v4673_v38, %v5055_v35  ;;  %v5204_v44 = vmul.f32 %v4620_v13, %v5070_v11  ;;  %v1661_v46 = vadd.f32 %v9283_v28, %v1525_v59  ;;  %v9291_v59 = vld [vmem:[#allocation62_spill] sm:$0xff]  ;;  %v9293_v28 = vld [vmem:[#allocation61_spill] sm:$0xff] }
 0x114   : > { %v1767_v2 = vadd.f32 %v9284_v41, %v1659_v47  ;;  %v5210_v56 = vmul.f32 %v4673_v38, %v5070_v11  ;;  %v1771_v55 = vadd.f32 %v9286_v40, %v1663_v48  ;;  %v5214_v31 = vadd.f32 %v987_v42, %v5061_v26  ;;  %v9292_v42 = vld [vmem:[#allocation70_spill] sm:$0xff]  ;;  %v9294_v41 = vld [vmem:[#allocation65_spill] sm:$0xff]  ;;  %v9310_v12 = vld [vmem:[#allocation68_spill] sm:$0xff] }
 0x115   : > { %9281 = vst [vmem:[#allocation77_spill] sm:$0xff] %v5200_v7  ;;  %9282 = vst [vmem:[#allocation101_spill] sm:$0xff] %v5204_v44  ;;  %v914_v35 = vmul.f32 %v4615_v10, %v5097_v54  ;;  %v1769_v4 = vadd.f32 %v9287_v63, %v1661_v46  ;;  %v5222_v3 = vmul.f32 %v4615_v10, %v9289_v22  ;;  %v9303_v44 = vld [vmem:[#allocation43_spill] sm:$0xff] }
 0x116   : > { %9285 = vst [vmem:[#allocation80_spill] sm:$0xff] %v5210_v56  ;;  %v1835_v34 = vadd.f32 %v9288_v25, %v1767_v2  ;;  %v5226_v11 = vmul.f32 %v4615_v10, %v9290_v30  ;;  %v1839_v26 = vadd.f32 %v9291_v59, %v1771_v55  ;;  %v5234_v47 = vmul.f32 %v4620_v13, %v9289_v22  ;;  %v5248_v55 = vld [vmem:[#allocation2 + $0x51] sm:$0xff] }
 0x117   : > { %v946_v14 = vadd.f32 %v914_v35, %v9292_v42  ;;  %v5238_v48 = vmul.f32 %v4620_v13, %v9290_v30  ;;  %v1837_v46 = vadd.f32 %v9293_v28, %v1769_v4  ;;  %v5242_v40 = vadd.f32 %v918_v8, %v882_v18  ;;  %v9296_v35 = vld [vmem:[#allocation81_spill] sm:$0xff]  ;;  %v9298_v4 = vld [vmem:[#allocation16_spill] sm:$0xff]  ;;  %v9299_v18 = vld [vmem:[#allocation66_spill] sm:$0xff] }
 0x118   : > { %v1971_v2 = vadd.f32 %v9294_v41, %v1835_v34  ;;  %v5246_v63 = vmul.f32 %v4620_v13, %v5097_v54  ;;  %v1975_v25 = vadd.f32 %v9296_v35, %v1839_v26  ;;  %v5255_v59 = vmul.f32 %v4673_v38, %v9290_v30  ;;  %v5259_v34 = vld [vmem:[#allocation2 + $0x69] sm:$0xff]  ;;  %v9300_v28 = vld [vmem:[#allocation67_spill] sm:$0xff] }
 0x119   : > { %9295 = vst [vmem:[#allocation34_spill] sm:$0xff] %v5242_v40  ;;  %v5251_v22 = vadd.f32 %v982_v23, %v946_v14  ;;  %v1424_v42 = vmul.f32 %v9298_v4, %v5228_v0  ;;  %v1973_v8 = vadd.f32 %v9299_v18, %v1837_v46  ;;  %v5265_v7 = vmul.f32 %v4673_v38, %v5097_v54  ;;  %v9301_v30 = vld [vmem:[#allocation83_spill] sm:$0xff]  ;;  %v747_v14 = vld [vmem:[#allocation2 + $0xf0] sm:$0xff]  ;;  %v9306_v54 = vld [vmem:[#allocation84_spill] sm:$0xff] }
 0x11a   : > { %v2107_v41 = vadd.f32 %v9300_v28, %v1971_v2  ;;  %v5269_v23 = vmul.f32 %v4673_v38, %v4957_v33  ;;  %v2111_v26 = vadd.f32 %v9301_v30, %v1975_v25  ;;  %v5274_v35 = vmul.f32 %v4625_v16, %v5248_v55  ;;  %v9304_v2 = vld [vmem:[#allocation18_spill] sm:$0xff]  ;;  %v5289_v30 = vld [vmem:[#allocation2 + $0x3a] sm:$0xff] }
 0x11b   : > { %9297 = vst [vmem:[#allocation60_spill] sm:$0xff] %v5251_v22  ;;  %v1456_v46 = vadd.f32 %v1424_v42, %v9303_v44  ;;  %v1560_v18 = vmul.f32 %v9304_v2, %v5248_v55  ;;  %v9305_v28 = vld [vmem:[#allocation82_spill] sm:$0xff]  ;;  %v5283_v33 = vmul.f32 %v4630_v19, %v5248_v55  ;;  %v5287_v25 = vmul.f32 %v4635_v21, %v5248_v55  ;;  %v9313_v22 = vld [vmem:[#allocation23_spill] sm:$0xff] }
 0x11c   : > { %9302 = vst [vmem:[#allocation35_spill] sm:$0xff] %v5274_v35  ;;  %v2109_v40 = vadd.f32 %v9305_v28, %v1973_v8  ;;  %v2243_v20 = vadd.f32 %v9306_v54, %v2107_v41  ;;  %v2247_v39 = vadd.f32 %v5137_v6, %v2111_v26  ;;  %v5293_v44 = vmul.f32 %v4591_v61, %v749_v5  ;;  %v9308_v41 = vld [vmem:[#allocation85_spill] sm:$0xff]  ;;  %v9309_v54 = vld [vmem:[#allocation38_spill] sm:$0xff] }
 0x11d   : > { %v5297_v42 = vmul.f32 %v4635_v21, %v5259_v34  ;;  %v1592_v8 = vadd.f32 %v1560_v18, %v1456_v46  ;;  %v791_v56 = vmul.f32 %v4591_v61, %v747_v14  ;;  %v857_v57 = vmul.f32 %v4594_v62, %v747_v14  ;;  %v9312_v35 = vld [vmem:[#allocation50_spill] sm:$0xff]  ;;  %v9314_v18 = vld [vmem:[#allocation37_spill] sm:$0xff] }
 0x11e   : > { %9307 = vst [vmem:[#allocation36_spill] sm:$0xff] %v5293_v44  ;;  %v2245_v28 = vadd.f32 %v9308_v41, %v2109_v40  ;;  %v2351_v49 = vadd.f32 %v9309_v54, %v2243_v20  ;;  %v5306_v6 = vadd.f32 %v9310_v12, %v2247_v39  ;;  %v923_v26 = vmul.f32 %v4615_v10, %v747_v14  ;;  %v9315_v41 = vld [vmem:[#allocation39_spill] sm:$0xff] }
 0x11f   : > { %v1904_v29 = vadd.f32 %v9312_v35, %v1592_v8  ;;  %v2008_v46 = vmul.f32 %v9313_v22, %v5289_v30  ;;  %v989_v54 = vmul.f32 %v4620_v13, %v747_v14  ;;  %v1055_v43 = vmul.f32 %v4673_v38, %v747_v14  ;;  %v9318_v8 = vld [vmem:[#allocation71_spill] sm:$0xff] }
 0x120   : > { %9311 = vst [vmem:[#allocation58_spill] sm:$0xff] %v5306_v6  ;;  %v2353_v40 = vadd.f32 %v9314_v18, %v2245_v28  ;;  %v2419_v20 = vadd.f32 %v9315_v41, %v2351_v49  ;;  %v859_v44 = vmul.f32 %v4594_v62, %v749_v5  ;;  %v5318_v39 = vmul.f32 %v4615_v10, %v749_v5  ;;  %v9317_v6 = vld [vmem:[#allocation26_spill] sm:$0xff]  ;;  %v5334_v18 = vld [vmem:[#allocation2 + $0x3b] sm:$0xff] }
 0x121   : > { %v2040_v12 = vadd.f32 %v2008_v46, %v1904_v29  ;;  %v2144_v35 = vmul.f32 %v9317_v6, %v5303_v24  ;;  %v5329_v49 = vmul.f32 %v4620_v13, %v749_v5  ;;  %v5332_v14 = vmul.f32 %v4673_v38, %v749_v5 }
 0x122   : > { %9316 = vst [vmem:[#allocation64_spill] sm:$0xff] %v5318_v39  ;;  %v5323_v32 = vadd.f32 %v9318_v8, %v2353_v40  ;;  %v5326_v28 = vadd.f32 %v9320_v51, %v2419_v20  ;;  %v5337_v41 = vadd.f32 %v857_v57, %v5167_v53  ;;  %v5339_v29 = vadd.f32 %v859_v44, %v791_v56  ;;  %v5344_v8 = vld [vmem:[#allocation2 + $0x53] sm:$0xff]  ;;  %v4207_v51 = vpop.f32.mrf.mxu0  ;;  %v9330_v53 = vld [vmem:[#allocation17_spill] sm:$0xff]  ;;  %v9338_v39 = vld [vmem:[#allocation44_spill] sm:$0xff] }
 0x123   : > { %9322 = vst [vmem:[#allocation61_spill] sm:$0xff] %v5329_v49  ;;  %9323 = vst [vmem:[#allocation65_spill] sm:$0xff] %v5332_v14  ;;  %v5342_v46 = vadd.f32 %v923_v26, %v5059_v17  ;;  %v2176_v40 = vadd.f32 %v2144_v35, %v2040_v12  ;;  %v5347_v20 = vadd.f32 %v989_v54, %v5109_v1  ;;  %v9329_v14 = vld [vmem:[#allocation59_spill] sm:$0xff]  ;;  %v9331_v56 = vld [vmem:[#allocation54_spill] sm:$0xff] }
 0x124   : > { %9319 = vst [vmem:[#allocation62_spill] sm:$0xff] %v5323_v32  ;;  %9321 = vst [vmem:[#allocation70_spill] sm:$0xff] %v5326_v28  ;;  %v5350_v5 = vadd.f32 %v1055_v43, %v5214_v31  ;;  %v842_v32 = vmul.f32 %v4594_v62, %v9329_v14  ;;  %v908_v57 = vmul.f32 %v4615_v10, %v9329_v14  ;;  %v9332_v26 = vld [vmem:[#allocation32_spill] sm:$0xff]  ;;  %v9333_v35 = vld [vmem:[#allocation73_spill] sm:$0xff] }
 0x125   : > { %9324 = vst [vmem:[#allocation81_spill] sm:$0xff] %v5337_v41  ;;  %9325 = vst [vmem:[#allocation66_spill] sm:$0xff] %v5339_v29  ;;  %v1492_v17 = vmul.f32 %v9330_v53, %v5248_v55  ;;  %v2488_v44 = vadd.f32 %v9331_v56, %v2176_v40  ;;  %v2592_v12 = vmul.f32 %v9332_v26, %v5334_v18  ;;  %v9334_v43 = vld [vmem:[#allocation86_spill] sm:$0xff]  ;;  %v9335_v54 = vld [vmem:[#allocation40_spill] sm:$0xff] }
 0x126   : > { %9326 = vst [vmem:[#allocation67_spill] sm:$0xff] %v5342_v46  ;;  %9327 = vst [vmem:[#allocation83_spill] sm:$0xff] %v5347_v20  ;;  %v944_v1 = vadd.f32 %v5226_v11, %v9333_v35  ;;  %v2728_v31 = vmul.f32 %v9334_v43, %v5344_v8  ;;  %v874_v20 = vadd.f32 %v842_v32, %v9335_v54  ;;  %v5368_v29 = vld [vmem:[#allocation2 + $0x81] sm:$0xff]  ;;  %v9337_v56 = vld [vmem:[#allocation14_spill] sm:$0xff] }
 0x127   : > { %9328 = vst [vmem:[#allocation43_spill] sm:$0xff] %v5350_v5  ;;  %v9336_v5 = vld [vmem:[#allocation41_spill] sm:$0xff]  ;;  %v581_v14 = vadd.f32 %v4207_v51, %v4589_v60  ;;  %v2624_v49 = vadd.f32 %v2592_v12, %v2488_v44  ;;  %v1289_v46 = vmul.f32 %v9337_v56, %v4722_v15  ;;  %v1425_v11 = vmul.f32 %v9298_v4, %v9338_v39  ;;  %v9339_v51 = vld [vmem:[#allocation74_spill] sm:$0xff]  ;;  %v572_v44 = vpop.f32.mrf.mxu0  ;;  %v9359_v41 = vld [vmem:[#allocation47_spill] sm:$0xff] }
 0x128   : > { %v940_v28 = vadd.f32 %v908_v57, %v9336_v5  ;;  %v1012_v40 = vadd.f32 %v5246_v63, %v944_v1  ;;  %v1494_v35 = vmul.f32 %v9330_v53, %v5259_v34  ;;  %v942_v32 = vadd.f32 %v5222_v3, %v874_v20 }
 0x129   : > { %708 = vst.msk [vmem:[#allocation2 + $0x112] sm:$0xff] %vm632_vm2, %v581_v14  ;;  %v1561_v57 = vmul.f32 %v9304_v2, %v9339_v51  ;;  %v5382_v63 = vadd.f32 %v2728_v31, %v2624_v49  ;;  %v1156_v12 = vmul.f32 %v4625_v16, %v5228_v0  ;;  %v1457_v1 = vadd.f32 %v1425_v11, %v1289_v46  ;;  %v9341_v31 = vld [vmem:[#allocation55_spill] sm:$0xff]  ;;  %v9342_v46 = vld [vmem:[#allocation21_spill] sm:$0xff]  ;;  %v9344_v16 = vld [vmem:[#allocation42_spill] sm:$0xff] }
 0x12a   : > { %v1008_v5 = vadd.f32 %v5234_v47, %v940_v28  ;;  %v1080_v15 = vadd.f32 %v5269_v23, %v1012_v40  ;;  %v1496_v54 = vmul.f32 %v9330_v53, %v5368_v29  ;;  %v1628_v3 = vmul.f32 %v4682_v45, %v5259_v34  ;;  %v5399_v40 = vld [vmem:[#allocation2 + $0x99] sm:$0xff] }
 0x12b   : > { %9340 = vst [vmem:[#allocation82_spill] sm:$0xff] %v5382_v63  ;;  %v1010_v47 = vadd.f32 %v5238_v48, %v942_v32  ;;  %v1630_v49 = vmul.f32 %v4682_v45, %v5368_v29  ;;  %3273 = vrot.lane.b32.xlu1 %v5382_v63, %s4403_s18  ;;  %v1593_v20 = vadd.f32 %v1561_v57, %v1457_v1  ;;  %9343 = vst [vmem:[#allocation84_spill] sm:$0xff] %v5399_v40  ;;  %v4210_v32 = vpop.f32.mrf.mxu0  ;;  %v9346_v57 = vld [vmem:[#allocation56_spill] sm:$0xff] }
 0x12c   : > { %v1076_v28 = vadd.f32 %v5255_v59, %v1008_v5  ;;  %v1188_v23 = vadd.f32 %v1156_v12, %v1080_v15  ;;  %v1873_v14 = vmul.f32 %v9342_v46, %v9341_v31  ;;  %v573_v48 = vadd.f32 %v4589_v60, %v572_v44  ;;  %v9347_v31 = vld [vmem:[#allocation45_spill] sm:$0xff] }
 0x12d   : > { %v1078_v11 = vadd.f32 %v5265_v7, %v1010_v47  ;;  %v5406_v59 = vadd.f32 %v5192_v50, %v5090_v37  ;;  %v2009_v12 = vmul.f32 %v9313_v22, %v9346_v57  ;;  %v594_v1 = vadd.f32 %v4210_v32, %v4589_v60  ;;  %v9348_v7 = vld [vmem:[#allocation46_spill] sm:$0xff]  ;;  %v9351_v32 = vld [vmem:[#allocation75_spill] sm:$0xff] }
 0x12e   : > { %v1184_v53 = vadd.f32 %v9344_v16, %v1076_v28  ;;  %v1256_v5 = vadd.f32 %v5283_v33, %v1188_v23  ;;  %v1905_v15 = vadd.f32 %v1873_v14, %v1593_v20  ;;  %v1222_v16 = vmul.f32 %v4630_v19, %v5228_v0  ;;  %706 = vst.msk [vmem:[#allocation2 + $0xfa] sm:$0xff] %vm632_vm2, %v573_v48  ;;  %v9349_v33 = vld [vmem:[#allocation19_spill] sm:$0xff]  ;;  %v5425_v23 = vld [vmem:[#allocation2 + $0x6a] sm:$0xff] }
 0x12f   : > { %9345 = vst [vmem:[#allocation85_spill] sm:$0xff] %v5406_v59  ;;  %v1186_v63 = vadd.f32 %v9347_v31, %v1078_v11  ;;  %v1356_v37 = vmul.f32 %v4635_v21, %v5228_v0  ;;  %v1632_v50 = vmul.f32 %v4682_v45, %v5399_v40  ;;  %v1740_v47 = vmul.f32 %v9349_v33, %v5289_v30  ;;  %v9353_v45 = vld [vmem:[#allocation63_spill] sm:$0xff]  ;;  %v5444_v19 = vld [vmem:[#allocation2 + $0x63] sm:$0xff] }
 0x130   : > { %v1252_v44 = vadd.f32 %v9348_v7, %v1184_v53  ;;  %v1392_v60 = vadd.f32 %v5297_v42, %v1256_v5  ;;  %v2041_v28 = vadd.f32 %v2009_v12, %v1905_v15  ;;  %711 = vst.msk [vmem:[#allocation2 + $0x13a] sm:$0xff] %vm632_vm2, %v594_v1  ;;  %v9350_v53 = vld [vmem:[#allocation20_spill] sm:$0xff]  ;;  %v2145_v48 = vmul.f32 %v9317_v6, %v9351_v32  ;;  %v9352_v7 = vld [vmem:[#allocation22_spill] sm:$0xff] }
 0x131   : > { %v1806_v20 = vmul.f32 %v9350_v53, %v5289_v30  ;;  %v1254_v14 = vadd.f32 %v1222_v16, %v1186_v63  ;;  %v1808_v31 = vmul.f32 %v9350_v53, %v5303_v24  ;;  %v1940_v33 = vmul.f32 %v9352_v7, %v5289_v30  ;;  %v9354_v63 = vld [vmem:[#allocation30_spill] sm:$0xff]  ;;  %9356 = vst [vmem:[#allocation38_spill] sm:$0xff] %v5444_v19 }
 0x132   : > { %v1388_v11 = vadd.f32 %v1356_v37, %v1252_v44  ;;  %v1942_v42 = vmul.f32 %v9352_v7, %v5303_v24  ;;  %v1528_v5 = vadd.f32 %v1496_v54, %v1392_v60  ;;  %v2177_v1 = vadd.f32 %v2145_v48, %v2041_v28  ;;  %v9355_v37 = vld [vmem:[#allocation25_spill] sm:$0xff]  ;;  %v9357_v28 = vld [vmem:[#allocation87_spill] sm:$0xff] }
 0x133   : > { %v1390_v15 = vadd.f32 %v5287_v25, %v1254_v14  ;;  %v2457_v16 = vmul.f32 %v9354_v63, %v9353_v45  ;;  %v1944_v44 = vmul.f32 %v9352_v7, %v5425_v23  ;;  %v2076_v53 = vmul.f32 %v9355_v37, %v5303_v24  ;;  %v5448_v54 = vld [vmem:[#allocation2 + $0x82] sm:$0xff] }
 0x134   : > { %v1524_v12 = vadd.f32 %v1492_v17, %v1388_v11  ;;  %v1664_v21 = vadd.f32 %v1632_v50, %v1528_v5  ;;  %v1290_v40 = vmul.f32 %v9337_v56, %v5228_v0  ;;  %v2593_v45 = vmul.f32 %v9332_v26, %v9357_v28  ;;  %v5458_v5 = vld [vmem:[#allocation2 + $0x9a] sm:$0xff] }
 0x135   : > { %v1526_v25 = vadd.f32 %v1494_v35, %v1390_v15  ;;  %v2489_v60 = vadd.f32 %v2457_v16, %v2177_v1  ;;  %v2078_v14 = vmul.f32 %v9355_v37, %v5425_v23  ;;  %v1426_v50 = vmul.f32 %v9298_v4, %v5248_v55  ;;  %v9358_v7 = vld [vmem:[#allocation48_spill] sm:$0xff] }
 0x136   : > { %v1660_v17 = vadd.f32 %v1628_v3, %v1524_v12  ;;  %v1772_v11 = vadd.f32 %v1740_v47, %v1664_v21  ;;  %v1562_v48 = vmul.f32 %v9304_v2, %v5259_v34  ;;  %v2729_v15 = vmul.f32 %v9334_v43, %v5444_v19 }
 0x137   : > { %v1662_v0 = vadd.f32 %v1630_v49, %v1526_v25  ;;  %v2625_v3 = vadd.f32 %v2593_v45, %v2489_v60  ;;  %v2080_v12 = vmul.f32 %v9355_v37, %v5448_v54  ;;  %v2212_v21 = vmul.f32 %v4707_v58, %v5425_v23  ;;  %v9360_v49 = vld [vmem:[#allocation49_spill] sm:$0xff]  ;;  %v9362_v45 = vld [vmem:[#allocation28_spill] sm:$0xff] }
 0x138   : > { %v1768_v35 = vadd.f32 %v9358_v7, %v1660_v17  ;;  %v1840_v47 = vadd.f32 %v1808_v31, %v1772_v11  ;;  %v1458_v1 = vadd.f32 %v1426_v50, %v1290_v40  ;;  %v2214_v16 = vmul.f32 %v4707_v58, %v5448_v54  ;;  %v5471_v7 = vld [vmem:[#allocation2 + $0x110] sm:$0xff]  ;;  %v9363_v40 = vld [vmem:[#allocation29_spill] sm:$0xff]  ;;  %v9364_v50 = vld [vmem:[#allocation31_spill] sm:$0xff] }
 0x139   : > { %v1770_v59 = vadd.f32 %v9359_v41, %v1662_v0  ;;  %v5473_v17 = vadd.f32 %v2729_v15, %v2625_v3  ;;  %v2216_v60 = vmul.f32 %v4707_v58, %v5458_v5  ;;  %v2324_v37 = vmul.f32 %v9362_v45, %v5334_v18 }
 0x13a   : > { %v1836_v25 = vadd.f32 %v9360_v49, %v1768_v35  ;;  %v1976_v27 = vadd.f32 %v1944_v44, %v1840_v47  ;;  %v1594_v31 = vadd.f32 %v1562_v48, %v1458_v1  ;;  %v2390_v11 = vmul.f32 %v9363_v40, %v5334_v18 }
 0x13b   : > { %9361 = vst [vmem:[#allocation68_spill] sm:$0xff] %v5473_v17  ;;  %v2524_v41 = vmul.f32 %v9364_v50, %v5334_v18  ;;  %v1838_v0 = vadd.f32 %v1806_v20, %v1770_v59  ;;  %3275 = vrot.lane.b32.xlu0 %v5473_v17, %s4403_s18  ;;  %v5487_v15 = vmul.f32 %v4591_v61, %v5471_v7 }
 0x13c   : > { %v1972_v35 = vadd.f32 %v1940_v33, %v1836_v25  ;;  %v2112_v3 = vadd.f32 %v2080_v12, %v1976_v27  ;;  %v5491_v44 = vadd.f32 %v5196_v52, %v5094_v36  ;;  %v1874_v48 = vmul.f32 %v9342_v46, %v5289_v30 }
 0x13d   : > { %v1974_v47 = vadd.f32 %v1942_v42, %v1838_v0  ;;  %v5497_v59 = vmul.f32 %v4594_v62, %v5471_v7  ;;  %v2010_v27 = vmul.f32 %v9313_v22, %v5303_v24  ;;  %v1291_v12 = vmul.f32 %v9337_v56, %v9338_v39  ;;  %v585_v42 = vpop.f32.mrf.mxu0  ;;  %v5513_v0 = vld [vmem:[#allocation2 + $0x6b] sm:$0xff] }
 0x13e   : > { %v2108_v1 = vadd.f32 %v2076_v53, %v1972_v35  ;;  %v2248_v33 = vadd.f32 %v2216_v60, %v2112_v3  ;;  %v1906_v20 = vadd.f32 %v1874_v48, %v1594_v31  ;;  %v1427_v36 = vmul.f32 %v9298_v4, %v9339_v51  ;;  %v748_v60 = vld [vmem:[#allocation2 + $0xf8] sm:$0xff]  ;;  %9366 = vst [vmem:[#allocation37_spill] sm:$0xff] %v5513_v0  ;;  %v9367_v35 = vld [vmem:[#allocation69_spill] sm:$0xff] }
 0x13f   : > { %v2110_v52 = vadd.f32 %v2078_v14, %v1974_v47  ;;  %v5507_v30 = vmul.f32 %v4615_v10, %v5471_v7  ;;  %v2146_v53 = vmul.f32 %v9317_v6, %v5425_v23  ;;  %v1563_v3 = vmul.f32 %v9304_v2, %v9367_v35 }
 0x140   : > { %v2244_v49 = vadd.f32 %v2212_v21, %v2108_v1  ;;  %v5511_v25 = vadd.f32 %v2324_v37, %v2248_v33  ;;  %v2042_v31 = vadd.f32 %v2010_v27, %v1906_v20  ;;  %v1459_v39 = vadd.f32 %v1427_v36, %v1291_v12  ;;  %v9368_v21 = vld [vmem:[#allocation51_spill] sm:$0xff]  ;;  %v5527_v33 = vld [vmem:[%s8782_s3] ss:$0 sm:$0xff]  ;;  %v9370_v36 = vld [vmem:[#allocation53_spill] sm:$0xff] }
 0x141   : > { %v2246_v14 = vadd.f32 %v2214_v16, %v2110_v52  ;;  %v2458_v47 = vmul.f32 %v9354_v63, %v5334_v18  ;;  %v2594_v1 = vmul.f32 %v9332_v26, %v5344_v8  ;;  %v1875_v27 = vmul.f32 %v9342_v46, %v9346_v57  ;;  %v9369_v20 = vld [vmem:[#allocation52_spill] sm:$0xff] }
 0x142   : > { %9365 = vst [vmem:[#allocation50_spill] sm:$0xff] %v5511_v25  ;;  %v2352_v48 = vadd.f32 %v9368_v21, %v2244_v49  ;;  %v2178_v17 = vadd.f32 %v2146_v53, %v2042_v31  ;;  %v1595_v37 = vadd.f32 %v1563_v3, %v1459_v39  ;;  %v586_v16 = vadd.f32 %v5527_v33, %v585_v42  ;;  %v4211_v53 = vpop.f32.mrf.mxu0 }
 0x143   : > { %v2354_v12 = vadd.f32 %v9369_v20, %v2246_v14  ;;  %v792_v18 = vmul.f32 %v4591_v61, %v748_v60  ;;  %v2730_v49 = vmul.f32 %v9334_v43, %v5513_v0  ;;  %v2011_v57 = vmul.f32 %v9313_v22, %v9351_v32 }
 0x144   : > { %v2420_v52 = vadd.f32 %v9370_v36, %v2352_v48  ;;  %v2490_v31 = vadd.f32 %v2458_v47, %v2178_v17  ;;  %v1907_v39 = vadd.f32 %v1875_v27, %v1595_v37  ;;  %709 = vst.msk [vmem:[#allocation2 + $0x122] sm:$0xff] %vm632_vm2, %v586_v16  ;;  %v597_v3 = vadd.f32 %v5527_v33, %v4211_v53  ;;  %v9373_v27 = vld [vmem:[#allocation78_spill] sm:$0xff]  ;;  %v5561_v53 = vld [vmem:[#allocation2 + $0x7b] sm:$0xff] }
 0x145   : > { %v5539_v42 = vadd.f32 %v2390_v11, %v2354_v12  ;;  %v1292_v21 = vmul.f32 %v9337_v56, %v5248_v55  ;;  %v1428_v48 = vmul.f32 %v9298_v4, %v5259_v34  ;;  %v858_v17 = vmul.f32 %v4594_v62, %v748_v60  ;;  %9375 = vst [vmem:[#allocation59_spill] sm:$0xff] %v5561_v53 }
 0x146   : > { %v5541_v14 = vadd.f32 %v2524_v41, %v2420_v52  ;;  %v2626_v47 = vadd.f32 %v2594_v1, %v2490_v31  ;;  %v2043_v37 = vadd.f32 %v2011_v57, %v1907_v39  ;;  %v2147_v20 = vmul.f32 %v9317_v6, %v9373_v27  ;;  %712 = vst.msk [vmem:[#allocation2 + $0x142] sm:$0xff] %vm632_vm2, %v597_v3 }
 0x147   : > { %9371 = vst [vmem:[#allocation39_spill] sm:$0xff] %v5539_v42  ;;  %v924_v11 = vmul.f32 %v4615_v10, %v748_v60  ;;  %v990_v41 = vmul.f32 %v4620_v13, %v748_v60  ;;  %v1460_v16 = vadd.f32 %v1428_v48, %v1292_v21  ;;  %v1564_v55 = vmul.f32 %v9304_v2, %v5368_v29 }
 0x148   : > { %9372 = vst [vmem:[#allocation71_spill] sm:$0xff] %v5541_v14  ;;  %v5555_v12 = vadd.f32 %v2730_v49, %v2626_v47  ;;  %v2179_v36 = vadd.f32 %v2147_v20, %v2043_v37  ;;  %v2459_v1 = vmul.f32 %v9354_v63, %v9357_v28  ;;  %v1293_v52 = vmul.f32 %v9337_v56, %v9339_v51  ;;  %v9377_v20 = vld [vmem:[#allocation76_spill] sm:$0xff] }
 0x149   : > { %v1596_v31 = vadd.f32 %v1564_v55, %v1460_v16  ;;  %v1876_v39 = vmul.f32 %v9342_v46, %v5303_v24  ;;  %v1429_v57 = vmul.f32 %v9298_v4, %v9367_v35  ;;  %v1565_v49 = vmul.f32 %v9304_v2, %v5113_v9  ;;  %v753_v55 = vld [vmem:[#allocation2 + $0x138] sm:$0xff] }
 0x14a   : > { %9374 = vst [vmem:[#allocation72_spill] sm:$0xff] %v5555_v12  ;;  %v5571_v3 = vmul.f32 %v4620_v13, %v5471_v7  ;;  %v5575_v28 = vmul.f32 %v4673_v38, %v5471_v7  ;;  %3277 = vrot.lane.b32.xlu1 %v5555_v12, %s4403_s18  ;;  %v2491_v51 = vadd.f32 %v2459_v1, %v2179_v36  ;;  %v9378_v1 = vld [vmem:[#allocation91_spill] sm:$0xff] }
 0x14b   : > { %v2595_v24 = vmul.f32 %v9332_v26, %v5444_v19  ;;  %v1056_v21 = vmul.f32 %v4673_v38, %v748_v60  ;;  %v1908_v48 = vadd.f32 %v1876_v39, %v1596_v31  ;;  %v2012_v47 = vmul.f32 %v9313_v22, %v5425_v23  ;;  %v9379_v60 = vld [vmem:[#allocation85_spill] sm:$0xff] }
 0x14c   : > { %9376 = vst [vmem:[#allocation54_spill] sm:$0xff] %v5575_v28  ;;  %v1461_v37 = vadd.f32 %v1429_v57, %v1293_v52  ;;  %v5585_v16 = vadd.f32 %v858_v17, %v9377_v20  ;;  %v5588_v7 = vadd.f32 %v5497_v59, %v792_v18  ;;  %v2731_v36 = vmul.f32 %v9334_v43, %v5561_v53  ;;  %v588_v52 = vpop.f32.mrf.mxu0 }
 0x14d   : > { %v2627_v28 = vadd.f32 %v2595_v24, %v2491_v51  ;;  %v5593_v12 = vadd.f32 %v924_v11, %v9378_v1  ;;  %v5596_v31 = vadd.f32 %v990_v41, %v9379_v60  ;;  %v2044_v39 = vadd.f32 %v2012_v47, %v1908_v48  ;;  %v9386_v48 = vld [vmem:[#allocation64_spill] sm:$0xff] }
 0x14e   : > { %v1597_v45 = vadd.f32 %v1565_v49, %v1461_v37  ;;  %v5599_v17 = vmul.f32 %v4591_v61, %v753_v55  ;;  %v863_v59 = vmul.f32 %v4594_v62, %v753_v55  ;;  %v2148_v57 = vmul.f32 %v9317_v6, %v5448_v54  ;;  %v4214_v1 = vpop.f32.mrf.mxu0  ;;  %v751_v60 = vld [vmem:[#allocation2 + $0x120] sm:$0xff] }
 0x14f   : > { %9380 = vst [vmem:[#allocation73_spill] sm:$0xff] %v5596_v31  ;;  %v5602_v18 = vadd.f32 %v2731_v36, %v2627_v28  ;;  %v5607_v51 = vadd.f32 %v1056_v21, %v5491_v44  ;;  %v5610_v11 = vmul.f32 %v4615_v10, %v753_v55  ;;  %v5613_v41 = vmul.f32 %v4620_v13, %v753_v55  ;;  %v9385_v28 = vld [vmem:[#allocation81_spill] sm:$0xff] }
 0x150   : > { %9381 = vst [vmem:[#allocation86_spill] sm:$0xff] %v5599_v17  ;;  %v1877_v49 = vmul.f32 %v9342_v46, %v9351_v32  ;;  %v5618_v24 = vmul.f32 %v4673_v38, %v753_v55  ;;  %v957_v47 = vadd.f32 %v9386_v48, %v9385_v28  ;;  %v2180_v44 = vadd.f32 %v2148_v57, %v2044_v39  ;;  %v5624_v21 = vld [vmem:[#allocation2 + $0x83] sm:$0xff]  ;;  %v601_v58 = vpop.f32.mrf.mxu0 }
 0x151   : > { %9382 = vst [vmem:[#allocation40_spill] sm:$0xff] %v5602_v18  ;;  %9383 = vst [vmem:[#allocation41_spill] sm:$0xff] %v5607_v51  ;;  %3279 = vrot.lane.b32.xlu0 %v5602_v18, %s4403_s18  ;;  %v2460_v37 = vmul.f32 %v9354_v63, %v5344_v8  ;;  %v2596_v20 = vmul.f32 %v9332_v26, %v5513_v0  ;;  %v2013_v32 = vmul.f32 %v9313_v22, %v9373_v27  ;;  %v5651_v51 = vld [vmem:[#allocation2 + $0x93] sm:$0xff] }
 0x152   : > { %9384 = vst [vmem:[#allocation44_spill] sm:$0xff] %v5618_v24  ;;  %9387 = vst [vmem:[#allocation74_spill] sm:$0xff] %v5624_v21  ;;  %v1909_v36 = vadd.f32 %v1877_v49, %v1597_v45  ;;  %v589_v55 = vadd.f32 %v5527_v33, %v588_v52  ;;  %v610_v28 = vadd.f32 %v5527_v33, %v4214_v1  ;;  %v9388_v49 = vld [vmem:[#allocation92_spill] sm:$0xff] }
 0x153   : > { %v2492_v18 = vadd.f32 %v2460_v37, %v2180_v44  ;;  %v1294_v39 = vmul.f32 %v9337_v56, %v5259_v34  ;;  %v1430_v8 = vmul.f32 %v9298_v4, %v5368_v29  ;;  %v2732_v57 = vmul.f32 %v9334_v43, %v5624_v21  ;;  %v9389_v52 = vld [vmem:[#allocation84_spill] sm:$0xff]  ;;  %9390 = vst [vmem:[#allocation55_spill] sm:$0xff] %v5651_v51 }
 0x154   : > { %v2045_v45 = vadd.f32 %v2013_v32, %v1909_v36  ;;  %v2149_v48 = vmul.f32 %v9317_v6, %v9388_v49  ;;  %710 = vst.msk [vmem:[#allocation2 + $0x12a] sm:$0xff] %vm632_vm2, %v589_v55  ;;  %v1566_v44 = vmul.f32 %v9304_v2, %v9389_v52  ;;  %v795_v37 = vmul.f32 %v4591_v61, %v751_v60 }
 0x155   : > { %v2628_v1 = vadd.f32 %v2596_v20, %v2492_v18  ;;  %v2461_v34 = vmul.f32 %v9354_v63, %v5444_v19  ;;  %715 = vst.msk [vmem:[#allocation2 + $0x16a] sm:$0xff] %vm632_vm2, %v610_v28  ;;  %v1462_v24 = vadd.f32 %v1430_v8, %v1294_v39  ;;  %v861_v31 = vmul.f32 %v4594_v62, %v751_v60  ;;  %v5657_v20 = vld [vmem:[#allocation2 + $0xa9] sm:$0xff] }
 0x156   : > { %v927_v36 = vmul.f32 %v4615_v10, %v751_v60  ;;  %v2181_v32 = vadd.f32 %v2149_v48, %v2045_v45  ;;  %v1878_v55 = vmul.f32 %v9342_v46, %v5425_v23  ;;  %v1295_v28 = vmul.f32 %v9337_v56, %v9367_v35  ;;  %v9392_v45 = vld [vmem:[#allocation67_spill] sm:$0xff]  ;;  %v9393_v48 = vld [vmem:[#allocation61_spill] sm:$0xff] }
 0x157   : > { %v5655_v25 = vadd.f32 %v2732_v57, %v2628_v1  ;;  %v1598_v18 = vadd.f32 %v1566_v44, %v1462_v24  ;;  %v1431_v39 = vmul.f32 %v9298_v4, %v5113_v9  ;;  %v993_v8 = vmul.f32 %v4620_v13, %v751_v60  ;;  %v754_v1 = vld [vmem:[#allocation2 + $0x140] sm:$0xff] }
 0x158   : > { %v1023_v40 = vadd.f32 %v9393_v48, %v9392_v45  ;;  %v2493_v42 = vadd.f32 %v2461_v34, %v2181_v32  ;;  %v2597_v23 = vmul.f32 %v9332_v26, %v5561_v53  ;;  %v1059_v57 = vmul.f32 %v4673_v38, %v751_v60  ;;  %v4215_v45 = vpop.f32.mrf.mxu0  ;;  %v9394_v60 = vld [vmem:[#allocation36_spill] sm:$0xff] }
 0x159   : > { %9391 = vst [vmem:[#allocation42_spill] sm:$0xff] %v5655_v25  ;;  %3281 = vrot.lane.b32.xlu1 %v5655_v25, %s4403_s18  ;;  %v2733_v35 = vmul.f32 %v9334_v43, %v5651_v51  ;;  %v1910_v24 = vadd.f32 %v1878_v55, %v1598_v18  ;;  %v1463_v44 = vadd.f32 %v1431_v39, %v1295_v28  ;;  %v9395_v25 = vld [vmem:[#allocation66_spill] sm:$0xff] }
 0x15a   : > { %v2629_v14 = vadd.f32 %v2597_v23, %v2493_v42  ;;  %v2014_v50 = vmul.f32 %v9313_v22, %v5448_v54  ;;  %v1567_v34 = vmul.f32 %v9304_v2, %v5657_v20  ;;  %v602_v32 = vadd.f32 %v5527_v33, %v601_v58 }
 0x15b   : > { %v893_v48 = vadd.f32 %v861_v31, %v9394_v60  ;;  %v5679_v19 = vadd.f32 %v863_v59, %v795_v37  ;;  %v959_v17 = vadd.f32 %v927_v36, %v9395_v25  ;;  %v613_v55 = vadd.f32 %v5527_v33, %v4215_v45 }
 0x15c   : > { %v5683_v18 = vadd.f32 %v993_v8, %v957_v47  ;;  %v5685_v42 = vadd.f32 %v2733_v35, %v2629_v14  ;;  %v2046_v28 = vadd.f32 %v2014_v50, %v1910_v24  ;;  %v1599_v39 = vadd.f32 %v1567_v34, %v1463_v44  ;;  %713 = vst.msk [vmem:[#allocation2 + $0x152] sm:$0xff] %vm632_vm2, %v602_v32  ;;  %v5708_v14 = vld [vmem:[#allocation2 + $0x9b] sm:$0xff]  ;;  %v5710_v47 = vld [vmem:[#allocation2 + $0xaa] sm:$0xff] }
 0x15d   : > { %v5688_v23 = vadd.f32 %v1059_v57, %v1023_v40  ;;  %v5691_v58 = vmul.f32 %v4591_v61, %v754_v1  ;;  %v864_v31 = vmul.f32 %v4594_v62, %v754_v1  ;;  %v5695_v59 = vmul.f32 %v4615_v10, %v754_v1  ;;  %716 = vst.msk [vmem:[#allocation2 + $0x172] sm:$0xff] %vm632_vm2, %v613_v55  ;;  %v5722_v24 = vld [vmem:[#allocation2 + $0xab] sm:$0xff] }
 0x15e   : > { %9396 = vst [vmem:[#allocation56_spill] sm:$0xff] %v5683_v18  ;;  %9397 = vst [vmem:[#allocation45_spill] sm:$0xff] %v5685_v42  ;;  %v5699_v25 = vmul.f32 %v4620_v13, %v754_v1  ;;  %v5702_v50 = vmul.f32 %v4673_v38, %v754_v1  ;;  %3283 = vrot.lane.b32.xlu0 %v5685_v42, %s4403_s18  ;;  %v2150_v40 = vmul.f32 %v9317_v6, %v5458_v5  ;;  %v752_v44 = vld [vmem:[#allocation2 + $0x128] sm:$0xff] }
 0x15f   : > { %9398 = vst [vmem:[#allocation46_spill] sm:$0xff] %v5688_v23  ;;  %9400 = vst [vmem:[#allocation63_spill] sm:$0xff] %v5708_v14  ;;  %v1879_v37 = vmul.f32 %v9342_v46, %v9373_v27  ;;  %v958_v36 = vadd.f32 %v5507_v30, %v5585_v16  ;;  %v1024_v8 = vadd.f32 %v5571_v3, %v5593_v12  ;;  %v757_v18 = vld [vmem:[#allocation2 + $0x168] sm:$0xff] }
 0x160   : > { %9399 = vst [vmem:[#allocation75_spill] sm:$0xff] %v5702_v50  ;;  %v2462_v57 = vmul.f32 %v9354_v63, %v5513_v0  ;;  %v2598_v35 = vmul.f32 %v9332_v26, %v5624_v21  ;;  %v2182_v1 = vadd.f32 %v2150_v40, %v2046_v28  ;;  %v2015_v27 = vmul.f32 %v9313_v22, %v9388_v49  ;;  %v5746_v50 = vld [vmem:[#allocation2 + $0xb1] sm:$0xff] }
 0x161   : > { %v1911_v34 = vadd.f32 %v1879_v37, %v1599_v39  ;;  %v1432_v30 = vmul.f32 %v9298_v4, %v9389_v52  ;;  %v2734_v12 = vmul.f32 %v9334_v43, %v5708_v14  ;;  %v2151_v3 = vmul.f32 %v9317_v6, %v5710_v47 }
 0x162   : > { %v2463_v16 = vmul.f32 %v9354_v63, %v5561_v53  ;;  %v2599_v32 = vmul.f32 %v9332_v26, %v5651_v51  ;;  %v2494_v45 = vadd.f32 %v2462_v57, %v2182_v1  ;;  %v2735_v55 = vmul.f32 %v9334_v43, %v5722_v24 }
 0x163   : > { %v2047_v60 = vadd.f32 %v2015_v27, %v1911_v34  ;;  %v1296_v28 = vmul.f32 %v9337_v56, %v5368_v29  ;;  %v796_v39 = vmul.f32 %v4591_v61, %v752_v44  ;;  %v862_v40 = vmul.f32 %v4594_v62, %v752_v44 }
 0x164   : > { %v928_v37 = vmul.f32 %v4615_v10, %v752_v44  ;;  %v5744_v42 = vadd.f32 %v5610_v11, %v893_v48  ;;  %v2630_v57 = vadd.f32 %v2598_v35, %v2494_v45  ;;  %v5749_v34 = vadd.f32 %v5613_v41, %v959_v17  ;;  %v5765_v41 = vld [vmem:[#allocation2 + $0xc1] sm:$0xff]  ;;  %v604_v45 = vpop.f32.mrf.mxu0 }
 0x165   : > { %v2183_v1 = vadd.f32 %v2151_v3, %v2047_v60  ;;  %v1464_v27 = vadd.f32 %v1432_v30, %v1296_v28  ;;  %v994_v29 = vmul.f32 %v4620_v13, %v752_v44  ;;  %v1060_v23 = vmul.f32 %v4673_v38, %v752_v44 }
 0x166   : > { %v5754_v0 = vmul.f32 %v4591_v61, %v757_v18  ;;  %v1297_v11 = vmul.f32 %v9337_v56, %v5113_v9  ;;  %v5759_v48 = vmul.f32 %v4594_v62, %v757_v18  ;;  %v5761_v53 = vadd.f32 %v2734_v12, %v2630_v57 }
 0x167   : > { %v2495_v35 = vadd.f32 %v2463_v16, %v2183_v1  ;;  %v1568_v17 = vmul.f32 %v9304_v2, %v5746_v50  ;;  %v5768_v30 = vadd.f32 %v862_v40, %v5487_v15  ;;  %v5770_v44 = vadd.f32 %v864_v31, %v796_v39 }
 0x168   : > { %9401 = vst [vmem:[#allocation87_spill] sm:$0xff] %v5761_v53  ;;  %v5773_v3 = vadd.f32 %v928_v37, %v5588_v7  ;;  %v1433_v9 = vmul.f32 %v9298_v4, %v5657_v20  ;;  %v5778_v12 = vmul.f32 %v4615_v10, %v757_v18  ;;  %3285 = vrot.lane.b32.xlu1 %v5761_v53, %s4403_s18  ;;  %v5788_v7 = vld [vmem:[#allocation2 + $0xb2] sm:$0xff] }
 0x169   : > { %v2631_v16 = vadd.f32 %v2599_v32, %v2495_v35  ;;  %v1600_v60 = vadd.f32 %v1568_v17, %v1464_v27  ;;  %v1880_v15 = vmul.f32 %v9342_v46, %v5448_v54  ;;  %v5784_v31 = vadd.f32 %v994_v29, %v958_v36  ;;  %v5799_v54 = vld [vmem:[#allocation2 + $0xc9] sm:$0xff]  ;;  %v5804_v36 = vld [vmem:[#allocation2 + $0xb3] sm:$0xff] }
 0x16a   : > { %v5786_v28 = vadd.f32 %v1060_v23, %v1024_v8  ;;  %v1465_v39 = vadd.f32 %v1433_v9, %v1297_v11  ;;  %v1569_v40 = vmul.f32 %v9304_v2, %v5765_v41  ;;  %v5793_v37 = vmul.f32 %v4620_v13, %v757_v18  ;;  %v4218_v11 = vpop.f32.mrf.mxu0  ;;  %v5813_v17 = vld [vmem:[#allocation2 + $0xc2] sm:$0xff] }
 0x16b   : > { %9402 = vst [vmem:[#allocation48_spill] sm:$0xff] %v5784_v31  ;;  %v5795_v57 = vadd.f32 %v2735_v55, %v2631_v16  ;;  %v1912_v32 = vadd.f32 %v1880_v15, %v1600_v60  ;;  %v2016_v1 = vmul.f32 %v9313_v22, %v5458_v5  ;;  %v5802_v23 = vmul.f32 %v4673_v38, %v757_v18  ;;  %v755_v16 = vld [vmem:[#allocation2 + $0x150] sm:$0xff] }
 0x16c   : > { %9403 = vst [vmem:[#allocation47_spill] sm:$0xff] %v5786_v28  ;;  %v1601_v8 = vadd.f32 %v1569_v40, %v1465_v39  ;;  %v1881_v27 = vmul.f32 %v9342_v46, %v9388_v49  ;;  %v605_v29 = vadd.f32 %v5527_v33, %v604_v45  ;;  %v2152_v35 = vmul.f32 %v9317_v6, %v5788_v7 }
 0x16d   : > { %9404 = vst [vmem:[#allocation49_spill] sm:$0xff] %v5795_v57  ;;  %9405 = vst [vmem:[#allocation69_spill] sm:$0xff] %v5802_v23  ;;  %3287 = vrot.lane.b32.xlu0 %v5795_v57, %s4403_s18  ;;  %v2048_v55 = vadd.f32 %v2016_v1, %v1912_v32  ;;  %v2017_v18 = vmul.f32 %v9313_v22, %v5710_v47  ;;  %v626_v9 = vadd.f32 %v5527_v33, %v4218_v11  ;;  %v5837_v11 = vld [vmem:[#allocation2 + $0xd9] sm:$0xff]  ;;  %v617_v23 = vpop.f32.mrf.mxu0 }
 0x16e   : > { %v1913_v60 = vadd.f32 %v1881_v27, %v1601_v8  ;;  %714 = vst.msk [vmem:[#allocation2 + $0x15a] sm:$0xff] %vm632_vm2, %v605_v29  ;;  %v1298_v49 = vmul.f32 %v9337_v56, %v9389_v52  ;;  %v1434_v45 = vmul.f32 %v9298_v4, %v5746_v50  ;;  %v1570_v15 = vmul.f32 %v9304_v2, %v5799_v54 }
 0x16f   : > { %v2184_v39 = vadd.f32 %v2152_v35, %v2048_v55  ;;  %v2464_v40 = vmul.f32 %v9354_v63, %v5624_v21  ;;  %v2600_v32 = vmul.f32 %v9332_v26, %v5708_v14  ;;  %v2736_v1 = vmul.f32 %v9334_v43, %v5804_v36  ;;  %719 = vst.msk [vmem:[#allocation2 + $0x19a] sm:$0xff] %vm632_vm2, %v626_v9 }
 0x170   : > { %v5833_v52 = vmul.f32 %v4591_v61, %v755_v16  ;;  %v2049_v8 = vadd.f32 %v2017_v18, %v1913_v60  ;;  %v2153_v27 = vmul.f32 %v9317_v6, %v5813_v17  ;;  %v1466_v29 = vadd.f32 %v1434_v45, %v1298_v49  ;;  %v5847_v45 = vld [vmem:[#allocation2 + $0xc3] sm:$0xff] }
 0x171   : > { %v865_v55 = vmul.f32 %v4594_v62, %v755_v16  ;;  %v2496_v35 = vadd.f32 %v2464_v40, %v2184_v39  ;;  %v1299_v57 = vmul.f32 %v9337_v56, %v5657_v20  ;;  %v1435_v43 = vmul.f32 %v9298_v4, %v5765_v41 }
 0x172   : > { %v931_v9 = vmul.f32 %v4615_v10, %v755_v16  ;;  %v2185_v53 = vadd.f32 %v2153_v27, %v2049_v8  ;;  %v2465_v18 = vmul.f32 %v9354_v63, %v5651_v51  ;;  %v1602_v60 = vadd.f32 %v1570_v15, %v1466_v29  ;;  %v758_v15 = vld [vmem:[#allocation2 + $0x170] sm:$0xff] }
 0x173   : > { %v2632_v49 = vadd.f32 %v2600_v32, %v2496_v35  ;;  %v1882_v39 = vmul.f32 %v9342_v46, %v5458_v5  ;;  %v1467_v40 = vadd.f32 %v1435_v43, %v1299_v57  ;;  %v1571_v20 = vmul.f32 %v9304_v2, %v5837_v11  ;;  %v9407_v5 = vld [vmem:[#allocation86_spill] sm:$0xff] }
 0x174   : > { %v997_v31 = vmul.f32 %v4620_v13, %v755_v16  ;;  %v1063_v28 = vmul.f32 %v4673_v38, %v755_v16  ;;  %v2497_v8 = vadd.f32 %v2465_v18, %v2185_v53  ;;  %v2601_v27 = vmul.f32 %v9332_v26, %v5722_v24  ;;  %v5869_v53 = vld [vmem:[%s8783_s4 + $0x8] ss:$0 sm:$0xff] }
 0x175   : > { %v5857_v29 = vadd.f32 %v2736_v1, %v2632_v49  ;;  %v1914_v32 = vadd.f32 %v1882_v39, %v1602_v60  ;;  %v1603_v35 = vadd.f32 %v1571_v20, %v1467_v40  ;;  %v618_v51 = vadd.f32 %v5527_v33, %v617_v23  ;;  %v5873_v1 = vld [vmem:[#allocation2 + $0xca] sm:$0xff]  ;;  %v5885_v60 = vld [vmem:[#allocation2 + $0xda] sm:$0xff] }
 0x176   : > { %v5861_v57 = vadd.f32 %v865_v55, %v9407_v5  ;;  %v5864_v43 = vmul.f32 %v4591_v61, %v758_v15  ;;  %v2633_v21 = vadd.f32 %v2601_v27, %v2497_v8  ;;  %v2737_v16 = vmul.f32 %v5869_v53, %v5847_v45  ;;  %v5917_v5 = vld [vmem:[#allocation2 + $0xdb] sm:$0xff] }
 0x177   : > { %9406 = vst [vmem:[#allocation51_spill] sm:$0xff] %v5857_v29  ;;  %v5876_v18 = vadd.f32 %v931_v9, %v5679_v19  ;;  %v5879_v23 = vmul.f32 %v4594_v62, %v758_v15  ;;  %3289 = vrot.lane.b32.xlu1 %v5857_v29, %s4403_s18  ;;  %v2018_v55 = vmul.f32 %v9313_v22, %v5788_v7  ;;  %717 = vst.msk [vmem:[#allocation2 + $0x182] sm:$0xff] %vm632_vm2, %v618_v51  ;;  %v4219_v51 = vpop.f32.mrf.mxu0 }
 0x178   : > { %9408 = vst [vmem:[#allocation52_spill] sm:$0xff] %v5864_v43  ;;  %v1883_v49 = vmul.f32 %v9342_v46, %v5710_v47  ;;  %v5891_v39 = vadd.f32 %v997_v31, %v5744_v42  ;;  %v5894_v19 = vadd.f32 %v1063_v28, %v5749_v34  ;;  %v5897_v9 = vmul.f32 %v4615_v10, %v758_v15 }
 0x179   : > { %9409 = vst [vmem:[#allocation53_spill] sm:$0xff] %v5879_v23  ;;  %v5899_v40 = vadd.f32 %v2737_v16, %v2633_v21  ;;  %v2050_v20 = vadd.f32 %v2018_v55, %v1914_v32  ;;  %v2154_v8 = vmul.f32 %v9317_v6, %v5873_v1  ;;  %v2019_v47 = vmul.f32 %v9313_v22, %v5813_v17  ;;  %v5915_v32 = vld [vmem:[#allocation2 + $0xcb] sm:$0xff]  ;;  %v5919_v16 = vld [vmem:[#allocation2 + $0xe1] sm:$0xff] }
 0x17a   : > { %9410 = vst [vmem:[#allocation78_spill] sm:$0xff] %v5891_v39  ;;  %9411 = vst [vmem:[#allocation76_spill] sm:$0xff] %v5894_v19  ;;  %v1915_v27 = vadd.f32 %v1883_v49, %v1603_v35  ;;  %v5906_v42 = vmul.f32 %v4620_v13, %v758_v15  ;;  %v2466_v34 = vmul.f32 %v9354_v63, %v5708_v14  ;;  %v6189_v14 = vld [vmem:[#allocation2 + $0x3c] sm:$0xff] }
 0x17b   : > { %9412 = vst [vmem:[#allocation91_spill] sm:$0xff] %v5897_v9  ;;  %9413 = vst [vmem:[#allocation85_spill] sm:$0xff] %v5899_v40  ;;  %3291 = vrot.lane.b32.xlu0 %v5899_v40, %s4403_s18  ;;  %v2155_v21 = vmul.f32 %v9317_v6, %v5885_v60  ;;  %v629_v31 = vadd.f32 %v5527_v33, %v4219_v51  ;;  %v2186_v28 = vadd.f32 %v2154_v8, %v2050_v20  ;;  %v9439_v9 = vld [vmem:[#allocation8_spill] sm:$0xff] }
 0x17c   : > { %9414 = vst [vmem:[#allocation81_spill] sm:$0xff] %v5906_v42  ;;  %v2051_v35 = vadd.f32 %v2019_v47, %v1915_v27  ;;  %v1300_v55 = vmul.f32 %v9337_v56, %v5746_v50  ;;  %v1436_v49 = vmul.f32 %v9298_v4, %v5799_v54  ;;  %v5926_v40 = vmul.f32 %v4673_v38, %v758_v15  ;;  %v756_v27 = vld [vmem:[#allocation2 + $0x158] sm:$0xff] }
 0x17d   : > { %v962_v51 = vadd.f32 %v5695_v59, %v5768_v30  ;;  %v1028_v20 = vadd.f32 %v5699_v25, %v5773_v3  ;;  %v2602_v8 = vmul.f32 %v9332_v26, %v5804_v36  ;;  %720 = vst.msk [vmem:[#allocation2 + $0x1a2] sm:$0xff] %vm632_vm2, %v629_v31  ;;  %v2498_v47 = vadd.f32 %v2466_v34, %v2186_v28  ;;  %v5948_v31 = vld [vmem:[#allocation2 + $0xf1] sm:$0xff] }
 0x17e   : > { %9415 = vst [vmem:[#allocation64_spill] sm:$0xff] %v5926_v40  ;;  %v2187_v50 = vadd.f32 %v2155_v21, %v2051_v35  ;;  %v2467_v29 = vmul.f32 %v9354_v63, %v5722_v24  ;;  %v1468_v39 = vadd.f32 %v1436_v49, %v1300_v55  ;;  %v2738_v15 = vmul.f32 %v5869_v53, %v5915_v32  ;;  %v761_v55 = vld [vmem:[#allocation2 + $0x198] sm:$0xff] }
 0x17f   : > { %v2603_v59 = vmul.f32 %v9332_v26, %v5847_v45  ;;  %v2739_v25 = vmul.f32 %v5869_v53, %v5917_v5  ;;  %v1572_v30 = vmul.f32 %v9304_v2, %v5919_v16  ;;  %v5946_v3 = vmul.f32 %v4591_v61, %v756_v27 }
 0x180   : > { %v2634_v34 = vadd.f32 %v2602_v8, %v2498_v47  ;;  %v2499_v21 = vadd.f32 %v2467_v29, %v2187_v50  ;;  %v1301_v24 = vmul.f32 %v9337_v56, %v5765_v41  ;;  %v866_v28 = vmul.f32 %v4594_v62, %v756_v27  ;;  %v5959_v29 = vld [vmem:[#allocation2 + $0xe2] sm:$0xff] }
 0x181   : > { %9416 = vst [vmem:[#allocation92_spill] sm:$0xff] %v5946_v3  ;;  %v932_v35 = vmul.f32 %v4615_v10, %v756_v27  ;;  %v1604_v49 = vadd.f32 %v1572_v30, %v1468_v39  ;;  %v1884_v40 = vmul.f32 %v9342_v46, %v5788_v7  ;;  %v998_v19 = vmul.f32 %v4620_v13, %v756_v27  ;;  %v9452_v3 = vld [vmem:[#allocation37_spill] sm:$0xff] }
 0x182   : > { %v5957_v61 = vadd.f32 %v2738_v15, %v2634_v34  ;;  %v2635_v8 = vadd.f32 %v2603_v59, %v2499_v21  ;;  %v1437_v47 = vmul.f32 %v9298_v4, %v5837_v11  ;;  %v1064_v41 = vmul.f32 %v4673_v38, %v756_v27  ;;  %v620_v27 = vpop.f32.mrf.mxu0 }
 0x183   : > { %v1916_v50 = vadd.f32 %v1884_v40, %v1604_v49  ;;  %v2020_v43 = vmul.f32 %v9313_v22, %v5873_v1  ;;  %v1573_v39 = vmul.f32 %v9304_v2, %v5948_v31  ;;  %v5969_v7 = vmul.f32 %v4615_v10, %v761_v55 }
 0x184   : > { %9417 = vst [vmem:[#allocation84_spill] sm:$0xff] %v5957_v61  ;;  %v5972_v15 = vmul.f32 %v4620_v13, %v761_v55  ;;  %3293 = vrot.lane.b32.xlu1 %v5957_v61, %s4403_s18  ;;  %v5976_v59 = vadd.f32 %v2739_v25, %v2635_v8  ;;  %v1469_v30 = vadd.f32 %v1437_v47, %v1301_v24  ;;  %v5995_v24 = vld [vmem:[#allocation2 + $0xf9] sm:$0xff]  ;;  %v9434_v61 = vld [vmem:[#allocation38_spill] sm:$0xff] }
 0x185   : > { %9418 = vst [vmem:[#allocation67_spill] sm:$0xff] %v5969_v7  ;;  %v5979_v40 = vadd.f32 %v866_v28, %v5691_v58  ;;  %v5982_v34 = vadd.f32 %v932_v35, %v5770_v44  ;;  %v2052_v21 = vadd.f32 %v2020_v43, %v1916_v50  ;;  %v2156_v49 = vmul.f32 %v9317_v6, %v5959_v29  ;;  %v6004_v35 = vld [vmem:[#allocation2 + $0xe3] sm:$0xff] }
 0x186   : > { %9419 = vst [vmem:[#allocation61_spill] sm:$0xff] %v5972_v15  ;;  %9420 = vst [vmem:[#allocation36_spill] sm:$0xff] %v5976_v59  ;;  %v5986_v7 = vadd.f32 %v998_v19, %v962_v51  ;;  %v5989_v15 = vmul.f32 %v4673_v38, %v761_v55  ;;  %3295 = vrot.lane.b32.xlu0 %v5976_v59, %s4403_s18  ;;  %v1605_v25 = vadd.f32 %v1573_v39, %v1469_v30  ;;  %v6001_v19 = vld [vmem:[#allocation2 + $0xf2] sm:$0xff] }
 0x187   : > { %9421 = vst [vmem:[#allocation66_spill] sm:$0xff] %v5979_v40  ;;  %9422 = vst [vmem:[#allocation86_spill] sm:$0xff] %v5982_v34  ;;  %v1885_v58 = vmul.f32 %v9342_v46, %v5813_v17  ;;  %v5997_v44 = vadd.f32 %v1064_v41, %v1028_v20  ;;  %v2188_v43 = vadd.f32 %v2156_v49, %v2052_v21  ;;  %v6033_v49 = vld [vmem:[#allocation2 + $0x109] sm:$0xff]  ;;  %v6126_v34 = vld [vmem:[#allocation2 + $0x34] sm:$0xff] }
 0x188   : > { %9423 = vst [vmem:[#allocation102_spill] sm:$0xff] %v5986_v7  ;;  %9424 = vst [vmem:[#allocation103_spill] sm:$0xff] %v5989_v15  ;;  %v2468_v28 = vmul.f32 %v9354_v63, %v5804_v36  ;;  %v621_v51 = vadd.f32 %v5527_v33, %v620_v27  ;;  %v2021_v8 = vmul.f32 %v9313_v22, %v5885_v60 }
 0x189   : > { %9425 = vst [vmem:[#allocation104_spill] sm:$0xff] %v5997_v44  ;;  %v1917_v55 = vadd.f32 %v1885_v58, %v1605_v25  ;;  %v1302_v17 = vmul.f32 %v9337_v56, %v5799_v54  ;;  %v1438_v20 = vmul.f32 %v9298_v4, %v5919_v16  ;;  %v6014_v47 = vadd.f32 %v5759_v48, %v5833_v52  ;;  %v759_v25 = vld [vmem:[#allocation2 + $0x180] sm:$0xff] }
 0x18a   : > { %v2500_v36 = vadd.f32 %v2468_v28, %v2188_v43  ;;  %v2604_v33 = vmul.f32 %v9332_v26, %v5915_v32  ;;  %718 = vst.msk [vmem:[#allocation2 + $0x18a] sm:$0xff] %vm632_vm2, %v621_v51  ;;  %v1574_v41 = vmul.f32 %v9304_v2, %v5995_v24  ;;  %v6023_v50 = vadd.f32 %v5778_v12, %v5861_v57  ;;  %v6035_v57 = vld [vmem:[#allocation2 + $0xf3] sm:$0xff]  ;;  %v2861_v44 = vld [vmem:[#allocation2 + $0x1c] sm:$0xff] }
 0x18b   : > { %v2053_v54 = vadd.f32 %v2021_v8, %v1917_v55  ;;  %v2157_v39 = vmul.f32 %v9317_v6, %v6001_v19  ;;  %v1470_v30 = vadd.f32 %v1438_v20, %v1302_v17  ;;  %v2740_v52 = vmul.f32 %v5869_v53, %v6004_v35  ;;  %v6037_v43 = vld [vmem:[#allocation2 + $0xfa] sm:$0xff] }
 0x18c   : > { %v2636_v48 = vadd.f32 %v2604_v33, %v2500_v36  ;;  %v2469_v27 = vmul.f32 %v9354_v63, %v5847_v45  ;;  %v1886_v21 = vmul.f32 %v9342_v46, %v5873_v1  ;;  %v1303_v28 = vmul.f32 %v9337_v56, %v5837_v11 }
 0x18d   : > { %v2189_v12 = vadd.f32 %v2157_v39, %v2053_v54  ;;  %v1606_v58 = vadd.f32 %v1574_v41, %v1470_v30  ;;  %v1439_v51 = vmul.f32 %v9298_v4, %v5948_v31  ;;  %v6045_v45 = vadd.f32 %v5793_v37, %v5876_v18  ;;  %v4276_v41 = vld [vmem:[%s8785_s6 + $0x10] sm:$0xff]  ;;  %v9427_v54 = vld [vmem:[#allocation4_spill] sm:$0xff] }
 0x18e   : > { %v6047_v1 = vadd.f32 %v2740_v52, %v2636_v48  ;;  %v2605_v55 = vmul.f32 %v9332_v26, %v5917_v5  ;;  %v2022_v8 = vmul.f32 %v9313_v22, %v5959_v29  ;;  %v1575_v11 = vmul.f32 %v9304_v2, %v6033_v49 }
 0x18f   : > { %v2501_v17 = vadd.f32 %v2469_v27, %v2189_v12  ;;  %v1918_v20 = vadd.f32 %v1886_v21, %v1606_v58  ;;  %v1471_v36 = vadd.f32 %v1439_v51, %v1303_v28  ;;  %v869_v33 = vmul.f32 %v4594_v62, %v759_v25  ;;  %v6068_v27 = vld [vmem:[#allocation2 + $0x10a] sm:$0xff] }
 0x190   : > { %9426 = vst [vmem:[#allocation105_spill] sm:$0xff] %v6047_v1  ;;  %3297 = vrot.lane.b32.xlu1 %v6047_v1, %s4403_s18  ;;  %v2741_v37 = vmul.f32 %v5869_v53, %v6035_v57  ;;  %v2158_v18 = vmul.f32 %v9317_v6, %v6037_v43  ;;  %v6066_v39 = vrot.slane %v4276_v41, %v9427_v54  ;;  %v9428_v51 = vld [vmem:[#allocation6_spill] sm:$0xff] }
 0x191   : > { %v2637_v30 = vadd.f32 %v2605_v55, %v2501_v17  ;;  %v2054_v48 = vadd.f32 %v2022_v8, %v1918_v20  ;;  %v1607_v52 = vadd.f32 %v1575_v11, %v1471_v36  ;;  %v1887_v21 = vmul.f32 %v9342_v46, %v5885_v60  ;;  %v6084_v17 = vld [vmem:[#allocation2 + $0xfb] sm:$0xff]  ;;  %v6086_v36 = vld [vmem:[#allocation2 + $0x4b] sm:$0xff] }
 0x192   : > { %v6073_v12 = vmul.f32 %v4615_v10, %v759_v25  ;;  %v2470_v58 = vmul.f32 %v9354_v63, %v5915_v32  ;;  %v2023_v28 = vmul.f32 %v9313_v22, %v6001_v19  ;;  %v6080_v54 = vrot.slane %v4276_v41, %v9428_v51  ;;  %9431 = vst [vmem:[#allocation106_spill] sm:$0xff] %v6086_v36  ;;  %v2859_v11 = vld [vmem:[#allocation2 + $0x4] sm:$0xff]  ;;  %v9433_v51 = vld [vmem:[#allocation70_spill] sm:$0xff] }
 0x193   : > { %v6082_v55 = vadd.f32 %v2741_v37, %v2637_v30  ;;  %v2190_v8 = vadd.f32 %v2158_v18, %v2054_v48  ;;  %v1919_v20 = vadd.f32 %v1887_v21, %v1607_v52  ;;  %v2659_v60 = vmul.f32 %v6086_v36, %v6066_v39  ;;  %v4278_v18 = vld [vmem:[%s8785_s6] sm:$0xff]  ;;  %v9432_v30 = vld [vmem:[#allocation10_spill] sm:$0xff]  ;;  %9437 = vst [vmem:[#allocation70_spill] sm:$0xff] %v6126_v34 }
 0x194   : > { %9429 = vst [vmem:[#allocation4_spill] sm:$0xff] %v6080_v54  ;;  %v6091_v32 = vmul.f32 %v4620_v13, %v759_v25  ;;  %v2606_v1 = vmul.f32 %v9332_v26, %v6004_v35  ;;  %v2159_v37 = vmul.f32 %v9317_v6, %v6068_v27  ;;  %v6101_v48 = vrot.slane %v4278_v18, %v9432_v30  ;;  %v4279_v30 = vld [vmem:[%s8785_s6 + $0x8] sm:$0xff] }
 0x195   : > { %9430 = vst [vmem:[#allocation6_spill] sm:$0xff] %v6082_v55  ;;  %3299 = vrot.lane.b32.xlu0 %v6082_v55, %s4403_s18  ;;  %v2502_v52 = vadd.f32 %v2470_v58, %v2190_v8  ;;  %v2055_v21 = vadd.f32 %v2023_v28, %v1919_v20  ;;  %v2691_v59 = vadd.f32 %v2659_v60, %v9433_v51  ;;  %v9435_v58 = vld [vmem:[#allocation7_spill] sm:$0xff]  ;;  %v6120_v60 = vld [vmem:[#allocation2 + $0x10b] sm:$0xff]  ;;  %v6209_v13 = vld [vmem:[#allocation2 + $0x121] sm:$0xff] }
 0x196   : > { %v2795_v7 = vmul.f32 %v6080_v54, %v9434_v61  ;;  %v6109_v15 = vmul.f32 %v4673_v38, %v759_v25  ;;  %v2742_v42 = vmul.f32 %v5869_v53, %v6084_v17  ;;  %v2903_v18 = vmul.f32 %v6101_v48, %v2859_v11  ;;  %v6128_v11 = vld [vmem:[#allocation2 + $0x64] sm:$0xff] }
 0x197   : > { %v6118_v28 = vrot.slane %v4279_v30, %v9435_v58  ;;  %v2638_v8 = vadd.f32 %v2606_v1, %v2502_v52  ;;  %v2191_v20 = vadd.f32 %v2159_v37, %v2055_v21  ;;  %v2471_v25 = vmul.f32 %v9354_v63, %v5917_v5  ;;  %9438 = vst [vmem:[#allocation38_spill] sm:$0xff] %v6128_v11  ;;  %v9441_v1 = vld [vmem:[#allocation31_spill] sm:$0xff] }
 0x198   : > { %v2827_v51 = vadd.f32 %v2795_v7, %v2691_v59  ;;  %v2607_v55 = vmul.f32 %v9332_v26, %v6035_v57  ;;  %v6132_v58 = vrot.slane %v4279_v30, %v9439_v9  ;;  %v2525_v37 = vmul.f32 %v6086_v36, %v9441_v1  ;;  %v9443_v7 = vld [vmem:[#allocation9_spill] sm:$0xff]  ;;  %v6149_v9 = vld [vmem:[%s8785_s6 + $0x18] ss:$0 sm:$0xff] }
 0x199   : > { %9436 = vst [vmem:[#allocation10_spill] sm:$0xff] %v6118_v28  ;;  %v2971_v62 = vmul.f32 %v6118_v28, %v2861_v44  ;;  %v6136_v52 = vadd.f32 %v2742_v42, %v2638_v8  ;;  %v2503_v21 = vadd.f32 %v2471_v25, %v2191_v20  ;;  %v6139_v59 = vrot.slane %v4276_v41, %v9443_v7  ;;  %v6151_v30 = vld [vmem:[#allocation2 + $0x4c] sm:$0xff]  ;;  %v9448_v7 = vld [vmem:[#allocation59_spill] sm:$0xff] }
 0x19a   : > { %9440 = vst [vmem:[#allocation7_spill] sm:$0xff] %v6132_v58  ;;  %v2935_v5 = vadd.f32 %v2903_v18, %v2827_v51  ;;  %v6142_v40 = vadd.f32 %v869_v33, %v5754_v0  ;;  %v2743_v23 = vmul.f32 %v5869_v53, %v6120_v60  ;;  %9446 = vst [vmem:[#allocation108_spill] sm:$0xff] %v6151_v30  ;;  %v9447_v42 = vld [vmem:[#allocation62_spill] sm:$0xff] }
 0x19b   : > { %9442 = vst [vmem:[#allocation8_spill] sm:$0xff] %v6136_v52  ;;  %9444 = vst [vmem:[#allocation9_spill] sm:$0xff] %v6139_v59  ;;  %v2557_v8 = vadd.f32 %v2525_v37, %v9447_v42  ;;  %v2661_v18 = vmul.f32 %v6066_v39, %v9434_v61  ;;  %3301 = vrot.lane.b32.xlu1 %v6136_v52, %s4403_s18  ;;  %v2639_v0 = vadd.f32 %v2607_v55, %v2503_v21  ;;  %v2860_v25 = vld [vmem:[#allocation2 + $0xc] sm:$0xff] }
 0x19c   : > { %9445 = vst [vmem:[#allocation107_spill] sm:$0xff] %v6142_v40  ;;  %v3003_v33 = vadd.f32 %v2971_v62, %v2935_v5  ;;  %v3039_v41 = vmul.f32 %v6132_v58, %v6126_v34  ;;  %v3175_v20 = vmul.f32 %v6149_v9, %v6128_v11  ;;  %v2797_v40 = vmul.f32 %v6080_v54, %v9448_v7  ;;  %v6165_v42 = vld [vmem:[#allocation2 + $0x53] sm:$0xff]  ;;  %v6177_v7 = vld [vmem:[#allocation2 + $0x7c] sm:$0xff] }
 0x19d   : > { %v2693_v51 = vadd.f32 %v2661_v18, %v2557_v8  ;;  %v2905_v37 = vmul.f32 %v6101_v48, %v2861_v44  ;;  %v2660_v61 = vmul.f32 %v6165_v42, %v6066_v39  ;;  %v6169_v55 = vadd.f32 %v2743_v23, %v2639_v0  ;;  %v6175_v8 = vld [vmem:[#allocation2 + $0x24] sm:$0xff]  ;;  %9450 = vst [vmem:[#allocation59_spill] sm:$0xff] %v6177_v7  ;;  %v9451_v44 = vld [vmem:[#allocation71_spill] sm:$0xff] }
 0x19e   : > { %v3071_v62 = vadd.f32 %v3039_v41, %v3003_v33  ;;  %v3107_v21 = vmul.f32 %v6139_v59, %v6151_v30  ;;  %v2973_v5 = vmul.f32 %v6118_v28, %v6126_v34  ;;  %v2796_v38 = vmul.f32 %v6080_v54, %v9452_v3  ;;  %v6183_v0 = vld [vmem:[#allocation2 + $0x111] sm:$0xff] }
 0x19f   : > { %9449 = vst [vmem:[#allocation62_spill] sm:$0xff] %v6169_v55  ;;  %v2829_v18 = vadd.f32 %v2797_v40, %v2693_v51  ;;  %v2692_v52 = vadd.f32 %v2660_v61, %v9451_v44  ;;  %v2904_v23 = vmul.f32 %v6101_v48, %v2860_v25  ;;  %3303 = vrot.lane.b32.xlu0 %v6169_v55, %s4403_s18  ;;  %v6191_v40 = vld [vmem:[#allocation2 + $0x54] sm:$0xff] }
 0x1a0   : > { %v3139_v33 = vadd.f32 %v3107_v21, %v3071_v62  ;;  %v3041_v41 = vmul.f32 %v6132_v58, %v6151_v30  ;;  %9453 = vst [vmem:[#allocation71_spill] sm:$0xff] %v6191_v40  ;;  %v1304_v51 = vmul.f32 %v9337_v56, %v5919_v16  ;;  %v1440_v61 = vmul.f32 %v9298_v4, %v5995_v24  ;;  %v6205_v30 = vld [vmem:[#allocation2 + $0x6c] sm:$0xff] }
 0x1a1   : > { %v2937_v25 = vadd.f32 %v2905_v37, %v2829_v18  ;;  %v3109_v44 = vmul.f32 %v6139_v59, %v6128_v11  ;;  %v2828_v34 = vadd.f32 %v2796_v38, %v2692_v52  ;;  %v2972_v62 = vmul.f32 %v6118_v28, %v6175_v8  ;;  %9455 = vst [vmem:[#allocation109_spill] sm:$0xff] %v6205_v30 }
 0x1a2   : > { %v6201_v21 = vadd.f32 %v3175_v20, %v3139_v33  ;;  %v3177_v55 = vmul.f32 %v6149_v9, %v6177_v7  ;;  %v1472_v36 = vadd.f32 %v1440_v61, %v1304_v51  ;;  %v1576_v16 = vmul.f32 %v9304_v2, %v6183_v0  ;;  %v6215_v20 = vld [vmem:[#allocation2 + $0x112] sm:$0xff] }
 0x1a3   : > { %v3005_v37 = vadd.f32 %v2973_v5, %v2937_v25  ;;  %v2936_v18 = vadd.f32 %v2904_v23, %v2828_v34  ;;  %v3040_v38 = vmul.f32 %v6132_v58, %v6189_v14  ;;  %v3108_v52 = vmul.f32 %v6139_v59, %v6191_v40  ;;  %9456 = vst [vmem:[#allocation110_spill] sm:$0xff] %v6215_v20 }
 0x1a4   : > { %9454 = vst [vmem:[#allocation37_spill] sm:$0xff] %v6201_v21  ;;  %3470 = vrot.lane.b32.xlu0 %v6201_v21, %s4403_s18  ;;  %v1608_v33 = vadd.f32 %v1576_v16, %v1472_v36  ;;  %v1888_v51 = vmul.f32 %v9342_v46, %v5959_v29  ;;  %v1305_v61 = vmul.f32 %v9337_v56, %v5948_v31  ;;  %v6233_v31 = vld [vmem:[#allocation2 + $0x122] sm:$0xff] }
 0x1a5   : > { %v1441_v34 = vmul.f32 %v9298_v4, %v6033_v49  ;;  %v3073_v5 = vadd.f32 %v3041_v41, %v3005_v37  ;;  %v3004_v23 = vadd.f32 %v2972_v62, %v2936_v18  ;;  %v3176_v25 = vmul.f32 %v6149_v9, %v6205_v30 }
 0x1a6   : > { %v1577_v7 = vmul.f32 %v9304_v2, %v6209_v13  ;;  %v1920_v11 = vadd.f32 %v1888_v51, %v1608_v33  ;;  %v2024_v36 = vmul.f32 %v9313_v22, %v6037_v43  ;;  %v2160_v29 = vmul.f32 %v9317_v6, %v6215_v20  ;;  %v6241_v51 = vld [vmem:[#allocation2 + $0x113] sm:$0xff] }
 0x1a7   : > { %v1473_v16 = vadd.f32 %v1441_v34, %v1305_v61  ;;  %v3141_v41 = vadd.f32 %v3109_v44, %v3073_v5  ;;  %v3072_v62 = vadd.f32 %v3040_v38, %v3004_v23  ;;  %v2472_v37 = vmul.f32 %v9354_v63, %v6004_v35  ;;  %v9458_v23 = vld [vmem:[#allocation39_spill] sm:$0xff] }
 0x1a8   : > { %v2608_v18 = vmul.f32 %v9332_v26, %v6084_v17  ;;  %v2056_v33 = vadd.f32 %v2024_v36, %v1920_v11  ;;  %v1889_v61 = vmul.f32 %v9342_v46, %v6001_v19  ;;  %v2526_v34 = vmul.f32 %v6165_v42, %v9441_v1  ;;  %v6257_v36 = vld [vmem:[#allocation2 + $0x139] sm:$0xff] }
 0x1a9   : > { %v1609_v21 = vadd.f32 %v1577_v7, %v1473_v16  ;;  %v6247_v20 = vadd.f32 %v3177_v55, %v3141_v41  ;;  %v3140_v44 = vadd.f32 %v3108_v52, %v3072_v62  ;;  %v2025_v38 = vmul.f32 %v9313_v22, %v6068_v27 }
 0x1aa   : > { %v2161_v35 = vmul.f32 %v9317_v6, %v6233_v31  ;;  %v2192_v11 = vadd.f32 %v2160_v29, %v2056_v33  ;;  %v2558_v7 = vadd.f32 %v2526_v34, %v9458_v23  ;;  %v2662_v19 = vmul.f32 %v6066_v39, %v9452_v3  ;;  %v9460_v29 = vld [vmem:[#allocation74_spill] sm:$0xff]  ;;  %v6269_v33 = vld [vmem:[#allocation2 + $0x123] sm:$0xff] }
 0x1ab   : > { %9457 = vst [vmem:[#allocation111_spill] sm:$0xff] %v6247_v20  ;;  %v1921_v5 = vadd.f32 %v1889_v61, %v1609_v21  ;;  %3474 = vrot.lane.b32.xlu1 %v6247_v20, %s4403_s18  ;;  %v6261_v55 = vadd.f32 %v3176_v25, %v3140_v44  ;;  %v2744_v52 = vmul.f32 %v5869_v53, %v6241_v51  ;;  %v3644_v25 = vstv %s3643_s12 }
 0x1ac   : > { %v2473_v16 = vmul.f32 %v9354_v63, %v6035_v57  ;;  %v2798_v21 = vmul.f32 %v6080_v54, %v9460_v29  ;;  %v2504_v41 = vadd.f32 %v2472_v37, %v2192_v11  ;;  %v2694_v3 = vadd.f32 %v2662_v19, %v2558_v7  ;;  %v6287_v7 = vld [vmem:[#allocation2 + $0x129] sm:$0xff] }
 0x1ad   : > { %9459 = vst [vmem:[#allocation39_spill] sm:$0xff] %v6261_v55  ;;  %v2057_v62 = vadd.f32 %v2025_v38, %v1921_v5  ;;  %v2906_v61 = vmul.f32 %v6101_v48, %v6175_v8  ;;  %3472 = vrot.lane.b32.xlu0 %v6261_v55, %s4403_s18  ;;  %v1307_v34 = vmul.f32 %v9337_v56, %v6033_v49  ;;  %4272 = vrcp.f32 %v3644_v25 }
 0x1ae   : > { %v1443_v57 = vmul.f32 %v9298_v4, %v6209_v13  ;;  %v1579_v37 = vmul.f32 %v9304_v2, %v6257_v36  ;;  %v2640_v44 = vadd.f32 %v2608_v18, %v2504_v41  ;;  %v2830_v11 = vadd.f32 %v2798_v21, %v2694_v3 }
 0x1af   : > { %v2193_v38 = vadd.f32 %v2161_v35, %v2057_v62  ;;  %v2609_v8 = vmul.f32 %v9332_v26, %v6120_v60  ;;  %v2745_v5 = vmul.f32 %v5869_v53, %v6269_v33  ;;  %v2974_v23 = vmul.f32 %v6118_v28, %v6189_v14  ;;  %v6293_v35 = vld [vmem:[#allocation2 + $0x84] sm:$0xff] }
 0x1b0   : > { %v1475_v49 = vadd.f32 %v1443_v57, %v1307_v34  ;;  %v6289_v19 = vadd.f32 %v2744_v52, %v2640_v44  ;;  %v2938_v55 = vadd.f32 %v2906_v61, %v2830_v11  ;;  %v3042_v18 = vmul.f32 %v6132_v58, %v6191_v40  ;;  %v6303_v61 = vld [vmem:[#allocation2 + $0x13a] sm:$0xff] }
 0x1b1   : > { %v2505_v29 = vadd.f32 %v2473_v16, %v2193_v38  ;;  %v1891_v41 = vmul.f32 %v9342_v46, %v6068_v27  ;;  %v2027_v62 = vmul.f32 %v9313_v22, %v6233_v31  ;;  %v1306_v3 = vmul.f32 %v9337_v56, %v5995_v24  ;;  %v6321_v44 = vld [vmem:[#allocation2 + $0x1a0] sm:$0xff] }
 0x1b2   : > { %9461 = vst [vmem:[#allocation74_spill] sm:$0xff] %v6289_v19  ;;  %v1611_v21 = vadd.f32 %v1579_v37, %v1475_v49  ;;  %3305 = vrot.lane.b32.xlu1 %v6289_v19, %s4403_s18  ;;  %v3006_v16 = vadd.f32 %v2974_v23, %v2938_v55  ;;  %v1442_v25 = vmul.f32 %v9298_v4, %v6183_v0  ;;  %v6319_v37 = vld [vmem:[#allocation2 + $0x141] sm:$0xff] }
 0x1b3   : > { %v2641_v52 = vadd.f32 %v2609_v8, %v2505_v29  ;;  %v1578_v34 = vmul.f32 %v9304_v2, %v6287_v7  ;;  %v6311_v27 = vadd.f32 %v6073_v12, %v6014_v47  ;;  %v6315_v24 = vadd.f32 %v6091_v32, %v6023_v50  ;;  %v6376_v19 = vld [vmem:[#allocation2 + $0x63] sm:$0xff] }
 0x1b4   : > { %v3110_v57 = vmul.f32 %v6139_v59, %v6205_v30  ;;  %v1923_v55 = vadd.f32 %v1891_v41, %v1611_v21  ;;  %v3074_v11 = vadd.f32 %v3042_v18, %v3006_v16  ;;  %v3178_v8 = vmul.f32 %v6149_v9, %v6293_v35 }
 0x1b5   : > { %9462 = vst [vmem:[#allocation112_spill] sm:$0xff] %v6311_v27  ;;  %9463 = vst [vmem:[#allocation113_spill] sm:$0xff] %v6315_v24  ;;  %v6323_v38 = vadd.f32 %v2745_v5, %v2641_v52  ;;  %v1474_v47 = vadd.f32 %v1442_v25, %v1306_v3  ;;  %v2163_v50 = vmul.f32 %v9317_v6, %v6303_v61  ;;  %v6353_v52 = vld [vmem:[#allocation2 + $0x13b] sm:$0xff]  ;;  %v9469_v25 = vld [vmem:[#allocation110_spill] sm:$0xff] }
 0x1b6   : > { %v2059_v12 = vadd.f32 %v2027_v62, %v1923_v55  ;;  %v1890_v32 = vmul.f32 %v9342_v46, %v6037_v43  ;;  %v1308_v23 = vmul.f32 %v9337_v56, %v6183_v0  ;;  %v3142_v5 = vadd.f32 %v3110_v57, %v3074_v11  ;;  %v6349_v62 = vld [vmem:[#allocation2 + $0x12a] sm:$0xff]  ;;  %9468 = vst [vmem:[#allocation118_spill] sm:$0xff] %v6353_v52 }
 0x1b7   : > { %9464 = vst [vmem:[#allocation114_spill] sm:$0xff] %v6323_v38  ;;  %3307 = vrot.lane.b32.xlu0 %v6323_v38, %s4403_s18  ;;  %v1610_v49 = vadd.f32 %v1578_v34, %v1474_v47  ;;  %v1444_v29 = vmul.f32 %v9298_v4, %v6287_v7  ;;  %v1580_v18 = vmul.f32 %v9304_v2, %v6319_v37  ;;  %v9473_v47 = vld [vmem:[#allocation106_spill] sm:$0xff] }
 0x1b8   : > { %v6341_v21 = vadd.f32 %v6109_v15, %v6045_v45  ;;  %v6345_v43 = vmul.f32 %v4615_v10, %v6321_v44  ;;  %v2195_v0 = vadd.f32 %v2163_v50, %v2059_v12  ;;  %v2475_v41 = vmul.f32 %v9354_v63, %v6120_v60  ;;  %v9470_v45 = vld [vmem:[#allocation11_spill] sm:$0xff]  ;;  %v9472_v60 = vld [vmem:[#allocation29_spill] sm:$0xff]  ;;  %9475 = vst [vmem:[#allocation106_spill] sm:$0xff] %v6376_v19 }
 0x1b9   : > { %v6351_v3 = vadd.f32 %v3178_v8, %v3142_v5  ;;  %v1922_v16 = vadd.f32 %v1890_v32, %v1610_v49  ;;  %v2026_v34 = vmul.f32 %v9313_v22, %v9469_v25  ;;  %v1476_v15 = vadd.f32 %v1444_v29, %v1308_v23 }
 0x1ba   : > { %9465 = vst [vmem:[#allocation115_spill] sm:$0xff] %v6341_v21  ;;  %9466 = vst [vmem:[#allocation116_spill] sm:$0xff] %v6345_v43  ;;  %v6359_v57 = vmul.f32 %v9470_v45, %v6321_v44  ;;  %v2507_v55 = vadd.f32 %v2475_v41, %v2195_v0  ;;  %v2611_v11 = vmul.f32 %v9332_v26, %v6269_v33  ;;  %v4273_v5 = vpop.eup %4272  ;;  %v6373_v0 = vld [vmem:[#allocation2 + $0x142] sm:$0xff]  ;;  %v9474_v41 = vld [vmem:[#allocation58_spill] sm:$0xff] }
 0x1bb   : > { %9467 = vst [vmem:[#allocation117_spill] sm:$0xff] %v6351_v3  ;;  %v2391_v12 = vmul.f32 %v9473_v47, %v9472_v60  ;;  %3476 = vrot.lane.b32.xlu1 %v6351_v3, %s4403_s18  ;;  %v2058_v8 = vadd.f32 %v2026_v34, %v1922_v16  ;;  %v2162_v50 = vmul.f32 %v9317_v6, %v6349_v62  ;;  %v6380_v3 = vld [vmem:[#allocation2 + $0x12b] sm:$0xff]  ;;  %4258 = vpush %v4273_v5 }
 0x1bc   : > { %9471 = vst [vmem:[#allocation110_spill] sm:$0xff] %v6359_v57  ;;  %v1612_v32 = vadd.f32 %v1580_v18, %v1476_v15  ;;  %v1892_v23 = vmul.f32 %v9342_v46, %v9469_v25  ;;  %v2643_v49 = vadd.f32 %v2611_v11, %v2507_v55  ;;  %v2747_v29 = vmul.f32 %v5869_v53, %v6353_v52  ;;  %v6409_v21 = vld [vmem:[#allocation2 + $0x6b] sm:$0xff] }
 0x1bd   : > { %v2423_v38 = vadd.f32 %v2391_v12, %v9474_v41  ;;  %v2527_v16 = vmul.f32 %v6376_v19, %v9441_v1  ;;  %v2194_v34 = vadd.f32 %v2162_v50, %v2058_v8  ;;  %9476 = vst [vmem:[#allocation58_spill] sm:$0xff] %v6380_v3  ;;  %v2474_v18 = vmul.f32 %v9354_v63, %v6084_v17  ;;  %v6390_v41 = vld [vmem:[#allocation2 + $0x7b] sm:$0xff] }
 0x1be   : > { %v1924_v25 = vadd.f32 %v1892_v23, %v1612_v32  ;;  %v2028_v15 = vmul.f32 %v9313_v22, %v6349_v62  ;;  %v6386_v55 = vadd.f32 %v2747_v29, %v2643_v49  ;;  %v2610_v11 = vmul.f32 %v9332_v26, %v6241_v51  ;;  %9478 = vst [vmem:[#allocation120_spill] sm:$0xff] %v6390_v41  ;;  %v9479_v49 = vld [vmem:[#allocation55_spill] sm:$0xff] }
 0x1bf   : > { %v2559_v12 = vadd.f32 %v2527_v16, %v2423_v38  ;;  %v2663_v8 = vmul.f32 %v6390_v41, %v6066_v39  ;;  %v2506_v50 = vadd.f32 %v2474_v18, %v2194_v34  ;;  %v2164_v17 = vmul.f32 %v9317_v6, %v6373_v0  ;;  %v6406_v18 = vld [vmem:[#allocation2 + $0x143] sm:$0xff] }
 0x1c0   : > { %9477 = vst [vmem:[#allocation119_spill] sm:$0xff] %v6386_v55  ;;  %v2060_v20 = vadd.f32 %v2028_v15, %v1924_v25  ;;  %v2392_v32 = vmul.f32 %v6165_v42, %v9472_v60  ;;  %3311 = vrot.lane.b32.xlu0 %v6386_v55, %s4403_s18  ;;  %v2746_v23 = vmul.f32 %v5869_v53, %v6380_v3  ;;  %9480 = vst [vmem:[#allocation55_spill] sm:$0xff] %v6406_v18  ;;  %v9481_v25 = vld [vmem:[#allocation50_spill] sm:$0xff] }
 0x1c1   : > { %v2476_v38 = vmul.f32 %v9354_v63, %v6241_v51  ;;  %v2695_v5 = vadd.f32 %v2663_v8, %v2559_v12  ;;  %v2799_v29 = vmul.f32 %v6080_v54, %v9479_v49  ;;  %v2642_v16 = vadd.f32 %v2610_v11, %v2506_v50  ;;  %9482 = vst [vmem:[#allocation50_spill] sm:$0xff] %v6409_v21  ;;  %v9483_v51 = vld [vmem:[#allocation70_spill] sm:$0xff]  ;;  %v6417_v8 = vld [vmem:[#allocation2 + $0x83] sm:$0xff] }
 0x1c2   : > { %v2196_v34 = vadd.f32 %v2164_v17, %v2060_v20  ;;  %v2424_v15 = vadd.f32 %v2392_v32, %v9481_v25  ;;  %v2528_v55 = vmul.f32 %v6409_v21, %v9441_v1  ;;  %v2612_v57 = vmul.f32 %v9332_v26, %v6380_v3  ;;  %9484 = vst [vmem:[#allocation70_spill] sm:$0xff] %v6417_v8  ;;  %v9486_v32 = vld [vmem:[#allocation97_spill] sm:$0xff]  ;;  %v9504_v26 = vld [vmem:[#allocation91_spill] sm:$0xff] }
 0x1c3   : > { %v2831_v43 = vadd.f32 %v2799_v29, %v2695_v5  ;;  %v2907_v12 = vmul.f32 %v6101_v48, %v9483_v51  ;;  %v2664_v20 = vmul.f32 %v6417_v8, %v6066_v39  ;;  %v6421_v11 = vadd.f32 %v2746_v23, %v2642_v16  ;;  %v9487_v49 = vld [vmem:[#allocation89_spill] sm:$0xff]  ;;  %v9488_v5 = vld [vmem:[#allocation108_spill] sm:$0xff]  ;;  %v9489_v51 = vld [vmem:[#allocation63_spill] sm:$0xff] }
 0x1c4   : > { %v2508_v50 = vadd.f32 %v2476_v38, %v2196_v34  ;;  %v2560_v17 = vadd.f32 %v2528_v55, %v2424_v15  ;;  %v1081_v25 = vadd.f32 %v9487_v49, %v9486_v32  ;;  %v2748_v24 = vmul.f32 %v5869_v53, %v6406_v18  ;;  %v9490_v38 = vld [vmem:[#allocation57_spill] sm:$0xff]  ;;  %v9493_v53 = vld [vmem:[#allocation24_spill] sm:$0xff]  ;;  %v9495_v49 = vld [vmem:[#allocation38_spill] sm:$0xff] }
 0x1c5   : > { %9485 = vst [vmem:[#allocation121_spill] sm:$0xff] %v6421_v11  ;;  %v2939_v27 = vadd.f32 %v2907_v12, %v2831_v43  ;;  %v2975_v29 = vmul.f32 %v6118_v28, %v9488_v5  ;;  %v2800_v3 = vmul.f32 %v6080_v54, %v9489_v51  ;;  %3309 = vrot.lane.b32.xlu1 %v6421_v11, %s4403_s18  ;;  %v6434_v34 = vld [vmem:[#allocation2 + $0x61] sm:$0xff]  ;;  %v9499_v18 = vld [vmem:[#allocation15_spill] sm:$0xff] }
 0x1c6   : > { %v2644_v23 = vadd.f32 %v2612_v57, %v2508_v50  ;;  %v2696_v16 = vadd.f32 %v2664_v20, %v2560_v17  ;;  %v1189_v55 = vadd.f32 %v9490_v38, %v1081_v25  ;;  %9491 = vst [vmem:[#allocation97_spill] sm:$0xff] %v6434_v34  ;;  %v9492_v15 = vld [vmem:[#allocation13_spill] sm:$0xff]  ;;  %v6440_v43 = vmul.f32 %v9493_v53, %v6321_v44  ;;  %v6448_v50 = vld [vmem:[#allocation2 + $0x94] sm:$0xff] }
 0x1c7   : > { %v1225_v32 = vmul.f32 %v6434_v34, %v9492_v15  ;;  %v3007_v12 = vadd.f32 %v2975_v29, %v2939_v27  ;;  %v3043_v51 = vmul.f32 %v6132_v58, %v9495_v49  ;;  %v2908_v11 = vmul.f32 %v6101_v48, %v6189_v14  ;;  %v760_v57 = vld [vmem:[#allocation2 + $0x188] sm:$0xff]  ;;  %9497 = vst [vmem:[#allocation63_spill] sm:$0xff] %v6448_v50  ;;  %v6450_v38 = vld [vmem:[#allocation2 + $0x79] sm:$0xff]  ;;  %v9503_v34 = vld [vmem:[#allocation66_spill] sm:$0xff] }
 0x1c8   : > { %9494 = vst [vmem:[#allocation89_spill] sm:$0xff] %v6440_v43  ;;  %v6446_v20 = vadd.f32 %v2748_v24, %v2644_v23  ;;  %v2832_v17 = vadd.f32 %v2800_v3, %v2696_v16  ;;  %9498 = vst [vmem:[#allocation57_spill] sm:$0xff] %v6450_v38  ;;  %v1361_v44 = vmul.f32 %v6450_v38, %v9499_v18  ;;  %v9500_v43 = vld [vmem:[#allocation92_spill] sm:$0xff]  ;;  %v9501_v27 = vld [vmem:[#allocation53_spill] sm:$0xff] }
 0x1c9   : > { %v1257_v25 = vadd.f32 %v1225_v32, %v1189_v55  ;;  %v6456_v29 = vadd.f32 %v9501_v27, %v9500_v43  ;;  %v6460_v52 = vadd.f32 %v9504_v26, %v9503_v34  ;;  %v3075_v14 = vadd.f32 %v3043_v51, %v3007_v12  ;;  %v9506_v24 = vld [vmem:[#allocation59_spill] sm:$0xff]  ;;  %v9508_v43 = vld [vmem:[#allocation17_spill] sm:$0xff]  ;;  %v9510_v34 = vld [vmem:[#allocation86_spill] sm:$0xff] }
 0x1ca   : > { %9496 = vst [vmem:[#allocation108_spill] sm:$0xff] %v6446_v20  ;;  %v3111_v23 = vmul.f32 %v6139_v59, %v9506_v24  ;;  %3313 = vrot.lane.b32.xlu1 %v6446_v20, %s4403_s18  ;;  %v2940_v3 = vadd.f32 %v2908_v11, %v2832_v17  ;;  %v2976_v16 = vmul.f32 %v6118_v28, %v6191_v40  ;;  %v6468_v32 = vld [vmem:[#allocation2 + $0x91] sm:$0xff]  ;;  %v9511_v12 = vld [vmem:[#allocation81_spill] sm:$0xff] }
 0x1cb   : > { %9502 = vst [vmem:[#allocation13_spill] sm:$0xff] %v6456_v29  ;;  %9505 = vst [vmem:[#allocation92_spill] sm:$0xff] %v6460_v52  ;;  %v1393_v55 = vadd.f32 %v1361_v44, %v1257_v25  ;;  %v1497_v27 = vmul.f32 %v6468_v32, %v9508_v43  ;;  %v9509_v29 = vld [vmem:[#allocation5_spill] sm:$0xff]  ;;  %v6475_v51 = vadd.f32 %v9511_v12, %v9510_v34  ;;  %v9514_v38 = vld [vmem:[#allocation27_spill] sm:$0xff] }
 0x1cc   : > { %9507 = vst [vmem:[#allocation53_spill] sm:$0xff] %v6468_v32  ;;  %v870_v26 = vmul.f32 %v9509_v29, %v760_v57  ;;  %v3143_v52 = vadd.f32 %v3111_v23, %v3075_v14  ;;  %v3179_v20 = vmul.f32 %v6149_v9, %v6448_v50  ;;  %v3008_v11 = vadd.f32 %v2976_v16, %v2940_v3  ;;  %v6481_v44 = vld [vmem:[#allocation2 + $0xa9] sm:$0xff]  ;;  %v6493_v23 = vld [vmem:[#allocation2 + $0x9c] sm:$0xff] }
 0x1cd   : > { %9512 = vst [vmem:[#allocation66_spill] sm:$0xff] %v6475_v51  ;;  %v3044_v17 = vmul.f32 %v6132_v58, %v6205_v30  ;;  %v1529_v25 = vadd.f32 %v1497_v27, %v1393_v55  ;;  %9513 = vst [vmem:[#allocation91_spill] sm:$0xff] %v6481_v44  ;;  %v1633_v32 = vmul.f32 %v6481_v44, %v9514_v38  ;;  %v9519_v3 = vld [vmem:[#allocation60_spill] sm:$0xff]  ;;  %v9520_v16 = vld [vmem:[#allocation94_spill] sm:$0xff] }
 0x1ce   : > { %v6486_v29 = vmul.f32 %v4615_v10, %v760_v57  ;;  %v6489_v34 = vmul.f32 %v9470_v45, %v760_v57  ;;  %v6491_v14 = vadd.f32 %v3179_v20, %v3143_v52  ;;  %9518 = vst [vmem:[#allocation122_spill] sm:$0xff] %v6493_v23  ;;  %v1082_v12 = vadd.f32 %v9520_v16, %v9519_v3  ;;  %v4289_v30 = vld [vmem:[#allocation2 + $0x4a] sm:$0xff]  ;;  %v9521_v44 = vld [vmem:[#allocation19_spill] sm:$0xff]  ;;  %v9522_v10 = vld [vmem:[#allocation52_spill] sm:$0xff] }
 0x1cf   : > { %v3076_v51 = vadd.f32 %v3044_v17, %v3008_v11  ;;  %v3112_v55 = vmul.f32 %v6139_v59, %v6293_v35  ;;  %v1665_v27 = vadd.f32 %v1633_v32, %v1529_v25  ;;  %v1741_v40 = vmul.f32 %v4289_v30, %v9521_v44  ;;  %v9525_v52 = vld [vmem:[#allocation35_spill] sm:$0xff]  ;;  %v6509_v3 = vld [vmem:[#allocation2 + $0x69] sm:$0xff]  ;;  %v9528_v25 = vld [vmem:[#allocation20_spill] sm:$0xff] }
 0x1d0   : > { %9515 = vst [vmem:[#allocation5_spill] sm:$0xff] %v6486_v29  ;;  %9516 = vst [vmem:[#allocation86_spill] sm:$0xff] %v6489_v34  ;;  %v6501_v29 = vadd.f32 %v870_v26, %v9522_v10  ;;  %v6504_v34 = vmul.f32 %v9493_v53, %v760_v57  ;;  %3478 = vrot.lane.b32.xlu0 %v6491_v14, %s4403_s18  ;;  %v1190_v20 = vadd.f32 %v9525_v52, %v1082_v12  ;;  %v6515_v26 = vld [vmem:[#allocation2 + $0x62] sm:$0xff]  ;;  %v6519_v16 = vld [vmem:[#allocation2 + $0x7a] sm:$0xff] }
 0x1d1   : > { %9517 = vst [vmem:[#allocation81_spill] sm:$0xff] %v6491_v14  ;;  %9526 = vst [vmem:[#allocation52_spill] sm:$0xff] %v6509_v3  ;;  %v1226_v11 = vmul.f32 %v6509_v3, %v9492_v15  ;;  %v3144_v32 = vadd.f32 %v3112_v55, %v3076_v51  ;;  %v3180_v30 = vmul.f32 %v6149_v9, %v6493_v23  ;;  %v9530_v10 = vld [vmem:[#allocation22_spill] sm:$0xff]  ;;  %v9532_v14 = vld [vmem:[#allocation25_spill] sm:$0xff] }
 0x1d2   : > { %9523 = vst [vmem:[#allocation60_spill] sm:$0xff] %v6501_v29  ;;  %9524 = vst [vmem:[#allocation94_spill] sm:$0xff] %v6504_v34  ;;  %v1773_v17 = vadd.f32 %v1741_v40, %v1665_v27  ;;  %v1809_v57 = vmul.f32 %v6515_v26, %v9528_v25  ;;  %v1945_v12 = vmul.f32 %v6519_v16, %v9530_v10  ;;  %v6523_v52 = vld [vmem:[#allocation2 + $0x92] sm:$0xff]  ;;  %v6527_v55 = vld [vmem:[#allocation2 + $0x81] sm:$0xff] }
 0x1d3   : > { %9527 = vst [vmem:[#allocation35_spill] sm:$0xff] %v6515_v26  ;;  %9529 = vst [vmem:[#allocation20_spill] sm:$0xff] %v6519_v16  ;;  %v2081_v29 = vmul.f32 %v6523_v52, %v9532_v14  ;;  %v1258_v51 = vadd.f32 %v1226_v11, %v1190_v20  ;;  %v1362_v40 = vmul.f32 %v6527_v55, %v9499_v18  ;;  %v6533_v53 = vld [vmem:[#allocation2 + $0xaa] sm:$0xff]  ;;  %v9537_v16 = vld [vmem:[#allocation28_spill] sm:$0xff] }
 0x1d4   : > { %9531 = vst [vmem:[#allocation123_spill] sm:$0xff] %v6523_v52  ;;  %9533 = vst [vmem:[#allocation124_spill] sm:$0xff] %v6527_v55  ;;  %v6531_v27 = vadd.f32 %v3180_v30, %v3144_v32  ;;  %v1841_v34 = vadd.f32 %v1809_v57, %v1773_v17  ;;  %v9536_v45 = vld [vmem:[#allocation33_spill] sm:$0xff]  ;;  %v2325_v26 = vmul.f32 %v9473_v47, %v9537_v16  ;;  %v6539_v23 = vld [vmem:[#allocation2 + $0x151] sm:$0xff] }
 0x1d5   : > { %9535 = vst [vmem:[#allocation126_spill] sm:$0xff] %v6533_v53  ;;  %v2217_v3 = vmul.f32 %v6533_v53, %v9536_v45  ;;  %9538 = vst [vmem:[#allocation127_spill] sm:$0xff] %v6539_v23  ;;  %v2393_v20 = vmul.f32 %v6376_v19, %v9472_v60  ;;  %v2529_v11 = vmul.f32 %v6390_v41, %v9441_v1  ;;  %v6545_v32 = vld [vmem:[#allocation2 + $0x99] sm:$0xff]  ;;  %v6555_v53 = vld [vmem:[#allocation2 + $0xab] sm:$0xff] }
 0x1d6   : > { %9534 = vst [vmem:[#allocation125_spill] sm:$0xff] %v6531_v27  ;;  %v1394_v55 = vadd.f32 %v1362_v40, %v1258_v51  ;;  %9539 = vst [vmem:[#allocation128_spill] sm:$0xff] %v6545_v32  ;;  %v1498_v30 = vmul.f32 %v6545_v32, %v9508_v43  ;;  %3480 = vrot.lane.b32.xlu1 %v6531_v27, %s4403_s18  ;;  %v1977_v17 = vadd.f32 %v1945_v12, %v1841_v34  ;;  %v6551_v57 = vld [vmem:[#allocation2 + $0x93] sm:$0xff] }
 0x1d7   : > { %9540 = vst [vmem:[#allocation129_spill] sm:$0xff] %v6551_v57  ;;  %v2665_v47 = vmul.f32 %v6551_v57, %v6066_v39  ;;  %9541 = vst [vmem:[#allocation130_spill] sm:$0xff] %v6555_v53  ;;  %v6559_v41 = vmul.f32 %v6555_v53, %v6080_v54  ;;  %v6561_v51 = vld [vmem:[#allocation2 + $0xb1] sm:$0xff]  ;;  %v1309_v34 = vmul.f32 %v9337_v56, %v6209_v13  ;;  %v6583_v13 = vld [vmem:[#allocation2 + $0x159] sm:$0xff] }
 0x1d8   : > { %9542 = vst [vmem:[#allocation131_spill] sm:$0xff] %v6561_v51  ;;  %v1634_v40 = vmul.f32 %v6561_v51, %v9514_v38  ;;  %v1530_v32 = vadd.f32 %v1498_v30, %v1394_v55  ;;  %v1445_v12 = vmul.f32 %v9298_v4, %v6257_v36  ;;  %v1581_v27 = vmul.f32 %v9304_v2, %v6539_v23  ;;  %v6585_v30 = vld [vmem:[#allocation2 + $0xac] sm:$0xff] }
 0x1d9   : > { %v2113_v57 = vadd.f32 %v2081_v29, %v1977_v17  ;;  %v6573_v53 = vmul.f32 %v6101_v48, %v9488_v5  ;;  %v6577_v19 = vmul.f32 %v6118_v28, %v9495_v49  ;;  %v6581_v55 = vmul.f32 %v6132_v58, %v9506_v24  ;;  %9543 = vst [vmem:[#allocation132_spill] sm:$0xff] %v6583_v13  ;;  %v4300_v17 = vld [vmem:[#allocation2 + $0x52] sm:$0xff]  ;;  %v6592_v49 = vld [vmem:[#allocation2 + $0x6a] sm:$0xff] }
 0x1da   : > { %9544 = vst [vmem:[#allocation133_spill] sm:$0xff] %v6585_v30  ;;  %v6589_v51 = vmul.f32 %v6139_v59, %v6448_v50  ;;  %v1666_v29 = vadd.f32 %v1634_v40, %v1530_v32  ;;  %v1742_v5 = vmul.f32 %v4300_v17, %v9521_v44  ;;  %v1477_v52 = vadd.f32 %v1445_v12, %v1309_v34  ;;  %v6608_v34 = vld [vmem:[#allocation2 + $0x82] sm:$0xff] }
 0x1db   : > { %v2249_v38 = vadd.f32 %v2217_v3, %v2113_v57  ;;  %9545 = vst [vmem:[#allocation134_spill] sm:$0xff] %v6592_v49  ;;  %v1810_v24 = vmul.f32 %v6592_v49, %v9528_v25  ;;  %v1310_v43 = vmul.f32 %v9337_v56, %v6287_v7  ;;  %v1446_v18 = vmul.f32 %v9298_v4, %v6319_v37  ;;  %v6612_v17 = vld [vmem:[#allocation2 + $0x169] sm:$0xff] }
 0x1dc   : > { %v1774_v58 = vadd.f32 %v1742_v5, %v1666_v29  ;;  %v1613_v50 = vadd.f32 %v1581_v27, %v1477_v52  ;;  %v1893_v32 = vmul.f32 %v9342_v46, %v6233_v31  ;;  %v1582_v40 = vmul.f32 %v9304_v2, %v6583_v13  ;;  %9546 = vst [vmem:[#allocation135_spill] sm:$0xff] %v6608_v34  ;;  %v6614_v27 = vld [vmem:[#allocation2 + $0x9a] sm:$0xff]  ;;  %v6618_v29 = vld [vmem:[#allocation2 + $0xb2] sm:$0xff] }
 0x1dd   : > { %v2357_v3 = vadd.f32 %v2325_v26, %v2249_v38  ;;  %v6606_v57 = vmul.f32 %v6149_v9, %v6585_v30  ;;  %v1946_v7 = vmul.f32 %v6608_v34, %v9530_v10  ;;  %v1478_v12 = vadd.f32 %v1446_v18, %v1310_v43  ;;  %9547 = vst [vmem:[#allocation136_spill] sm:$0xff] %v6612_v17  ;;  %v6624_v34 = vld [vmem:[#allocation2 + $0x152] sm:$0xff] }
 0x1de   : > { %v1842_v52 = vadd.f32 %v1810_v24, %v1774_v58  ;;  %9548 = vst [vmem:[#allocation137_spill] sm:$0xff] %v6614_v27  ;;  %v2082_v31 = vmul.f32 %v6614_v27, %v9532_v14  ;;  %v2218_v38 = vmul.f32 %v6618_v29, %v9536_v45  ;;  %v1925_v26 = vadd.f32 %v1893_v32, %v1613_v50 }
 0x1df   : > { %v2425_v5 = vadd.f32 %v2393_v20, %v2357_v3  ;;  %v2326_v49 = vmul.f32 %v6165_v42, %v9537_v16  ;;  %9549 = vst [vmem:[#allocation138_spill] sm:$0xff] %v6624_v34  ;;  %v2029_v58 = vmul.f32 %v9313_v22, %v6303_v61  ;;  %v1614_v18 = vadd.f32 %v1582_v40, %v1478_v12  ;;  %v6642_v12 = vld [vmem:[#allocation2 + $0x15a] sm:$0xff] }
 0x1e0   : > { %v1978_v24 = vadd.f32 %v1946_v7, %v1842_v52  ;;  %v1311_v43 = vmul.f32 %v9337_v56, %v6257_v36  ;;  %v1447_v27 = vmul.f32 %v9298_v4, %v6539_v23  ;;  %v1583_v50 = vmul.f32 %v9304_v2, %v6612_v17  ;;  %9550 = vst [vmem:[#allocation139_spill] sm:$0xff] %v6642_v12  ;;  %v6644_v17 = vld [vmem:[#allocation2 + $0x9b] sm:$0xff] }
 0x1e1   : > { %v2561_v20 = vadd.f32 %v2529_v11, %v2425_v5  ;;  %v2394_v42 = vmul.f32 %v6409_v21, %v9472_v60  ;;  %v2530_v32 = vmul.f32 %v6417_v8, %v9441_v1  ;;  %v1894_v40 = vmul.f32 %v9342_v46, %v6349_v62  ;;  %9551 = vst [vmem:[#allocation140_spill] sm:$0xff] %v6644_v17  ;;  %v6650_v21 = vld [vmem:[#allocation2 + $0x171] sm:$0xff] }
 0x1e2   : > { %v2114_v3 = vadd.f32 %v2082_v31, %v1978_v24  ;;  %v2061_v7 = vadd.f32 %v2029_v58, %v1925_v26  ;;  %v2165_v36 = vmul.f32 %v9317_v6, %v6624_v34  ;;  %v1479_v52 = vadd.f32 %v1447_v27, %v1311_v43  ;;  %9552 = vst [vmem:[#allocation141_spill] sm:$0xff] %v6650_v21  ;;  %v6652_v26 = vld [vmem:[#allocation2 + $0x16a] sm:$0xff] }
 0x1e3   : > { %v2697_v23 = vadd.f32 %v2665_v47, %v2561_v20  ;;  %v2666_v11 = vmul.f32 %v6644_v17, %v6066_v39  ;;  %v1926_v5 = vadd.f32 %v1894_v40, %v1614_v18  ;;  %v2030_v8 = vmul.f32 %v9313_v22, %v6373_v0  ;;  %9553 = vst [vmem:[#allocation142_spill] sm:$0xff] %v6652_v26 }
 0x1e4   : > { %v2250_v62 = vadd.f32 %v2218_v38, %v2114_v3  ;;  %v1615_v31 = vadd.f32 %v1583_v50, %v1479_v52  ;;  %v1895_v58 = vmul.f32 %v9342_v46, %v6303_v61  ;;  %v2031_v47 = vmul.f32 %v9313_v22, %v6624_v34  ;;  %v6670_v34 = vld [vmem:[#allocation2 + $0xb3] sm:$0xff] }
 0x1e5   : > { %v2833_v27 = vadd.f32 %v6559_v41, %v2697_v23  ;;  %v2166_v18 = vmul.f32 %v9317_v6, %v6642_v12  ;;  %v1312_v24 = vmul.f32 %v9337_v56, %v6319_v37  ;;  %v1448_v38 = vmul.f32 %v9298_v4, %v6583_v13  ;;  %9554 = vst [vmem:[#allocation143_spill] sm:$0xff] %v6670_v34  ;;  %v9608_v4 = vld [vmem:[#allocation38_spill] sm:$0xff] }
 0x1e6   : > { %v2358_v43 = vadd.f32 %v2326_v49, %v2250_v62  ;;  %v2197_v50 = vadd.f32 %v2165_v36, %v2061_v7  ;;  %v1927_v20 = vadd.f32 %v1895_v58, %v1615_v31  ;;  %v1584_v61 = vmul.f32 %v9304_v2, %v6650_v21  ;;  %v6677_v62 = vld [vmem:[#allocation2 + $0x153] sm:$0xff]  ;;  %v9583_v21 = vld [vmem:[#allocation17_spill] sm:$0xff] }
 0x1e7   : > { %v2941_v40 = vadd.f32 %v6573_v53, %v2833_v27  ;;  %v2062_v3 = vadd.f32 %v2030_v8, %v1926_v5  ;;  %v2167_v41 = vmul.f32 %v9317_v6, %v6652_v26  ;;  %v1480_v23 = vadd.f32 %v1448_v38, %v1312_v24  ;;  %9555 = vst [vmem:[#allocation144_spill] sm:$0xff] %v6677_v62  ;;  %v9556_v31 = vld [vmem:[#allocation71_spill] sm:$0xff]  ;;  %v9557_v24 = vld [vmem:[#allocation118_spill] sm:$0xff]  ;;  %v9558_v38 = vld [vmem:[#allocation32_spill] sm:$0xff] }
 0x1e8   : > { %v2426_v52 = vadd.f32 %v2394_v42, %v2358_v43  ;;  %v2802_v37 = vmul.f32 %v6670_v34, %v6080_v54  ;;  %v2477_v49 = vmul.f32 %v9354_v63, %v6269_v33  ;;  %v2063_v7 = vadd.f32 %v2031_v47, %v1927_v20  ;;  %v6687_v47 = vld [vmem:[#allocation2 + $0x172] sm:$0xff]  ;;  %v9606_v26 = vld [vmem:[#allocation128_spill] sm:$0xff] }
 0x1e9   : > { %v3009_v36 = vadd.f32 %v6577_v19, %v2941_v40  ;;  %v1616_v53 = vadd.f32 %v1584_v61, %v1480_v23  ;;  %v1896_v8 = vmul.f32 %v9342_v46, %v6373_v0  ;;  %v2032_v42 = vmul.f32 %v9313_v22, %v6642_v12  ;;  %9559 = vst [vmem:[#allocation71_spill] sm:$0xff] %v6687_v47  ;;  %v6693_v0 = vld [vmem:[%s8783_s4 + $0x8] ss:$0 sm:$0xff] }
 0x1ea   : > { %v2562_v5 = vadd.f32 %v2530_v32, %v2426_v52  ;;  %v2910_v58 = vmul.f32 %v6101_v48, %v9556_v31  ;;  %v2509_v27 = vadd.f32 %v2477_v49, %v2197_v50  ;;  %v2613_v33 = vmul.f32 %v9558_v38, %v9557_v24  ;;  %9560 = vst [vmem:[#allocation118_spill] sm:$0xff] %v6693_v0  ;;  %v9561_v50 = vld [vmem:[#allocation58_spill] sm:$0xff]  ;;  %v9562_v52 = vld [vmem:[#allocation79_spill] sm:$0xff]  ;;  %v9563_v49 = vld [vmem:[#allocation88_spill] sm:$0xff] }
 0x1eb   : > { %v3077_v19 = vadd.f32 %v6581_v55, %v3009_v36  ;;  %v2198_v43 = vadd.f32 %v2166_v18, %v2062_v3  ;;  %v2199_v20 = vadd.f32 %v2167_v41, %v2063_v7  ;;  %v1928_v61 = vadd.f32 %v1896_v8, %v1616_v53  ;;  %v9564_v36 = vld [vmem:[#allocation100_spill] sm:$0xff] }
 0x1ec   : > { %v2698_v40 = vadd.f32 %v2666_v11, %v2562_v5  ;;  %v2749_v32 = vmul.f32 %v6693_v0, %v6677_v62  ;;  %v2478_v23 = vmul.f32 %v9354_v63, %v9561_v50  ;;  %v1015_v31 = vadd.f32 %v9563_v49, %v9562_v52  ;;  %v9565_v8 = vld [vmem:[#allocation12_spill] sm:$0xff]  ;;  %v9566_v5 = vld [vmem:[#allocation97_spill] sm:$0xff]  ;;  %s4259_s28 = spop %4258 }
 0x1ed   : > { %v3145_v55 = vadd.f32 %v6589_v51, %v3077_v19  ;;  %v2479_v18 = vmul.f32 %v9354_v63, %v9557_v24  ;;  %v2064_v11 = vadd.f32 %v2032_v42, %v1928_v61  ;;  %v2168_v3 = vmul.f32 %v9317_v6, %v6687_v47  ;;  %v6714_v49 = vld [vmem:[#allocation2 + $0x16b] sm:$0xff]  ;;  %v6801_v22 = vld [vmem:[#allocation2 + $0xc3] sm:$0xff] }
 0x1ee   : > { %v2834_v41 = vadd.f32 %v2802_v37, %v2698_v40  ;;  %v2615_v7 = vmul.f32 %v9558_v38, %v6677_v62  ;;  %v1083_v53 = vadd.f32 %v9564_v36, %v1015_v31  ;;  %v1159_v50 = vmul.f32 %v9566_v5, %v9565_v8  ;;  %9568 = vst [vmem:[#allocation79_spill] sm:$0xff] %v6714_v49  ;;  %v9569_v61 = vld [vmem:[#allocation109_spill] sm:$0xff] }
 0x1ef   : > { %v6712_v52 = vadd.f32 %v6606_v57, %v3145_v55  ;;  %v2645_v51 = vadd.f32 %v2613_v33, %v2509_v27  ;;  %v2510_v19 = vadd.f32 %v2478_v23, %v2198_v43  ;;  %v2511_v42 = vadd.f32 %v2479_v18, %v2199_v20  ;;  %v9570_v62 = vld [vmem:[#allocation57_spill] sm:$0xff]  ;;  %v9574_v57 = vld [vmem:[#allocation7_spill] sm:$0xff] }
 0x1f0   : > { %v2942_v24 = vadd.f32 %v2910_v58, %v2834_v41  ;;  %v2978_v37 = vmul.f32 %v6118_v28, %v9569_v61  ;;  %v1191_v40 = vadd.f32 %v1159_v50, %v1083_v53  ;;  %v1227_v47 = vmul.f32 %v9570_v62, %v9492_v15  ;;  %v9571_v31 = vld [vmem:[#allocation13_spill] sm:$0xff]  ;;  %v9575_v33 = vld [vmem:[#allocation55_spill] sm:$0xff] }
 0x1f1   : > { %9567 = vst [vmem:[#allocation58_spill] sm:$0xff] %v6712_v52  ;;  %v9572_v36 = vld [vmem:[#allocation5_spill] sm:$0xff]  ;;  %3482 = vrot.lane.b32.xlu0 %v6712_v52, %s4403_s18  ;;  %v3046_v27 = vmul.f32 %v9574_v57, %v6293_v35  ;;  %v2614_v58 = vmul.f32 %v9558_v38, %v9575_v33  ;;  %v2200_v43 = vadd.f32 %v2168_v3, %v2064_v11  ;;  %v6730_v20 = vld [vmem:[#allocation2 + $0xb4] sm:$0xff] }
 0x1f2   : > { %v6722_v6 = vadd.f32 %v9572_v36, %v9571_v31  ;;  %9576 = vst [vmem:[#allocation100_spill] sm:$0xff] %v6730_v20  ;;  %v3010_v23 = vadd.f32 %v2978_v37, %v2942_v24  ;;  %v6732_v55 = vld [vmem:[#allocation2 + $0x15b] sm:$0xff]  ;;  %v2751_v18 = vmul.f32 %v6693_v0, %v6714_v49  ;;  %v1259_v41 = vadd.f32 %v1227_v47, %v1191_v40  ;;  %v9579_v5 = vld [vmem:[#allocation53_spill] sm:$0xff]  ;;  %v9581_v3 = vld [vmem:[#allocation122_spill] sm:$0xff] }
 0x1f3   : > { %9577 = vst [vmem:[#allocation12_spill] sm:$0xff] %v6732_v55  ;;  %v9578_v53 = vld [vmem:[#allocation15_spill] sm:$0xff]  ;;  %v6738_v31 = vadd.f32 %v2749_v32, %v2645_v51  ;;  %v2646_v36 = vadd.f32 %v2614_v58, %v2510_v19  ;;  %v2647_v52 = vadd.f32 %v2615_v7, %v2511_v42  ;;  %v3114_v24 = vmul.f32 %v6139_v59, %v9581_v3 }
 0x1f4   : > { %9573 = vst [vmem:[#allocation88_spill] sm:$0xff] %v6722_v6  ;;  %v1363_v50 = vmul.f32 %v9579_v5, %v9578_v53  ;;  %v2480_v6 = vmul.f32 %v9354_v63, %v9575_v33  ;;  %v3078_v11 = vadd.f32 %v3046_v27, %v3010_v23  ;;  %v6744_v37 = vld [vmem:[#allocation2 + $0x173] sm:$0xff]  ;;  %v3182_v40 = vmul.f32 %v6149_v9, %v6730_v20  ;;  %v6756_v27 = vld [vmem:[#allocation2 + $0xc1] sm:$0xff] }
 0x1f5   : > { %9580 = vst [vmem:[#allocation97_spill] sm:$0xff] %v6738_v31  ;;  %9582 = vst [vmem:[#allocation109_spill] sm:$0xff] %v6744_v37  ;;  %v9584_v49 = vld [vmem:[#allocation91_spill] sm:$0xff]  ;;  %3315 = vrot.lane.b32.xlu0 %v6738_v31, %s4403_s18  ;;  %v2750_v32 = vmul.f32 %v6693_v0, %v6732_v55  ;;  %v2616_v51 = vmul.f32 %v9558_v38, %v6732_v55  ;;  %v6764_v31 = vadd.f32 %v2751_v18, %v2647_v52  ;;  %v9594_v38 = vld [vmem:[#allocation52_spill] sm:$0xff] }
 0x1f6   : > { %v1395_v12 = vadd.f32 %v1363_v50, %v1259_v41  ;;  %v1499_v47 = vmul.f32 %v9584_v49, %v9583_v21  ;;  %v2512_v7 = vadd.f32 %v2480_v6, %v2200_v43  ;;  %v3146_v19 = vadd.f32 %v3114_v24, %v3078_v11  ;;  %9585 = vst [vmem:[#allocation57_spill] sm:$0xff] %v6756_v27  ;;  %v9586_v33 = vld [vmem:[#allocation27_spill] sm:$0xff]  ;;  %v9588_v41 = vld [vmem:[#allocation93_spill] sm:$0xff]  ;;  %v9593_v24 = vld [vmem:[#allocation80_spill] sm:$0xff] }
 0x1f7   : > { %v1635_v58 = vmul.f32 %v6756_v27, %v9586_v33  ;;  %v9587_v23 = vld [vmem:[#allocation95_spill] sm:$0xff]  ;;  %v6762_v63 = vadd.f32 %v2750_v32, %v2646_v36  ;;  %9590 = vst [vmem:[#allocation5_spill] sm:$0xff] %v6764_v31  ;;  %v2752_v6 = vmul.f32 %v6693_v0, %v6744_v37  ;;  %v1160_v13 = vmul.f32 %v9594_v38, %v9565_v8  ;;  %v9595_v52 = vld [vmem:[#allocation20_spill] sm:$0xff]  ;;  %v9602_v37 = vld [vmem:[#allocation129_spill] sm:$0xff] }
 0x1f8   : > { %v1531_v42 = vadd.f32 %v1499_v47, %v1395_v12  ;;  %v1016_v50 = vadd.f32 %v9588_v41, %v9587_v23  ;;  %v9591_v43 = vld [vmem:[#allocation35_spill] sm:$0xff]  ;;  %v6770_v11 = vadd.f32 %v3182_v40, %v3146_v19  ;;  %v2648_v36 = vadd.f32 %v2616_v51, %v2512_v7  ;;  %v9597_v41 = vld [vmem:[#allocation126_spill] sm:$0xff]  ;;  %v9599_v7 = vld [vmem:[#allocation124_spill] sm:$0xff]  ;;  %9604 = vst [vmem:[#allocation15_spill] sm:$0xff] %v6801_v22 }
 0x1f9   : > { %9589 = vst [vmem:[#allocation13_spill] sm:$0xff] %v6762_v63  ;;  %v1743_v55 = vmul.f32 %v9591_v43, %v9521_v44  ;;  %3319 = vrot.lane.b32.xlu0 %v6764_v31, %s4403_s18  ;;  %v1811_v18 = vmul.f32 %v9595_v52, %v9528_v25  ;;  %v9596_v32 = vld [vmem:[#allocation123_spill] sm:$0xff]  ;;  %v2083_v40 = vmul.f32 %v9597_v41, %v9532_v14 }
 0x1fa   : > { %9592 = vst [vmem:[#allocation7_spill] sm:$0xff] %v6770_v11  ;;  %v1667_v12 = vadd.f32 %v1635_v58, %v1531_v42  ;;  %v1084_v47 = vadd.f32 %v9593_v24, %v1016_v50  ;;  %v1947_v23 = vmul.f32 %v9596_v32, %v9530_v10  ;;  %3484 = vrot.lane.b32.xlu1 %v6770_v11, %s4403_s18  ;;  %v6785_v42 = vld [vmem:[#allocation2 + $0xc2] sm:$0xff]  ;;  %v9600_v50 = vld [vmem:[#allocation106_spill] sm:$0xff] }
 0x1fb   : > { %9598 = vst [vmem:[#allocation55_spill] sm:$0xff] %v6785_v42  ;;  %v2219_v38 = vmul.f32 %v6785_v42, %v9536_v45  ;;  %v1228_v51 = vmul.f32 %v9599_v7, %v9492_v15  ;;  %v2327_v43 = vmul.f32 %v9600_v50, %v9537_v16  ;;  %v9601_v24 = vld [vmem:[#allocation120_spill] sm:$0xff]  ;;  %v2531_v0 = vmul.f32 %v9602_v37, %v9441_v1  ;;  %v9612_v37 = vld [vmem:[#allocation99_spill] sm:$0xff] }
 0x1fc   : > { %v1775_v19 = vadd.f32 %v1743_v55, %v1667_v12  ;;  %v1192_v58 = vadd.f32 %v1160_v13, %v1084_v47  ;;  %v2395_v31 = vmul.f32 %v9601_v24, %v9472_v60  ;;  %v9603_v55 = vld [vmem:[#allocation130_spill] sm:$0xff]  ;;  %v6805_v13 = vmul.f32 %v6801_v22, %v6080_v54  ;;  %v6807_v47 = vld [vmem:[#allocation2 + $0xc4] sm:$0xff] }
 0x1fd   : > { %v6799_v12 = vmul.f32 %v9603_v55, %v6066_v39  ;;  %9605 = vst [vmem:[#allocation53_spill] sm:$0xff] %v6807_v47  ;;  %v1364_v46 = vmul.f32 %v9606_v26, %v9578_v53  ;;  %v6811_v2 = vadd.f32 %v2752_v6, %v2648_v36  ;;  %v6815_v56 = vmul.f32 %v6101_v48, %v9608_v4  ;;  %v9610_v55 = vld [vmem:[#allocation59_spill] sm:$0xff] }
 0x1fe   : > { %v1843_v11 = vadd.f32 %v1811_v18, %v1775_v19  ;;  %v1260_v50 = vadd.f32 %v1228_v51, %v1192_v58  ;;  %v6819_v18 = vmul.f32 %v6118_v28, %v9610_v55  ;;  %v9611_v19 = vld [vmem:[#allocation96_spill] sm:$0xff]  ;;  %3317 = vrot.lane.b32.xlu1 %v6762_v63, %s4403_s18  ;;  %v9613_v51 = vld [vmem:[#allocation63_spill] sm:$0xff]  ;;  %v6837_v55 = vmul.f32 %v6149_v9, %v6807_v47  ;;  %v9622_v47 = vld [vmem:[#allocation137_spill] sm:$0xff] }
 0x1ff   : > { %9607 = vst [vmem:[#allocation122_spill] sm:$0xff] %v6811_v2  ;;  %9609 = vst [vmem:[#allocation91_spill] sm:$0xff] %v6815_v56  ;;  %v1017_v22 = vadd.f32 %v9612_v37, %v9611_v19  ;;  %v6827_v24 = vmul.f32 %v9574_v57, %v9613_v51  ;;  %v9615_v36 = vld [vmem:[#allocation131_spill] sm:$0xff]  ;;  %v6833_v56 = vmul.f32 %v6139_v59, %v6585_v30  ;;  %v9618_v37 = vld [vmem:[#allocation98_spill] sm:$0xff] }
 0x200   : > { %v1979_v58 = vadd.f32 %v1947_v23, %v1843_v11  ;;  %v1396_v6 = vadd.f32 %v1364_v46, %v1260_v50  ;;  %v1500_v4 = vmul.f32 %v9615_v36, %v9583_v21  ;;  %9617 = vst [vmem:[#allocation35_spill] sm:$0xff] %v6837_v55  ;;  %v1161_v11 = vmul.f32 %v9570_v62, %v9565_v8  ;;  %v6842_v51 = vld [vmem:[#allocation2 + $0xc9] sm:$0xff] }
 0x201   : > { %9614 = vst [vmem:[#allocation95_spill] sm:$0xff] %v6827_v24  ;;  %9616 = vst [vmem:[#allocation93_spill] sm:$0xff] %v6833_v56  ;;  %v1085_v19 = vadd.f32 %v9618_v37, %v1017_v22  ;;  %v1636_v46 = vmul.f32 %v6842_v51, %v9586_v33  ;;  %v9620_v50 = vld [vmem:[#allocation134_spill] sm:$0xff]  ;;  %v9621_v56 = vld [vmem:[#allocation135_spill] sm:$0xff]  ;;  %v1948_v55 = vmul.f32 %v9622_v47, %v9530_v10 }
 0x202   : > { %v2115_v23 = vadd.f32 %v2083_v40, %v1979_v58  ;;  %v1532_v63 = vadd.f32 %v1500_v4, %v1396_v6  ;;  %9619 = vst [vmem:[#allocation80_spill] sm:$0xff] %v6842_v51  ;;  %v1744_v30 = vmul.f32 %v9620_v50, %v9521_v44  ;;  %v1812_v24 = vmul.f32 %v9621_v56, %v9528_v25  ;;  %v6858_v4 = vld [vmem:[#allocation2 + $0xca] sm:$0xff] }
 0x203   : > { %v1193_v22 = vadd.f32 %v1161_v11, %v1085_v19  ;;  %v1229_v62 = vmul.f32 %v9579_v5, %v9492_v15  ;;  %3321 = vrot.lane.b32.xlu1 %v6811_v2, %s4403_s18  ;;  %v2084_v6 = vmul.f32 %v6618_v29, %v9532_v14  ;;  %9623 = vst [vmem:[#allocation52_spill] sm:$0xff] %v6858_v4  ;;  %v9624_v50 = vld [vmem:[#allocation50_spill] sm:$0xff] }
 0x204   : > { %v2251_v40 = vadd.f32 %v2219_v38, %v2115_v23  ;;  %v1668_v58 = vadd.f32 %v1636_v46, %v1532_v63  ;;  %v2220_v37 = vmul.f32 %v6858_v4, %v9536_v45  ;;  %v2328_v47 = vmul.f32 %v9624_v50, %v9537_v16  ;;  %v9625_v19 = vld [vmem:[#allocation70_spill] sm:$0xff] }
 0x205   : > { %v2396_v11 = vmul.f32 %v9625_v19, %v9472_v60  ;;  %v1261_v5 = vadd.f32 %v1229_v62, %v1193_v22  ;;  %v1365_v2 = vmul.f32 %v9584_v49, %v9578_v53  ;;  %v2532_v23 = vmul.f32 %v6644_v17, %v9441_v1  ;;  %v6874_v4 = vld [vmem:[#allocation2 + $0xcb] sm:$0xff] }
 0x206   : > { %v2359_v38 = vadd.f32 %v2327_v43, %v2251_v40  ;;  %v1776_v63 = vadd.f32 %v1744_v30, %v1668_v58  ;;  %v6872_v46 = vmul.f32 %v6670_v34, %v6066_v39  ;;  %9626 = vst [vmem:[#allocation20_spill] sm:$0xff] %v6874_v4  ;;  %v6878_v50 = vmul.f32 %v6874_v4, %v6080_v54  ;;  %v9627_v49 = vld [vmem:[#allocation34_spill] sm:$0xff]  ;;  %v9628_v43 = vld [vmem:[#allocation101_spill] sm:$0xff] }
 0x207   : > { %v1397_v19 = vadd.f32 %v1365_v2, %v1261_v5  ;;  %v1501_v22 = vmul.f32 %v6756_v27, %v9583_v21  ;;  %v1018_v30 = vadd.f32 %v9628_v43, %v9627_v49  ;;  %v6886_v58 = vmul.f32 %v6101_v48, %v9569_v61  ;;  %v6892_v17 = vld [vmem:[#allocation2 + $0xcc] sm:$0xff]  ;;  %v6894_v2 = vld [vmem:[#allocation2 + $0xd9] sm:$0xff] }
 0x208   : > { %v2427_v62 = vadd.f32 %v2395_v31, %v2359_v38  ;;  %v1844_v40 = vadd.f32 %v1812_v24, %v1776_v63  ;;  %v6890_v34 = vmul.f32 %v6118_v28, %v6293_v35  ;;  %9629 = vst [vmem:[#allocation123_spill] sm:$0xff] %v6892_v17  ;;  %9630 = vst [vmem:[#allocation126_spill] sm:$0xff] %v6894_v2  ;;  %v9631_v27 = vld [vmem:[#allocation77_spill] sm:$0xff] }
 0x209   : > { %v1533_v4 = vadd.f32 %v1501_v22, %v1397_v19  ;;  %v1637_v5 = vmul.f32 %v6894_v2, %v9586_v33  ;;  %v1086_v49 = vadd.f32 %v9631_v27, %v1018_v30  ;;  %v1162_v31 = vmul.f32 %v9599_v7, %v9565_v8 }
 0x20a   : > { %v2563_v24 = vadd.f32 %v2531_v0, %v2427_v62  ;;  %v1980_v61 = vadd.f32 %v1948_v55, %v1844_v40  ;;  %v6903_v38 = vmul.f32 %v9574_v57, %v9581_v3  ;;  %v6907_v63 = vmul.f32 %v6139_v59, %v6730_v20 }
 0x20b   : > { %v1669_v19 = vadd.f32 %v1637_v5, %v1533_v4  ;;  %v1745_v22 = vmul.f32 %v9595_v52, %v9521_v44  ;;  %v1194_v43 = vadd.f32 %v1162_v31, %v1086_v49  ;;  %v1230_v27 = vmul.f32 %v9606_v26, %v9492_v15  ;;  %v9633_v31 = vld [vmem:[#allocation120_spill] sm:$0xff] }
 0x20c   : > { %v2699_v7 = vadd.f32 %v6799_v12, %v2563_v24  ;;  %v2116_v0 = vadd.f32 %v2084_v6, %v1980_v61  ;;  %v6916_v55 = vmul.f32 %v6149_v9, %v6892_v17  ;;  %v1813_v30 = vmul.f32 %v9596_v32, %v9528_v25  ;;  %v6927_v6 = vld [vmem:[#allocation2 + $0xda] sm:$0xff] }
 0x20d   : > { %v1777_v62 = vadd.f32 %v1745_v22, %v1669_v19  ;;  %v1949_v4 = vmul.f32 %v9597_v41, %v9530_v10  ;;  %v1262_v40 = vadd.f32 %v1230_v27, %v1194_v43  ;;  %v1366_v52 = vmul.f32 %v9615_v36, %v9578_v53  ;;  %9632 = vst [vmem:[#allocation124_spill] sm:$0xff] %v6927_v6  ;;  %v9634_v19 = vld [vmem:[#allocation91_spill] sm:$0xff]  ;;  %v9636_v27 = vld [vmem:[#allocation130_spill] sm:$0xff] }
 0x20e   : > { %v2835_v5 = vadd.f32 %v6805_v13, %v2699_v7  ;;  %v2252_v49 = vadd.f32 %v2220_v37, %v2116_v0  ;;  %v2085_v12 = vmul.f32 %v6785_v42, %v9532_v14  ;;  %v2221_v9 = vmul.f32 %v6927_v6, %v9536_v45  ;;  %v9635_v37 = vld [vmem:[#allocation129_spill] sm:$0xff]  ;;  %v9641_v42 = vld [vmem:[#allocation136_spill] sm:$0xff] }
 0x20f   : > { %v1845_v32 = vadd.f32 %v1813_v30, %v1777_v62  ;;  %v2329_v24 = vmul.f32 %v9633_v31, %v9537_v16  ;;  %v1398_v41 = vadd.f32 %v1366_v52, %v1262_v40  ;;  %v1502_v61 = vmul.f32 %v6842_v51, %v9583_v21  ;;  %v6940_v0 = vld [vmem:[#allocation2 + $0x181] sm:$0xff]  ;;  %v9637_v30 = vld [vmem:[#allocation15_spill] sm:$0xff] }
 0x210   : > { %v2943_v22 = vadd.f32 %v9634_v19, %v2835_v5  ;;  %v2360_v13 = vadd.f32 %v2328_v47, %v2252_v49  ;;  %v2397_v43 = vmul.f32 %v9635_v37, %v9472_v60  ;;  %v2533_v7 = vmul.f32 %v9636_v27, %v9441_v1  ;;  %v6944_v40 = vld [vmem:[#allocation2 + $0xe1] sm:$0xff]  ;;  %v9639_v49 = vld [vmem:[#allocation127_spill] sm:$0xff]  ;;  %v9640_v19 = vld [vmem:[#allocation14_spill] sm:$0xff] }
 0x211   : > { %v1981_v6 = vadd.f32 %v1949_v4, %v1845_v32  ;;  %v2669_v62 = vmul.f32 %v9637_v30, %v6066_v39  ;;  %v1534_v31 = vadd.f32 %v1502_v61, %v1398_v41  ;;  %9638 = vst [vmem:[#allocation106_spill] sm:$0xff] %v6944_v40  ;;  %v1638_v52 = vmul.f32 %v6944_v40, %v9586_v33  ;;  %v9642_v27 = vld [vmem:[#allocation16_spill] sm:$0xff]  ;;  %v9643_v41 = vld [vmem:[#allocation18_spill] sm:$0xff]  ;;  %v9644_v30 = vld [vmem:[#allocation95_spill] sm:$0xff] }
 0x212   : > { %v3011_v47 = vadd.f32 %v6819_v18, %v2943_v22  ;;  %v2428_v5 = vadd.f32 %v2396_v11, %v2360_v13  ;;  %v1313_v37 = vmul.f32 %v9640_v19, %v9639_v49  ;;  %v1449_v51 = vmul.f32 %v9642_v27, %v9641_v42  ;;  %v9645_v18 = vld [vmem:[#allocation138_spill] sm:$0xff]  ;;  %v9646_v11 = vld [vmem:[#allocation21_spill] sm:$0xff]  ;;  %v6960_v33 = vld [vmem:[#allocation2 + $0xdb] sm:$0xff] }
 0x213   : > { %v2117_v36 = vadd.f32 %v2085_v12, %v1981_v6  ;;  %v1670_v4 = vadd.f32 %v1638_v52, %v1534_v31  ;;  %v1746_v32 = vmul.f32 %v9621_v56, %v9521_v44  ;;  %v1585_v61 = vmul.f32 %v9643_v41, %v6940_v0  ;;  %9647 = vst [vmem:[#allocation38_spill] sm:$0xff] %v6960_v33  ;;  %v9648_v31 = vld [vmem:[#allocation137_spill] sm:$0xff] }
 0x214   : > { %v3079_v26 = vadd.f32 %v9644_v30, %v3011_v47  ;;  %v2564_v40 = vadd.f32 %v2532_v23, %v2428_v5  ;;  %v1481_v2 = vadd.f32 %v1449_v51, %v1313_v37  ;;  %v1897_v22 = vmul.f32 %v9646_v11, %v9645_v18  ;;  %v9649_v52 = vld [vmem:[#allocation93_spill] sm:$0xff]  ;;  %v9650_v47 = vld [vmem:[#allocation142_spill] sm:$0xff]  ;;  %v9651_v5 = vld [vmem:[#allocation23_spill] sm:$0xff] }
 0x215   : > { %v2253_v13 = vadd.f32 %v2221_v9, %v2117_v36  ;;  %v2805_v12 = vmul.f32 %v6960_v33, %v6080_v54  ;;  %v1778_v6 = vadd.f32 %v1746_v32, %v1670_v4  ;;  %v1814_v56 = vmul.f32 %v9648_v31, %v9528_v25  ;;  %v6970_v30 = vld [vmem:[#allocation2 + $0x189] sm:$0xff]  ;;  %v9652_v18 = vld [vmem:[#allocation132_spill] sm:$0xff]  ;;  %v9653_v32 = vld [vmem:[#allocation35_spill] sm:$0xff] }
 0x216   : > { %v3147_v44 = vadd.f32 %v9649_v52, %v3079_v26  ;;  %v2700_v21 = vadd.f32 %v6872_v46, %v2564_v40  ;;  %v1950_v51 = vmul.f32 %v6618_v29, %v9530_v10  ;;  %v1617_v23 = vadd.f32 %v1585_v61, %v1481_v2  ;;  %v6980_v46 = vld [vmem:[#allocation2 + $0x182] sm:$0xff]  ;;  %v9658_v52 = vld [vmem:[#allocation139_spill] sm:$0xff] }
 0x217   : > { %v2361_v36 = vadd.f32 %v2329_v24, %v2253_v13  ;;  %v1846_v9 = vadd.f32 %v1814_v56, %v1778_v6  ;;  %v2033_v37 = vmul.f32 %v9651_v5, %v9650_v47  ;;  %v1314_v4 = vmul.f32 %v9640_v19, %v9652_v18  ;;  %v9655_v29 = vld [vmem:[#allocation141_spill] sm:$0xff]  ;;  %v9656_v13 = vld [vmem:[#allocation52_spill] sm:$0xff] }
 0x218   : > { %v6977_v31 = vadd.f32 %v9653_v32, %v3147_v44  ;;  %v2836_v26 = vadd.f32 %v6878_v50, %v2700_v21  ;;  %v1929_v40 = vadd.f32 %v1897_v22, %v1617_v23  ;;  %v1450_v2 = vmul.f32 %v9642_v27, %v9655_v29  ;;  %v6991_v21 = vld [vmem:[#allocation2 + $0xe2] sm:$0xff] }
 0x219   : > { %v2429_v61 = vadd.f32 %v2397_v43, %v2361_v36  ;;  %v1982_v24 = vadd.f32 %v1950_v51, %v1846_v9  ;;  %v2086_v6 = vmul.f32 %v9656_v13, %v9532_v14  ;;  %v1586_v56 = vmul.f32 %v9643_v41, %v6970_v30  ;;  %9657 = vst [vmem:[#allocation96_spill] sm:$0xff] %v6991_v21  ;;  %v9659_v9 = vld [vmem:[#allocation26_spill] sm:$0xff]  ;;  %v4319_v33 = vld [vmem:[#allocation2 + $0x7c] sm:$0xff] }
 0x21a   : > { %9654 = vst [vmem:[#allocation59_spill] sm:$0xff] %v6977_v31  ;;  %3486 = vrot.lane.b32.xlu0 %v6977_v31, %s4403_s18  ;;  %v2944_v44 = vadd.f32 %v6886_v58, %v2836_v26  ;;  %v2222_v50 = vmul.f32 %v6991_v21, %v9536_v45  ;;  %v1482_v22 = vadd.f32 %v1450_v2, %v1314_v4  ;;  %v763_v13 = vld [vmem:[#allocation2 + $0x1b0] sm:$0xff]  ;;  %v9660_v26 = vld [vmem:[#allocation63_spill] sm:$0xff] }
 0x21b   : > { %v1898_v43 = vmul.f32 %v9646_v11, %v9658_v52  ;;  %v2565_v51 = vadd.f32 %v2533_v7, %v2429_v61  ;;  %v2118_v23 = vadd.f32 %v2086_v6, %v1982_v24  ;;  %v2065_v36 = vadd.f32 %v2033_v37, %v1929_v40  ;;  %v9661_v52 = vld [vmem:[#allocation70_spill] sm:$0xff]  ;;  %v9662_v37 = vld [vmem:[#allocation140_spill] sm:$0xff]  ;;  %v9663_v6 = vld [vmem:[#allocation107_spill] sm:$0xff] }
 0x21c   : > { %v2169_v32 = vmul.f32 %v9659_v9, %v6980_v46  ;;  %v3012_v31 = vadd.f32 %v6890_v34, %v2944_v44  ;;  %v2913_v58 = vmul.f32 %v4319_v33, %v6101_v48  ;;  %v2981_v14 = vmul.f32 %v6118_v28, %v9660_v26  ;;  %v7008_v24 = vld [vmem:[#allocation2 + $0x18a] sm:$0xff]  ;;  %v9664_v44 = vld [vmem:[#allocation67_spill] sm:$0xff] }
 0x21d   : > { %v1618_v21 = vadd.f32 %v1586_v56, %v1482_v22  ;;  %v2701_v4 = vadd.f32 %v2669_v62, %v2565_v51  ;;  %v2254_v2 = vadd.f32 %v2222_v50, %v2118_v23  ;;  %v2330_v7 = vmul.f32 %v9661_v52, %v9537_v16  ;;  %v9665_v45 = vld [vmem:[#allocation11_spill] sm:$0xff]  ;;  %v765_v51 = vld [vmem:[#allocation2 + $0x1c8] sm:$0xff] }
 0x21e   : > { %v2398_v40 = vmul.f32 %v9662_v37, %v9472_v60  ;;  %v3080_v61 = vadd.f32 %v6903_v38, %v3012_v31  ;;  %v969_v33 = vadd.f32 %v9664_v44, %v9663_v6  ;;  %v1005_v10 = vmul.f32 %v9665_v45, %v763_v13  ;;  %v9666_v50 = vld [vmem:[#allocation71_spill] sm:$0xff]  ;;  %v9667_v52 = vld [vmem:[#allocation133_spill] sm:$0xff]  ;;  %v9670_v37 = vld [vmem:[#allocation30_spill] sm:$0xff] }
 0x21f   : > { %v1930_v34 = vadd.f32 %v1898_v43, %v1618_v21  ;;  %v2837_v26 = vadd.f32 %v2805_v12, %v2701_v4  ;;  %v2362_v56 = vadd.f32 %v2330_v7, %v2254_v2  ;;  %v2201_v62 = vadd.f32 %v2169_v32, %v2065_v36  ;;  %v9668_v31 = vld [vmem:[#allocation143_spill] sm:$0xff]  ;;  %v9669_v43 = vld [vmem:[#allocation144_spill] sm:$0xff] }
 0x220   : > { %v2034_v22 = vmul.f32 %v9651_v5, %v9666_v50  ;;  %v3148_v23 = vadd.f32 %v6907_v63, %v3080_v61  ;;  %v3049_v38 = vmul.f32 %v9574_v57, %v9667_v52  ;;  %v2534_v21 = vmul.f32 %v9668_v31, %v9441_v1  ;;  %v7022_v44 = vld [vmem:[#allocation2 + $0xdc] sm:$0xff]  ;;  %v9673_v63 = vld [vmem:[#allocation53_spill] sm:$0xff] }
 0x221   : > { %v2481_v6 = vmul.f32 %v9670_v37, %v9669_v43  ;;  %9671 = vst [vmem:[#allocation99_spill] sm:$0xff] %v7022_v44  ;;  %v2945_v12 = vadd.f32 %v2913_v58, %v2837_v26  ;;  %v2430_v4 = vadd.f32 %v2398_v40, %v2362_v56  ;;  %v2170_v32 = vmul.f32 %v9659_v9, %v7008_v24  ;;  %v9674_v52 = vld [vmem:[#allocation24_spill] sm:$0xff]  ;;  %v9679_v26 = vld [vmem:[#allocation61_spill] sm:$0xff] }
 0x222   : > { %v2066_v36 = vadd.f32 %v2034_v22, %v1930_v34  ;;  %v7027_v2 = vadd.f32 %v6916_v55, %v3148_v23  ;;  %v3117_v7 = vmul.f32 %v6139_v59, %v9673_v63  ;;  %v1037_v61 = vadd.f32 %v1005_v10, %v969_v33  ;;  %v9675_v43 = vld [vmem:[#allocation20_spill] sm:$0xff]  ;;  %v7041_v55 = vld [vmem:[%s8785_s6 + $0x18] ss:$0 sm:$0xff] }
 0x223   : > { %v1073_v31 = vmul.f32 %v9674_v52, %v765_v51  ;;  %v3013_v60 = vadd.f32 %v2981_v14, %v2945_v12  ;;  %v2566_v16 = vadd.f32 %v2534_v21, %v2430_v4  ;;  %v2670_v1 = vmul.f32 %v9675_v43, %v6066_v39  ;;  %v7034_v58 = vld [vmem:[#allocation2 + $0x183] sm:$0xff]  ;;  %9676 = vst [vmem:[#allocation134_spill] sm:$0xff] %v7041_v55  ;;  %v9680_v23 = vld [vmem:[#allocation79_spill] sm:$0xff]  ;;  %v9682_v43 = vld [vmem:[#allocation118_spill] sm:$0xff] }
 0x224   : > { %9672 = vst [vmem:[#allocation98_spill] sm:$0xff] %v7027_v2  ;;  %v2513_v40 = vadd.f32 %v2481_v6, %v2201_v62  ;;  %3488 = vrot.lane.b32.xlu1 %v7027_v2, %s4403_s18  ;;  %v3185_v10 = vmul.f32 %v7041_v55, %v7022_v44  ;;  %v7045_v34 = vld [vmem:[#allocation2 + $0xe3] sm:$0xff]  ;;  %v1071_v62 = vmul.f32 %v9674_v52, %v763_v13 }
 0x225   : > { %9677 = vst [vmem:[#allocation135_spill] sm:$0xff] %v7045_v34  ;;  %v2806_v14 = vmul.f32 %v7045_v34, %v6080_v54  ;;  %v9678_v33 = vld [vmem:[#allocation112_spill] sm:$0xff]  ;;  %v3081_v22 = vadd.f32 %v3049_v38, %v3013_v60  ;;  %v2702_v51 = vadd.f32 %v2670_v1, %v2566_v16  ;;  %v2202_v12 = vadd.f32 %v2170_v32, %v2066_v36  ;;  %v9684_v60 = vld [vmem:[#allocation113_spill] sm:$0xff]  ;;  %v9685_v16 = vld [vmem:[#allocation103_spill] sm:$0xff] }
 0x226   : > { %v1035_v56 = vadd.f32 %v9679_v26, %v9678_v33  ;;  %v9681_v21 = vld [vmem:[#allocation32_spill] sm:$0xff]  ;;  %v2914_v4 = vmul.f32 %v6101_v48, %v6293_v35  ;;  %v2982_v2 = vmul.f32 %v6118_v28, %v9581_v3  ;;  %v2753_v34 = vmul.f32 %v9682_v43, %v7034_v58 }
 0x227   : > { %v2617_v6 = vmul.f32 %v9681_v21, %v9680_v23  ;;  %v1105_v44 = vadd.f32 %v1073_v31, %v1037_v61  ;;  %v3149_v63 = vadd.f32 %v3117_v7, %v3081_v22  ;;  %v2838_v33 = vadd.f32 %v2806_v14, %v2702_v51  ;;  %v9683_v13 = vld [vmem:[#allocation12_spill] sm:$0xff]  ;;  %v7076_v14 = vld [vmem:[#allocation2 + $0x18b] sm:$0xff] }
 0x228   : > { %v2482_v1 = vmul.f32 %v9670_v37, %v9683_v13  ;;  %v1101_v38 = vadd.f32 %v9685_v16, %v9684_v60  ;;  %v1103_v36 = vadd.f32 %v1071_v62, %v1035_v56  ;;  %v1181_v35 = vmul.f32 %v9565_v8, %v9641_v42  ;;  %v7070_v7 = vld [vmem:[#allocation2 + $0x199] sm:$0xff] }
 0x229   : > { %v2649_v26 = vadd.f32 %v2617_v6, %v2513_v40  ;;  %v1315_v3 = vmul.f32 %v9640_v19, %v9641_v42  ;;  %v7068_v32 = vadd.f32 %v3185_v10, %v3149_v63  ;;  %v2946_v28 = vadd.f32 %v2914_v4, %v2838_v33  ;;  %v7072_v61 = vld [vmem:[#allocation2 + $0x139] sm:$0xff] }
 0x22a   : > { %v2514_v31 = vadd.f32 %v2482_v1, %v2202_v12  ;;  %9687 = vst [vmem:[#allocation34_spill] sm:$0xff] %v7072_v61  ;;  %v1177_v40 = vmul.f32 %v7072_v61, %v9565_v8  ;;  %v1179_v56 = vmul.f32 %v9565_v8, %v9639_v49  ;;  %v1213_v62 = vadd.f32 %v1181_v35, %v1105_v44  ;;  %v9688_v12 = vld [vmem:[#allocation109_spill] sm:$0xff] }
 0x22b   : > { %9686 = vst [vmem:[#allocation50_spill] sm:$0xff] %v7068_v32  ;;  %v1249_v22 = vmul.f32 %v9492_v15, %v6940_v0  ;;  %v1451_v63 = vmul.f32 %v9642_v27, %v6940_v0  ;;  %3490 = vrot.lane.b32.xlu0 %v7068_v32, %s4403_s18  ;;  %v3014_v10 = vadd.f32 %v2982_v2, %v2946_v28  ;;  %v7092_v44 = vld [vmem:[#allocation2 + $0xe4] sm:$0xff] }
 0x22c   : > { %v3050_v51 = vmul.f32 %v9574_v57, %v6730_v20  ;;  %v3118_v6 = vmul.f32 %v6139_v59, %v6892_v17  ;;  %v2618_v4 = vmul.f32 %v9681_v21, %v9688_v12  ;;  %9689 = vst [vmem:[#allocation101_spill] sm:$0xff] %v7092_v44  ;;  %v1209_v33 = vadd.f32 %v1177_v40, %v1101_v38  ;;  %v7104_v40 = vld [vmem:[#allocation2 + $0x19a] sm:$0xff] }
 0x22d   : > { %v1245_v13 = vmul.f32 %v9492_v15, %v9639_v49  ;;  %v1483_v1 = vadd.f32 %v1451_v63, %v1315_v3  ;;  %v1587_v60 = vmul.f32 %v9643_v41, %v7070_v7  ;;  %v7098_v2 = vadd.f32 %v2753_v34, %v2649_v26  ;;  %v9691_v49 = vld [vmem:[#allocation92_spill] sm:$0xff]  ;;  %v9692_v3 = vld [vmem:[#allocation86_spill] sm:$0xff] }
 0x22e   : > { %v3082_v28 = vadd.f32 %v3050_v51, %v3014_v10  ;;  %v2650_v16 = vadd.f32 %v2618_v4, %v2514_v31  ;;  %v2754_v35 = vmul.f32 %v9682_v43, %v7076_v14  ;;  %v1211_v32 = vadd.f32 %v1179_v56, %v1103_v36  ;;  %v9693_v36 = vld [vmem:[#allocation66_spill] sm:$0xff]  ;;  %v764_v51 = vld [vmem:[#allocation2 + $0x1b8] sm:$0xff]  ;;  %v7152_v59 = vld [vmem:[#allocation2 + $0x141] sm:$0xff] }
 0x22f   : > { %9690 = vst [vmem:[#allocation77_spill] sm:$0xff] %v7098_v2  ;;  %v1281_v61 = vadd.f32 %v1249_v22, %v1213_v62  ;;  %v1385_v17 = vmul.f32 %v9578_v53, %v7070_v7  ;;  %v1619_v38 = vadd.f32 %v1587_v60, %v1483_v1  ;;  %v1034_v63 = vadd.f32 %v9692_v3, %v9691_v49  ;;  %v9694_v31 = vld [vmem:[#allocation94_spill] sm:$0xff] }
 0x230   : > { %v3150_v20 = vadd.f32 %v3118_v6, %v3082_v28  ;;  %v3186_v34 = vmul.f32 %v7041_v55, %v7092_v44  ;;  %3323 = vrot.lane.b32.xlu0 %v7098_v2, %s4403_s18  ;;  %v1899_v26 = vmul.f32 %v9646_v11, %v9650_v47  ;;  %v7116_v56 = vadd.f32 %v9694_v31, %v9693_v36  ;;  %v1143_v1 = vld [vmem:[#allocation2 + $0x1b1] sm:$0xff]  ;;  %v9698_v31 = vld [vmem:[#allocation17_spill] sm:$0xff] }
 0x231   : > { %v1247_v62 = vmul.f32 %v9492_v15, %v9641_v42  ;;  %v1277_v22 = vadd.f32 %v1245_v13, %v1209_v33  ;;  %v2035_v10 = vmul.f32 %v9651_v5, %v6980_v46  ;;  %v7124_v4 = vadd.f32 %v2754_v35, %v2650_v16  ;;  %v766_v49 = vld [vmem:[#allocation2 + $0x1d0] sm:$0xff]  ;;  %v9700_v33 = vld [vmem:[#allocation116_spill] sm:$0xff]  ;;  %v9704_v55 = vld [vmem:[#allocation27_spill] sm:$0xff]  ;;  %9705 = vst [vmem:[#allocation130_spill] sm:$0xff] %v7152_v59 }
 0x232   : > { %9695 = vst [vmem:[#allocation120_spill] sm:$0xff] %v7116_v56  ;;  %v7122_v6 = vadd.f32 %v3186_v34, %v3150_v20  ;;  %v1931_v60 = vadd.f32 %v1899_v26, %v1619_v38  ;;  %v2171_v28 = vmul.f32 %v9659_v9, %v7104_v40  ;;  %v1417_v36 = vadd.f32 %v1385_v17, %v1281_v61  ;;  %v9699_v56 = vld [vmem:[#allocation60_spill] sm:$0xff]  ;;  %v1145_v20 = vld [vmem:[#allocation2 + $0x1c9] sm:$0xff] }
 0x233   : > { %9697 = vst [vmem:[#allocation129_spill] sm:$0xff] %v7124_v4  ;;  %v1279_v3 = vadd.f32 %v1247_v62, %v1211_v32  ;;  %v1521_v2 = vmul.f32 %v9698_v31, %v1143_v1  ;;  %v970_v13 = vadd.f32 %v9700_v33, %v9699_v56  ;;  %v1381_v16 = vmul.f32 %v9578_v53, %v9641_v42  ;;  %v7137_v34 = vld [vmem:[#allocation2 + $0x19b] sm:$0xff]  ;;  %v9702_v26 = vld [vmem:[#allocation110_spill] sm:$0xff] }
 0x234   : > { %9696 = vst [vmem:[#allocation91_spill] sm:$0xff] %v7122_v6  ;;  %3492 = vrot.lane.b32.xlu1 %v7122_v6, %s4403_s18  ;;  %v1383_v35 = vmul.f32 %v9578_v53, %v6940_v0  ;;  %v2067_v38 = vadd.f32 %v2035_v10, %v1931_v60  ;;  %v1006_v17 = vmul.f32 %v9665_v45, %v764_v51  ;;  %v9701_v61 = vld [vmem:[#allocation88_spill] sm:$0xff]  ;;  %v9703_v10 = vld [vmem:[#allocation89_spill] sm:$0xff] }
 0x235   : > { %v2483_v32 = vmul.f32 %v9670_v37, %v9680_v23  ;;  %v1036_v56 = vadd.f32 %v9702_v26, %v9701_v61  ;;  %v1072_v62 = vmul.f32 %v9674_v52, %v764_v51  ;;  %v1074_v1 = vmul.f32 %v9674_v52, %v766_v49 }
 0x236   : > { %v2203_v33 = vadd.f32 %v2171_v28, %v2067_v38  ;;  %v2619_v42 = vmul.f32 %v9681_v21, %v7034_v58  ;;  %v1038_v6 = vadd.f32 %v1006_v17, %v970_v13  ;;  %v1102_v60 = vadd.f32 %v9703_v10, %v1034_v63  ;;  %v1142_v13 = vld [vmem:[#allocation2 + $0x1a1] sm:$0xff]  ;;  %v9707_v10 = vld [vmem:[#allocation19_spill] sm:$0xff] }
 0x237   : > { %v1553_v44 = vadd.f32 %v1521_v2, %v1417_v36  ;;  %v1657_v45 = vmul.f32 %v9704_v55, %v1145_v20  ;;  %v2755_v23 = vmul.f32 %v9682_v43, %v7137_v34  ;;  %v1178_v51 = vmul.f32 %v7152_v59, %v9565_v8 }
 0x238   : > { %3325 = vrot.lane.b32.xlu1 %v7124_v4, %s4403_s18  ;;  %v2515_v52 = vadd.f32 %v2483_v32, %v2203_v33  ;;  %v1106_v28 = vadd.f32 %v1074_v1, %v1038_v6  ;;  %v1182_v58 = vmul.f32 %v9565_v8, %v9655_v29  ;;  %v1250_v2 = vmul.f32 %v9492_v15, %v6970_v30  ;;  %v1144_v1 = vld [vmem:[#allocation2 + $0x1b9] sm:$0xff] }
 0x239   : > { %v1413_v63 = vadd.f32 %v1381_v16, %v1277_v22  ;;  %v1517_v49 = vmul.f32 %v9698_v31, %v6940_v0  ;;  %v1104_v36 = vadd.f32 %v1072_v62, %v1036_v56  ;;  %v1316_v20 = vmul.f32 %v9640_v19, %v9655_v29  ;;  %v7314_v19 = vld [vmem:[#allocation2 + $0xac] sm:$0xff] }
 0x23a   : > { %v2651_v38 = vadd.f32 %v2619_v42, %v2515_v52  ;;  %v1210_v17 = vadd.f32 %v1178_v51, %v1102_v60  ;;  %v1214_v61 = vadd.f32 %v1182_v58, %v1106_v28  ;;  %v1386_v6 = vmul.f32 %v9578_v53, %v1142_v13  ;;  %v1726_v58 = vld [vmem:[#allocation2 + $0x1a2] sm:$0xff]  ;;  %9744 = vst [vmem:[#allocation144_spill] sm:$0xff] %v7314_v19 }
 0x23b   : > { %v1519_v32 = vmul.f32 %v9698_v31, %v7070_v7  ;;  %v1689_v26 = vadd.f32 %v1657_v45, %v1553_v44  ;;  %v1180_v22 = vmul.f32 %v9565_v8, %v9652_v18  ;;  %v1452_v0 = vmul.f32 %v9642_v27, %v6970_v30  ;;  %v1146_v44 = vld [vmem:[#allocation2 + $0x1d1] sm:$0xff] }
 0x23c   : > { %v7173_v16 = vadd.f32 %v2755_v23, %v2651_v38  ;;  %v1246_v56 = vmul.f32 %v9492_v15, %v9652_v18  ;;  %v1282_v62 = vadd.f32 %v1250_v2, %v1214_v61  ;;  %v1522_v33 = vmul.f32 %v9698_v31, %v1144_v1 }
 0x23d   : > { %v1415_v42 = vadd.f32 %v1383_v35, %v1279_v3  ;;  %v1765_v60 = vmul.f32 %v9707_v10, %v9650_v47  ;;  %v1484_v45 = vadd.f32 %v1452_v0, %v1316_v20  ;;  %v1588_v51 = vmul.f32 %v9643_v41, %v1142_v13  ;;  %v7298_v41 = vld [vmem:[#allocation2 + $0xf4] sm:$0xff] }
 0x23e   : > { %9706 = vst [vmem:[#allocation127_spill] sm:$0xff] %v7173_v16  ;;  %v1833_v52 = vmul.f32 %v9528_v25, %v6980_v46  ;;  %3327 = vrot.lane.b32.xlu0 %v7173_v16, %s4403_s18  ;;  %v1212_v23 = vadd.f32 %v1180_v22, %v1104_v36  ;;  %v1278_v28 = vadd.f32 %v1246_v56, %v1210_v17  ;;  %9742 = vst [vmem:[#allocation71_spill] sm:$0xff] %v7298_v41 }
 0x23f   : > { %v1418_v18 = vadd.f32 %v1386_v6, %v1282_v62  ;;  %v1797_v2 = vadd.f32 %v1765_v60, %v1689_v26  ;;  %v1248_v3 = vmul.f32 %v9492_v15, %v9655_v29  ;;  %v1620_v35 = vadd.f32 %v1588_v51, %v1484_v45  ;;  %v9709_v62 = vld [vmem:[#allocation22_spill] sm:$0xff]  ;;  %v2310_v51 = vld [vmem:[#allocation2 + $0x1a3] sm:$0xff] }
 0x240   : > { %v1900_v47 = vmul.f32 %v9646_v11, %v9666_v50  ;;  %v1382_v20 = vmul.f32 %v9578_v53, %v9655_v29  ;;  %v1658_v46 = vmul.f32 %v9704_v55, %v1146_v44  ;;  %v2036_v36 = vmul.f32 %v9651_v5, %v7008_v24  ;;  %v9740_v5 = vld [vmem:[#allocation65_spill] sm:$0xff] }
 0x241   : > { %v1554_v38 = vadd.f32 %v1522_v33, %v1418_v18  ;;  %v1549_v17 = vadd.f32 %v1517_v49, %v1413_v63  ;;  %v1653_v61 = vmul.f32 %v9704_v55, %v7070_v7  ;;  %v2172_v26 = vmul.f32 %v9659_v9, %v1726_v58  ;;  %v4324_v49 = vld [vmem:[#allocation2 + $0x91] sm:$0xff]  ;;  %v4325_v18 = vld [vmem:[#allocation2 + $0xa9] sm:$0xff] }
 0x242   : > { %v1932_v6 = vadd.f32 %v1900_v47, %v1620_v35  ;;  %v1280_v1 = vadd.f32 %v1248_v3, %v1212_v23  ;;  %v1384_v22 = vmul.f32 %v9578_v53, %v6970_v30  ;;  %v1414_v0 = vadd.f32 %v1382_v20, %v1278_v28  ;;  %v9739_v9 = vld [vmem:[#allocation83_spill] sm:$0xff] }
 0x243   : > { %v1518_v29 = vmul.f32 %v9698_v31, %v6970_v30  ;;  %v7201_v56 = vadd.f32 %v1519_v32, %v1415_v42  ;;  %v1969_v33 = vmul.f32 %v9709_v62, %v7104_v40  ;;  %v1163_v7 = vmul.f32 %v4324_v49, %v9565_v8  ;;  %v9710_v32 = vld [vmem:[#allocation43_spill] sm:$0xff] }
 0x244   : > { %v2068_v63 = vadd.f32 %v2036_v36, %v1932_v6  ;;  %v1865_v60 = vadd.f32 %v1833_v52, %v1797_v2  ;;  %v1520_v44 = vmul.f32 %v9698_v31, %v1142_v13  ;;  %v1690_v45 = vadd.f32 %v1658_v46, %v1554_v38  ;;  %v9711_v46 = vld [vmem:[#allocation57_spill] sm:$0xff] }
 0x245   : > { %9708 = vst [vmem:[#allocation136_spill] sm:$0xff] %v7201_v56  ;;  %v2484_v23 = vmul.f32 %v9670_v37, %v9688_v12  ;;  %v2620_v30 = vmul.f32 %v9681_v21, %v7076_v14  ;;  %v1195_v42 = vadd.f32 %v1163_v7, %v9710_v32  ;;  %v1231_v3 = vmul.f32 %v4325_v18, %v9492_v15  ;;  %v9713_v6 = vld [vmem:[#allocation25_spill] sm:$0xff]  ;;  %v9738_v21 = vld [vmem:[#allocation15_spill] sm:$0xff] }
 0x246   : > { %v2204_v28 = vadd.f32 %v2172_v26, %v2068_v63  ;;  %v1416_v35 = vadd.f32 %v1384_v22, %v1280_v1  ;;  %v1550_v47 = vadd.f32 %v1518_v29, %v1414_v0  ;;  %v1654_v52 = vmul.f32 %v9704_v55, %v1142_v13  ;;  %v9715_v1 = vld [vmem:[#allocation33_spill] sm:$0xff]  ;;  %v9717_v13 = vld [vmem:[#allocation31_spill] sm:$0xff]  ;;  %v9719_v63 = vld [vmem:[#allocation126_spill] sm:$0xff] }
 0x247   : > { %v1766_v2 = vmul.f32 %v9707_v10, %v9666_v50  ;;  %v2756_v38 = vmul.f32 %v9682_v43, %v2310_v51  ;;  %v1263_v12 = vadd.f32 %v1231_v3, %v1195_v42  ;;  %v1367_v36 = vmul.f32 %v9711_v46, %v9578_v53  ;;  %v9728_v42 = vld [vmem:[#allocation131_spill] sm:$0xff] }
 0x248   : > { %v2516_v20 = vadd.f32 %v2484_v23, %v2204_v28  ;;  %v7219_v14 = vadd.f32 %v1653_v61, %v1549_v17  ;;  %v7223_v26 = vmul.f32 %v9713_v6, %v7104_v40  ;;  %v7227_v22 = vmul.f32 %v9715_v1, %v7104_v40  ;;  %v9722_v40 = vld [vmem:[#allocation128_spill] sm:$0xff] }
 0x249   : > { %v7231_v50 = vmul.f32 %v9717_v13, %v7137_v34  ;;  %v1798_v0 = vadd.f32 %v1766_v2, %v1690_v45  ;;  %v1399_v29 = vadd.f32 %v1367_v36, %v1263_v12  ;;  %v1503_v49 = vmul.f32 %v9719_v63, %v9698_v31  ;;  %v4327_v2 = vld [vmem:[#allocation2 + $0x92] sm:$0xff]  ;;  %v7267_v12 = vld [vmem:[#allocation2 + $0xaa] sm:$0xff] }
 0x24a   : > { %9712 = vst [vmem:[#allocation95_spill] sm:$0xff] %v7219_v14  ;;  %9714 = vst [vmem:[#allocation138_spill] sm:$0xff] %v7223_v26  ;;  %v2652_v43 = vadd.f32 %v2620_v30, %v2516_v20  ;;  %v7235_v17 = vadd.f32 %v1969_v33, %v1865_v60  ;;  %v7237_v61 = vadd.f32 %v1520_v44, %v1416_v35  ;;  %v7247_v30 = vld [vmem:[#allocation2 + $0xf1] sm:$0xff]  ;;  %v9727_v44 = vld [vmem:[#allocation41_spill] sm:$0xff] }
 0x24b   : > { %9716 = vst [vmem:[#allocation93_spill] sm:$0xff] %v7227_v22  ;;  %9718 = vst [vmem:[#allocation142_spill] sm:$0xff] %v7231_v50  ;;  %v1834_v7 = vmul.f32 %v9528_v25, %v7008_v24  ;;  %v1164_v23 = vmul.f32 %v9722_v40, %v9565_v8  ;;  %v7243_v28 = vadd.f32 %v1654_v52, %v1550_v47  ;;  %v9733_v40 = vld [vmem:[#allocation124_spill] sm:$0xff]  ;;  %v9750_v26 = vld [vmem:[#allocation9_spill] sm:$0xff] }
 0x24c   : > { %9720 = vst [vmem:[#allocation132_spill] sm:$0xff] %v7235_v17  ;;  %9721 = vst [vmem:[#allocation35_spill] sm:$0xff] %v7237_v61  ;;  %v7245_v34 = vadd.f32 %v2756_v38, %v2652_v43  ;;  %v1535_v45 = vadd.f32 %v1503_v49, %v1399_v29  ;;  %v1639_v32 = vmul.f32 %v7247_v30, %v9704_v55  ;;  %v9732_v49 = vld [vmem:[#allocation55_spill] sm:$0xff]  ;;  %v9755_v14 = vld [vmem:[#allocation96_spill] sm:$0xff] }
 0x24d   : > { %9723 = vst [vmem:[#allocation141_spill] sm:$0xff] %v7243_v28  ;;  %9725 = vst [vmem:[#allocation63_spill] sm:$0xff] %v7247_v30  ;;  %v1970_v33 = vmul.f32 %v9709_v62, %v1726_v58  ;;  %v7253_v60 = vmul.f32 %v9713_v6, %v1726_v58  ;;  %v1196_v24 = vadd.f32 %v1164_v23, %v9727_v44  ;;  %v9734_v44 = vld [vmem:[#allocation28_spill] sm:$0xff] }
 0x24e   : > { %9724 = vst [vmem:[#allocation139_spill] sm:$0xff] %v7245_v34  ;;  %v1232_v3 = vmul.f32 %v9728_v42, %v9492_v15  ;;  %v1866_v35 = vadd.f32 %v1834_v7, %v1798_v0  ;;  %v7259_v47 = vmul.f32 %v9715_v1, %v1726_v58  ;;  %3329 = vrot.lane.b32.xlu1 %v7245_v34, %s4403_s18  ;;  %v9731_v0 = vld [vmem:[#allocation80_spill] sm:$0xff] }
 0x24f   : > { %9726 = vst [vmem:[#allocation70_spill] sm:$0xff] %v7253_v60  ;;  %v1671_v52 = vadd.f32 %v1639_v32, %v1535_v45  ;;  %v1747_v20 = vmul.f32 %v4327_v2, %v9707_v10  ;;  %v7265_v38 = vmul.f32 %v9717_v13, %v2310_v51  ;;  %v1815_v36 = vmul.f32 %v7267_v12, %v9528_v25  ;;  %v7277_v45 = vld [vmem:[#allocation2 + $0xf2] sm:$0xff]  ;;  %v9747_v60 = vld [vmem:[#allocation53_spill] sm:$0xff] }
 0x250   : > { %9729 = vst [vmem:[#allocation107_spill] sm:$0xff] %v7259_v47  ;;  %v1264_v43 = vadd.f32 %v1232_v3, %v1196_v24  ;;  %v1368_v58 = vmul.f32 %v9731_v0, %v9578_v53  ;;  %v1951_v7 = vmul.f32 %v9732_v49, %v9709_v62  ;;  %v2087_v23 = vmul.f32 %v9733_v40, %v9713_v6  ;;  %v4330_v32 = vld [vmem:[#allocation2 + $0x93] sm:$0xff]  ;;  %v7282_v2 = vld [vmem:[#allocation2 + $0xab] sm:$0xff] }
 0x251   : > { %9730 = vst [vmem:[#allocation67_spill] sm:$0xff] %v7265_v38  ;;  %v1779_v29 = vadd.f32 %v1747_v20, %v1671_v52  ;;  %v2223_v51 = vmul.f32 %v7277_v45, %v9715_v1  ;;  %v2331_v42 = vmul.f32 %v4330_v32, %v9734_v44  ;;  %v9735_v24 = vld [vmem:[#allocation29_spill] sm:$0xff]  ;;  %v9736_v20 = vld [vmem:[#allocation106_spill] sm:$0xff]  ;;  %v7288_v16 = vadd.f32 %v1970_v33, %v1866_v35 }
 0x252   : > { %v2399_v3 = vmul.f32 %v7282_v2, %v9735_v24  ;;  %v1400_v52 = vadd.f32 %v1368_v58, %v1264_v43  ;;  %v1504_v34 = vmul.f32 %v9736_v20, %v9698_v31  ;;  %v2535_v37 = vmul.f32 %v9738_v21, %v9717_v13  ;;  %v9741_v32 = vld [vmem:[#allocation38_spill] sm:$0xff]  ;;  %v7300_v43 = vld [vmem:[#allocation2 + $0xf9] sm:$0xff] }
 0x253   : > { %9737 = vst [vmem:[#allocation11_spill] sm:$0xff] %v7288_v16  ;;  %v1847_v4 = vadd.f32 %v1815_v36, %v1779_v29  ;;  %v1089_v11 = vadd.f32 %v9740_v5, %v9739_v9  ;;  %v7296_v38 = vmul.f32 %v9741_v32, %v6066_v39  ;;  %v1640_v33 = vmul.f32 %v7300_v43, %v9704_v55  ;;  %v7305_v58 = vld [vmem:[#allocation2 + $0xf3] sm:$0xff] }
 0x254   : > { %v1536_v27 = vadd.f32 %v1504_v34, %v1400_v52  ;;  %v1165_v35 = vmul.f32 %v4325_v18, %v9565_v8  ;;  %9743 = vst [vmem:[#allocation133_spill] sm:$0xff] %v7305_v58  ;;  %v7309_v5 = vmul.f32 %v7305_v58, %v6080_v54  ;;  %v4334_v9 = vld [vmem:[#allocation2 + $0x94] sm:$0xff]  ;;  %v9746_v18 = vld [vmem:[#allocation137_spill] sm:$0xff]  ;;  %v1233_v16 = vmul.f32 %v9711_v46, %v9492_v15 }
 0x255   : > { %v1983_v36 = vadd.f32 %v1951_v7, %v1847_v4  ;;  %v7312_v29 = vmul.f32 %v4334_v9, %v6101_v48  ;;  %v9745_v34 = vld [vmem:[#allocation10_spill] sm:$0xff]  ;;  %v1748_v4 = vmul.f32 %v9746_v18, %v9707_v10  ;;  %v7326_v61 = vmul.f32 %v9574_v57, %v9747_v60  ;;  %v9749_v9 = vld [vmem:[#allocation99_spill] sm:$0xff]  ;;  %v9754_v18 = vld [vmem:[#allocation52_spill] sm:$0xff] }
 0x256   : > { %v7318_v52 = vmul.f32 %v7314_v19, %v9745_v34  ;;  %v1672_v50 = vadd.f32 %v1640_v33, %v1536_v27  ;;  %v1197_v7 = vadd.f32 %v1165_v35, %v1089_v11  ;;  %v7330_v56 = vmul.f32 %v9750_v26, %v9749_v9  ;;  %v9752_v47 = vld [vmem:[#allocation134_spill] sm:$0xff]  ;;  %v7346_v9 = vld [vmem:[#allocation2 + $0xfa] sm:$0xff] }
 0x257   : > { %v2119_v17 = vadd.f32 %v2087_v23, %v1983_v36  ;;  %9748 = vst [vmem:[#allocation24_spill] sm:$0xff] %v7326_v61  ;;  %v7334_v22 = vmul.f32 %v9752_v47, %v7298_v41  ;;  %v7336_v33 = vld [vmem:[#allocation2 + $0xb2] sm:$0xff]  ;;  %v1369_v23 = vmul.f32 %v9719_v63, %v9578_v53  ;;  %v1952_v28 = vmul.f32 %v9754_v18, %v9709_v62  ;;  %v9757_v41 = vld [vmem:[#allocation140_spill] sm:$0xff] }
 0x258   : > { %9751 = vst [vmem:[#allocation112_spill] sm:$0xff] %v7330_v56  ;;  %v1780_v27 = vadd.f32 %v1748_v4, %v1672_v50  ;;  %v1816_v11 = vmul.f32 %v7336_v33, %v9528_v25  ;;  %v1265_v35 = vadd.f32 %v1233_v16, %v1197_v7  ;;  %v2088_v59 = vmul.f32 %v9755_v14, %v9713_v6  ;;  %v9760_v14 = vld [vmem:[#allocation73_spill] sm:$0xff]  ;;  %v9761_v58 = vld [vmem:[#allocation54_spill] sm:$0xff] }
 0x259   : > { %9753 = vst [vmem:[#allocation61_spill] sm:$0xff] %v7334_v22  ;;  %v2255_v36 = vadd.f32 %v2223_v51, %v2119_v17  ;;  %9756 = vst [vmem:[#allocation79_spill] sm:$0xff] %v7346_v9  ;;  %v2224_v50 = vmul.f32 %v7346_v9, %v9715_v1  ;;  %v2332_v60 = vmul.f32 %v9757_v41, %v9734_v44  ;;  %v9758_v51 = vld [vmem:[#allocation143_spill] sm:$0xff]  ;;  %v9759_v22 = vld [vmem:[#allocation20_spill] sm:$0xff] }
 0x25a   : > { %v1848_v4 = vadd.f32 %v1816_v11, %v1780_v27  ;;  %v1401_v16 = vadd.f32 %v1369_v23, %v1265_v35  ;;  %v1505_v7 = vmul.f32 %v7247_v30, %v9698_v31  ;;  %v2400_v19 = vmul.f32 %v9758_v51, %v9735_v24  ;;  %v7360_v27 = vld [vmem:[#allocation2 + $0x109] sm:$0xff]  ;;  %v4339_v11 = vld [vmem:[#allocation2 + $0xb1] sm:$0xff]  ;;  %v7367_v51 = vld [vmem:[#allocation2 + $0xfb] sm:$0xff] }
 0x25b   : > { %v2363_v17 = vadd.f32 %v2331_v42, %v2255_v36  ;;  %v2536_v56 = vmul.f32 %v9759_v22, %v9717_v13  ;;  %v1090_v61 = vadd.f32 %v9761_v58, %v9760_v14  ;;  %9762 = vst [vmem:[#allocation118_spill] sm:$0xff] %v7360_v27  ;;  %v1641_v41 = vmul.f32 %v7360_v27, %v9704_v55  ;;  %v9763_v23 = vld [vmem:[#allocation135_spill] sm:$0xff] }
 0x25c   : > { %v1984_v18 = vadd.f32 %v1952_v28, %v1848_v4  ;;  %v1537_v9 = vadd.f32 %v1505_v7, %v1401_v16  ;;  %v1166_v35 = vmul.f32 %v4339_v11, %v9565_v8  ;;  %v2672_v36 = vmul.f32 %v9763_v23, %v6066_v39  ;;  %9764 = vst [vmem:[#allocation12_spill] sm:$0xff] %v7367_v51  ;;  %v4341_v11 = vld [vmem:[#allocation2 + $0x9c] sm:$0xff] }
 0x25d   : > { %v2431_v42 = vadd.f32 %v2399_v3, %v2363_v17  ;;  %v2808_v22 = vmul.f32 %v7367_v51, %v6080_v54  ;;  %v1749_v14 = vmul.f32 %v7267_v12, %v9707_v10  ;;  %v1234_v16 = vmul.f32 %v9731_v0, %v9492_v15  ;;  %v9765_v17 = vld [vmem:[#allocation100_spill] sm:$0xff] }
 0x25e   : > { %v2120_v28 = vadd.f32 %v2088_v59, %v1984_v18  ;;  %v1673_v58 = vadd.f32 %v1641_v41, %v1537_v9  ;;  %v1198_v4 = vadd.f32 %v1166_v35, %v1090_v61  ;;  %v2916_v3 = vmul.f32 %v4341_v11, %v6101_v48  ;;  %v7382_v54 = vld [vmem:[#allocation2 + $0xfc] sm:$0xff]  ;;  %v9768_v41 = vld [vmem:[#allocation101_spill] sm:$0xff] }
 0x25f   : > { %v2567_v7 = vadd.f32 %v2535_v37, %v2431_v42  ;;  %v7378_v23 = vmul.f32 %v9745_v34, %v9765_v17  ;;  %v1817_v51 = vmul.f32 %v9732_v49, %v9528_v25  ;;  %9766 = vst [vmem:[#allocation113_spill] sm:$0xff] %v7382_v54  ;;  %v1370_v61 = vmul.f32 %v9736_v20, %v9578_v53  ;;  %v9767_v9 = vld [vmem:[#allocation123_spill] sm:$0xff] }
 0x260   : > { %v2256_v27 = vadd.f32 %v2224_v50, %v2120_v28  ;;  %v1781_v59 = vadd.f32 %v1749_v14, %v1673_v58  ;;  %v1266_v12 = vadd.f32 %v1234_v16, %v1198_v4  ;;  %v7389_v18 = vmul.f32 %v9574_v57, %v9767_v9  ;;  %v7410_v17 = vld [vmem:[#allocation2 + $0x111] sm:$0xff] }
 0x261   : > { %v2703_v37 = vadd.f32 %v7296_v38, %v2567_v7  ;;  %v7393_v35 = vmul.f32 %v9750_v26, %v9768_v41  ;;  %v1953_v50 = vmul.f32 %v9733_v40, %v9709_v62  ;;  %v1506_v58 = vmul.f32 %v7300_v43, %v9698_v31  ;;  %v7406_v7 = vld [vmem:[#allocation2 + $0x10a] sm:$0xff] }
 0x262   : > { %v2364_v42 = vadd.f32 %v2332_v60, %v2256_v27  ;;  %v1849_v28 = vadd.f32 %v1817_v51, %v1781_v59  ;;  %v1402_v14 = vadd.f32 %v1370_v61, %v1266_v12  ;;  %v7402_v38 = vmul.f32 %v9752_v47, %v7382_v54 }
 0x263   : > { %v2839_v4 = vadd.f32 %v7309_v5, %v2703_v37  ;;  %v2089_v16 = vmul.f32 %v7277_v45, %v9713_v6  ;;  %v2225_v11 = vmul.f32 %v7406_v7, %v9715_v1  ;;  %v1642_v5 = vmul.f32 %v7410_v17, %v9704_v55 }
 0x264   : > { %v2432_v60 = vadd.f32 %v2400_v19, %v2364_v42  ;;  %v1985_v27 = vadd.f32 %v1953_v50, %v1849_v28  ;;  %v1538_v51 = vadd.f32 %v1506_v58, %v1402_v14  ;;  %v2333_v12 = vmul.f32 %v7282_v2, %v9734_v44  ;;  %v9769_v14 = vld [vmem:[#allocation46_spill] sm:$0xff] }
 0x265   : > { %v2947_v59 = vadd.f32 %v7312_v29, %v2839_v4  ;;  %v2401_v61 = vmul.f32 %v9738_v21, %v9735_v24  ;;  %v1167_v37 = vmul.f32 %v9711_v46, %v9565_v8  ;;  %v1750_v42 = vmul.f32 %v7336_v33, %v9707_v10  ;;  %v9772_v33 = vld [vmem:[#allocation133_spill] sm:$0xff] }
 0x266   : > { %v2568_v54 = vadd.f32 %v2536_v56, %v2432_v60  ;;  %v2121_v19 = vadd.f32 %v2089_v16, %v1985_v27  ;;  %v1674_v50 = vadd.f32 %v1642_v5, %v1538_v51  ;;  %v2537_v29 = vmul.f32 %v9741_v32, %v9717_v13  ;;  %v9770_v56 = vld [vmem:[#allocation52_spill] sm:$0xff] }
 0x267   : > { %v3015_v28 = vadd.f32 %v7318_v52, %v2947_v59  ;;  %v1199_v58 = vadd.f32 %v1167_v37, %v9769_v14  ;;  %v1235_v2 = vmul.f32 %v9719_v63, %v9492_v15  ;;  %v1818_v46 = vmul.f32 %v9770_v56, %v9528_v25  ;;  %v9771_v16 = vld [vmem:[#allocation24_spill] sm:$0xff] }
 0x268   : > { %v2704_v21 = vadd.f32 %v2672_v36, %v2568_v54  ;;  %v2257_v4 = vadd.f32 %v2225_v11, %v2121_v19  ;;  %v1782_v41 = vadd.f32 %v1750_v42, %v1674_v50  ;;  %v2673_v27 = vmul.f32 %v9772_v33, %v6066_v39  ;;  %v9773_v14 = vld [vmem:[#allocation96_spill] sm:$0xff]  ;;  %v7439_v19 = vld [vmem:[#allocation2 + $0x10b] sm:$0xff] }
 0x269   : > { %v3083_v60 = vadd.f32 %v9771_v16, %v3015_v28  ;;  %v1267_v52 = vadd.f32 %v1235_v2, %v1199_v58  ;;  %v1371_v51 = vmul.f32 %v7247_v30, %v9578_v53  ;;  %v1954_v54 = vmul.f32 %v9773_v14, %v9709_v62  ;;  %v9774_v36 = vld [vmem:[#allocation112_spill] sm:$0xff]  ;;  %v9776_v16 = vld [vmem:[#allocation118_spill] sm:$0xff] }
 0x26a   : > { %v2840_v5 = vadd.f32 %v2808_v22, %v2704_v21  ;;  %v2365_v59 = vadd.f32 %v2333_v12, %v2257_v4  ;;  %v1850_v37 = vadd.f32 %v1818_v46, %v1782_v41  ;;  %v9775_v50 = vld [vmem:[#allocation4_spill] sm:$0xff]  ;;  %v1507_v58 = vmul.f32 %v9776_v16, %v9698_v31  ;;  %v9777_v22 = vld [vmem:[#allocation79_spill] sm:$0xff]  ;;  %v9778_v12 = vld [vmem:[#allocation61_spill] sm:$0xff] }
 0x26b   : > { %v3151_v11 = vadd.f32 %v9774_v36, %v3083_v60  ;;  %v2809_v42 = vmul.f32 %v7439_v19, %v9775_v50  ;;  %v1403_v28 = vadd.f32 %v1371_v51, %v1267_v52  ;;  %v2090_v41 = vmul.f32 %v9777_v22, %v9713_v6  ;;  %v9780_v4 = vld [vmem:[#allocation144_spill] sm:$0xff] }
 0x26c   : > { %v2948_v2 = vadd.f32 %v2916_v3, %v2840_v5  ;;  %v2433_v63 = vadd.f32 %v2401_v61, %v2365_v59  ;;  %v1986_v30 = vadd.f32 %v1954_v54, %v1850_v37  ;;  %v2917_v46 = vmul.f32 %v9780_v4, %v6101_v48  ;;  %v7452_v36 = vld [vmem:[#allocation2 + $0x121] sm:$0xff]  ;;  %v7457_v5 = vld [vmem:[#allocation2 + $0x112] sm:$0xff] }
 0x26d   : > { %v7448_v21 = vadd.f32 %v9778_v12, %v3151_v11  ;;  %v1539_v60 = vadd.f32 %v1507_v58, %v1403_v28  ;;  %9781 = vst [vmem:[#allocation109_spill] sm:$0xff] %v7452_v36  ;;  %v1643_v52 = vmul.f32 %v7452_v36, %v9704_v55  ;;  %9782 = vst [vmem:[#allocation92_spill] sm:$0xff] %v7457_v5  ;;  %v9783_v37 = vld [vmem:[#allocation53_spill] sm:$0xff]  ;;  %v9784_v11 = vld [vmem:[#allocation99_spill] sm:$0xff] }
 0x26e   : > { %v3016_v51 = vadd.f32 %v7378_v23, %v2948_v2  ;;  %v2569_v3 = vadd.f32 %v2537_v29, %v2433_v63  ;;  %v2122_v61 = vadd.f32 %v2090_v41, %v1986_v30  ;;  %v2226_v59 = vmul.f32 %v7457_v5, %v9715_v1  ;;  %v4347_v2 = vld [vmem:[#allocation2 + $0xb3] sm:$0xff] }
 0x26f   : > { %9779 = vst [vmem:[#allocation103_spill] sm:$0xff] %v7448_v21  ;;  %3494 = vrot.lane.b32.xlu0 %v7448_v21, %s4403_s18  ;;  %v2985_v54 = vmul.f32 %v9745_v34, %v9783_v37  ;;  %v3053_v28 = vmul.f32 %v9574_v57, %v9784_v11  ;;  %v1675_v58 = vadd.f32 %v1643_v52, %v1539_v60  ;;  %v9785_v12 = vld [vmem:[#allocation71_spill] sm:$0xff] }
 0x270   : > { %v1751_v23 = vmul.f32 %v9732_v49, %v9707_v10  ;;  %v3084_v63 = vadd.f32 %v7389_v18, %v3016_v51  ;;  %v2705_v30 = vadd.f32 %v2673_v27, %v2569_v3  ;;  %v2258_v29 = vadd.f32 %v2226_v59, %v2122_v61  ;;  %v9786_v18 = vld [vmem:[#allocation20_spill] sm:$0xff]  ;;  %v7480_v51 = vld [vmem:[#allocation2 + $0x10c] sm:$0xff]  ;;  %v9788_v59 = vld [vmem:[#allocation47_spill] sm:$0xff] }
 0x271   : > { %v2334_v41 = vmul.f32 %v4347_v2, %v9734_v44  ;;  %v3121_v4 = vmul.f32 %v9750_v26, %v9785_v12  ;;  %v1819_v37 = vmul.f32 %v9733_v40, %v9528_v25  ;;  %v1168_v60 = vmul.f32 %v9731_v0, %v9565_v8  ;;  %9787 = vst [vmem:[#allocation86_spill] sm:$0xff] %v7480_v51 }
 0x272   : > { %v1783_v21 = vadd.f32 %v1751_v23, %v1675_v58  ;;  %v3152_v52 = vadd.f32 %v7393_v35, %v3084_v63  ;;  %v2841_v49 = vadd.f32 %v2809_v42, %v2705_v30  ;;  %v2402_v27 = vmul.f32 %v9786_v18, %v9735_v24  ;;  %v9790_v63 = vld [vmem:[#allocation135_spill] sm:$0xff] }
 0x273   : > { %v2366_v36 = vadd.f32 %v2334_v41, %v2258_v29  ;;  %v1955_v61 = vmul.f32 %v7277_v45, %v9709_v62  ;;  %v1200_v58 = vadd.f32 %v1168_v60, %v9788_v59  ;;  %v1236_v23 = vmul.f32 %v9736_v20, %v9492_v15 }
 0x274   : > { %v1851_v3 = vadd.f32 %v1819_v37, %v1783_v21  ;;  %v7488_v0 = vadd.f32 %v7402_v38, %v3152_v52  ;;  %v2949_v35 = vadd.f32 %v2917_v46, %v2841_v49  ;;  %v2538_v30 = vmul.f32 %v9790_v63, %v9717_v13  ;;  %v7502_v49 = vld [vmem:[#allocation2 + $0x122] sm:$0xff] }
 0x275   : > { %v2434_v42 = vadd.f32 %v2402_v27, %v2366_v36  ;;  %v2091_v21 = vmul.f32 %v7406_v7, %v9713_v6  ;;  %v1268_v2 = vadd.f32 %v1236_v23, %v1200_v58  ;;  %v1372_v41 = vmul.f32 %v7300_v43, %v9578_v53  ;;  %v9791_v36 = vld [vmem:[#allocation12_spill] sm:$0xff]  ;;  %9792 = vst [vmem:[#allocation94_spill] sm:$0xff] %v7502_v49  ;;  %v4350_v23 = vld [vmem:[#allocation2 + $0xb4] sm:$0xff] }
 0x276   : > { %9789 = vst [vmem:[#allocation66_spill] sm:$0xff] %v7488_v0  ;;  %v1987_v29 = vadd.f32 %v1955_v61, %v1851_v3  ;;  %3496 = vrot.lane.b32.xlu1 %v7488_v0, %s4403_s18  ;;  %v3017_v37 = vadd.f32 %v2985_v54, %v2949_v35  ;;  %v3189_v38 = vmul.f32 %v9752_v47, %v7480_v51  ;;  %v7508_v54 = vld [vmem:[#allocation2 + $0x113] sm:$0xff]  ;;  %v7514_v0 = vld [vmem:[#allocation2 + $0x129] sm:$0xff] }
 0x277   : > { %v2570_v46 = vadd.f32 %v2538_v30, %v2434_v42  ;;  %v2674_v60 = vmul.f32 %v9791_v36, %v6066_v39  ;;  %v2227_v18 = vmul.f32 %v7502_v49, %v9715_v1  ;;  %v1404_v27 = vadd.f32 %v1372_v41, %v1268_v2  ;;  %v4351_v30 = vld [vmem:[#allocation2 + $0xc3] sm:$0xff]  ;;  %9793 = vst [vmem:[#allocation17_spill] sm:$0xff] %v7514_v0 }
 0x278   : > { %v2123_v52 = vadd.f32 %v2091_v21, %v1987_v29  ;;  %v1508_v3 = vmul.f32 %v7410_v17, %v9698_v31  ;;  %v3085_v61 = vadd.f32 %v3053_v28, %v3017_v37  ;;  %v2810_v58 = vmul.f32 %v7508_v54, %v9775_v50 }
 0x279   : > { %v2706_v59 = vadd.f32 %v2674_v60, %v2570_v46  ;;  %v2918_v35 = vmul.f32 %v4350_v23, %v6101_v48  ;;  %v2335_v29 = vmul.f32 %v4351_v30, %v9734_v44  ;;  %v1644_v2 = vmul.f32 %v7514_v0, %v9704_v55  ;;  %v9794_v46 = vld [vmem:[#allocation101_spill] sm:$0xff] }
 0x27a   : > { %v2259_v42 = vadd.f32 %v2227_v18, %v2123_v52  ;;  %v1540_v21 = vadd.f32 %v1508_v3, %v1404_v27  ;;  %v3153_v28 = vadd.f32 %v3121_v4, %v3085_v61  ;;  %v2986_v37 = vmul.f32 %v9745_v34, %v9767_v9  ;;  %v9796_v61 = vld [vmem:[#allocation56_spill] sm:$0xff] }
 0x27b   : > { %v2842_v41 = vadd.f32 %v2810_v58, %v2706_v59  ;;  %v3054_v60 = vmul.f32 %v9574_v57, %v9794_v46  ;;  %v2403_v52 = vmul.f32 %v9741_v32, %v9735_v24  ;;  %v1752_v27 = vmul.f32 %v9770_v56, %v9707_v10  ;;  %v9797_v59 = vld [vmem:[#allocation44_spill] sm:$0xff]  ;;  %v7532_v58 = vld [vmem:[#allocation2 + $0x114] sm:$0xff] }
 0x27c   : > { %v2367_v49 = vadd.f32 %v2335_v29, %v2259_v42  ;;  %v1676_v18 = vadd.f32 %v1644_v2, %v1540_v21  ;;  %v7526_v3 = vadd.f32 %v3189_v38, %v3153_v28  ;;  %v2539_v4 = vmul.f32 %v9772_v33, %v9717_v13  ;;  %9798 = vst [vmem:[#allocation116_spill] sm:$0xff] %v7532_v58  ;;  %v9799_v29 = vld [vmem:[#allocation126_spill] sm:$0xff]  ;;  %v9800_v38 = vld [vmem:[#allocation113_spill] sm:$0xff] }
 0x27d   : > { %v2950_v23 = vadd.f32 %v2918_v35, %v2842_v41  ;;  %v1093_v9 = vadd.f32 %v9797_v59, %v9796_v61  ;;  %v1820_v32 = vmul.f32 %v9773_v14, %v9528_v25  ;;  %v1169_v21 = vmul.f32 %v9799_v29, %v9565_v8 }
 0x27e   : > { %9795 = vst [vmem:[#allocation60_spill] sm:$0xff] %v7526_v3  ;;  %v2435_v30 = vadd.f32 %v2403_v52, %v2367_v49  ;;  %v1784_v42 = vadd.f32 %v1752_v27, %v1676_v18  ;;  %3498 = vrot.lane.b32.xlu0 %v7526_v3, %s4403_s18  ;;  %v3122_v35 = vmul.f32 %v9750_v26, %v9800_v38  ;;  %v9801_v18 = vld [vmem:[#allocation63_spill] sm:$0xff] }
 0x27f   : > { %v3018_v56 = vadd.f32 %v2986_v37, %v2950_v23  ;;  %v2675_v2 = vmul.f32 %v7439_v19, %v6066_v39  ;;  %v1956_v49 = vmul.f32 %v9777_v22, %v9709_v62  ;;  %v1201_v52 = vadd.f32 %v1169_v21, %v1093_v9  ;;  %v7550_v37 = vld [vmem:[#allocation2 + $0x123] sm:$0xff] }
 0x280   : > { %v2571_v28 = vadd.f32 %v2539_v4, %v2435_v30  ;;  %v1852_v41 = vadd.f32 %v1820_v32, %v1784_v42  ;;  %v1237_v27 = vmul.f32 %v9801_v18, %v9492_v15  ;;  %v3190_v59 = vmul.f32 %v9752_v47, %v7532_v58  ;;  %9802 = vst [vmem:[#allocation88_spill] sm:$0xff] %v7550_v37  ;;  %v4354_v42 = vld [vmem:[#allocation2 + $0xc4] sm:$0xff] }
 0x281   : > { %v3086_v61 = vadd.f32 %v3054_v60, %v3018_v56  ;;  %v2811_v23 = vmul.f32 %v7550_v37, %v9775_v50  ;;  %v2092_v29 = vmul.f32 %v7457_v5, %v9713_v6  ;;  %v1373_v9 = vmul.f32 %v9776_v16, %v9578_v53  ;;  %v7561_v21 = vld [vmem:[#allocation2 + $0x12a] sm:$0xff] }
 0x282   : > { %v2707_v3 = vadd.f32 %v2675_v2, %v2571_v28  ;;  %v1988_v22 = vadd.f32 %v1956_v49, %v1852_v41  ;;  %v1269_v4 = vadd.f32 %v1237_v27, %v1201_v52  ;;  %v2919_v60 = vmul.f32 %v4354_v42, %v6101_v48  ;;  %9803 = vst [vmem:[#allocation110_spill] sm:$0xff] %v7561_v21  ;;  %v7565_v5 = vld [vmem:[#allocation2 + $0x124] sm:$0xff] }
 0x283   : > { %v3154_v30 = vadd.f32 %v3122_v35, %v3086_v61  ;;  %v2987_v32 = vmul.f32 %v9745_v34, %v9784_v11  ;;  %v2228_v56 = vmul.f32 %v7561_v21, %v9715_v1  ;;  %9804 = vst [vmem:[#allocation89_spill] sm:$0xff] %v7565_v5  ;;  %v9805_v28 = vld [vmem:[#allocation109_spill] sm:$0xff]  ;;  %v3055_v52 = vmul.f32 %v9574_v57, %v9785_v12 }
 0x284   : > { %v2843_v37 = vadd.f32 %v2811_v23, %v2707_v3  ;;  %v2124_v2 = vadd.f32 %v2092_v29, %v1988_v22  ;;  %v1405_v49 = vadd.f32 %v1373_v9, %v1269_v4  ;;  %v1509_v41 = vmul.f32 %v9805_v28, %v9698_v31  ;;  %v4356_v61 = vld [vmem:[#allocation2 + $0xcb] sm:$0xff]  ;;  %v9808_v9 = vld [vmem:[#allocation48_spill] sm:$0xff] }
 0x285   : > { %v7569_v35 = vadd.f32 %v3190_v59, %v3154_v30  ;;  %v3123_v27 = vmul.f32 %v9750_v26, %v7480_v51  ;;  %v2336_v42 = vmul.f32 %v4356_v61, %v9734_v44  ;;  %v9807_v22 = vld [vmem:[#allocation34_spill] sm:$0xff]  ;;  %v3191_v59 = vmul.f32 %v9752_v47, %v7565_v5  ;;  %v9809_v30 = vld [vmem:[#allocation75_spill] sm:$0xff] }
 0x286   : > { %v2951_v21 = vadd.f32 %v2919_v60, %v2843_v37  ;;  %v2260_v3 = vadd.f32 %v2228_v56, %v2124_v2  ;;  %v1541_v23 = vadd.f32 %v1509_v41, %v1405_v49  ;;  %v1645_v29 = vmul.f32 %v9807_v22, %v9704_v55 }
 0x287   : > { %9806 = vst [vmem:[#allocation27_spill] sm:$0xff] %v7569_v35  ;;  %3500 = vrot.lane.b32.xlu1 %v7569_v35, %s4403_s18  ;;  %v2404_v4 = vmul.f32 %v9790_v63, %v9735_v24  ;;  %v1094_v51 = vadd.f32 %v9809_v30, %v9808_v9  ;;  %v1170_v37 = vmul.f32 %v9736_v20, %v9565_v8 }
 0x288   : > { %v3019_v60 = vadd.f32 %v2987_v32, %v2951_v21  ;;  %v2368_v56 = vadd.f32 %v2336_v42, %v2260_v3  ;;  %v1677_v2 = vadd.f32 %v1645_v29, %v1541_v23  ;;  %v1753_v49 = vmul.f32 %v9733_v40, %v9707_v10  ;;  %v7598_v32 = vld [vmem:[#allocation2 + $0x12b] sm:$0xff] }
 0x289   : > { %v2540_v41 = vmul.f32 %v9791_v36, %v9717_v13  ;;  %v2676_v61 = vmul.f32 %v7508_v54, %v6066_v39  ;;  %v1202_v35 = vadd.f32 %v1170_v37, %v1094_v51  ;;  %v1238_v63 = vmul.f32 %v7300_v43, %v9492_v15  ;;  %9810 = vst [vmem:[#allocation19_spill] sm:$0xff] %v7598_v32  ;;  %v4358_v21 = vld [vmem:[#allocation2 + $0xcc] sm:$0xff] }
 0x28a   : > { %v3087_v9 = vadd.f32 %v3055_v52, %v3019_v60  ;;  %v2436_v30 = vadd.f32 %v2404_v4, %v2368_v56  ;;  %v1785_v5 = vadd.f32 %v1753_v49, %v1677_v2  ;;  %v1821_v20 = vmul.f32 %v7277_v45, %v9528_v25  ;;  %v7605_v52 = vld [vmem:[#allocation2 + $0x12c] sm:$0xff] }
 0x28b   : > { %v2812_v40 = vmul.f32 %v7598_v32, %v9775_v50  ;;  %v2920_v42 = vmul.f32 %v4358_v21, %v6101_v48  ;;  %v1270_v3 = vadd.f32 %v1238_v63, %v1202_v35  ;;  %v1374_v51 = vmul.f32 %v7410_v17, %v9578_v53  ;;  %9811 = vst [vmem:[#allocation22_spill] sm:$0xff] %v7605_v52  ;;  %v9814_v21 = vld [vmem:[#allocation130_spill] sm:$0xff] }
 0x28c   : > { %v3155_v23 = vadd.f32 %v3123_v27, %v3087_v9  ;;  %v2572_v29 = vadd.f32 %v2540_v41, %v2436_v30  ;;  %v1853_v4 = vadd.f32 %v1821_v20, %v1785_v5  ;;  %v1957_v37 = vmul.f32 %v7406_v7, %v9709_v62  ;;  %v9813_v41 = vld [vmem:[#allocation94_spill] sm:$0xff] }
 0x28d   : > { %v2988_v60 = vmul.f32 %v9745_v34, %v9794_v46  ;;  %v3056_v56 = vmul.f32 %v9574_v57, %v9800_v38  ;;  %v1406_v2 = vadd.f32 %v1374_v51, %v1270_v3  ;;  %v1510_v63 = vmul.f32 %v7514_v0, %v9698_v31 }
 0x28e   : > { %v7615_v35 = vadd.f32 %v3191_v59, %v3155_v23  ;;  %v2708_v27 = vadd.f32 %v2676_v61, %v2572_v29  ;;  %v1989_v49 = vadd.f32 %v1957_v37, %v1853_v4  ;;  %v2093_v5 = vmul.f32 %v9813_v41, %v9713_v6  ;;  %v7627_v61 = vld [vmem:[#allocation2 + $0x13a] sm:$0xff] }
 0x28f   : > { %v3124_v9 = vmul.f32 %v9750_v26, %v7532_v58  ;;  %v3192_v30 = vmul.f32 %v9752_v47, %v7605_v52  ;;  %v1542_v20 = vadd.f32 %v1510_v63, %v1406_v2  ;;  %v1646_v3 = vmul.f32 %v9814_v21, %v9704_v55  ;;  %9815 = vst [vmem:[#allocation57_spill] sm:$0xff] %v7627_v61  ;;  %v4360_v29 = vld [vmem:[#allocation2 + $0xdb] sm:$0xff] }
 0x290   : > { %9812 = vst [vmem:[#allocation43_spill] sm:$0xff] %v7615_v35  ;;  %3502 = vrot.lane.b32.xlu0 %v7615_v35, %s4403_s18  ;;  %v2844_v59 = vadd.f32 %v2812_v40, %v2708_v27  ;;  %v2125_v51 = vadd.f32 %v2093_v5, %v1989_v49  ;;  %v2229_v23 = vmul.f32 %v7627_v61, %v9715_v1  ;;  %v9816_v5 = vld [vmem:[#allocation88_spill] sm:$0xff] }
 0x291   : > { %v2337_v4 = vmul.f32 %v4360_v29, %v9734_v44  ;;  %v2405_v37 = vmul.f32 %v9772_v33, %v9735_v24  ;;  %v1678_v2 = vadd.f32 %v1646_v3, %v1542_v20  ;;  %v1754_v63 = vmul.f32 %v9773_v14, %v9707_v10  ;;  %v9817_v29 = vld [vmem:[#allocation79_spill] sm:$0xff]  ;;  %v9818_v33 = vld [vmem:[#allocation76_spill] sm:$0xff] }
 0x292   : > { %v1171_v35 = vmul.f32 %v9801_v18, %v9565_v8  ;;  %v2952_v40 = vadd.f32 %v2920_v42, %v2844_v59  ;;  %v2261_v27 = vadd.f32 %v2229_v23, %v2125_v51  ;;  %v2541_v49 = vmul.f32 %v7439_v19, %v9717_v13  ;;  %v7647_v18 = vld [vmem:[#allocation2 + $0x13b] sm:$0xff] }
 0x293   : > { %v2677_v52 = vmul.f32 %v9816_v5, %v6066_v39  ;;  %v1786_v58 = vadd.f32 %v1754_v63, %v1678_v2  ;;  %v1822_v21 = vmul.f32 %v9817_v29, %v9528_v25  ;;  %v1239_v14 = vmul.f32 %v9776_v16, %v9492_v15  ;;  %9819 = vst [vmem:[#allocation25_spill] sm:$0xff] %v7647_v18  ;;  %v9820_v23 = vld [vmem:[#allocation92_spill] sm:$0xff] }
 0x294   : > { %v1203_v20 = vadd.f32 %v1171_v35, %v9818_v33  ;;  %v3020_v3 = vadd.f32 %v2988_v60, %v2952_v40  ;;  %v2369_v61 = vadd.f32 %v2337_v4, %v2261_v27  ;;  %v2813_v42 = vmul.f32 %v7647_v18, %v9775_v50  ;;  %v7657_v60 = vld [vmem:[#allocation2 + $0x13c] sm:$0xff]  ;;  %v9821_v40 = vld [vmem:[#allocation110_spill] sm:$0xff] }
 0x295   : > { %v2921_v59 = vmul.f32 %v6101_v48, %v9784_v11  ;;  %v1854_v51 = vadd.f32 %v1822_v21, %v1786_v58  ;;  %v1958_v2 = vmul.f32 %v9820_v23, %v9709_v62  ;;  %v1375_v33 = vmul.f32 %v9805_v28, %v9578_v53  ;;  %v7665_v21 = vld [vmem:[#allocation2 + $0x151] sm:$0xff] }
 0x296   : > { %v1271_v63 = vadd.f32 %v1239_v14, %v1203_v20  ;;  %v3088_v35 = vadd.f32 %v3056_v56, %v3020_v3  ;;  %v2437_v5 = vadd.f32 %v2405_v37, %v2369_v61  ;;  %v2989_v4 = vmul.f32 %v9745_v34, %v9785_v12  ;;  %9822 = vst [vmem:[#allocation33_spill] sm:$0xff] %v7665_v21  ;;  %v9823_v37 = vld [vmem:[#allocation86_spill] sm:$0xff]  ;;  %v9824_v3 = vld [vmem:[#allocation89_spill] sm:$0xff] }
 0x297   : > { %v2094_v27 = vmul.f32 %v9821_v40, %v9713_v6  ;;  %v1990_v18 = vadd.f32 %v1958_v2, %v1854_v51  ;;  %v1511_v58 = vmul.f32 %v9807_v22, %v9698_v31  ;;  %v1647_v20 = vmul.f32 %v7665_v21, %v9704_v55 }
 0x298   : > { %v1407_v11 = vadd.f32 %v1375_v33, %v1271_v63  ;;  %v3156_v56 = vadd.f32 %v3124_v9, %v3088_v35  ;;  %v2573_v61 = vadd.f32 %v2541_v49, %v2437_v5  ;;  %v3057_v14 = vmul.f32 %v9574_v57, %v9823_v37  ;;  %v7675_v63 = vld [vmem:[#allocation2 + $0x142] sm:$0xff]  ;;  %v9827_v49 = vld [vmem:[#allocation135_spill] sm:$0xff] }
 0x299   : > { %v3125_v12 = vmul.f32 %v9750_v26, %v9824_v3  ;;  %v3193_v51 = vmul.f32 %v9752_v47, %v7657_v60  ;;  %v2126_v2 = vadd.f32 %v2094_v27, %v1990_v18  ;;  %9825 = vst [vmem:[#allocation31_spill] sm:$0xff] %v7675_v63  ;;  %v2230_v22 = vmul.f32 %v7675_v63, %v9715_v1 }
 0x29a   : > { %v1543_v33 = vadd.f32 %v1511_v58, %v1407_v11  ;;  %v7679_v40 = vadd.f32 %v3192_v30, %v3156_v56  ;;  %v2709_v9 = vadd.f32 %v2677_v52, %v2573_v61  ;;  %v2338_v5 = vmul.f32 %v9827_v49, %v9734_v44  ;;  %v9828_v56 = vld [vmem:[#allocation104_spill] sm:$0xff] }
 0x29b   : > { %v2406_v35 = vmul.f32 %v9791_v36, %v9735_v24  ;;  %v2262_v3 = vadd.f32 %v2230_v22, %v2126_v2  ;;  %v1755_v47 = vmul.f32 %v7277_v45, %v9707_v10  ;;  %v1172_v18 = vmul.f32 %v7300_v43, %v9565_v8  ;;  %v7700_v2 = vld [vmem:[#allocation2 + $0x143] sm:$0xff] }
 0x29c   : > { %9826 = vst [vmem:[#allocation128_spill] sm:$0xff] %v7679_v40  ;;  %v1679_v37 = vadd.f32 %v1647_v20, %v1543_v33  ;;  %3504 = vrot.lane.b32.xlu1 %v7679_v40, %s4403_s18  ;;  %v2845_v30 = vadd.f32 %v2813_v42, %v2709_v9  ;;  %v2542_v52 = vmul.f32 %v7508_v54, %v9717_v13  ;;  %9829 = vst [vmem:[#allocation41_spill] sm:$0xff] %v7700_v2 }
 0x29d   : > { %v2678_v27 = vmul.f32 %v7598_v32, %v6066_v39  ;;  %v1823_v11 = vmul.f32 %v7406_v7, %v9528_v25  ;;  %v2370_v58 = vadd.f32 %v2338_v5, %v2262_v3  ;;  %v1204_v45 = vadd.f32 %v1172_v18, %v9828_v56  ;;  %v7708_v3 = vld [vmem:[#allocation2 + $0x144] sm:$0xff] }
 0x29e   : > { %v1787_v20 = vadd.f32 %v1755_v47, %v1679_v37  ;;  %v1240_v43 = vmul.f32 %v7410_v17, %v9492_v15  ;;  %v2953_v61 = vadd.f32 %v2921_v59, %v2845_v30  ;;  %v2814_v42 = vmul.f32 %v7700_v2, %v9775_v50  ;;  %9830 = vst [vmem:[#allocation131_spill] sm:$0xff] %v7708_v3  ;;  %v9831_v18 = vld [vmem:[#allocation57_spill] sm:$0xff] }
 0x29f   : > { %v2922_v22 = vmul.f32 %v6101_v48, %v9794_v46  ;;  %v1959_v33 = vmul.f32 %v9813_v41, %v9709_v62  ;;  %v2438_v9 = vadd.f32 %v2406_v35, %v2370_v58  ;;  %v1376_v5 = vmul.f32 %v7514_v0, %v9578_v53  ;;  %v9832_v46 = vld [vmem:[#allocation130_spill] sm:$0xff]  ;;  %v7718_v58 = vld [vmem:[#allocation2 + $0x159] sm:$0xff] }
 0x2a0   : > { %v1855_v37 = vadd.f32 %v1823_v11, %v1787_v20  ;;  %v1272_v49 = vadd.f32 %v1240_v43, %v1204_v45  ;;  %v3021_v59 = vadd.f32 %v2989_v4, %v2953_v61  ;;  %v2990_v47 = vmul.f32 %v9745_v34, %v9800_v38  ;;  %9833 = vst [vmem:[#allocation80_spill] sm:$0xff] %v7718_v58  ;;  %v7722_v20 = vpop.permute.xlu0 %3271  ;;  %v9835_v45 = vld [vmem:[#allocation116_spill] sm:$0xff]  ;;  %v9836_v61 = vld [vmem:[#allocation22_spill] sm:$0xff] }
 0x2a1   : > { %v2095_v30 = vmul.f32 %v9831_v18, %v9713_v6  ;;  %v1512_v56 = vmul.f32 %v9832_v46, %v9698_v31  ;;  %v2574_v40 = vadd.f32 %v2542_v52, %v2438_v9  ;;  %v1648_v11 = vmul.f32 %v7718_v58, %v9704_v55  ;;  %9834 = vst [vmem:[#allocation55_spill] sm:$0xff] %v7722_v20  ;;  %v7731_v52 = vld [vmem:[%s8785_s6 + $0x18] ss:$0 sm:$0xff]  ;;  %v9839_v20 = vld [vmem:[#allocation133_spill] sm:$0xff]  ;;  %v9840_v58 = vld [vmem:[#allocation78_spill] sm:$0xff] }
 0x2a2   : > { %v1991_v2 = vadd.f32 %v1959_v33, %v1855_v37  ;;  %v1408_v35 = vadd.f32 %v1376_v5, %v1272_v49  ;;  %v3089_v4 = vadd.f32 %v3057_v14, %v3021_v59  ;;  %v3058_v43 = vmul.f32 %v9574_v57, %v9835_v45  ;;  %v7735_v49 = vld [vmem:[#allocation2 + $0x152] sm:$0xff]  ;;  %v7739_v59 = vpop.permute.xlu1 %3273  ;;  %v9841_v18 = vld [vmem:[#allocation69_spill] sm:$0xff] }
 0x2a3   : > { %v3126_v38 = vmul.f32 %v9750_v26, %v9836_v61  ;;  %v3194_v33 = vmul.f32 %v7731_v52, %v7708_v3  ;;  %v2710_v9 = vadd.f32 %v2678_v27, %v2574_v40  ;;  %9837 = vst [vmem:[#allocation124_spill] sm:$0xff] %v7735_v49  ;;  %v2231_v14 = vmul.f32 %v7735_v49, %v9715_v1 }
 0x2a4   : > { %v2127_v37 = vadd.f32 %v2095_v30, %v1991_v2  ;;  %v1544_v5 = vadd.f32 %v1512_v56, %v1408_v35  ;;  %9838 = vst [vmem:[#allocation28_spill] sm:$0xff] %v7739_v59  ;;  %v3157_v46 = vadd.f32 %v3125_v12, %v3089_v4  ;;  %v2339_v61 = vmul.f32 %v9839_v20, %v9734_v44  ;;  %v7749_v49 = vpop.permute.xlu0 %3275  ;;  %v9846_v4 = vld [vmem:[#allocation110_spill] sm:$0xff] }
 0x2a5   : > { %v1756_v45 = vmul.f32 %v9817_v29, %v9707_v10  ;;  %v1097_v3 = vadd.f32 %v9841_v18, %v9840_v58  ;;  %v2846_v40 = vadd.f32 %v2814_v42, %v2710_v9  ;;  %v1173_v30 = vmul.f32 %v9776_v16, %v9565_v8  ;;  %9842 = vst [vmem:[#allocation29_spill] sm:$0xff] %v7749_v49  ;;  %v9845_v16 = vld [vmem:[#allocation88_spill] sm:$0xff]  ;;  %v9852_v49 = vld [vmem:[#allocation86_spill] sm:$0xff] }
 0x2a6   : > { %v2263_v27 = vadd.f32 %v2231_v14, %v2127_v37  ;;  %v1680_v2 = vadd.f32 %v1648_v11, %v1544_v5  ;;  %v7751_v56 = vadd.f32 %v3193_v51, %v3157_v46  ;;  %v2407_v12 = vmul.f32 %v7439_v19, %v9735_v24  ;;  %v7759_v20 = vpop.permute.xlu1 %3277  ;;  %v7767_v37 = vld [vmem:[#allocation2 + $0x139] sm:$0xff]  ;;  %v9848_v46 = vld [vmem:[#allocation25_spill] sm:$0xff] }
 0x2a7   : > { %v1824_v35 = vmul.f32 %v9820_v23, %v9528_v25  ;;  %v1241_v29 = vmul.f32 %v9805_v28, %v9492_v15  ;;  %v2954_v18 = vadd.f32 %v2922_v22, %v2846_v40  ;;  %v1205_v11 = vadd.f32 %v1173_v30, %v1097_v3  ;;  %9844 = vst [vmem:[#allocation15_spill] sm:$0xff] %v7759_v20 }
 0x2a8   : > { %9843 = vst [vmem:[#allocation106_spill] sm:$0xff] %v7751_v56  ;;  %v2371_v42 = vadd.f32 %v2339_v61, %v2263_v27  ;;  %v1788_v58 = vadd.f32 %v1756_v45, %v1680_v2  ;;  %3506 = vrot.lane.b32.xlu0 %v7751_v56, %s4403_s18  ;;  %v2543_v51 = vmul.f32 %v9845_v16, %v9717_v13  ;;  %9847 = vst [vmem:[#allocation83_spill] sm:$0xff] %v7767_v37  ;;  %v7775_v27 = vld [vmem:[#allocation2 + $0x153] sm:$0xff]  ;;  %v7781_v56 = vld [vmem:[#allocation2 + $0x169] sm:$0xff] }
 0x2a9   : > { %v1960_v9 = vmul.f32 %v9846_v4, %v9709_v62  ;;  %v1377_v14 = vmul.f32 %v7767_v37, %v9578_v53  ;;  %v1513_v22 = vmul.f32 %v7665_v21, %v9698_v31  ;;  %v3022_v3 = vadd.f32 %v2990_v47, %v2954_v18  ;;  %9849 = vst [vmem:[#allocation65_spill] sm:$0xff] %v7781_v56  ;;  %v7795_v37 = vld [vmem:[#allocation2 + $0x15a] sm:$0xff] }
 0x2aa   : > { %v2439_v45 = vadd.f32 %v2407_v12, %v2371_v42  ;;  %v1856_v61 = vadd.f32 %v1824_v35, %v1788_v58  ;;  %v1273_v5 = vadd.f32 %v1241_v29, %v1205_v11  ;;  %v2679_v40 = vmul.f32 %v9848_v46, %v6066_v39  ;;  %v7785_v35 = vld [vmem:[#allocation2 + $0x154] sm:$0xff]  ;;  %v7787_v42 = vpop.permute.xlu0 %3279 }
 0x2ab   : > { %v2815_v2 = vmul.f32 %v7775_v27, %v9775_v50  ;;  %v2096_v30 = vmul.f32 %v7675_v63, %v9713_v6  ;;  %v1649_v20 = vmul.f32 %v7781_v56, %v9704_v55  ;;  %v3090_v47 = vadd.f32 %v3058_v43, %v3022_v3  ;;  %9850 = vst [vmem:[#allocation38_spill] sm:$0xff] %v7787_v42  ;;  %v9851_v58 = vld [vmem:[#allocation71_spill] sm:$0xff]  ;;  %v9853_v63 = vld [vmem:[#allocation89_spill] sm:$0xff] }
 0x2ac   : > { %v2575_v12 = vadd.f32 %v2543_v51, %v2439_v45  ;;  %v1992_v29 = vadd.f32 %v1960_v9, %v1856_v61  ;;  %v1409_v18 = vadd.f32 %v1377_v14, %v1273_v5  ;;  %v2923_v11 = vmul.f32 %v6101_v48, %v9851_v58  ;;  %v7799_v45 = vpop.permute.xlu1 %3281 }
 0x2ad   : > { %v2991_v59 = vmul.f32 %v9745_v34, %v9852_v49  ;;  %v3059_v21 = vmul.f32 %v9574_v57, %v9853_v63  ;;  %v2232_v43 = vmul.f32 %v7795_v37, %v9715_v1  ;;  %v3158_v51 = vadd.f32 %v3126_v38, %v3090_v47  ;;  %9854 = vst [vmem:[#allocation10_spill] sm:$0xff] %v7799_v45  ;;  %v7839_v45 = vld [vmem:[#allocation2 + $0x141] sm:$0xff] }
 0x2ae   : > { %v2711_v3 = vadd.f32 %v2679_v40, %v2575_v12  ;;  %v2128_v9 = vadd.f32 %v2096_v30, %v1992_v29  ;;  %v1545_v14 = vadd.f32 %v1513_v22, %v1409_v18  ;;  %v3127_v61 = vmul.f32 %v9750_v26, %v7657_v60  ;;  %v9856_v12 = vld [vmem:[#allocation102_spill] sm:$0xff]  ;;  %v9857_v29 = vld [vmem:[#allocation64_spill] sm:$0xff]  ;;  %9864 = vst [vmem:[#allocation143_spill] sm:$0xff] %v7839_v45 }
 0x2af   : > { %v3195_v5 = vmul.f32 %v7731_v52, %v7785_v35  ;;  %v2340_v58 = vmul.f32 %v9791_v36, %v9734_v44  ;;  %v1757_v42 = vmul.f32 %v7406_v7, %v9707_v10  ;;  %v7809_v56 = vadd.f32 %v3194_v33, %v3158_v51  ;;  %v9859_v51 = vld [vmem:[#allocation41_spill] sm:$0xff] }
 0x2b0   : > { %v2847_v38 = vadd.f32 %v2815_v2, %v2711_v3  ;;  %v2264_v40 = vadd.f32 %v2232_v43, %v2128_v9  ;;  %v1681_v30 = vadd.f32 %v1649_v20, %v1545_v14  ;;  %v2408_v22 = vmul.f32 %v7508_v54, %v9735_v24  ;;  %v7823_v43 = vpop.permute.xlu0 %3283  ;;  %v7827_v9 = vld [vmem:[#allocation2 + $0x15b] sm:$0xff] }
 0x2b1   : > { %9855 = vst [vmem:[#allocation137_spill] sm:$0xff] %v7809_v56  ;;  %v2544_v47 = vmul.f32 %v7598_v32, %v9717_v13  ;;  %v1098_v18 = vadd.f32 %v9857_v29, %v9856_v12  ;;  %v1174_v36 = vmul.f32 %v7410_v17, %v9565_v8  ;;  %3508 = vrot.lane.b32.xlu1 %v7809_v56, %s4403_s18  ;;  %9858 = vst [vmem:[#allocation9_spill] sm:$0xff] %v7823_v43  ;;  %v9863_v29 = vld [vmem:[#allocation113_spill] sm:$0xff] }
 0x2b2   : > { %v2955_v7 = vadd.f32 %v2923_v11, %v2847_v38  ;;  %v2372_v33 = vadd.f32 %v2340_v58, %v2264_v40  ;;  %v1789_v2 = vadd.f32 %v1757_v42, %v1681_v30  ;;  %v1825_v20 = vmul.f32 %v9813_v41, %v9528_v25  ;;  %9860 = vst [vmem:[#allocation134_spill] sm:$0xff] %v7827_v9  ;;  %v9861_v38 = vld [vmem:[#allocation57_spill] sm:$0xff]  ;;  %v7835_v30 = vpop.permute.xlu1 %3285 }
 0x2b3   : > { %v2680_v3 = vmul.f32 %v9859_v51, %v6066_v39  ;;  %v2816_v14 = vmul.f32 %v7827_v9, %v9775_v50  ;;  %v1206_v17 = vadd.f32 %v1174_v36, %v1098_v18  ;;  %v1242_v12 = vmul.f32 %v7514_v0, %v9492_v15  ;;  %9862 = vst [vmem:[#allocation140_spill] sm:$0xff] %v7835_v30  ;;  %v9865_v36 = vld [vmem:[#allocation80_spill] sm:$0xff] }
 0x2b4   : > { %v3023_v11 = vadd.f32 %v2991_v59, %v2955_v7  ;;  %v2440_v58 = vadd.f32 %v2408_v22, %v2372_v33  ;;  %v1857_v42 = vadd.f32 %v1825_v20, %v1789_v2  ;;  %v1961_v40 = vmul.f32 %v9861_v38, %v9709_v62  ;;  %v7845_v7 = vld [vmem:[#allocation2 + $0x15c] sm:$0xff] }
 0x2b5   : > { %v2924_v56 = vmul.f32 %v6101_v48, %v9863_v29  ;;  %v1274_v43 = vadd.f32 %v1242_v12, %v1206_v17  ;;  %v1378_v18 = vmul.f32 %v7839_v45, %v9578_v53  ;;  %v1514_v9 = vmul.f32 %v9865_v36, %v9698_v31  ;;  %v9866_v2 = vld [vmem:[#allocation124_spill] sm:$0xff]  ;;  %v9868_v17 = vld [vmem:[#allocation22_spill] sm:$0xff]  ;;  %v9869_v38 = vld [vmem:[#allocation131_spill] sm:$0xff] }
 0x2b6   : > { %v3091_v59 = vadd.f32 %v3059_v21, %v3023_v11  ;;  %v2576_v22 = vadd.f32 %v2544_v47, %v2440_v58  ;;  %v1993_v33 = vadd.f32 %v1961_v40, %v1857_v42  ;;  %v2097_v20 = vmul.f32 %v9866_v2, %v9713_v6  ;;  %v9867_v30 = vld [vmem:[#allocation116_spill] sm:$0xff]  ;;  %v7855_v47 = vld [vmem:[#allocation2 + $0x16a] sm:$0xff]  ;;  %v7859_v58 = vpop.permute.xlu0 %3287 }
 0x2b7   : > { %v2992_v29 = vmul.f32 %v9745_v34, %v9867_v30  ;;  %v3060_v12 = vmul.f32 %v9574_v57, %v9868_v17  ;;  %v3128_v45 = vmul.f32 %v9750_v26, %v9869_v38  ;;  %v1410_v0 = vadd.f32 %v1378_v18, %v1274_v43  ;;  %9870 = vst [vmem:[#allocation73_spill] sm:$0xff] %v7859_v58  ;;  %v7865_v17 = vld [vmem:[#allocation2 + $0x171] sm:$0xff] }
 0x2b8   : > { %v3159_v41 = vadd.f32 %v3127_v61, %v3091_v59  ;;  %v2712_v36 = vadd.f32 %v2680_v3, %v2576_v22  ;;  %v2129_v21 = vadd.f32 %v2097_v20, %v1993_v33  ;;  %v2233_v11 = vmul.f32 %v7855_v47, %v9715_v1  ;;  %v7873_v22 = vpop.permute.xlu1 %3289 }
 0x2b9   : > { %v3196_v42 = vmul.f32 %v7731_v52, %v7845_v7  ;;  %v2341_v40 = vmul.f32 %v7439_v19, %v9734_v44  ;;  %v1546_v2 = vadd.f32 %v1514_v9, %v1410_v0  ;;  %v1650_v61 = vmul.f32 %v7865_v17, %v9704_v55  ;;  %9872 = vst [vmem:[#allocation100_spill] sm:$0xff] %v7873_v22 }
 0x2ba   : > { %v7869_v43 = vadd.f32 %v3195_v5, %v3159_v41  ;;  %v2848_v3 = vadd.f32 %v2816_v14, %v2712_v36  ;;  %v2265_v18 = vadd.f32 %v2233_v11, %v2129_v21  ;;  %v2409_v59 = vmul.f32 %v9845_v16, %v9735_v24  ;;  %v9873_v21 = vld [vmem:[#allocation115_spill] sm:$0xff] }
 0x2bb   : > { %v2545_v33 = vmul.f32 %v9848_v46, %v9717_v13  ;;  %v1682_v20 = vadd.f32 %v1650_v61, %v1546_v2  ;;  %v1758_v19 = vmul.f32 %v9820_v23, %v9707_v10  ;;  %v1175_v0 = vmul.f32 %v9805_v28, %v9565_v8  ;;  %v9874_v11 = vld [vmem:[#allocation83_spill] sm:$0xff]  ;;  %v9875_v61 = vld [vmem:[#allocation33_spill] sm:$0xff] }
 0x2bc   : > { %9871 = vst [vmem:[#allocation54_spill] sm:$0xff] %v7869_v43  ;;  %3510 = vrot.lane.b32.xlu0 %v7869_v43, %s4403_s18  ;;  %v2956_v41 = vadd.f32 %v2924_v56, %v2848_v3  ;;  %v2373_v5 = vadd.f32 %v2341_v40, %v2265_v18  ;;  %v2681_v9 = vmul.f32 %v7775_v27, %v6066_v39  ;;  %v7892_v43 = vld [vmem:[#allocation2 + $0x16b] sm:$0xff]  ;;  %v7898_v3 = vpop.permute.xlu0 %3291 }
 0x2bd   : > { %v1826_v14 = vmul.f32 %v9846_v4, %v9528_v25  ;;  %v1790_v36 = vadd.f32 %v1758_v19, %v1682_v20  ;;  %v1207_v2 = vadd.f32 %v1175_v0, %v9873_v21  ;;  %v1243_v23 = vmul.f32 %v9874_v11, %v9492_v15  ;;  %9876 = vst [vmem:[#allocation123_spill] sm:$0xff] %v7892_v43  ;;  %v7900_v18 = vld [vmem:[#allocation2 + $0x16c] sm:$0xff]  ;;  %v9878_v0 = vld [vmem:[#allocation31_spill] sm:$0xff]  ;;  %v7910_v11 = vpop.permute.xlu1 %3293 }
 0x2be   : > { %v1379_v28 = vmul.f32 %v9875_v61, %v9578_v53  ;;  %v3024_v22 = vadd.f32 %v2992_v29, %v2956_v41  ;;  %v2441_v58 = vadd.f32 %v2409_v59, %v2373_v5  ;;  %v2817_v56 = vmul.f32 %v7892_v43, %v9775_v50  ;;  %9877 = vst [vmem:[#allocation46_spill] sm:$0xff] %v7898_v3  ;;  %v9880_v43 = vld [vmem:[#allocation65_spill] sm:$0xff] }
 0x2bf   : > { %v2925_v40 = vmul.f32 %v6101_v48, %v9852_v49  ;;  %v2993_v20 = vmul.f32 %v9745_v34, %v9853_v63  ;;  %v1858_v19 = vadd.f32 %v1826_v14, %v1790_v36  ;;  %v1962_v29 = vmul.f32 %v9878_v0, %v9709_v62  ;;  %9879 = vst [vmem:[#allocation52_spill] sm:$0xff] %v7910_v11  ;;  %v7914_v14 = vld [vmem:[#allocation2 + $0x181] sm:$0xff] }
 0x2c0   : > { %v1275_v59 = vadd.f32 %v1243_v23, %v1207_v2  ;;  %v3092_v41 = vadd.f32 %v3060_v12, %v3024_v22  ;;  %v2577_v5 = vadd.f32 %v2545_v33, %v2441_v58  ;;  %v3061_v21 = vmul.f32 %v9574_v57, %v7657_v60  ;;  %9881 = vst [vmem:[#allocation24_spill] sm:$0xff] %v7914_v14  ;;  %v7922_v23 = vld [vmem:[#allocation2 + $0x172] sm:$0xff] }
 0x2c1   : > { %v2098_v49 = vmul.f32 %v7795_v37, %v9713_v6  ;;  %v1994_v61 = vadd.f32 %v1962_v29, %v1858_v19  ;;  %v1515_v63 = vmul.f32 %v9880_v43, %v9698_v31  ;;  %v1651_v36 = vmul.f32 %v7914_v14, %v9704_v55  ;;  %9882 = vst [vmem:[#allocation96_spill] sm:$0xff] %v7922_v23  ;;  %v9886_v14 = vld [vmem:[#allocation17_spill] sm:$0xff] }
 0x2c2   : > { %v1411_v3 = vadd.f32 %v1379_v28, %v1275_v59  ;;  %v3160_v12 = vadd.f32 %v3128_v45, %v3092_v41  ;;  %v2713_v58 = vadd.f32 %v2681_v9, %v2577_v5  ;;  %v3129_v22 = vmul.f32 %v9750_v26, %v7785_v35  ;;  %v7934_v41 = vpop.permute.xlu0 %3295 }
 0x2c3   : > { %v3197_v33 = vmul.f32 %v7731_v52, %v7900_v18  ;;  %v2130_v2 = vadd.f32 %v2098_v49, %v1994_v61  ;;  %v2234_v28 = vmul.f32 %v7922_v23, %v9715_v1  ;;  %v2342_v43 = vmul.f32 %v7508_v54, %v9734_v44  ;;  %9884 = vst [vmem:[#allocation4_spill] sm:$0xff] %v7934_v41  ;;  %v9885_v61 = vld [vmem:[#allocation94_spill] sm:$0xff] }
 0x2c4   : > { %v1547_v19 = vadd.f32 %v1515_v63, %v1411_v3  ;;  %v7928_v29 = vadd.f32 %v3196_v42, %v3160_v12  ;;  %v2849_v45 = vadd.f32 %v2817_v56, %v2713_v58  ;;  %v2410_v9 = vmul.f32 %v7598_v32, %v9735_v24  ;;  %v9887_v42 = vld [vmem:[#allocation134_spill] sm:$0xff] }
 0x2c5   : > { %v2546_v59 = vmul.f32 %v9859_v51, %v9717_v13  ;;  %v2266_v5 = vadd.f32 %v2234_v28, %v2130_v2  ;;  %v1759_v11 = vmul.f32 %v9885_v61, %v9707_v10  ;;  %v1176_v54 = vmul.f32 %v9886_v14, %v9565_v8  ;;  %v7944_v3 = vld [vmem:[#allocation2 + $0x173] sm:$0xff]  ;;  %v7950_v2 = vpop.permute.xlu1 %3297  ;;  %v9891_v8 = vld [vmem:[#allocation120_spill] sm:$0xff] }
 0x2c6   : > { %9883 = vst [vmem:[#allocation112_spill] sm:$0xff] %v7928_v29  ;;  %v1683_v49 = vadd.f32 %v1651_v36, %v1547_v19  ;;  %3512 = vrot.lane.b32.xlu1 %v7928_v29, %s4403_s18  ;;  %v2957_v63 = vadd.f32 %v2925_v40, %v2849_v45  ;;  %v2682_v56 = vmul.f32 %v9887_v42, %v6066_v39  ;;  %9888 = vst [vmem:[#allocation118_spill] sm:$0xff] %v7944_v3  ;;  %v9889_v36 = vld [vmem:[#allocation57_spill] sm:$0xff]  ;;  %v9892_v61 = vld [vmem:[#allocation143_spill] sm:$0xff] }
 0x2c7   : > { %v2818_v12 = vmul.f32 %v7944_v3, %v9775_v50  ;;  %v1827_v58 = vmul.f32 %v9889_v36, %v9528_v25  ;;  %9890 = vst [vmem:[#allocation61_spill] sm:$0xff] %v7950_v2  ;;  %v2374_v28 = vadd.f32 %v2342_v43, %v2266_v5  ;;  %v1208_v14 = vadd.f32 %v1176_v54, %v9891_v8  ;;  %v9893_v41 = vld [vmem:[#allocation22_spill] sm:$0xff]  ;;  %v9894_v3 = vld [vmem:[#allocation124_spill] sm:$0xff] }
 0x2c8   : > { %v1791_v19 = vadd.f32 %v1759_v11, %v1683_v49  ;;  %v1244_v40 = vmul.f32 %v9892_v61, %v9492_v15  ;;  %v3025_v45 = vadd.f32 %v2993_v20, %v2957_v63  ;;  %v2926_v29 = vmul.f32 %v6101_v48, %v9867_v30  ;;  %v7961_v23 = vld [vmem:[#allocation2 + $0x174] sm:$0xff]  ;;  %v9895_v5 = vld [vmem:[#allocation80_spill] sm:$0xff]  ;;  %v7975_v8 = vld [vmem:[#allocation2 + $0x189] sm:$0xff] }
 0x2c9   : > { %v2994_v42 = vmul.f32 %v9745_v34, %v9893_v41  ;;  %v1963_v51 = vmul.f32 %v9894_v3, %v9709_v62  ;;  %v2442_v32 = vadd.f32 %v2410_v9, %v2374_v28  ;;  %v1380_v49 = vmul.f32 %v9895_v5, %v9578_v53  ;;  %v7967_v20 = vld [vmem:[#allocation2 + $0x182] sm:$0xff]  ;;  %v7973_v9 = vpop.permute.xlu0 %3299  ;;  %9897 = vst [vmem:[#allocation53_spill] sm:$0xff] %v7975_v8 }
 0x2ca   : > { %v1859_v43 = vadd.f32 %v1827_v58, %v1791_v19  ;;  %v1276_v11 = vadd.f32 %v1244_v40, %v1208_v14  ;;  %v3093_v54 = vadd.f32 %v3061_v21, %v3025_v45  ;;  %v2099_v15 = vmul.f32 %v7855_v47, %v9713_v6  ;;  %9896 = vst [vmem:[#allocation144_spill] sm:$0xff] %v7973_v9 }
 0x2cb   : > { %v2235_v30 = vmul.f32 %v7967_v20, %v9715_v1  ;;  %v1516_v63 = vmul.f32 %v7865_v17, %v9698_v31  ;;  %v2578_v28 = vadd.f32 %v2546_v59, %v2442_v32  ;;  %v1652_v53 = vmul.f32 %v7975_v8, %v9704_v55  ;;  %v7985_v17 = vpop.permute.xlu1 %3301 }
 0x2cc   : > { %v1995_v58 = vadd.f32 %v1963_v51, %v1859_v43  ;;  %v1412_v19 = vadd.f32 %v1380_v49, %v1276_v11  ;;  %v3161_v21 = vadd.f32 %v3129_v22, %v3093_v54  ;;  %v3062_v14 = vmul.f32 %v9574_v57, %v9869_v38  ;;  %9898 = vst [vmem:[#allocation99_spill] sm:$0xff] %v7985_v17 }
 0x2cd   : > { %v3130_v61 = vmul.f32 %v9750_v26, %v7845_v7  ;;  %v3198_v31 = vmul.f32 %v7731_v52, %v7961_v23  ;;  %v2714_v32 = vadd.f32 %v2682_v56, %v2578_v28  ;;  %v2343_v59 = vmul.f32 %v9845_v16, %v9734_v44  ;;  %v9900_v16 = vld [vmem:[#allocation123_spill] sm:$0xff] }
 0x2ce   : > { %v2131_v51 = vadd.f32 %v2099_v15, %v1995_v58  ;;  %v1548_v40 = vadd.f32 %v1516_v63, %v1412_v19  ;;  %v7989_v45 = vadd.f32 %v3197_v33, %v3161_v21  ;;  %v2411_v22 = vmul.f32 %v9848_v46, %v9735_v24  ;;  %v8003_v15 = vld [vmem:[#allocation2 + $0x183] sm:$0xff]  ;;  %v9902_v19 = vld [vmem:[#allocation95_spill] sm:$0xff] }
 0x2cf   : > { %v2547_v43 = vmul.f32 %v7775_v27, %v9717_v13  ;;  %v1760_v11 = vmul.f32 %v9846_v4, %v9707_v10  ;;  %v2850_v5 = vadd.f32 %v2818_v12, %v2714_v32  ;;  %v1761_v56 = vmul.f32 %v9889_v36, %v9707_v10  ;;  %v9903_v21 = vld [vmem:[#allocation89_spill] sm:$0xff]  ;;  %v8022_v17 = vpop.permute.xlu1 %3474 }
 0x2d0   : > { %9899 = vst [vmem:[#allocation20_spill] sm:$0xff] %v7989_v45  ;;  %v2267_v49 = vadd.f32 %v2235_v30, %v2131_v51  ;;  %v1684_v54 = vadd.f32 %v1652_v53, %v1548_v40  ;;  %3514 = vrot.lane.b32.xlu0 %v7989_v45, %s4403_s18  ;;  %v2683_v33 = vmul.f32 %v9900_v16, %v6066_v39  ;;  %v8011_v30 = vpop.permute.xlu0 %3303  ;;  %9904 = vst [vmem:[#allocation12_spill] sm:$0xff] %v8022_v17 }
 0x2d1   : > { %v2819_v63 = vmul.f32 %v8003_v15, %v9775_v50  ;;  %v1828_v4 = vmul.f32 %v9878_v0, %v9528_v25  ;;  %v1829_v12 = vmul.f32 %v9894_v3, %v9528_v25  ;;  %9901 = vst [vmem:[#allocation47_spill] sm:$0xff] %v8011_v30  ;;  %v2958_v36 = vadd.f32 %v2926_v29, %v2850_v5 }
 0x2d2   : > { %v2375_v28 = vadd.f32 %v2343_v59, %v2267_v49  ;;  %v1792_v58 = vadd.f32 %v1760_v11, %v1684_v54  ;;  %v1793_v53 = vadd.f32 %v1761_v56, %v9902_v19  ;;  %v2927_v32 = vmul.f32 %v6101_v48, %v9903_v21  ;;  %v8024_v59 = vld [vmem:[#allocation2 + $0x184] sm:$0xff] }
 0x2d3   : > { %v1964_v51 = vmul.f32 %v7795_v37, %v9709_v62  ;;  %v1965_v40 = vmul.f32 %v7855_v47, %v9709_v62  ;;  %v2101_v45 = vmul.f32 %v7967_v20, %v9713_v6  ;;  %v3026_v30 = vadd.f32 %v2994_v42, %v2958_v36  ;;  %v9905_v19 = vld [vmem:[#allocation96_spill] sm:$0xff]  ;;  %v9907_v36 = vld [vmem:[#allocation55_spill] sm:$0xff] }
 0x2d4   : > { %v2443_v29 = vadd.f32 %v2411_v22, %v2375_v28  ;;  %v1860_v11 = vadd.f32 %v1828_v4, %v1792_v58  ;;  %v1861_v5 = vadd.f32 %v1829_v12, %v1793_v53  ;;  %v2995_v49 = vmul.f32 %v9745_v34, %v7657_v60  ;;  %v9906_v12 = vld [vmem:[#allocation90_spill] sm:$0xff]  ;;  %v8046_v8 = vpop.permute.xlu0 %3470 }
 0x2d5   : > { %v3063_v54 = vmul.f32 %v9574_v57, %v7785_v35  ;;  %v3131_v56 = vmul.f32 %v9750_v26, %v7900_v18  ;;  %v2100_v21 = vmul.f32 %v9905_v19, %v9713_v6  ;;  %v3094_v9 = vadd.f32 %v3062_v14, %v3026_v30  ;;  %v8040_v58 = vld [vmem:[#allocation2 + $0x18a] sm:$0xff]  ;;  %9909 = vst [vmem:[#allocation56_spill] sm:$0xff] %v8046_v8 }
 0x2d6   : > { %v2579_v2 = vadd.f32 %v2547_v43, %v2443_v29  ;;  %v1996_v42 = vadd.f32 %v1964_v51, %v1860_v11  ;;  %v1997_v22 = vadd.f32 %v1965_v40, %v1861_v5  ;;  %v3199_v4 = vmul.f32 %v7731_v52, %v8024_v59  ;;  %v9910_v40 = vld [vmem:[#allocation19_spill] sm:$0xff]  ;;  %v9911_v5 = vld [vmem:[#allocation141_spill] sm:$0xff] }
 0x2d7   : > { %v8038_v28 = vadd.f32 %v9907_v36, %v9906_v12  ;;  %v2236_v53 = vmul.f32 %v8040_v58, %v9715_v1  ;;  %v1762_v17 = vmul.f32 %v9878_v0, %v9707_v10  ;;  %v3162_v14 = vadd.f32 %v3130_v61, %v3094_v9 }
 0x2d8   : > { %v2715_v43 = vadd.f32 %v2683_v33, %v2579_v2  ;;  %v2132_v30 = vadd.f32 %v2100_v21, %v1996_v42  ;;  %v2133_v51 = vadd.f32 %v2101_v45, %v1997_v22  ;;  %v2344_v29 = vmul.f32 %v9910_v40, %v9734_v44  ;;  %v9914_v2 = vld [vmem:[#allocation93_spill] sm:$0xff]  ;;  %v9916_v21 = vld [vmem:[#allocation134_spill] sm:$0xff] }
 0x2d9   : > { %9908 = vst [vmem:[#allocation101_spill] sm:$0xff] %v8038_v28  ;;  %v2345_v11 = vmul.f32 %v9848_v46, %v9734_v44  ;;  %v1794_v12 = vadd.f32 %v1762_v17, %v9911_v5  ;;  %v1830_v36 = vmul.f32 %v7795_v37, %v9528_v25  ;;  %v8055_v28 = vpop.permute.xlu1 %3305  ;;  %v8057_v0 = vadd.f32 %v3198_v31, %v3162_v14  ;;  %v9915_v45 = vld [vmem:[#allocation41_spill] sm:$0xff] }
 0x2da   : > { %9912 = vst [vmem:[#allocation44_spill] sm:$0xff] %v8055_v28  ;;  %v2851_v8 = vadd.f32 %v2819_v63, %v2715_v43  ;;  %v2268_v9 = vadd.f32 %v2236_v53, %v2132_v30  ;;  %v2269_v61 = vadd.f32 %v9914_v2, %v2133_v51  ;;  %v2412_v33 = vmul.f32 %v9915_v45, %v9735_v24  ;;  %v9917_v53 = vld [vmem:[#allocation118_spill] sm:$0xff] }
 0x2db   : > { %9913 = vst [vmem:[#allocation126_spill] sm:$0xff] %v8057_v0  ;;  %v2548_v42 = vmul.f32 %v9916_v21, %v9717_v13  ;;  %v1862_v46 = vadd.f32 %v1830_v36, %v1794_v12  ;;  %v1966_v17 = vmul.f32 %v9905_v19, %v9709_v62  ;;  %3516 = vrot.lane.b32.xlu1 %v8057_v0, %s4403_s18  ;;  %v8072_v30 = vld [vmem:[#allocation2 + $0x18b] sm:$0xff]  ;;  %v8078_v12 = vpop.permute.xlu0 %3472 }
 0x2dc   : > { %v2959_v22 = vadd.f32 %v2927_v32, %v2851_v8  ;;  %v2376_v31 = vadd.f32 %v2344_v29, %v2268_v9  ;;  %v2377_v14 = vadd.f32 %v2345_v11, %v2269_v61  ;;  %v2413_v63 = vmul.f32 %v7775_v27, %v9735_v24  ;;  %9918 = vst [vmem:[#allocation63_spill] sm:$0xff] %v8078_v12  ;;  %v8099_v28 = vld [vmem:[#allocation2 + $0x1b1] sm:$0xff] }
 0x2dd   : > { %v2684_v43 = vmul.f32 %v9917_v53, %v6066_v39  ;;  %v2820_v51 = vmul.f32 %v8072_v30, %v9775_v50  ;;  %v1998_v40 = vadd.f32 %v1966_v17, %v1862_v46  ;;  %v2102_v5 = vmul.f32 %v8040_v58, %v9713_v6  ;;  %v8088_v46 = vpop.permute.xlu1 %3476 }
 0x2de   : > { %v3027_v8 = vadd.f32 %v2995_v49, %v2959_v22  ;;  %v2444_v32 = vadd.f32 %v2412_v33, %v2376_v31  ;;  %v2445_v29 = vadd.f32 %v2413_v63, %v2377_v14  ;;  %v2549_v11 = vmul.f32 %v9900_v16, %v9717_v13  ;;  %9919 = vst [vmem:[#allocation109_spill] sm:$0xff] %v8088_v46  ;;  %v8092_v22 = vld [vmem:[#allocation2 + $0x19b] sm:$0xff] }
 0x2df   : > { %v2928_v36 = vmul.f32 %v6101_v48, %v9893_v41  ;;  %v2996_v9 = vmul.f32 %v9745_v34, %v9869_v38  ;;  %v3064_v2 = vmul.f32 %v9574_v57, %v7845_v7  ;;  %v2134_v61 = vadd.f32 %v2102_v5, %v1998_v40  ;;  %v9920_v31 = vld [vmem:[#allocation107_spill] sm:$0xff] }
 0x2e0   : > { %v3095_v17 = vadd.f32 %v3063_v54, %v3027_v8  ;;  %v2580_v0 = vadd.f32 %v2548_v42, %v2444_v32  ;;  %v2581_v49 = vadd.f32 %v2549_v11, %v2445_v29  ;;  %v2685_v33 = vmul.f32 %v8003_v15, %v6066_v39  ;;  %v9921_v11 = vld [vmem:[#allocation136_spill] sm:$0xff] }
 0x2e1   : > { %v2821_v41 = vmul.f32 %v8092_v22, %v9775_v50  ;;  %v2270_v14 = vadd.f32 %v9920_v31, %v2134_v61  ;;  %v2346_v63 = vmul.f32 %v9915_v45, %v9734_v44  ;;  %v1655_v54 = vmul.f32 %v8099_v28, %v9704_v55  ;;  %v8110_v31 = vpop.permute.xlu0 %3307 }
 0x2e2   : > { %v3163_v42 = vadd.f32 %v3131_v56, %v3095_v17  ;;  %v2716_v40 = vadd.f32 %v2684_v43, %v2580_v0  ;;  %v2717_v5 = vadd.f32 %v2685_v33, %v2581_v49  ;;  %v2929_v8 = vmul.f32 %v6101_v48, %v7657_v60  ;;  %9922 = vst [vmem:[#allocation34_spill] sm:$0xff] %v8110_v31  ;;  %v8114_v56 = vld [vmem:[#allocation2 + $0x18c] sm:$0xff] }
 0x2e3   : > { %v2378_v32 = vadd.f32 %v2346_v63, %v2270_v14  ;;  %v2414_v29 = vmul.f32 %v9916_v21, %v9735_v24  ;;  %v1687_v61 = vadd.f32 %v1655_v54, %v9921_v11  ;;  %v1763_v45 = vmul.f32 %v9894_v3, %v9707_v10  ;;  %v8122_v3 = vpop.permute.xlu1 %3309  ;;  %v8142_v11 = vld [vmem:[#allocation2 + $0x1a3] sm:$0xff] }
 0x2e4   : > { %v8112_v46 = vadd.f32 %v3199_v4, %v3163_v42  ;;  %v2852_v12 = vadd.f32 %v2820_v51, %v2716_v40  ;;  %v2853_v0 = vadd.f32 %v2821_v41, %v2717_v5  ;;  %v2550_v60 = vmul.f32 %v9917_v53, %v9717_v13  ;;  %9924 = vst [vmem:[#allocation75_spill] sm:$0xff] %v8122_v3 }
 0x2e5   : > { %v2446_v43 = vadd.f32 %v2414_v29, %v2378_v32  ;;  %v1795_v17 = vadd.f32 %v1763_v45, %v1687_v61  ;;  %v1831_v49 = vmul.f32 %v7855_v47, %v9528_v25  ;;  %v1967_v33 = vmul.f32 %v7967_v20, %v9709_v62  ;;  %v8132_v47 = vld [vmem:[#allocation2 + $0x19c] sm:$0xff] }
 0x2e6   : > { %9923 = vst [vmem:[#allocation48_spill] sm:$0xff] %v8112_v46  ;;  %3518 = vrot.lane.b32.xlu0 %v8112_v46, %s4403_s18  ;;  %v2960_v4 = vadd.f32 %v2928_v36, %v2852_v12  ;;  %v3132_v51 = vmul.f32 %v9750_v26, %v7961_v23  ;;  %v2961_v41 = vadd.f32 %v2929_v8, %v2853_v0  ;;  %v8140_v8 = vld [vmem:[#allocation2 + $0x1b2] sm:$0xff] }
 0x2e7   : > { %v2997_v14 = vmul.f32 %v9745_v34, %v7785_v35  ;;  %v3200_v63 = vmul.f32 %v7731_v52, %v8114_v56  ;;  %v2582_v54 = vadd.f32 %v2550_v60, %v2446_v43  ;;  %v2686_v42 = vmul.f32 %v8072_v30, %v6066_v39 }
 0x2e8   : > { %v1863_v40 = vadd.f32 %v1831_v49, %v1795_v17  ;;  %v3028_v5 = vadd.f32 %v2996_v9, %v2960_v4  ;;  %v3065_v12 = vmul.f32 %v9574_v57, %v7900_v18  ;;  %v3133_v36 = vmul.f32 %v9750_v26, %v8024_v59  ;;  %v8148_v9 = vpop.permute.xlu0 %3311  ;;  %v8152_v49 = vld [vmem:[#allocation2 + $0x1b9] sm:$0xff] }
 0x2e9   : > { %v3029_v32 = vadd.f32 %v2997_v14, %v2961_v41  ;;  %v2718_v29 = vadd.f32 %v2686_v42, %v2582_v54  ;;  %v2822_v61 = vmul.f32 %v8142_v11, %v9775_v50  ;;  %v2239_v0 = vmul.f32 %v9715_v1, %v8140_v8  ;;  %9925 = vst [vmem:[#allocation79_spill] sm:$0xff] %v8148_v9  ;;  %v9926_v54 = vld [vmem:[#allocation138_spill] sm:$0xff]  ;;  %v8166_v9 = vld [vmem:[#allocation2 + $0x1a4] sm:$0xff] }
 0x2ea   : > { %v1999_v45 = vadd.f32 %v1967_v33, %v1863_v40  ;;  %v3096_v60 = vadd.f32 %v3064_v2, %v3028_v5  ;;  %v3201_v17 = vmul.f32 %v7731_v52, %v8132_v47  ;;  %v1656_v4 = vmul.f32 %v8152_v49, %v9704_v55  ;;  %v8161_v40 = vpop.permute.xlu1 %3313 }
 0x2eb   : > { %v3097_v43 = vadd.f32 %v3065_v12, %v3029_v32  ;;  %v2854_v41 = vadd.f32 %v2822_v61, %v2718_v29  ;;  %v2930_v14 = vmul.f32 %v6101_v48, %v9869_v38  ;;  %v2998_v33 = vmul.f32 %v9745_v34, %v7845_v7  ;;  %9927 = vst [vmem:[#allocation76_spill] sm:$0xff] %v8161_v40  ;;  %v9928_v32 = vld [vmem:[#allocation35_spill] sm:$0xff] }
 0x2ec   : > { %v2135_v42 = vadd.f32 %v9926_v54, %v1999_v45  ;;  %v3164_v2 = vadd.f32 %v3132_v51, %v3096_v60  ;;  %v1688_v12 = vadd.f32 %v1656_v4, %v9928_v32  ;;  %v1764_v46 = vmul.f32 %v7795_v37, %v9707_v10  ;;  %v8181_v10 = vld [vmem:[%s8787_s8] sm:$0xf]  ;;  %v8197_v4 = vld [vmem:[#allocation2 + $0x1b3] sm:$0xff] }
 0x2ed   : > { %v3165_v5 = vadd.f32 %v3133_v36, %v3097_v43  ;;  %v2962_v55 = vadd.f32 %v2930_v14, %v2854_v41  ;;  %v3066_v38 = vmul.f32 %v9574_v57, %v7961_v23  ;;  %v2347_v61 = vmul.f32 %v7775_v27, %v9734_v44  ;;  %v1729_v43 = vld [vmem:[#allocation2 + $0x1ca] sm:$0xff]  ;;  %4255 = vmatprep.subr.msk.bf16.mxu1 %vm3849_vm5, %v8181_v10  ;;  %v9934_v40 = vld [vmem:[#allocation11_spill] sm:$0xff] }
 0x2ee   : > { %v2271_v29 = vadd.f32 %v2239_v0, %v2135_v42  ;;  %v8172_v45 = vadd.f32 %v3200_v63, %v3164_v2  ;;  %v1796_v51 = vadd.f32 %v1764_v46, %v1688_v12  ;;  %v1832_v36 = vmul.f32 %v9905_v19, %v9528_v25  ;;  %v8187_v63 = vpop.permute.xlu0 %3478  ;;  %v8203_v42 = vld [vmem:[#allocation2 + $0x1ba] sm:$0xff]  ;;  %v8207_v2 = vpop.permute.xlu1 %3480 }
 0x2ef   : > { %v8174_v54 = vadd.f32 %v3201_v17, %v3165_v5  ;;  %v3030_v37 = vadd.f32 %v2998_v33, %v2962_v55  ;;  %v3134_v0 = vmul.f32 %v9750_v26, %v8114_v56  ;;  %v2415_v27 = vmul.f32 %v9900_v16, %v9735_v24  ;;  %v8211_v5 = vld [vmem:[#allocation2 + $0x1b4] sm:$0xff] }
 0x2f0   : > { %9929 = vst [vmem:[#allocation92_spill] sm:$0xff] %v8172_v45  ;;  %v2379_v60 = vadd.f32 %v2347_v61, %v2271_v29  ;;  %3520 = vrot.lane.b32.xlu1 %v8172_v45, %s4403_s18  ;;  %v3202_v25 = vmul.f32 %v7731_v52, %v8166_v9  ;;  %v1864_v19 = vadd.f32 %v1832_v36, %v1796_v51 }
 0x2f1   : > { %9930 = vst [vmem:[#allocation135_spill] sm:$0xff] %v8174_v54  ;;  %3522 = vrot.lane.b32.xlu0 %v8174_v54, %s4403_s18  ;;  %v1968_v46 = vmul.f32 %v8040_v58, %v9709_v62  ;;  %v3098_v17 = vadd.f32 %v3066_v38, %v3030_v37  ;;  %v2551_v14 = vmul.f32 %v8003_v15, %v9717_v13 }
 0x2f2   : > { %v2447_v41 = vadd.f32 %v2415_v27, %v2379_v60  ;;  %v2687_v33 = vmul.f32 %v8092_v22, %v6066_v39  ;;  %v2823_v62 = vmul.f32 %v9775_v50, %v8197_v4  ;;  %v2931_v32 = vmul.f32 %v6101_v48, %v7785_v35  ;;  %v9931_v60 = vld [vmem:[#allocation70_spill] sm:$0xff] }
 0x2f3   : > { %v2000_v12 = vadd.f32 %v1968_v46, %v1864_v19  ;;  %v2240_v55 = vmul.f32 %v9715_v1, %v8203_v42  ;;  %v3166_v38 = vadd.f32 %v3134_v0, %v3098_v17  ;;  %v2105_v61 = vmul.f32 %v9713_v6, %v8140_v8  ;;  %v9933_v17 = vld [vmem:[#allocation132_spill] sm:$0xff] }
 0x2f4   : > { %v2583_v29 = vadd.f32 %v2551_v14, %v2447_v41  ;;  %v2241_v51 = vmul.f32 %v9715_v1, %v1729_v43  ;;  %v2999_v36 = vmul.f32 %v9745_v34, %v7900_v18  ;;  %v3067_v37 = vmul.f32 %v9574_v57, %v8024_v59  ;;  %v8232_v43 = vpop.permute.xlu0 %3482 }
 0x2f5   : > { %v3135_v35 = vmul.f32 %v9750_v26, %v8132_v47  ;;  %v2136_v27 = vadd.f32 %v9931_v60, %v2000_v12  ;;  %v8227_v19 = vadd.f32 %v3202_v25, %v3166_v38  ;;  %v3203_v46 = vmul.f32 %v7731_v52, %v8211_v5  ;;  %v1730_v25 = vld [vmem:[#allocation2 + $0x1d2] sm:$0xff]  ;;  %v8242_v38 = vld [vmem:[#allocation2 + $0x1bb] sm:$0xff] }
 0x2f6   : > { %v2719_v0 = vadd.f32 %v2687_v33, %v2583_v29  ;;  %v2137_v41 = vadd.f32 %v2105_v61, %v9933_v17  ;;  %v2348_v54 = vmul.f32 %v9916_v21, %v9734_v44  ;;  %v2416_v45 = vmul.f32 %v9917_v53, %v9735_v24  ;;  %v8248_v61 = vpop.permute.xlu1 %3484  ;;  %v8256_v17 = vld [vmem:[#allocation2 + $0x1bc] sm:$0xff] }
 0x2f7   : > { %9932 = vst [vmem:[#allocation104_spill] sm:$0xff] %v8227_v19  ;;  %v2272_v14 = vadd.f32 %v2240_v55, %v2136_v27  ;;  %v2552_v12 = vmul.f32 %v8072_v30, %v9717_v13  ;;  %3524 = vrot.lane.b32.xlu1 %v8227_v19, %s4403_s18  ;;  %v2688_v29 = vmul.f32 %v8142_v11, %v6066_v39 }
 0x2f8   : > { %v2855_v33 = vadd.f32 %v2823_v62, %v2719_v0  ;;  %v2273_v55 = vadd.f32 %v2241_v51, %v2137_v41  ;;  %v2349_v21 = vmul.f32 %v9900_v16, %v9734_v44  ;;  %v2824_v13 = vmul.f32 %v9775_v50, %v8242_v38 }
 0x2f9   : > { %v2380_v60 = vadd.f32 %v2348_v54, %v2272_v14  ;;  %v2932_v27 = vmul.f32 %v6101_v48, %v7845_v7  ;;  %v2106_v62 = vmul.f32 %v9713_v6, %v8203_v42  ;;  %v2417_v51 = vmul.f32 %v8003_v15, %v9735_v24  ;;  %v2313_v7 = vld [vmem:[#allocation2 + $0x1cb] sm:$0xff] }
 0x2fa   : > { %v2963_v0 = vadd.f32 %v2931_v32, %v2855_v33  ;;  %v2381_v19 = vadd.f32 %v2349_v21, %v2273_v55  ;;  %v2242_v16 = vmul.f32 %v9715_v1, %v1730_v25  ;;  %v3000_v54 = vmul.f32 %v9745_v34, %v7961_v23  ;;  %v8270_v21 = vpop.permute.xlu0 %3315 }
 0x2fb   : > { %v2448_v41 = vadd.f32 %v2416_v45, %v2380_v60  ;;  %v3068_v14 = vmul.f32 %v9574_v57, %v8114_v56  ;;  %v2138_v31 = vadd.f32 %v2106_v62, %v9934_v40  ;;  %v3136_v32 = vmul.f32 %v9750_v26, %v8166_v9  ;;  %9935 = vst [vmem:[#allocation130_spill] sm:$0xff] %v8270_v21 }
 0x2fc   : > { %v3031_v6 = vadd.f32 %v2999_v36, %v2963_v0  ;;  %v2449_v33 = vadd.f32 %v2417_v51, %v2381_v19  ;;  %v2689_v55 = vmul.f32 %v6066_v39, %v8197_v4  ;;  %v8274_v45 = vmul.f32 %v7731_v52, %v8256_v17  ;;  %v9936_v36 = vld [vmem:[#allocation142_spill] sm:$0xff]  ;;  %v8282_v51 = vpop.permute.xlu1 %3317 }
 0x2fd   : > { %v2584_v1 = vadd.f32 %v2552_v12, %v2448_v41  ;;  %v2274_v25 = vadd.f32 %v2242_v16, %v2138_v31  ;;  %v2350_v60 = vmul.f32 %v9917_v53, %v9734_v44  ;;  %v2825_v0 = vmul.f32 %v9775_v50, %v2313_v7  ;;  %v2314_v41 = vld [vmem:[#allocation2 + $0x1d3] sm:$0xff] }
 0x2fe   : > { %v3099_v40 = vadd.f32 %v3067_v37, %v3031_v6  ;;  %v2585_v62 = vadd.f32 %v9936_v36, %v2449_v33  ;;  %v2933_v19 = vmul.f32 %v6101_v48, %v7900_v18  ;;  %v3001_v12 = vmul.f32 %v9745_v34, %v8024_v59  ;;  %v2897_v7 = vld [vmem:[#allocation2 + $0x1cc] sm:$0xff]  ;;  %v9938_v33 = vld [vmem:[#allocation24_spill] sm:$0xff] }
 0x2ff   : > { %v2720_v21 = vadd.f32 %v2688_v29, %v2584_v1  ;;  %v2382_v3 = vadd.f32 %v2350_v60, %v2274_v25  ;;  %v2418_v31 = vmul.f32 %v8072_v30, %v9735_v24  ;;  %v3069_v37 = vmul.f32 %v9574_v57, %v8132_v47  ;;  %v9937_v29 = vld [vmem:[#allocation14_spill] sm:$0xff]  ;;  %v4389_v59 = vld [vmem:[#allocation2 + $0x199] sm:$0xff] }
 0x300   : > { %v3167_v44 = vadd.f32 %v3135_v35, %v3099_v40  ;;  %v2721_v53 = vadd.f32 %v2689_v55, %v2585_v62  ;;  %v2690_v16 = vmul.f32 %v6066_v39, %v8242_v38  ;;  %v1317_v1 = vmul.f32 %v9938_v33, %v9937_v29  ;;  %v9939_v36 = vld [vmem:[#allocation16_spill] sm:$0xff]  ;;  %v9940_v55 = vld [vmem:[#allocation18_spill] sm:$0xff]  ;;  %v8300_v40 = vpop.permute.xlu0 %3319  ;;  %v9942_v62 = vld [vmem:[#allocation21_spill] sm:$0xff] }
 0x301   : > { %v2856_v18 = vadd.f32 %v2824_v13, %v2720_v21  ;;  %v2450_v6 = vadd.f32 %v2418_v31, %v2382_v3  ;;  %v1453_v25 = vmul.f32 %v4389_v59, %v9939_v36  ;;  %v2826_v35 = vmul.f32 %v9775_v50, %v2314_v41  ;;  %v9941_v13 = vld [vmem:[#allocation67_spill] sm:$0xff]  ;;  %v8312_v41 = vpop.permute.xlu1 %3321 }
 0x302   : > { %v8295_v60 = vadd.f32 %v3203_v46, %v3167_v44  ;;  %v2857_v24 = vadd.f32 %v2825_v0, %v2721_v53  ;;  %v1589_v47 = vmul.f32 %v8099_v28, %v9940_v55  ;;  %v1901_v31 = vmul.f32 %v7967_v20, %v9942_v62 }
 0x303   : > { %v2964_v39 = vadd.f32 %v2932_v27, %v2856_v18  ;;  %v2586_v21 = vadd.f32 %v9941_v13, %v2450_v6  ;;  %v1485_v3 = vadd.f32 %v1453_v25, %v1317_v1  ;;  %v3137_v0 = vmul.f32 %v9750_v26, %v8211_v5  ;;  %v4390_v18 = vld [vmem:[#allocation2 + $0x19a] sm:$0xff]  ;;  %v9944_v1 = vld [vmem:[#allocation26_spill] sm:$0xff] }
 0x304   : > { %3526 = vrot.lane.b32.xlu0 %v8295_v60, %s4403_s18  ;;  %v2965_v46 = vadd.f32 %v2933_v19, %v2857_v24  ;;  %v3205_v50 = vmul.f32 %v7731_v52, %v2897_v7  ;;  %v2934_v28 = vmul.f32 %v6101_v48, %v7961_v23  ;;  %v9943_v6 = vld [vmem:[#allocation23_spill] sm:$0xff]  ;;  %v3002_v19 = vmul.f32 %v9745_v34, %v8114_v56  ;;  %v9945_v7 = vld [vmem:[#allocation53_spill] sm:$0xff]  ;;  %v8328_v56 = vpop.permute.xlu0 %3486 }
 0x305   : > { %v3032_v27 = vadd.f32 %v3000_v54, %v2964_v39  ;;  %v2722_v44 = vadd.f32 %v2690_v16, %v2586_v21  ;;  %v1621_v53 = vadd.f32 %v1589_v47, %v1485_v3  ;;  %v2037_v20 = vmul.f32 %v4390_v18, %v9943_v6  ;;  %v4391_v24 = vld [vmem:[#allocation2 + $0x1a1] sm:$0xff] }
 0x306   : > { %v3033_v33 = vadd.f32 %v3001_v12, %v2965_v46  ;;  %v2173_v5 = vmul.f32 %v9944_v1, %v8140_v8  ;;  %v1318_v59 = vmul.f32 %v9945_v7, %v9937_v29  ;;  %v1454_v54 = vmul.f32 %v4391_v24, %v9939_v36  ;;  %v9946_v12 = vld [vmem:[#allocation30_spill] sm:$0xff]  ;;  %v9947_v36 = vld [vmem:[#allocation32_spill] sm:$0xff]  ;;  %v9952_v24 = vld [vmem:[#allocation29_spill] sm:$0xff] }
 0x307   : > { %v3100_v25 = vadd.f32 %v3068_v14, %v3032_v27  ;;  %v2858_v48 = vadd.f32 %v2826_v35, %v2722_v44  ;;  %v1933_v23 = vadd.f32 %v1901_v31, %v1621_v53  ;;  %v3070_v47 = vmul.f32 %v9574_v57, %v8166_v9  ;;  %v2898_v29 = vld [vmem:[#allocation2 + $0x1d4] sm:$0xff]  ;;  %v8336_v9 = vpop.permute.xlu1 %3488 }
 0x308   : > { %v3101_v16 = vadd.f32 %v3069_v37, %v3033_v33  ;;  %v2485_v39 = vmul.f32 %v8003_v15, %v9946_v12  ;;  %v1590_v34 = vmul.f32 %v8152_v49, %v9940_v55  ;;  %v1486_v13 = vadd.f32 %v1454_v54, %v1318_v59  ;;  %v8362_v44 = vpop.permute.xlu0 %3490  ;;  %v9950_v33 = vld [vmem:[#allocation101_spill] sm:$0xff]  ;;  %v9953_v54 = vld [vmem:[#allocation72_spill] sm:$0xff] }
 0x309   : > { %v3168_v8 = vadd.f32 %v3136_v32, %v3100_v25  ;;  %v2966_v14 = vadd.f32 %v2934_v28, %v2858_v48  ;;  %v2069_v35 = vadd.f32 %v2037_v20, %v1933_v23  ;;  %v3138_v37 = vmul.f32 %v9750_v26, %v8256_v17  ;;  %v4392_v26 = vld [vmem:[%s8783_s4 + $0x8] ss:$0 sm:$0xff]  ;;  %v9948_v28 = vld [vmem:[#allocation82_spill] sm:$0xff]  ;;  %v9951_v23 = vld [vmem:[#allocation68_spill] sm:$0xff] }
 0x30a   : > { %v3169_v21 = vadd.f32 %v3137_v0, %v3101_v16  ;;  %v2621_v57 = vmul.f32 %v8092_v22, %v9947_v36  ;;  %v1902_v15 = vmul.f32 %v8040_v58, %v9942_v62  ;;  %v1622_v3 = vadd.f32 %v1590_v34, %v1486_v13  ;;  %v4393_v17 = vld [vmem:[#allocation2 + $0x1a2] sm:$0xff]  ;;  %v9954_v16 = vld [vmem:[#allocation15_spill] sm:$0xff] }
 0x30b   : > { %v8339_v49 = vadd.f32 %v8274_v45, %v3168_v8  ;;  %v3034_v32 = vadd.f32 %v3002_v19, %v2966_v14  ;;  %v2205_v55 = vadd.f32 %v2173_v5, %v2069_v35  ;;  %v3206_v46 = vmul.f32 %v7731_v52, %v2898_v29  ;;  %v8352_v45 = vld [vmem:[%s8784_s5] ss:$0 sm:$0xff]  ;;  %v9957_v14 = vld [vmem:[#allocation42_spill] sm:$0xff] }
 0x30c   : > { %v8341_v31 = vadd.f32 %v3205_v50, %v3169_v21  ;;  %v2757_v22 = vmul.f32 %v4392_v26, %v8197_v4  ;;  %v2038_v58 = vmul.f32 %v4393_v17, %v9943_v6  ;;  %v1934_v0 = vadd.f32 %v1902_v15, %v1622_v3  ;;  %v9949_v4 = vld [vmem:[#allocation28_spill] sm:$0xff]  ;;  %v9958_v35 = vld [vmem:[#allocation10_spill] sm:$0xff]  ;;  %v9959_v21 = vld [vmem:[#allocation45_spill] sm:$0xff]  ;;  %v8400_v15 = vpop.permute.xlu0 %3323 }
 0x30d   : > { %3528 = vrot.lane.b32.xlu1 %v8339_v49, %s4403_s18  ;;  %v3102_v62 = vadd.f32 %v3070_v47, %v3034_v32  ;;  %v2517_v52 = vadd.f32 %v2485_v39, %v2205_v55  ;;  %v2174_v50 = vmul.f32 %v9944_v1, %v8203_v42  ;;  %v3368_v27 = vadd.f32 %v9949_v4, %v9948_v28  ;;  %v8370_v42 = vpop.permute.xlu1 %3492  ;;  %v9956_v39 = vld [vmem:[#allocation38_spill] sm:$0xff]  ;;  %v9961_v55 = vld [vmem:[#allocation87_spill] sm:$0xff]  ;;  %v9962_v3 = vld [vmem:[#allocation140_spill] sm:$0xff] }
 0x30e   : > { %3530 = vrot.lane.b32.xlu0 %v8341_v31, %s4403_s18  ;;  %v2070_v6 = vadd.f32 %v2038_v58, %v1934_v0  ;;  %v2486_v20 = vmul.f32 %v8072_v30, %v9946_v12  ;;  %v3406_v19 = vadd.f32 %v8352_v45, %v9950_v33  ;;  %v8368_v5 = vstv %s4259_s28  ;;  %v9955_v12 = vld [vmem:[#allocation40_spill] sm:$0xff]  ;;  %v9965_v17 = vld [vmem:[#allocation37_spill] sm:$0xff] }
 0x30f   : > { %v3170_v53 = vadd.f32 %v3138_v37, %v3102_v62  ;;  %v2653_v18 = vadd.f32 %v2621_v57, %v2517_v52  ;;  %v2622_v25 = vmul.f32 %v8142_v11, %v9947_v36  ;;  %v3407_v48 = vadd.f32 %v8352_v45, %v3368_v27  ;;  %v9960_v37 = vld [vmem:[#allocation9_spill] sm:$0xff]  ;;  %v8398_v57 = vld [vmem:[%s8786_s7] ss:$0 sm:$0xff]  ;;  %v9969_v27 = vld [vmem:[#allocation111_spill] sm:$0xff] }
 0x310   : > { %v2206_v59 = vadd.f32 %v2174_v50, %v2070_v6  ;;  %v3369_v30 = vadd.f32 %v9952_v24, %v9951_v23  ;;  %v3370_v47 = vadd.f32 %v9954_v16, %v9953_v54  ;;  %v3371_v34 = vadd.f32 %v9956_v39, %v9955_v12  ;;  %v9966_v58 = vld [vmem:[#allocation56_spill] sm:$0xff]  ;;  %v9967_v50 = vld [vmem:[#allocation51_spill] sm:$0xff]  ;;  %v9971_v23 = vld [vmem:[#allocation85_spill] sm:$0xff] }
 0x311   : > { %v8372_v1 = vadd.f32 %v3206_v46, %v3170_v53  ;;  %v8374_v7 = vadd.f32 %v2757_v22, %v2653_v18  ;;  %v2758_v11 = vmul.f32 %v4392_v26, %v8242_v38  ;;  %v3648_v29 = vmul.f32 %v8368_v5, %v3406_v19  ;;  %v9963_v38 = vld [vmem:[#allocation49_spill] sm:$0xff]  ;;  %v9968_v28 = vld [vmem:[#allocation100_spill] sm:$0xff]  ;;  %v8414_v6 = vpop.permute.xlu1 %3325  ;;  %v9972_v24 = vld [vmem:[#allocation46_spill] sm:$0xff] }
 0x312   : > { %v2518_v8 = vadd.f32 %v2486_v20, %v2206_v59  ;;  %v3372_v13 = vadd.f32 %v9958_v35, %v9957_v14  ;;  %v3373_v36 = vadd.f32 %v9960_v37, %v9959_v21  ;;  %v3374_v46 = vadd.f32 %v9962_v3, %v9961_v55  ;;  %v9964_v26 = vld [vmem:[#allocation73_spill] sm:$0xff]  ;;  %v9970_v53 = vld [vmem:[#allocation12_spill] sm:$0xff]  ;;  %v9973_v39 = vld [vmem:[#allocation39_spill] sm:$0xff]  ;;  %v8439_v55 = vpop.permute.xlu0 %3327 }
 0x313   : > { %3532 = vrot.lane.b32.xlu1 %v8372_v1, %s4403_s18  ;;  %3331 = vrot.lane.b32.xlu0 %v8374_v7, %s4403_s18  ;;  %v3375_v22 = vadd.f32 %v9964_v26, %v9963_v38  ;;  %v3566_v62 = vadd.f32 %v9966_v58, %v9965_v17  ;;  %v3649_v52 = vmul.f32 %v8368_v5, %v3407_v48  ;;  %v9975_v14 = vld [vmem:[#allocation84_spill] sm:$0xff]  ;;  %v9977_v37 = vld [vmem:[#allocation117_spill] sm:$0xff] }
 0x314   : > { %v2654_v32 = vadd.f32 %v2622_v25, %v2518_v8  ;;  %v3408_v0 = vadd.f32 %v8352_v45, %v3369_v30  ;;  %v3376_v4 = vadd.f32 %v9968_v28, %v9967_v50  ;;  %v3568_v18 = vadd.f32 %v9970_v53, %v9969_v27  ;;  %v9976_v35 = vld [vmem:[#allocation52_spill] sm:$0xff] }
 0x315   : > { %v3409_v20 = vadd.f32 %v8352_v45, %v3370_v47  ;;  %v3410_v33 = vadd.f32 %v8352_v45, %v3371_v34  ;;  %v3605_v59 = vadd.f32 %v8398_v57, %v3566_v62  ;;  %v3411_v25 = vadd.f32 %v8352_v45, %v3372_v13  ;;  %v9974_v34 = vld [vmem:[#allocation63_spill] sm:$0xff]  ;;  %v8451_v50 = vpop.permute.xlu1 %3329 }
 0x316   : > { %v8418_v19 = vadd.f32 %v2758_v11, %v2654_v32  ;;  %v3412_v48 = vadd.f32 %v8352_v45, %v3373_v36  ;;  %v3377_v30 = vadd.f32 %v9972_v24, %v9971_v23  ;;  %v3607_v54 = vadd.f32 %v8398_v57, %v3568_v18  ;;  %v9978_v36 = vld [vmem:[#allocation109_spill] sm:$0xff] }
 0x317   : > { %v3413_v16 = vadd.f32 %v8352_v45, %v3374_v46  ;;  %v3414_v47 = vadd.f32 %v8352_v45, %v3375_v22  ;;  %v3680_v12 = vmul.f32 %v8368_v5, %v3605_v59  ;;  %v3567_v8 = vadd.f32 %v9974_v34, %v9973_v39  ;;  %v9979_v59 = vld [vmem:[#allocation36_spill] sm:$0xff]  ;;  %v9981_v24 = vld [vmem:[#allocation81_spill] sm:$0xff] }
 0x318   : > { %3333 = vrot.lane.b32.xlu1 %v8418_v19, %s4403_s18  ;;  %v3415_v11 = vadd.f32 %v8352_v45, %v3376_v4  ;;  %v3378_v13 = vadd.f32 %v9976_v35, %v9975_v14  ;;  %v3682_v21 = vmul.f32 %v8368_v5, %v3607_v54  ;;  %v3569_v32 = vadd.f32 %v9978_v36, %v9977_v37  ;;  %v9982_v54 = vld [vmem:[#allocation105_spill] sm:$0xff] }
 0x319   : > { %v3650_v3 = vmul.f32 %v8368_v5, %v3408_v0  ;;  %v3651_v46 = vmul.f32 %v8368_v5, %v3409_v20  ;;  %v3652_v38 = vmul.f32 %v8368_v5, %v3410_v33  ;;  %v3606_v26 = vadd.f32 %v8398_v57, %v3567_v8  ;;  %v9984_v34 = vld [vmem:[#allocation125_spill] sm:$0xff] }
 0x31a   : > { %v3653_v22 = vmul.f32 %v8368_v5, %v3411_v25  ;;  %v8447_v17 = vmul.f32 %v8368_v5, %v3412_v48  ;;  %v3416_v58 = vadd.f32 %v8352_v45, %v3377_v30  ;;  %v3608_v62 = vadd.f32 %v8398_v57, %v3569_v32  ;;  %v9980_v25 = vld [vmem:[#allocation4_spill] sm:$0xff] }
 0x31b   : > { %v3655_v28 = vmul.f32 %v8368_v5, %v3413_v16  ;;  %v8455_v0 = vmul.f32 %v8368_v5, %v3414_v47  ;;  %v3712_v4 = vsub.f32 1.0, %v3680_v12  ;;  %v3681_v27 = vmul.f32 %v8368_v5, %v3606_v26  ;;  %v9983_v16 = vld [vmem:[#allocation61_spill] sm:$0xff]  ;;  %v9986_v26 = vld [vmem:[#allocation7_spill] sm:$0xff] }
 0x31c   : > { %v8459_v53 = vmul.f32 %v8368_v5, %v3415_v11  ;;  %v3417_v18 = vadd.f32 %v8352_v45, %v3378_v13  ;;  %v3714_v20 = vsub.f32 1.0, %v3682_v21  ;;  %v3683_v33 = vmul.f32 %v8368_v5, %v3608_v62  ;;  %v8473_v11 = vpop.permute.xlu0 %3494  ;;  %v9985_v21 = vld [vmem:[#allocation58_spill] sm:$0xff]  ;;  %v8481_v62 = vpop.permute.xlu1 %3496 }
 0x31d   : > { %v3379_v48 = vadd.f32 %v9980_v25, %v9979_v59  ;;  %v3713_v23 = vsub.f32 1.0, %v3681_v27  ;;  %v3570_v30 = vadd.f32 %v8187_v63, %v9981_v24  ;;  %v3380_v47 = vadd.f32 %v9983_v16, %v9982_v54  ;;  %v9988_v27 = vld [vmem:[#allocation144_spill] sm:$0xff]  ;;  %v9992_v24 = vld [vmem:[#allocation47_spill] sm:$0xff] }
 0x31e   : > { %v3715_v12 = vsub.f32 1.0, %v3683_v33  ;;  %v3851_v39 = vsel %vm3849_vm5, %v8181_v10, 0  ;;  %v3571_v8 = vadd.f32 %v8207_v2, %v9984_v34  ;;  %v3744_v35 = vadd.f32 %v3712_v4, %v3648_v29  ;;  %v9987_v2 = vld [vmem:[#allocation6_spill] sm:$0xff] }
 0x31f   : > { %v3609_v14 = vadd.f32 %v8398_v57, %v3570_v30  ;;  %v3745_v13 = vadd.f32 %v3713_v23, %v3649_v52  ;;  %4221 = vmatpush3.bf16.msra.mxu1 %v3851_v39  ;;  %v3572_v63 = vadd.f32 %v8232_v43, %v9985_v21  ;;  %v3746_v37 = vadd.f32 %v3714_v20, %v3650_v3  ;;  %v9989_v20 = vld [vmem:[#allocation8_spill] sm:$0xff]  ;;  %v9991_v23 = vld [vmem:[#allocation62_spill] sm:$0xff] }
 0x320   : > { %v3747_v36 = vadd.f32 %v3715_v12, %v3651_v46  ;;  %v3610_v32 = vadd.f32 %v8398_v57, %v3571_v8  ;;  %v3573_v10 = vadd.f32 %v8248_v61, %v9986_v26  ;;  %v3381_v33 = vadd.f32 %v9988_v27, %v9987_v2  ;;  %v9990_v61 = vld [vmem:[#allocation99_spill] sm:$0xff]  ;;  %v3499_v8 = vpop.permute.xlu0 %3498  ;;  %v9994_v21 = vld [vmem:[#allocation44_spill] sm:$0xff] }
 0x321   : > { %v3684_v59 = vmul.f32 %v8368_v5, %v3609_v14  ;;  %v3776_v29 = vpack.c.bf16 %v3745_v13, %v3744_v35  ;;  %v3611_v52 = vadd.f32 %v8398_v57, %v3572_v63  ;;  %v8488_v4 = vmul.f32 %v8368_v5, %v3416_v58  ;;  %v9993_v13 = vld [vmem:[#allocation74_spill] sm:$0xff] }
 0x322   : > { %v3685_v43 = vmul.f32 %v8368_v5, %v3610_v32  ;;  %v3777_v3 = vpack.c.bf16 %v3747_v36, %v3746_v37  ;;  %v3612_v46 = vadd.f32 %v8398_v57, %v3573_v10  ;;  %v3382_v25 = vadd.f32 %v9990_v61, %v9989_v20  ;;  %v3501_v10 = vpop.permute.xlu1 %3500  ;;  %v9998_v20 = vld [vmem:[#allocation91_spill] sm:$0xff] }
 0x323   : > { %v3383_v30 = vadd.f32 %v9992_v24, %v9991_v23  ;;  %v3716_v54 = vsub.f32 1.0, %v3684_v59  ;;  %4222 = vmatprep.mubr.msk.bf16.mxu1 %vm3800_vm6, %v3776_v29  ;;  %v3686_v16 = vmul.f32 %v8368_v5, %v3611_v52  ;;  %v3659_v12 = vmul.f32 %v8368_v5, %v3417_v18  ;;  %v9995_v18 = vld [vmem:[#allocation59_spill] sm:$0xff]  ;;  %v9996_v59 = vld [vmem:[#allocation98_spill] sm:$0xff] }
 0x324   : > { %v3418_v58 = vadd.f32 %v8352_v45, %v3379_v48  ;;  %v3717_v39 = vsub.f32 1.0, %v3685_v43  ;;  %4223 = vmatmul.mubr.msk.bf16.vlgmr.msra.gmra.mxu1 %vm3800_vm6, %v3777_v3  ;;  %v3687_v34 = vmul.f32 %v8368_v5, %v3612_v46  ;;  %v3419_v14 = vadd.f32 %v8352_v45, %v3380_v47  ;;  %v9997_v29 = vld [vmem:[#allocation50_spill] sm:$0xff]  ;;  %v3503_v24 = vpop.permute.xlu0 %3502 }
 0x325   : > { %v3420_v35 = vadd.f32 %v8352_v45, %v3381_v33  ;;  %v3384_v63 = vadd.f32 %v9994_v21, %v9993_v13  ;;  %v3718_v37 = vsub.f32 1.0, %v3686_v16  ;;  %v3748_v36 = vadd.f32 %v3716_v54, %v3652_v38 }
 0x326   : > { %v3749_v32 = vadd.f32 %v3717_v39, %v3653_v22  ;;  %v3719_v26 = vsub.f32 1.0, %v3687_v34  ;;  %v3574_v48 = vadd.f32 %v8328_v56, %v9995_v18  ;;  %v3421_v2 = vadd.f32 %v8352_v45, %v3382_v25  ;;  %v9999_v25 = vld [vmem:[#allocation121_spill] sm:$0xff]  ;;  %v3505_v21 = vpop.permute.xlu1 %3504 }
 0x327   : > { %v3422_v27 = vadd.f32 %v8352_v45, %v3383_v30  ;;  %v3575_v47 = vadd.f32 %v8336_v9, %v9996_v59  ;;  %v3576_v33 = vadd.f32 %v8362_v44, %v9997_v29  ;;  %v3750_v52 = vadd.f32 %v3718_v37, %v8447_v17  ;;  %v10000_v44 = vld [vmem:[#allocation75_spill] sm:$0xff]  ;;  %v10002_v37 = vld [vmem:[#allocation34_spill] sm:$0xff] }
 0x328   : > { %v3751_v43 = vadd.f32 %v3719_v26, %v3655_v28  ;;  %v3613_v38 = vadd.f32 %v8398_v57, %v3574_v48  ;;  %v3778_v22 = vpack.c.bf16 %v3749_v32, %v3748_v36  ;;  %v8517_v3 = vmul.f32 %v8368_v5, %v3418_v58  ;;  %v10003_v48 = vld [vmem:[#allocation119_spill] sm:$0xff] }
 0x329   : > { %v3614_v56 = vadd.f32 %v8398_v57, %v3575_v47  ;;  %v3615_v46 = vadd.f32 %v8398_v57, %v3576_v33  ;;  %v3577_v61 = vadd.f32 %v8370_v42, %v9998_v20  ;;  %v3423_v9 = vadd.f32 %v8352_v45, %v3384_v63  ;;  %v10001_v63 = vld [vmem:[#allocation114_spill] sm:$0xff]  ;;  %v10004_v59 = vld [vmem:[#allocation79_spill] sm:$0xff]  ;;  %v10005_v47 = vld [vmem:[#allocation108_spill] sm:$0xff] }
 0x32a   : > { %v3386_v23 = vadd.f32 %v10000_v44, %v9999_v25  ;;  %v3688_v17 = vmul.f32 %v8368_v5, %v3613_v38  ;;  %4226 = vmatprep.mubr.msk.bf16.mxu1 %vm3800_vm6, %v3778_v22  ;;  %v3779_v28 = vpack.c.bf16 %v3751_v43, %v3750_v52  ;;  %v3661_v30 = vmul.f32 %v8368_v5, %v3419_v14  ;;  %v10007_v38 = vld [vmem:[#allocation103_spill] sm:$0xff] }
 0x32b   : > { %v3689_v54 = vmul.f32 %v8368_v5, %v3614_v56  ;;  %v3690_v16 = vmul.f32 %v8368_v5, %v3615_v46  ;;  %v3616_v58 = vadd.f32 %v8398_v57, %v3577_v61  ;;  %v3662_v42 = vmul.f32 %v8368_v5, %v3420_v35  ;;  %v10008_v46 = vld [vmem:[#allocation66_spill] sm:$0xff]  ;;  %v10009_v61 = vld [vmem:[#allocation60_spill] sm:$0xff]  ;;  %v10010_v25 = vld [vmem:[#allocation27_spill] sm:$0xff] }
 0x32c   : > { %v3663_v39 = vmul.f32 %v8368_v5, %v3421_v2  ;;  %v3664_v34 = vmul.f32 %v8368_v5, %v3422_v27  ;;  %v3720_v13 = vsub.f32 1.0, %v3688_v17  ;;  %4227 = vmatmul.mubr.msk.bf16.gmra.mxu1 %vm3800_vm6, %v3779_v28  ;;  %v3385_v36 = vadd.f32 %v10002_v37, %v10001_v63  ;;  %v10006_v27 = vld [vmem:[#allocation76_spill] sm:$0xff]  ;;  %v10013_v63 = vld [vmem:[#allocation106_spill] sm:$0xff] }
 0x32d   : > { %v3721_v14 = vsub.f32 1.0, %v3689_v54  ;;  %v3722_v32 = vsub.f32 1.0, %v3690_v16  ;;  %v3691_v26 = vmul.f32 %v8368_v5, %v3616_v58  ;;  %v3665_v18 = vmul.f32 %v8368_v5, %v3423_v9  ;;  %v10011_v54 = vld [vmem:[#allocation43_spill] sm:$0xff]  ;;  %v10012_v58 = vld [vmem:[#allocation128_spill] sm:$0xff] }
 0x32e   : > { %v3387_v35 = vadd.f32 %v10004_v59, %v10003_v48  ;;  %v3425_v2 = vadd.f32 %v8352_v45, %v3386_v23  ;;  %v3388_v29 = vadd.f32 %v10006_v27, %v10005_v47  ;;  %v3752_v33 = vadd.f32 %v3720_v13, %v8455_v0  ;;  %v3507_v23 = vpop.permute.xlu0 %3506  ;;  %v10014_v47 = vld [vmem:[#allocation137_spill] sm:$0xff] }
 0x32f   : > { %v3753_v52 = vadd.f32 %v3721_v14, %v8459_v53  ;;  %v3723_v43 = vsub.f32 1.0, %v3691_v26  ;;  %v3578_v22 = vadd.f32 %v8473_v11, %v10007_v38  ;;  %v3754_v56 = vadd.f32 %v3722_v32, %v8488_v4 }
 0x330   : > { %v3579_v20 = vadd.f32 %v8481_v62, %v10008_v46  ;;  %v3580_v9 = vadd.f32 %v3499_v8, %v10009_v61  ;;  %v3581_v44 = vadd.f32 %v3501_v10, %v10010_v25  ;;  %v3582_v53 = vadd.f32 %v3503_v24, %v10011_v54  ;;  %v3509_v62 = vpop.permute.xlu1 %3508 }
 0x331   : > { %v3755_v17 = vadd.f32 %v3723_v43, %v3659_v12  ;;  %v3617_v28 = vadd.f32 %v8398_v57, %v3578_v22  ;;  %v3780_v0 = vpack.c.bf16 %v3753_v52, %v3752_v33  ;;  %v3583_v13 = vadd.f32 %v3505_v21, %v10012_v58 }
 0x332   : > { %v3618_v16 = vadd.f32 %v8398_v57, %v3579_v20  ;;  %v3619_v11 = vadd.f32 %v8398_v57, %v3580_v9  ;;  %v3620_v4 = vadd.f32 %v8398_v57, %v3581_v44  ;;  %v3621_v12 = vadd.f32 %v8398_v57, %v3582_v53  ;;  %v3511_v22 = vpop.permute.xlu0 %3510  ;;  %v10015_v53 = vld [vmem:[#allocation54_spill] sm:$0xff] }
 0x333   : > { %v3692_v8 = vmul.f32 %v8368_v5, %v3617_v28  ;;  %4230 = vmatprep.mubr.msk.bf16.mxu1 %vm3800_vm6, %v3780_v0  ;;  %v3781_v10 = vpack.c.bf16 %v3755_v17, %v3754_v56  ;;  %v3584_v37 = vadd.f32 %v3507_v23, %v10013_v63  ;;  %v3622_v26 = vadd.f32 %v8398_v57, %v3583_v13 }
 0x334   : > { %v3693_v24 = vmul.f32 %v8368_v5, %v3618_v16  ;;  %v3694_v14 = vmul.f32 %v8368_v5, %v3619_v11  ;;  %v3695_v32 = vmul.f32 %v8368_v5, %v3620_v4  ;;  %v3696_v21 = vmul.f32 %v8368_v5, %v3621_v12 }
 0x335   : > { %v3724_v48 = vsub.f32 1.0, %v3692_v8  ;;  %4231 = vmatmul.mubr.msk.bf16.gmra.mxu1 %vm3800_vm6, %v3781_v10  ;;  %v3623_v59 = vadd.f32 %v8398_v57, %v3584_v37  ;;  %v3585_v27 = vadd.f32 %v3509_v62, %v10014_v47  ;;  %v3697_v38 = vmul.f32 %v8368_v5, %v3622_v26  ;;  %v10017_v47 = vld [vmem:[#allocation20_spill] sm:$0xff] }
 0x336   : > { %v3725_v33 = vsub.f32 1.0, %v3693_v24  ;;  %v3726_v52 = vsub.f32 1.0, %v3694_v14  ;;  %v3727_v43 = vsub.f32 1.0, %v3695_v32  ;;  %v3728_v46 = vsub.f32 1.0, %v3696_v21 }
 0x337   : > { %v3756_v56 = vadd.f32 %v3724_v48, %v8517_v3  ;;  %v3698_v20 = vmul.f32 %v8368_v5, %v3623_v59  ;;  %v3624_v61 = vadd.f32 %v8398_v57, %v3585_v27  ;;  %v3729_v23 = vsub.f32 1.0, %v3697_v38  ;;  %v10016_v3 = vld [vmem:[#allocation112_spill] sm:$0xff] }
 0x338   : > { %v3757_v9 = vadd.f32 %v3725_v33, %v3661_v30  ;;  %v3758_v25 = vadd.f32 %v3726_v52, %v3662_v42  ;;  %v3759_v44 = vadd.f32 %v3727_v43, %v3663_v39  ;;  %v3513_v17 = vpop.permute.xlu1 %3512  ;;  %v3424_v28 = vadd.f32 %v8352_v45, %v3385_v36  ;;  %v10018_v52 = vld [vmem:[#allocation97_spill] sm:$0xff]  ;;  %v10019_v43 = vld [vmem:[#allocation130_spill] sm:$0xff] }
 0x339   : > { %v3760_v0 = vadd.f32 %v3728_v46, %v3664_v34  ;;  %v3699_v54 = vmul.f32 %v8368_v5, %v3624_v61  ;;  %v3586_v16 = vadd.f32 %v3511_v22, %v10015_v53  ;;  %v3761_v11 = vadd.f32 %v3729_v23, %v3665_v18  ;;  %v10020_v22 = vld [vmem:[#allocation13_spill] sm:$0xff]  ;;  %v10021_v61 = vld [vmem:[#allocation126_spill] sm:$0xff] }
 0x33a   : > { %v3782_v4 = vpack.c.bf16 %v3757_v9, %v3756_v56  ;;  %v3587_v58 = vadd.f32 %v3513_v17, %v10016_v3  ;;  %v3783_v13 = vpack.c.bf16 %v3759_v44, %v3758_v25  ;;  %v3667_v62 = vmul.f32 %v8368_v5, %v3425_v2  ;;  %v10022_v3 = vld [vmem:[#allocation48_spill] sm:$0xff] }
 0x33b   : > { %v3730_v8 = vsub.f32 1.0, %v3698_v20  ;;  %v3731_v30 = vsub.f32 1.0, %v3699_v54  ;;  %v3625_v42 = vadd.f32 %v8398_v57, %v3586_v16  ;;  %v3426_v39 = vadd.f32 %v8352_v45, %v3387_v35 }
 0x33c   : > { %v3427_v36 = vadd.f32 %v8352_v45, %v3388_v29  ;;  %4234 = vmatprep.mubr.msk.bf16.mxu1 %vm3800_vm6, %v3782_v4  ;;  %v3626_v34 = vadd.f32 %v8398_v57, %v3587_v58  ;;  %v3784_v10 = vpack.c.bf16 %v3761_v11, %v3760_v0  ;;  %v3666_v18 = vmul.f32 %v8368_v5, %v3424_v28 }
 0x33d   : > { %v3763_v12 = vadd.f32 %v3731_v30, %v3667_v62  ;;  %v3700_v63 = vmul.f32 %v8368_v5, %v3625_v42  ;;  %4235 = vmatmul.mubr.msk.bf16.gmra.mxu1 %vm3800_vm6, %v3783_v13  ;;  %v3668_v29 = vmul.f32 %v8368_v5, %v3426_v39  ;;  %v3389_v38 = vadd.f32 %v10019_v43, %v10018_v52  ;;  %v10023_v62 = vld [vmem:[#allocation5_spill] sm:$0xff]  ;;  %v10024_v30 = vld [vmem:[#allocation122_spill] sm:$0xff] }
 0x33e   : > { %v3701_v2 = vmul.f32 %v8368_v5, %v3626_v34  ;;  %4238 = vmatprep.mubr.msk.bf16.mxu1 %vm3800_vm6, %v3784_v10  ;;  %v3762_v37 = vadd.f32 %v3730_v8, %v3666_v18  ;;  %v3669_v24 = vmul.f32 %v8368_v5, %v3427_v36  ;;  %v3390_v56 = vadd.f32 %v8282_v51, %v10020_v22  ;;  %v10025_v10 = vld [vmem:[#allocation92_spill] sm:$0xff] }
 0x33f   : > { %v3732_v35 = vsub.f32 1.0, %v3700_v63  ;;  %v3428_v25 = vadd.f32 %v8352_v45, %v3389_v38  ;;  %v3391_v8 = vadd.f32 %v8300_v40, %v10023_v62  ;;  %v3392_v42 = vadd.f32 %v8312_v41, %v10024_v30  ;;  %v10027_v41 = vld [vmem:[#allocation77_spill] sm:$0xff] }
 0x340   : > { %v3733_v14 = vsub.f32 1.0, %v3701_v2  ;;  %v3785_v32 = vpack.c.bf16 %v3763_v12, %v3762_v37  ;;  %v3429_v44 = vadd.f32 %v8352_v45, %v3390_v56  ;;  %v10026_v12 = vld [vmem:[#allocation135_spill] sm:$0xff] }
 0x341   : > { %v3764_v26 = vadd.f32 %v3732_v35, %v3668_v29  ;;  %v3670_v0 = vmul.f32 %v8368_v5, %v3428_v25  ;;  %v3430_v2 = vadd.f32 %v8352_v45, %v3391_v8  ;;  %v3431_v37 = vadd.f32 %v8352_v45, %v3392_v42 }
 0x342   : > { %v3765_v48 = vadd.f32 %v3733_v14, %v3669_v24  ;;  %v3515_v21 = vpop.permute.xlu0 %3514  ;;  %v3671_v54 = vmul.f32 %v8368_v5, %v3429_v44  ;;  %v3393_v14 = vadd.f32 %v8400_v15, %v10027_v41 }
 0x343   : > { %v3588_v27 = vadd.f32 %v3515_v21, %v10017_v47  ;;  %v3673_v21 = vmul.f32 %v8368_v5, %v3431_v37 }
 0x344   : > { %v3786_v59 = vpack.c.bf16 %v3765_v48, %v3764_v26  ;;  %v3672_v48 = vmul.f32 %v8368_v5, %v3430_v2  ;;  %v3432_v22 = vadd.f32 %v8352_v45, %v3393_v14 }
 0x345   : > { %4239 = vmatmul.mubr.msk.bf16.gmra.mxu1 %vm3800_vm6, %v3785_v32  ;;  %v3627_v33 = vadd.f32 %v8398_v57, %v3588_v27  ;;  %v10028_v32 = vld [vmem:[#allocation129_spill] sm:$0xff] }
 0x346   : > { %4242 = vmatprep.mubr.msk.bf16.mxu1 %vm3800_vm6, %v3786_v59  ;;  %v3394_v26 = vadd.f32 %v8414_v6, %v10028_v32 }
 0x347   : > { %v3702_v20 = vmul.f32 %v8368_v5, %v3627_v33  ;;  %v10029_v33 = vld [vmem:[#allocation104_spill] sm:$0xff] }
 0x348   : > { %v3433_v56 = vadd.f32 %v8352_v45, %v3394_v26 }
 0x349   : > { %v3734_v17 = vsub.f32 1.0, %v3702_v20 }
 0x34b   : > { %v3766_v51 = vadd.f32 %v3734_v17, %v3670_v0 }
 0x34d   : > { %v3517_v46 = vpop.permute.xlu1 %3516 }
 0x34e   : > { %v3589_v9 = vadd.f32 %v3517_v46, %v10021_v61  ;;  %v3674_v61 = vmul.f32 %v8368_v5, %v3432_v22 }
 0x350   : > { %v3628_v23 = vadd.f32 %v8398_v57, %v3589_v9  ;;  %v3675_v9 = vmul.f32 %v8368_v5, %v3433_v56 }
 0x352   : > { %v3703_v28 = vmul.f32 %v8368_v5, %v3628_v23 }
 0x354   : > { %v3735_v53 = vsub.f32 1.0, %v3703_v28 }
 0x356   : > { %v3767_v16 = vadd.f32 %v3735_v53, %v3671_v54  ;;  %v10030_v53 = vld [vmem:[#allocation127_spill] sm:$0xff] }
 0x358   : > { %v3519_v11 = vpop.permute.xlu0 %3518  ;;  %v3787_v4 = vpack.c.bf16 %v3767_v16, %v3766_v51  ;;  %v3395_v51 = vadd.f32 %v8439_v55, %v10030_v53  ;;  %v10031_v16 = vld [vmem:[#allocation139_spill] sm:$0xff] }
 0x359   : > { %v3590_v58 = vadd.f32 %v3519_v11, %v10022_v3  ;;  %v3396_v11 = vadd.f32 %v8451_v50, %v10031_v16 }
 0x35a   : > { %4243 = vmatmul.mubr.msk.bf16.gmra.mxu1 %vm3800_vm6, %v3787_v4  ;;  %v3434_v62 = vadd.f32 %v8352_v45, %v3395_v51 }
 0x35b   : > { %v3629_v13 = vadd.f32 %v8398_v57, %v3590_v58  ;;  %v3435_v8 = vadd.f32 %v8352_v45, %v3396_v11 }
 0x35d   : > { %v3704_v34 = vmul.f32 %v8368_v5, %v3629_v13 }
 0x35f   : > { %v3736_v40 = vsub.f32 1.0, %v3704_v34  ;;  %v3677_v34 = vmul.f32 %v8368_v5, %v3435_v8 }
 0x361   : > { %v3768_v43 = vadd.f32 %v3736_v40, %v3672_v48 }
 0x362   : > { %v3521_v39 = vpop.permute.xlu1 %3520 }
 0x363   : > { %v3523_v36 = vpop.permute.xlu0 %3522  ;;  %v3591_v18 = vadd.f32 %v3521_v39, %v10025_v10  ;;  %v3676_v39 = vmul.f32 %v8368_v5, %v3434_v62 }
 0x364   : > { %v3592_v63 = vadd.f32 %v3523_v36, %v10026_v12 }
 0x365   : > { %v3630_v35 = vadd.f32 %v8398_v57, %v3591_v18 }
 0x366   : > { %v3631_v29 = vadd.f32 %v8398_v57, %v3592_v63 }
 0x367   : > { %v3705_v24 = vmul.f32 %v8368_v5, %v3630_v35 }
 0x368   : > { %v3706_v27 = vmul.f32 %v8368_v5, %v3631_v29 }
 0x369   : > { %v3737_v59 = vsub.f32 1.0, %v3705_v24  ;;  %v3525_v47 = vpop.permute.xlu1 %3524 }
 0x36a   : > { %v3593_v52 = vadd.f32 %v3525_v47, %v10029_v33  ;;  %v3738_v6 = vsub.f32 1.0, %v3706_v27 }
 0x36b   : > { %v3769_v38 = vadd.f32 %v3737_v59, %v3673_v21  ;;  %v8671_v59 = vld [vmem:[%s8788_s9] ss:$0 sm:$0xff] }
 0x36c   : > { %v3632_v15 = vadd.f32 %v8398_v57, %v3593_v52  ;;  %v3770_v44 = vadd.f32 %v3738_v6, %v3674_v61 }
 0x36d   : > { %v3788_v46 = vpack.c.bf16 %v3769_v38, %v3768_v43 }
 0x36e   : > { %v3707_v20 = vmul.f32 %v8368_v5, %v3632_v15 }
 0x36f   : > { %4246 = vmatprep.mubr.msk.bf16.mxu1 %vm3800_vm6, %v3788_v46 }
 0x370   : > { %v3739_v25 = vsub.f32 1.0, %v3707_v20 }
 0x372   : > { %v3771_v23 = vadd.f32 %v3739_v25, %v3675_v9 }
 0x374   : > { %v3789_v17 = vpack.c.bf16 %v3771_v23, %v3770_v44 }
 0x376   : > { %v3527_v28 = vpop.permute.xlu0 %3526  ;;  %4247 = vmatmul.mubr.msk.bf16.gmra.mxu1 %vm3800_vm6, %v3789_v17 }
 0x377   : > { %v3594_v0 = vadd.f32 %v3527_v28, %v8295_v60 }
 0x379   : > { %v3633_v54 = vadd.f32 %v8398_v57, %v3594_v0 }
 0x37b   : > { %v3708_v3 = vmul.f32 %v8368_v5, %v3633_v54 }
 0x37d   : > { %v3740_v30 = vsub.f32 1.0, %v3708_v3 }
 0x37f   : > { %v3529_v4 = vpop.permute.xlu1 %3528  ;;  %v3772_v12 = vadd.f32 %v3740_v30, %v3676_v39 }
 0x380   : > { %v3595_v58 = vadd.f32 %v3529_v4, %v8339_v49  ;;  %v3531_v13 = vpop.permute.xlu0 %3530 }
 0x381   : > { %v3596_v55 = vadd.f32 %v3531_v13, %v8341_v31 }
 0x382   : > { %v3634_v60 = vadd.f32 %v8398_v57, %v3595_v58 }
 0x383   : > { %v3635_v2 = vadd.f32 %v8398_v57, %v3596_v55 }
 0x384   : > { %v3709_v42 = vmul.f32 %v8368_v5, %v3634_v60 }
 0x385   : > { %v3533_v50 = vpop.permute.xlu1 %3532  ;;  %v3332_v36 = vpop.permute.xlu0 %3331  ;;  %v3710_v40 = vmul.f32 %v8368_v5, %v3635_v2 }
 0x386   : > { %v3741_v10 = vsub.f32 1.0, %v3709_v42  ;;  %v3597_v49 = vadd.f32 %v3533_v50, %v8372_v1  ;;  %v3397_v18 = vadd.f32 %v3332_v36, %v8374_v7 }
 0x387   : > { %v3742_v14 = vsub.f32 1.0, %v3710_v40 }
 0x388   : > { %v3773_v63 = vadd.f32 %v3741_v10, %v3677_v34  ;;  %v3636_v37 = vadd.f32 %v8398_v57, %v3597_v49  ;;  %v3436_v35 = vadd.f32 %v8352_v45, %v3397_v18 }
 0x38a   : > { %v3790_v31 = vpack.c.bf16 %v3773_v63, %v3772_v12  ;;  %v3334_v29 = vpop.permute.xlu1 %3333  ;;  %v3711_v24 = vmul.f32 %v8368_v5, %v3636_v37  ;;  %v3678_v1 = vmul.f32 %v8368_v5, %v3436_v35 }
 0x38b   : > { %v3398_v41 = vadd.f32 %v3334_v29, %v8418_v19 }
 0x38c   : > { %4250 = vmatprep.mubr.msk.bf16.mxu1 %vm3800_vm6, %v3790_v31  ;;  %v3743_v32 = vsub.f32 1.0, %v3711_v24  ;;  %v3774_v26 = vadd.f32 %v3742_v14, %v3678_v1 }
 0x38d   : > { %v3437_v7 = vadd.f32 %v8352_v45, %v3398_v41 }
 0x38f   : > { %v3679_v57 = vmul.f32 %v8368_v5, %v3437_v7 }
 0x391   : > { %v3775_v48 = vadd.f32 %v3743_v32, %v3679_v57 }
 0x393   : > { %v3791_v21 = vpack.c.bf16 %v3775_v48, %v3774_v26 }
 0x395   : > { %4251 = vmatmul.mubr.msk.bf16.gmra.mxu1 %vm3800_vm6, %v3791_v21 }
 0x3e4   : > { %v4224_v45 = vpop.f32.mrf.mxu1 }
 0x3e5   : > { %v3896_v5 = vadd.f32 %v4224_v45, %v8671_v59 }
 0x3e6   : > { %v3887_v19 = vpop.f32.mrf.mxu1 }
 0x3e7   : > { %4016 = vst.msk [vmem:[%s8678_s14 + $0x10] sm:$0xff] %vm418_vm1, %v3896_v5  ;;  %v3888_v47 = vadd.f32 %v8671_v59, %v3887_v19 }
 0x3e8   : > { %v4225_v27 = vpop.f32.mrf.mxu1 }
 0x3e9   : > { %4014 = vst.msk [vmem:[%s8678_s14] sm:$0xff] %vm418_vm1, %v3888_v47  ;;  %v3899_v33 = vadd.f32 %v4225_v27, %v8671_v59 }
 0x3ea   : > { %v3890_v52 = vpop.f32.mrf.mxu1 }
 0x3eb   : > { %4017 = vst.msk [vmem:[%s8678_s14 + $0x18] sm:$0xff] %vm418_vm1, %v3899_v33  ;;  %v3891_v43 = vadd.f32 %v8671_v59, %v3890_v52 }
 0x3ec   : > { %v4228_v38 = vpop.f32.mrf.mxu1 }
 0x3ed   : > { %4015 = vst.msk [vmem:[%s8678_s14 + $0x8] sm:$0xff] %vm418_vm1, %v3891_v43  ;;  %v3912_v22 = vadd.f32 %v4228_v38, %v8671_v59 }
 0x3ee   : > { %v3903_v56 = vpop.f32.mrf.mxu1 }
 0x3ef   : > { %4020 = vst.msk [vmem:[%s8678_s14 + $0x30] sm:$0xff] %vm418_vm1, %v3912_v22  ;;  %v3904_v15 = vadd.f32 %v8671_v59, %v3903_v56 }
 0x3f0   : > { %v4229_v46 = vpop.f32.mrf.mxu1 }
 0x3f1   : > { %4018 = vst.msk [vmem:[%s8678_s14 + $0x20] sm:$0xff] %vm418_vm1, %v3904_v15  ;;  %v3915_v6 = vadd.f32 %v4229_v46, %v8671_v59 }
 0x3f2   : > { %v3906_v20 = vpop.f32.mrf.mxu1 }
 0x3f3   : > { %4021 = vst.msk [vmem:[%s8678_s14 + $0x38] sm:$0xff] %vm418_vm1, %v3915_v6  ;;  %v3907_v61 = vadd.f32 %v8671_v59, %v3906_v20 }
 0x3f5   : > { %4019 = vst.msk [vmem:[%s8678_s14 + $0x28] sm:$0xff] %vm418_vm1, %v3907_v61  ;;  %v4232_v9 = vpop.f32.mrf.mxu1 }
 0x3f6   : > { %v3928_v25 = vadd.f32 %v4232_v9, %v8671_v59 }
 0x3f7   : > { %v3919_v44 = vpop.f32.mrf.mxu1 }
 0x3f8   : > { %4024 = vst.msk [vmem:[%s8678_s14 + $0x50] sm:$0xff] %vm418_vm1, %v3928_v25  ;;  %v3920_v23 = vadd.f32 %v8671_v59, %v3919_v44 }
 0x3f9   : > { %v4233_v17 = vpop.f32.mrf.mxu1 }
 0x3fa   : > { %4022 = vst.msk [vmem:[%s8678_s14 + $0x40] sm:$0xff] %vm418_vm1, %v3920_v23  ;;  %v3931_v28 = vadd.f32 %v4233_v17, %v8671_v59 }
 0x3fb   : > { %v3922_v0 = vpop.f32.mrf.mxu1 }
 0x3fc   : > { %4025 = vst.msk [vmem:[%s8678_s14 + $0x58] sm:$0xff] %vm418_vm1, %v3931_v28  ;;  %v3923_v54 = vadd.f32 %v8671_v59, %v3922_v0 }
 0x3fd   : > { %v4236_v53 = vpop.f32.mrf.mxu1 }
 0x3fe   : > { %4023 = vst.msk [vmem:[%s8678_s14 + $0x48] sm:$0xff] %vm418_vm1, %v3923_v54  ;;  %v3944_v51 = vadd.f32 %v4236_v53, %v8671_v59 }
 0x3ff   : > { %v3935_v16 = vpop.f32.mrf.mxu1 }
 0x400   : > { %4028 = vst.msk [vmem:[%s8678_s14 + $0x70] sm:$0xff] %vm418_vm1, %v3944_v51  ;;  %v3936_v11 = vadd.f32 %v8671_v59, %v3935_v16 }
 0x401   : > { %v4237_v4 = vpop.f32.mrf.mxu1 }
 0x402   : > { %4026 = vst.msk [vmem:[%s8678_s14 + $0x60] sm:$0xff] %vm418_vm1, %v3936_v11  ;;  %v3947_v3 = vadd.f32 %v4237_v4, %v8671_v59 }
 0x403   : > { %v3938_v58 = vpop.f32.mrf.mxu1 }
 0x404   : > { %4029 = vst.msk [vmem:[%s8678_s14 + $0x78] sm:$0xff] %vm418_vm1, %v3947_v3  ;;  %v3939_v13 = vadd.f32 %v8671_v59, %v3938_v58 }
 0x405   : > { %v4240_v62 = vpop.f32.mrf.mxu1 }
 0x406   : > { %4027 = vst.msk [vmem:[%s8678_s14 + $0x68] sm:$0xff] %vm418_vm1, %v3939_v13  ;;  %v3960_v8 = vadd.f32 %v4240_v62, %v8671_v59 }
 0x407   : > { %v3951_v60 = vpop.f32.mrf.mxu1 }
 0x408   : > { %4032 = vst.msk [vmem:[%s8678_s14 + $0x90] sm:$0xff] %vm418_vm1, %v3960_v8  ;;  %v3952_v30 = vadd.f32 %v8671_v59, %v3951_v60 }
 0x409   : > { %v4241_v42 = vpop.f32.mrf.mxu1 }
 0x40a   : > { %4030 = vst.msk [vmem:[%s8678_s14 + $0x80] sm:$0xff] %vm418_vm1, %v3952_v30  ;;  %v3963_v55 = vadd.f32 %v4241_v42, %v8671_v59 }
 0x40b   : > { %v3954_v39 = vpop.f32.mrf.mxu1 }
 0x40c   : > { %4033 = vst.msk [vmem:[%s8678_s14 + $0x98] sm:$0xff] %vm418_vm1, %v3963_v55  ;;  %v3955_v50 = vadd.f32 %v8671_v59, %v3954_v39 }
 0x40e   : > { %4031 = vst.msk [vmem:[%s8678_s14 + $0x88] sm:$0xff] %vm418_vm1, %v3955_v50 }
 0x41a   : > { %v4244_v36 = vpop.f32.mrf.mxu1 }
 0x41b   : > { %v3976_v34 = vadd.f32 %v4244_v36, %v8671_v59 }
 0x41c   : > { %v3967_v10 = vpop.f32.mrf.mxu1 }
 0x41d   : > { %4036 = vst.msk [vmem:[%s8678_s14 + $0xb0] sm:$0xff] %vm418_vm1, %v3976_v34  ;;  %v3968_v49 = vadd.f32 %v8671_v59, %v3967_v10 }
 0x41e   : > { %v4245_v18 = vpop.f32.mrf.mxu1 }
 0x41f   : > { %4034 = vst.msk [vmem:[%s8678_s14 + $0xa0] sm:$0xff] %vm418_vm1, %v3968_v49  ;;  %v3979_v12 = vadd.f32 %v4245_v18, %v8671_v59 }
 0x420   : > { %v3970_v63 = vpop.f32.mrf.mxu1 }
 0x421   : > { %4037 = vst.msk [vmem:[%s8678_s14 + $0xb8] sm:$0xff] %vm418_vm1, %v3979_v12  ;;  %v3971_v2 = vadd.f32 %v8671_v59, %v3970_v63 }
 0x423   : > { %4035 = vst.msk [vmem:[%s8678_s14 + $0xa8] sm:$0xff] %vm418_vm1, %v3971_v2 }
 0x436   : > { %v4248_v37 = vpop.f32.mrf.mxu1 }
 0x437   : > { %v3992_v35 = vadd.f32 %v4248_v37, %v8671_v59 }
 0x438   : > { %v3983_v31 = vpop.f32.mrf.mxu1 }
 0x439   : > { %4040 = vst.msk [vmem:[%s8678_s14 + $0xd0] sm:$0xff] %vm418_vm1, %v3992_v35  ;;  %v3984_v29 = vadd.f32 %v8671_v59, %v3983_v31 }
 0x43a   : > { %v4249_v40 = vpop.f32.mrf.mxu1 }
 0x43b   : > { %4038 = vst.msk [vmem:[%s8678_s14 + $0xc0] sm:$0xff] %vm418_vm1, %v3984_v29  ;;  %v3995_v24 = vadd.f32 %v4249_v40, %v8671_v59 }
 0x43c   : > { %v3986_v41 = vpop.f32.mrf.mxu1 }
 0x43d   : > { %4041 = vst.msk [vmem:[%s8678_s14 + $0xd8] sm:$0xff] %vm418_vm1, %v3995_v24  ;;  %v3987_v1 = vadd.f32 %v8671_v59, %v3986_v41 }
 0x43f   : > { %4039 = vst.msk [vmem:[%s8678_s14 + $0xc8] sm:$0xff] %vm418_vm1, %v3987_v1 }
 0x455   : > { %v4252_v7 = vpop.f32.mrf.mxu1 }
 0x456   : > { %v4008_v14 = vadd.f32 %v4252_v7, %v8671_v59 }
 0x457   : > { %v3999_v32 = vpop.f32.mrf.mxu1 }
 0x458   : > { %4044 = vst.msk [vmem:[%s8678_s14 + $0xf0] sm:$0xff] %vm418_vm1, %v4008_v14  ;;  %v4000_v57 = vadd.f32 %v8671_v59, %v3999_v32 }
 0x459   : > { %v4253_v26 = vpop.f32.mrf.mxu1 }
 0x45a   : > { %4042 = vst.msk [vmem:[%s8678_s14 + $0xe0] sm:$0xff] %vm418_vm1, %v4000_v57  ;;  %v4011_v48 = vadd.f32 %v4253_v26, %v8671_v59 }
 0x45b   : > { %v4002_v21 = vpop.f32.mrf.mxu1 }
 0x45c   : > { %4045 = vst.msk [vmem:[%s8678_s14 + $0xf8] sm:$0xff] %vm418_vm1, %v4011_v48  ;;  %v4003_v45 = vadd.f32 %v8671_v59, %v4002_v21 }
 0x45e   : > { %4043 = vst.msk [vmem:[%s8678_s14 + $0xe8] sm:$0xff] %vm418_vm1, %v4003_v45 }
 0x45f PF: > { %s21_s15 = sadd.s32 1, %s4400_s15  }
 0x460   : > { %p18_p4 = scmp.ge.s32.totalorder %s21_s15, 4  }
 0x462   :  { %20 = sbr.rel (!%p18_p4) target bundleno = 2 (0x2), region = 92 }

</bundles_post_ra>
